<compile_context>
chip_gen: v7x
topology: tpu7x:2x2x1
jax: 0.10.0
libtpu: 0.0.40
codegen_flags: <defaults>
</compile_context>

<pallas_src>
import numpy as np
import jax
import jax.numpy as jnp
from jax.experimental import pallas as pl
from jax.experimental.pallas import tpu as pltpu

# Dimensions fixed by the module.
ENCODER_DIM = 768
ATTENTION_DIM = 512
DECODER_DIM = 512
EMBED_DIM = 512  # use_glove=False, use_bert=False


def _round_up(x, m):
    return (x + m - 1) // m * m


def init_params(key, vocab_size):
    ks = jax.random.split(key, 20)

    def uni(k, shape, scale):
        return jax.random.uniform(k, shape, jnp.float32, minval=-scale, maxval=scale)

    D, A, H, E = ENCODER_DIM, ATTENTION_DIM, DECODER_DIM, EMBED_DIM
    inv = lambda n: 1.0 / float(np.sqrt(n))
    p = {}
    p["embedding"] = uni(ks[0], (vocab_size, E), 0.1)
    # NOTE: enc_att declared as nn.Linear(1024, 512) in __init__ but fed 768-d features.
    p["W_enc"] = uni(ks[1], (D, A), inv(D)); p["b_enc"] = uni(ks[2], (1, A), inv(D))
    p["W_dec"] = uni(ks[3], (H, A), inv(H)); p["b_dec"] = uni(ks[4], (1, A), inv(H))
    p["w_att"] = uni(ks[5], (1, A), inv(A)); p["b_att"] = uni(ks[6], (1, 1), inv(A))
    p["W_h"] = uni(ks[7], (D, H), inv(D));   p["b_h"] = uni(ks[8], (1, H), inv(D))
    p["W_c"] = uni(ks[9], (D, H), inv(D));   p["b_c"] = uni(ks[10], (1, H), inv(D))
    p["W_fb"] = uni(ks[11], (H, D), inv(H)); p["b_fb"] = uni(ks[12], (1, D), inv(H))
    p["W_ih"] = uni(ks[13], (E + D, 4 * H), inv(H)); p["b_ih"] = uni(ks[14], (1, 4 * H), inv(H))
    p["W_hh"] = uni(ks[15], (H, 4 * H), inv(H));     p["b_hh"] = uni(ks[16], (1, 4 * H), inv(H))
    p["W_fc"] = uni(ks[17], (H, vocab_size), 0.1)
    p["b_fc"] = jnp.zeros((1, vocab_size), jnp.float32)
    return p


def _chip_config():
    """(num_tensorcores, per-core VMEM capacity bytes) with conservative fallbacks."""
    n_tc, vmem_cap = 1, 128 << 20
    try:
        info = pltpu.get_tpu_info()
        cap = getattr(info, "vmem_capacity_bytes", None)
        if cap:
            vmem_cap = int(cap)
    except Exception:
        pass
    try:
        kind = jax.devices()[0].device_kind.lower()
        if "7" in kind:                      # v7x: 2 TensorCores / chip, 64 MiB VMEM per TC
            n_tc = 2
            vmem_cap = min(vmem_cap, 64 << 20)
    except Exception:
        pass
    return n_tc, vmem_cap


def make_kernel(BH, P, P_pad, D, H, A):
    def kernel(bt_ref,                                  # SMEM (T,) int32: batch_size_t per step
               enc_ref, hc0_ref, embg_ref,
               Wenc_ref, benc_ref,                      # enc projection (b_dec folded into benc)
               Wdec_ref, watt_ref,
               Wfb_ref, bfb_ref,
               Wg_hbm, Wfc_hbm, bfc_ref,                # big bf16 weights live in HBM
               pred_ref, alpha_ref,
               h_sc, c_sc, encatt_sc, wg_sc, wfc_sc, dma_sem):
        b = pl.program_id(0)                            # batch block (parallel axis)
        t = pl.program_id(1)                            # time step (recurrent axis)

        # ---- one-time work per batch block (t == 0) ----
        @pl.when(t == 0)
        def _init():
            # Start the one-time weight staging DMAs (bf16); waits are deferred
            # until just before first use so step-0 compute hides the latency.
            pltpu.make_async_copy(Wg_hbm, wg_sc, dma_sem.at[0]).start()
            pltpu.make_async_copy(Wfc_hbm, wfc_sc, dma_sem.at[1]).start()
            # h0/c0 precomputed in the wrapper (hoisted mean + init matmul).
            h_sc[...] = hc0_ref[0, :, :H]
            c_sc[...] = hc0_ref[0, :, H:]
            # Hoisted (loop-invariant) encoder projection: enc @ W_enc + (b_enc + b_dec).
            enc_flat = enc_ref[...].reshape(BH * P, D)
            encatt_sc[...] = (
                jnp.dot(enc_flat, Wenc_ref[...], preferred_element_type=jnp.float32)
                + benc_ref[...]).reshape(BH, P, A)

        h = h_sc[...]                                   # (BH, H)
        c = c_sc[...]                                   # (BH, H)
        h16 = h.astype(jnp.bfloat16)

        # ---- additive attention (b_att dropped: softmax is shift-invariant) ----
        dec_att = jnp.dot(h16, Wdec_ref[...], preferred_element_type=jnp.float32)  # (BH, A)
        act = jnp.maximum(encatt_sc[...] + dec_att[:, None, :], 0.0)               # relu, (BH, P, A)
        att = jnp.sum(act * watt_ref[...][None, :, :], axis=-1)                    # (BH, P)
        att_max = jnp.max(att, axis=1, keepdims=True)
        e = jnp.exp(att - att_max)
        alpha = e / jnp.sum(e, axis=1, keepdims=True)                              # softmax over pixels

        # Attention-weighted encoding as a batched (1,P)x(P,D) MXU matmul; the
        # (BH,P,A) relu region above already binds the VPU, so keep this off it.
        awe = jax.lax.dot_general(
            alpha.astype(jnp.bfloat16)[:, None, :], enc_ref[...],
            dimension_numbers=(((2,), (1,)), ((0,), (0,))),
            preferred_element_type=jnp.float32)[:, 0, :]                           # (BH, D)
        gate = jax.nn.sigmoid(
            jnp.dot(h16, Wfb_ref[...], preferred_element_type=jnp.float32) + bfb_ref[...])
        awe = gate * awe

        @pl.when(t == 0)
        def _wait_gate_weights():
            pltpu.make_async_copy(Wg_hbm, wg_sc, dma_sem.at[0]).wait()

        # ---- LSTM gates: emb part precomputed in wrapper; K-split awe/h (no concat) ----
        gates = (embg_ref[0]
                 + jnp.dot(awe.astype(jnp.bfloat16), wg_sc[:D, :],
                           preferred_element_type=jnp.float32)
                 + jnp.dot(h16, wg_sc[D:, :],
                           preferred_element_type=jnp.float32))
        i_g = jax.nn.sigmoid(gates[:, 0:H])
        f_g = jax.nn.sigmoid(gates[:, H:2 * H])
        g_g = jnp.tanh(gates[:, 2 * H:3 * H])
        o_g = jax.nn.sigmoid(gates[:, 3 * H:4 * H])
        c_new = f_g * c + i_g * g_g
        h_new = o_g * jnp.tanh(c_new)

        @pl.when(t == 0)
        def _wait_fc_weights():
            pltpu.make_async_copy(Wfc_hbm, wfc_sc, dma_sem.at[1]).wait()

        # TODO(synk): train-mode nn.Dropout(p=0.5) RNG not reproducible; eval-mode identity used.
        preds = (jnp.dot(h_new.astype(jnp.bfloat16), wfc_sc[...],
                         preferred_element_type=jnp.float32) + bfc_ref[...])

        # predictions[:batch_size_t, t] = preds; rows >= batch_size_t stay zero
        # (assumes captions sorted by decreasing length, as the module's pipeline does).
        bt = bt_ref[t]
        rows = b * BH + jax.lax.broadcasted_iota(jnp.int32, (BH, 1), 0)
        wm = rows < bt
        pred_ref[0] = jnp.where(wm, preds, 0.0)
        alpha_m = jnp.where(wm, alpha, 0.0)
        if P_pad > P:
            alpha_m = jnp.concatenate(
                [alpha_m, jnp.zeros((BH, P_pad - P), jnp.float32)], axis=1)
        alpha_ref[0] = alpha_m

        h_sc[...] = h_new
        c_sc[...] = c_new

    return kernel


def decoder_forward(params, encoder_out, encoded_captions, caption_lengths):
    B = encoder_out.shape[0]
    D = encoder_out.shape[-1]
    enc = encoder_out.reshape(B, -1, D).astype(jnp.float32)          # (B, P, D)
    P = enc.shape[1]
    dec_len = [int(l) - 1 for l in caption_lengths]
    T = max(dec_len)
    E, H, A = EMBED_DIM, DECODER_DIM, ATTENTION_DIM
    V = params["W_fc"].shape[1]
    V_pad = _round_up(V, 128)                                        # lane-dense prediction stores
    P_pad = _round_up(P, 128)                                        # lane-dense alpha stores

    # Batch split only on multi-TensorCore chips (v7x); NB=1 keeps MXU M as large
    # as possible and avoids a second weight stage / projection on v5e/v6e.
    n_tc, vmem_cap = _chip_config()
    NB = 2 if (n_tc >= 2 and B % 2 == 0 and B >= 2) else 1
    BH = B // NB

    w = params
    bf16 = jnp.bfloat16

    # ---- wrapper-side (loop-invariant) fusion / hoisting ----
    avg = enc.mean(axis=1)                                           # (B, D)
    hc0 = jnp.concatenate([avg @ w["W_h"] + w["b_h"],
                           avg @ w["W_c"] + w["b_c"]], axis=1)       # (B, 2H)
    hc0 = hc0.reshape(NB, BH, 2 * H)
    b_enca = w["b_enc"] + w["b_dec"]                                 # fold b_dec into projection bias
    # Embedding contribution to the LSTM gates (+ fused biases): one big matmul.
    embeddings = jnp.take(w["embedding"], encoded_captions, axis=0)  # (B, seq, E)
    emb_g = (embeddings[:, :T, :].reshape(B * T, E) @ w["W_ih"][:E]
             + w["b_ih"] + w["b_hh"]).reshape(NB, BH, T * 4 * H)     # layout-preserving reshapes
    # Remaining gate weight (awe and h parts) and fc weight, bf16, staged once per block.
    Wg16 = jnp.concatenate([w["W_ih"][E:], w["W_hh"]], axis=0).astype(bf16)  # (D+H, 4H)
    Wfc16 = jnp.zeros((H, V_pad), bf16).at[:, :V].set(w["W_fc"].astype(bf16))
    b_fc_pad = jnp.zeros((1, V_pad), jnp.float32).at[:, :V].set(w["b_fc"])
    Wenc16 = w["W_enc"].astype(bf16)
    Wdec16 = w["W_dec"].astype(bf16)
    Wfb16 = w["W_fb"].astype(bf16)
    enc16 = enc.astype(bf16)
    # b_att is not passed: softmax(att + const) == softmax(att) (exact).

    bts = jnp.asarray([sum(1 for l in dec_len if l > t) for t in range(T)],
                      dtype=jnp.int32)

    kernel = make_kernel(BH, P, P_pad, D, H, A)

    def cspec(shape):
        n = len(shape)
        return pl.BlockSpec(shape, lambda b, t, bts, n=n: (0,) * n)

    in_specs = [
        pl.BlockSpec((BH, P, D), lambda b, t, bts: (b, 0, 0)),            # enc (bf16, per block)
        pl.BlockSpec((1, BH, 2 * H), lambda b, t, bts: (b, 0, 0)),        # h0|c0
        pl.BlockSpec((1, BH, 4 * H), lambda b, t, bts: (b, 0, t)),        # emb gate part @ step t
        cspec(Wenc16.shape), cspec(b_enca.shape),
        cspec(Wdec16.shape), cspec(w["w_att"].shape),
        cspec(Wfb16.shape), cspec(w["b_fb"].shape),
        pl.BlockSpec(memory_space=pl.ANY),                                # gate weights stay in HBM
        pl.BlockSpec(memory_space=pl.ANY),                                # fc weights stay in HBM
        cspec(b_fc_pad.shape),
    ]
    out_specs = [
        pl.BlockSpec((1, BH, V_pad), lambda b, t, bts: (b, 0, t)),        # lane-dense preds
        pl.BlockSpec((1, BH, P_pad), lambda b, t, bts: (b, 0, t)),        # lane-dense alphas
    ]
    scratch_shapes = [
        pltpu.VMEM((BH, H), jnp.float32),                 # h carry
        pltpu.VMEM((BH, H), jnp.float32),                 # c carry
        pltpu.VMEM((BH, P, A), jnp.float32),              # hoisted enc projection
        pltpu.VMEM((D + H, 4 * H), bf16),                 # gate weights (single copy, bf16)
        pltpu.VMEM((H, V_pad), bf16),                     # fc weights (single copy, bf16)
        pltpu.SemaphoreType.DMA((2,)),
    ]

    # VMEM budget from the actual footprint (blocked operands double-buffered,
    # HBM-staged weights single scratch copies), capped by chip VMEM capacity.
    def nbytes(shape, dtype):
        return int(np.prod(shape)) * np.dtype(dtype).itemsize

    blocked = [((BH, P, D), bf16), ((1, BH, 2 * H), jnp.float32),
               ((1, BH, 4 * H), jnp.float32),
               (Wenc16.shape, bf16), (b_enca.shape, jnp.float32),
               (Wdec16.shape, bf16), (w["w_att"].shape, jnp.float32),
               (Wfb16.shape, bf16), (w["b_fb"].shape, jnp.float32),
               (b_fc_pad.shape, jnp.float32),
               ((1, BH, V_pad), jnp.float32), ((1, BH, P_pad), jnp.float32)]
    scratch = [((BH, H), jnp.float32), ((BH, H), jnp.float32),
               ((BH, P, A), jnp.float32), ((D + H, 4 * H), bf16),
               ((H, V_pad), bf16)]
    footprint = (2 * sum(nbytes(s, d) for s, d in blocked)
                 + sum(nbytes(s, d) for s, d in scratch))
    vmem_limit = int(min(max(footprint + (8 << 20), 32 << 20), vmem_cap - (16 << 20)))

    grid_spec = pltpu.PrefetchScalarGridSpec(
        num_scalar_prefetch=1,
        grid=(NB, T),
        in_specs=in_specs,
        out_specs=out_specs,
        scratch_shapes=scratch_shapes,
    )
    preds3, alphas3 = pl.pallas_call(
        kernel,
        out_shape=(jax.ShapeDtypeStruct((NB, BH, T * V_pad), jnp.float32),
                   jax.ShapeDtypeStruct((NB, BH, T * P_pad), jnp.float32)),
        grid_spec=grid_spec,
        compiler_params=pltpu.CompilerParams(
            dimension_semantics=("parallel", "arbitrary"),   # batch-parallel, recurrent time
            vmem_limit_bytes=vmem_limit),
    )(bts, enc16, hc0, emb_g,
      Wenc16, b_enca, Wdec16, w["w_att"], Wfb16, w["b_fb"],
      Wg16, Wfc16, b_fc_pad)

    # (NB, BH, T*V_pad) -> (B, T, V): layout-preserving reshapes only (no transpose).
    predictions = preds3.reshape(B, T, V_pad)[:, :, :V]
    alphas = alphas3.reshape(B, T, P_pad)[:, :, :P]
    return predictions, encoded_captions, dec_len, alphas


def reference_forward(params, encoder_out, encoded_captions, caption_lengths):
    """Plain-JAX mirror of the PyTorch forward (use_bert=False, eval-mode dropout)."""
    B = encoder_out.shape[0]
    D = encoder_out.shape[-1]
    enc = encoder_out.reshape(B, -1, D)
    P = enc.shape[1]
    dec_len = [int(l) - 1 for l in caption_lengths]
    T = max(dec_len)
    V = params["W_fc"].shape[1]
    H = DECODER_DIM
    embeddings = jnp.take(params["embedding"], encoded_captions, axis=0)
    avg = enc.mean(axis=1)
    h = avg @ params["W_h"] + params["b_h"]
    c = avg @ params["W_c"] + params["b_c"]
    predictions = jnp.zeros((B, T, V), jnp.float32)
    alphas = jnp.zeros((B, T, P), jnp.float32)
    for t in range(T):
        bt = sum(1 for l in dec_len if l > t)
        enc_t = enc[:bt]
        enc_att = jnp.einsum("bpd,da->bpa", enc_t, params["W_enc"]) + params["b_enc"]
        dec_att = h[:bt] @ params["W_dec"] + params["b_dec"]
        act = jax.nn.relu(enc_att + dec_att[:, None, :])
        att = jnp.sum(act * params["w_att"][None, :, :], axis=-1) + params["b_att"]
        alpha = jax.nn.softmax(att, axis=1)
        awe = jnp.sum(enc_t * alpha[:, :, None], axis=1)
        gate = jax.nn.sigmoid(h[:bt] @ params["W_fb"] + params["b_fb"])
        awe = gate * awe
        x = jnp.concatenate([embeddings[:bt, t, :], awe], axis=1)
        gates = x @ params["W_ih"] + params["b_ih"] + h[:bt] @ params["W_hh"] + params["b_hh"]
        i_g = jax.nn.sigmoid(gates[:, 0:H])
        f_g = jax.nn.sigmoid(gates[:, H:2 * H])
        g_g = jnp.tanh(gates[:, 2 * H:3 * H])
        o_g = jax.nn.sigmoid(gates[:, 3 * H:4 * H])
        c = f_g * c[:bt] + i_g * g_g
        h = o_g * jnp.tanh(c)
        preds = h @ params["W_fc"] + params["b_fc"]
        predictions = predictions.at[:bt, t, :].set(preds)
        alphas = alphas.at[:bt, t, :].set(alpha)
    return predictions, alphas


if __name__ == "__main__":
    key = jax.random.PRNGKey(0)
    k_param, k_enc, k_cap = jax.random.split(key, 3)

    vocab_size = 128
    B, Hs, Ws = 4, 4, 4                                    # 16 "pixels"
    caption_lengths = [6, 5, 4, 3]                         # dec_len = [5,4,3,2], sorted decreasing
    seq_len = max(caption_lengths)

    params = init_params(k_param, vocab_size)
    encoder_out = jax.random.normal(k_enc, (B, Hs, Ws, ENCODER_DIM), jnp.float32)
    encoded_captions = jax.random.randint(k_cap, (B, seq_len), 0, vocab_size, dtype=jnp.int32)

    predictions, caps_out, dec_len, alphas = decoder_forward(
        params, encoder_out, encoded_captions, caption_lengths)
    jax.block_until_ready(predictions)
    jax.block_until_ready(alphas)

    ref_preds, ref_alphas = reference_forward(
        params, encoder_out, encoded_captions, caption_lengths)
    assert np.allclose(np.asarray(predictions), np.asarray(ref_preds),
                       rtol=2e-2, atol=2e-2), "predictions mismatch"
    assert np.allclose(np.asarray(alphas), np.asarray(ref_alphas),
                       rtol=2e-2, atol=2e-2), "alphas mismatch"
    print("KERNEL_OK")
</pallas_src>

<mosaic_0001>
module attributes {stable_mosaic.version = 11 : i64} {
  func.func @kernel(%arg0: i32, %arg1: i32, %arg2: memref<5xi32, #tpu.memory_space<smem>>, %arg3: memref<4x16x768xbf16, #tpu.memory_space<vmem>>, %arg4: memref<1x4x1024xf32, #tpu.memory_space<vmem>>, %arg5: memref<1x4x2048xf32, #tpu.memory_space<vmem>>, %arg6: memref<768x512xbf16, #tpu.memory_space<vmem>>, %arg7: memref<1x512xf32, #tpu.memory_space<vmem>>, %arg8: memref<512x512xbf16, #tpu.memory_space<vmem>>, %arg9: memref<1x512xf32, #tpu.memory_space<vmem>>, %arg10: memref<512x768xbf16, #tpu.memory_space<vmem>>, %arg11: memref<1x768xf32, #tpu.memory_space<vmem>>, %arg12: memref<1280x2048xbf16, #tpu.memory_space<any>>, %arg13: memref<512x128xbf16, #tpu.memory_space<any>>, %arg14: memref<1x128xf32, #tpu.memory_space<vmem>>, %arg15: memref<1x4x128xf32, #tpu.memory_space<vmem>>, %arg16: memref<1x4x128xf32, #tpu.memory_space<vmem>>, %arg17: memref<4x512xf32, #tpu.memory_space<vmem>>, %arg18: memref<4x512xf32, #tpu.memory_space<vmem>>, %arg19: memref<4x16x512xf32, #tpu.memory_space<vmem>>, %arg20: memref<1280x2048xbf16, #tpu.memory_space<vmem>>, %arg21: memref<512x128xbf16, #tpu.memory_space<vmem>>, %arg22: memref<2x!tpu.dma_semaphore, #tpu.memory_space<semaphore_mem>>) attributes {dimension_semantics = [#tpu.dimension_semantics<parallel>, #tpu.dimension_semantics<arbitrary>], iteration_bounds = array<i64: 1, 5>, scalar_prefetch = 1 : i64, scratch_operands = 6 : i64, tpu.core_type = #tpu.core_type<tc>, window_params = [{transform_indices = @transform_0, window_bounds = array<i64: 4, 16, 768>}, {transform_indices = @transform_1, window_bounds = array<i64: 1, 4, 1024>}, {transform_indices = @transform_2, window_bounds = array<i64: 1, 4, 2048>}, {pipeline_mode = #tpu.pipeline_mode<synchronous>, transform_indices = @transform_3, window_bounds = array<i64: 768, 512>}, {pipeline_mode = #tpu.pipeline_mode<synchronous>, transform_indices = @transform_4, window_bounds = array<i64: 1, 512>}, {pipeline_mode = #tpu.pipeline_mode<synchronous>, transform_indices = @transform_5, window_bounds = array<i64: 512, 512>}, {pipeline_mode = #tpu.pipeline_mode<synchronous>, transform_indices = @transform_6, window_bounds = array<i64: 1, 512>}, {pipeline_mode = #tpu.pipeline_mode<synchronous>, transform_indices = @transform_7, window_bounds = array<i64: 512, 768>}, {pipeline_mode = #tpu.pipeline_mode<synchronous>, transform_indices = @transform_8, window_bounds = array<i64: 1, 768>}, {}, {}, {pipeline_mode = #tpu.pipeline_mode<synchronous>, transform_indices = @transform_11, window_bounds = array<i64: 1, 128>}, {transform_indices = @transform_12, window_bounds = array<i64: 1, 4, 128>}, {transform_indices = @transform_13, window_bounds = array<i64: 1, 4, 128>}]} {
    %c0_i32 = arith.constant 0 : i32
    %0 = arith.cmpi eq, %arg1, %c0_i32 : i32
    %1 = arith.extui %0 : i1 to i32
    %c0_i32_0 = arith.constant 0 : i32
    %2 = arith.cmpi ne, %1, %c0_i32_0 : i32
    scf.if %2 {
      %c0_i32_58 = arith.constant 0 : i32
      %116 = tpu.memref_slice %arg22[%c0_i32_58] : memref<2x!tpu.dma_semaphore, #tpu.memory_space<semaphore_mem>> -> memref<1x!tpu.dma_semaphore, #tpu.memory_space<semaphore_mem>>
      %117 = tpu.memref_squeeze %116 : memref<1x!tpu.dma_semaphore, #tpu.memory_space<semaphore_mem>> -> memref<!tpu.dma_semaphore, #tpu.memory_space<semaphore_mem>>
      tpu.enqueue_dma source(%arg12 : memref<1280x2048xbf16, #tpu.memory_space<any>>) target(%arg20 : memref<1280x2048xbf16, #tpu.memory_space<vmem>>) target_semaphore(%117 : memref<!tpu.dma_semaphore, #tpu.memory_space<semaphore_mem>>)
      %c1_i32 = arith.constant 1 : i32
      %118 = tpu.memref_slice %arg22[%c1_i32] : memref<2x!tpu.dma_semaphore, #tpu.memory_space<semaphore_mem>> -> memref<1x!tpu.dma_semaphore, #tpu.memory_space<semaphore_mem>>
      %119 = tpu.memref_squeeze %118 : memref<1x!tpu.dma_semaphore, #tpu.memory_space<semaphore_mem>> -> memref<!tpu.dma_semaphore, #tpu.memory_space<semaphore_mem>>
      tpu.enqueue_dma source(%arg13 : memref<512x128xbf16, #tpu.memory_space<any>>) target(%arg21 : memref<512x128xbf16, #tpu.memory_space<vmem>>) target_semaphore(%119 : memref<!tpu.dma_semaphore, #tpu.memory_space<semaphore_mem>>)
      %c0_59 = arith.constant 0 : index
      %c0_60 = arith.constant 0 : index
      %c0_61 = arith.constant 0 : index
      %120 = vector.load %arg4[%c0_59, %c0_60, %c0_61] : memref<1x4x1024xf32, #tpu.memory_space<vmem>>, vector<1x4x512xf32>
      %121 = vector.shape_cast %120 : vector<1x4x512xf32> to vector<4x512xf32>
      %c0_62 = arith.constant 0 : index
      %c0_63 = arith.constant 0 : index
      %122 = vector.load %arg17[%c0_62, %c0_63] : memref<4x512xf32, #tpu.memory_space<vmem>>, vector<4x512xf32>
      tpu.vector_store %arg17[%c0_62, %c0_63], %121 {strides = array<i32>} : memref<4x512xf32, #tpu.memory_space<vmem>>, vector<4x512xf32>,
      %c0_64 = arith.constant 0 : index
      %c0_65 = arith.constant 0 : index
      %c512 = arith.constant 512 : index
      %123 = vector.load %arg4[%c0_64, %c0_65, %c512] : memref<1x4x1024xf32, #tpu.memory_space<vmem>>, vector<1x4x512xf32>
      %124 = vector.shape_cast %123 : vector<1x4x512xf32> to vector<4x512xf32>
      %c0_66 = arith.constant 0 : index
      %c0_67 = arith.constant 0 : index
      %125 = vector.load %arg18[%c0_66, %c0_67] : memref<4x512xf32, #tpu.memory_space<vmem>>, vector<4x512xf32>
      tpu.vector_store %arg18[%c0_66, %c0_67], %124 {strides = array<i32>} : memref<4x512xf32, #tpu.memory_space<vmem>>, vector<4x512xf32>,
      %c0_68 = arith.constant 0 : index
      %c0_69 = arith.constant 0 : index
      %c0_70 = arith.constant 0 : index
      %126 = vector.load %arg3[%c0_68, %c0_69, %c0_70] : memref<4x16x768xbf16, #tpu.memory_space<vmem>>, vector<4x16x768xbf16>
      %127 = vector.shape_cast %126 : vector<4x16x768xbf16> to vector<64x768xbf16>
      %c0_71 = arith.constant 0 : index
      %c0_72 = arith.constant 0 : index
      %128 = vector.load %arg6[%c0_71, %c0_72] : memref<768x512xbf16, #tpu.memory_space<vmem>>, vector<768x512xbf16>
      %cst_73 = arith.constant dense<0.000000e+00> : vector<64x512xf32>
      %129 = tpu.matmul %127, %128, %cst_73 {dimension_numbers = #tpu.dot_dimension_numbers<[1], [0], [0], [1], [0, 0, 1, 1], [], []>} : vector<64x768xbf16>, vector<768x512xbf16>, vector<64x512xf32> -> vector<64x512xf32>
      %c0_74 = arith.constant 0 : index
      %c0_75 = arith.constant 0 : index
      %130 = vector.load %arg7[%c0_74, %c0_75] : memref<1x512xf32, #tpu.memory_space<vmem>>, vector<1x512xf32>
      %131 = vector.broadcast %130 : vector<1x512xf32> to vector<64x512xf32>
      %132 = arith.addf %129, %131 : vector<64x512xf32>
      %133 = vector.shape_cast %132 : vector<64x512xf32> to vector<4x16x512xf32>
      %c0_76 = arith.constant 0 : index
      %c0_77 = arith.constant 0 : index
      %c0_78 = arith.constant 0 : index
      %134 = vector.load %arg19[%c0_76, %c0_77, %c0_78] : memref<4x16x512xf32, #tpu.memory_space<vmem>>, vector<4x16x512xf32>
      tpu.vector_store %arg19[%c0_76, %c0_77, %c0_78], %133 {strides = array<i32>} : memref<4x16x512xf32, #tpu.memory_space<vmem>>, vector<4x16x512xf32>,
    } else {
    }
    %c0 = arith.constant 0 : index
    %c0_1 = arith.constant 0 : index
    %3 = vector.load %arg17[%c0, %c0_1] : memref<4x512xf32, #tpu.memory_space<vmem>>, vector<4x512xf32>
    %c0_2 = arith.constant 0 : index
    %c0_3 = arith.constant 0 : index
    %4 = vector.load %arg18[%c0_2, %c0_3] : memref<4x512xf32, #tpu.memory_space<vmem>>, vector<4x512xf32>
    %5 = arith.truncf %3 : vector<4x512xf32> to vector<4x512xbf16>
    %c0_4 = arith.constant 0 : index
    %c0_5 = arith.constant 0 : index
    %6 = vector.load %arg8[%c0_4, %c0_5] : memref<512x512xbf16, #tpu.memory_space<vmem>>, vector<512x512xbf16>
    %cst = arith.constant dense<0.000000e+00> : vector<4x512xf32>
    %7 = tpu.matmul %5, %6, %cst {dimension_numbers = #tpu.dot_dimension_numbers<[1], [0], [0], [1], [0, 0, 1, 1], [], []>} : vector<4x512xbf16>, vector<512x512xbf16>, vector<4x512xf32> -> vector<4x512xf32>
    %c0_6 = arith.constant 0 : index
    %c0_7 = arith.constant 0 : index
    %c0_8 = arith.constant 0 : index
    %8 = vector.load %arg19[%c0_6, %c0_7, %c0_8] : memref<4x16x512xf32, #tpu.memory_space<vmem>>, vector<4x16x512xf32>
    %9 = vector.shape_cast %7 : vector<4x512xf32> to vector<4x1x512xf32>
    %10 = vector.broadcast %9 : vector<4x1x512xf32> to vector<4x16x512xf32>
    %11 = arith.addf %8, %10 : vector<4x16x512xf32>
    %cst_9 = arith.constant 0.000000e+00 : f32
    %12 = vector.broadcast %cst_9 : f32 to vector<4x16x512xf32>
    %13 = arith.maximumf %11, %12 : vector<4x16x512xf32>
    %c0_10 = arith.constant 0 : index
    %c0_11 = arith.constant 0 : index
    %14 = vector.load %arg9[%c0_10, %c0_11] : memref<1x512xf32, #tpu.memory_space<vmem>>, vector<1x512xf32>
    %15 = vector.shape_cast %14 : vector<1x512xf32> to vector<1x1x512xf32>
    %16 = vector.broadcast %15 : vector<1x1x512xf32> to vector<4x16x512xf32>
    %17 = arith.mulf %13, %16 : vector<4x16x512xf32>
    %cst_12 = arith.constant dense<0.000000e+00> : vector<4x16xf32>
    %18 = vector.multi_reduction <add>, %17, %cst_12 [2] : vector<4x16x512xf32> to vector<4x16xf32>
    %cst_13 = arith.constant dense<0xFF800000> : vector<4xf32>
    %19 = vector.multi_reduction <maximumf>, %18, %cst_13 [1] : vector<4x16xf32> to vector<4xf32>
    %20 = vector.shape_cast %19 : vector<4xf32> to vector<4x1xf32>
    %21 = vector.broadcast %20 : vector<4x1xf32> to vector<4x16xf32>
    %22 = arith.subf %18, %21 : vector<4x16xf32>
    %23 = math.exp %22 : vector<4x16xf32>
    %cst_14 = arith.constant dense<0.000000e+00> : vector<4xf32>
    %24 = vector.multi_reduction <add>, %23, %cst_14 [1] : vector<4x16xf32> to vector<4xf32>
    %25 = vector.shape_cast %24 : vector<4xf32> to vector<4x1xf32>
    %26 = vector.broadcast %25 : vector<4x1xf32> to vector<4x16xf32>
    %27 = arith.divf %23, %26 : vector<4x16xf32>
    %28 = arith.truncf %27 : vector<4x16xf32> to vector<4x16xbf16>
    %29 = vector.shape_cast %28 : vector<4x16xbf16> to vector<4x1x16xbf16>
    %c0_15 = arith.constant 0 : index
    %c0_16 = arith.constant 0 : index
    %c0_17 = arith.constant 0 : index
    %30 = vector.load %arg3[%c0_15, %c0_16, %c0_17] : memref<4x16x768xbf16, #tpu.memory_space<vmem>>, vector<4x16x768xbf16>
    %cst_18 = arith.constant dense<0.000000e+00> : vector<4x1x768xf32>
    %31 = tpu.matmul %29, %30, %cst_18 {dimension_numbers = #tpu.dot_dimension_numbers<[2], [1], [1], [2], [0, 0, 0, 1, 1, 2], [0], [0]>} : vector<4x1x16xbf16>, vector<4x16x768xbf16>, vector<4x1x768xf32> -> vector<4x1x768xf32>
    %32 = vector.shape_cast %31 : vector<4x1x768xf32> to vector<4x768xf32>
    %c0_19 = arith.constant 0 : index
    %c0_20 = arith.constant 0 : index
    %33 = vector.load %arg10[%c0_19, %c0_20] : memref<512x768xbf16, #tpu.memory_space<vmem>>, vector<512x768xbf16>
    %cst_21 = arith.constant dense<0.000000e+00> : vector<4x768xf32>
    %34 = tpu.matmul %5, %33, %cst_21 {dimension_numbers = #tpu.dot_dimension_numbers<[1], [0], [0], [1], [0, 0, 1, 1], [], []>} : vector<4x512xbf16>, vector<512x768xbf16>, vector<4x768xf32> -> vector<4x768xf32>
    %c0_22 = arith.constant 0 : index
    %c0_23 = arith.constant 0 : index
    %35 = vector.load %arg11[%c0_22, %c0_23] : memref<1x768xf32, #tpu.memory_space<vmem>>, vector<1x768xf32>
    %36 = vector.broadcast %35 : vector<1x768xf32> to vector<4x768xf32>
    %37 = arith.addf %34, %36 : vector<4x768xf32>
    %38 = arith.negf %37 : vector<4x768xf32>
    %39 = math.exp %38 : vector<4x768xf32>
    %cst_24 = arith.constant 1.000000e+00 : f32
    %40 = vector.broadcast %cst_24 : f32 to vector<4x768xf32>
    %41 = arith.addf %40, %39 : vector<4x768xf32>
    %42 = arith.divf %40, %41 : vector<4x768xf32>
    %43 = arith.mulf %42, %32 : vector<4x768xf32>
    %c0_i32_25 = arith.constant 0 : i32
    %44 = arith.cmpi eq, %arg1, %c0_i32_25 : i32
    %45 = arith.extui %44 : i1 to i32
    %c0_i32_26 = arith.constant 0 : i32
    %46 = arith.cmpi ne, %45, %c0_i32_26 : i32
    scf.if %46 {
      %c0_i32_58 = arith.constant 0 : i32
      %116 = tpu.memref_slice %arg22[%c0_i32_58] : memref<2x!tpu.dma_semaphore, #tpu.memory_space<semaphore_mem>> -> memref<1x!tpu.dma_semaphore, #tpu.memory_space<semaphore_mem>>
      %117 = tpu.memref_squeeze %116 : memref<1x!tpu.dma_semaphore, #tpu.memory_space<semaphore_mem>> -> memref<!tpu.dma_semaphore, #tpu.memory_space<semaphore_mem>>
      tpu.wait_dma2 semaphore(%117 : memref<!tpu.dma_semaphore, #tpu.memory_space<semaphore_mem>>) src(%arg12 : memref<1280x2048xbf16, #tpu.memory_space<any>>) dst(%arg20 : memref<1280x2048xbf16, #tpu.memory_space<vmem>>)
    } else {
    }
    %c0_27 = arith.constant 0 : index
    %c0_28 = arith.constant 0 : index
    %c0_29 = arith.constant 0 : index
    %47 = vector.load %arg5[%c0_27, %c0_28, %c0_29] : memref<1x4x2048xf32, #tpu.memory_space<vmem>>, vector<1x4x2048xf32>
    %48 = vector.shape_cast %47 : vector<1x4x2048xf32> to vector<4x2048xf32>
    %49 = arith.truncf %43 : vector<4x768xf32> to vector<4x768xbf16>
    %c0_30 = arith.constant 0 : index
    %c0_31 = arith.constant 0 : index
    %50 = vector.load %arg20[%c0_30, %c0_31] : memref<1280x2048xbf16, #tpu.memory_space<vmem>>, vector<768x2048xbf16>
    %cst_32 = arith.constant dense<0.000000e+00> : vector<4x2048xf32>
    %51 = tpu.matmul %49, %50, %cst_32 {dimension_numbers = #tpu.dot_dimension_numbers<[1], [0], [0], [1], [0, 0, 1, 1], [], []>} : vector<4x768xbf16>, vector<768x2048xbf16>, vector<4x2048xf32> -> vector<4x2048xf32>
    %52 = arith.addf %48, %51 : vector<4x2048xf32>
    %c768 = arith.constant 768 : index
    %c0_33 = arith.constant 0 : index
    %53 = vector.load %arg20[%c768, %c0_33] : memref<1280x2048xbf16, #tpu.memory_space<vmem>>, vector<512x2048xbf16>
    %cst_34 = arith.constant dense<0.000000e+00> : vector<4x2048xf32>
    %54 = tpu.matmul %5, %53, %cst_34 {dimension_numbers = #tpu.dot_dimension_numbers<[1], [0], [0], [1], [0, 0, 1, 1], [], []>} : vector<4x512xbf16>, vector<512x2048xbf16>, vector<4x2048xf32> -> vector<4x2048xf32>
    %55 = arith.addf %52, %54 : vector<4x2048xf32>
    %56 = vector.extract_strided_slice %55 {offsets = [0, 0], sizes = [4, 512], strides = [1, 1]} : vector<4x2048xf32> to vector<4x512xf32>
    %57 = arith.negf %56 : vector<4x512xf32>
    %58 = math.exp %57 : vector<4x512xf32>
    %cst_35 = arith.constant 1.000000e+00 : f32
    %59 = vector.broadcast %cst_35 : f32 to vector<4x512xf32>
    %60 = arith.addf %59, %58 : vector<4x512xf32>
    %61 = arith.divf %59, %60 : vector<4x512xf32>
    %62 = vector.extract_strided_slice %55 {offsets = [0, 512], sizes = [4, 512], strides = [1, 1]} : vector<4x2048xf32> to vector<4x512xf32>
    %63 = arith.negf %62 : vector<4x512xf32>
    %64 = math.exp %63 : vector<4x512xf32>
    %cst_36 = arith.constant 1.000000e+00 : f32
    %65 = vector.broadcast %cst_36 : f32 to vector<4x512xf32>
    %66 = arith.addf %65, %64 : vector<4x512xf32>
    %67 = arith.divf %65, %66 : vector<4x512xf32>
    %68 = vector.extract_strided_slice %55 {offsets = [0, 1024], sizes = [4, 512], strides = [1, 1]} : vector<4x2048xf32> to vector<4x512xf32>
    %69 = math.tanh %68 : vector<4x512xf32>
    %70 = vector.extract_strided_slice %55 {offsets = [0, 1536], sizes = [4, 512], strides = [1, 1]} : vector<4x2048xf32> to vector<4x512xf32>
    %71 = arith.negf %70 : vector<4x512xf32>
    %72 = math.exp %71 : vector<4x512xf32>
    %cst_37 = arith.constant 1.000000e+00 : f32
    %73 = vector.broadcast %cst_37 : f32 to vector<4x512xf32>
    %74 = arith.addf %73, %72 : vector<4x512xf32>
    %75 = arith.divf %73, %74 : vector<4x512xf32>
    %76 = arith.mulf %67, %4 : vector<4x512xf32>
    %77 = arith.mulf %61, %69 : vector<4x512xf32>
    %78 = arith.addf %76, %77 : vector<4x512xf32>
    %79 = math.tanh %78 : vector<4x512xf32>
    %80 = arith.mulf %75, %79 : vector<4x512xf32>
    %c0_i32_38 = arith.constant 0 : i32
    %81 = arith.cmpi eq, %arg1, %c0_i32_38 : i32
    %82 = arith.extui %81 : i1 to i32
    %c0_i32_39 = arith.constant 0 : i32
    %83 = arith.cmpi ne, %82, %c0_i32_39 : i32
    scf.if %83 {
      %c1_i32 = arith.constant 1 : i32
      %116 = tpu.memref_slice %arg22[%c1_i32] : memref<2x!tpu.dma_semaphore, #tpu.memory_space<semaphore_mem>> -> memref<1x!tpu.dma_semaphore, #tpu.memory_space<semaphore_mem>>
      %117 = tpu.memref_squeeze %116 : memref<1x!tpu.dma_semaphore, #tpu.memory_space<semaphore_mem>> -> memref<!tpu.dma_semaphore, #tpu.memory_space<semaphore_mem>>
      tpu.wait_dma2 semaphore(%117 : memref<!tpu.dma_semaphore, #tpu.memory_space<semaphore_mem>>) src(%arg13 : memref<512x128xbf16, #tpu.memory_space<any>>) dst(%arg21 : memref<512x128xbf16, #tpu.memory_space<vmem>>)
    } else {
    }
    %84 = arith.truncf %80 : vector<4x512xf32> to vector<4x512xbf16>
    %c0_40 = arith.constant 0 : index
    %c0_41 = arith.constant 0 : index
    %85 = vector.load %arg21[%c0_40, %c0_41] : memref<512x128xbf16, #tpu.memory_space<vmem>>, vector<512x128xbf16>
    %cst_42 = arith.constant dense<0.000000e+00> : vector<4x128xf32>
    %86 = tpu.matmul %84, %85, %cst_42 {dimension_numbers = #tpu.dot_dimension_numbers<[1], [0], [0], [1], [0, 0, 1, 1], [], []>} : vector<4x512xbf16>, vector<512x128xbf16>, vector<4x128xf32> -> vector<4x128xf32>
    %c0_43 = arith.constant 0 : index
    %c0_44 = arith.constant 0 : index
    %87 = vector.load %arg14[%c0_43, %c0_44] : memref<1x128xf32, #tpu.memory_space<vmem>>, vector<1x128xf32>
    %88 = vector.broadcast %87 : vector<1x128xf32> to vector<4x128xf32>
    %89 = arith.addf %86, %88 : vector<4x128xf32>
    %90 = arith.index_cast %arg1 : i32 to index
    %91 = memref.load %arg2[%90] : memref<5xi32, #tpu.memory_space<smem>>
    %c4_i32 = arith.constant 4 : i32
    %92 = arith.muli %arg0, %c4_i32 : i32
    %93 = tpu.iota {dimensions = array<i32: 0>} : vector<4x1xi32>
    %94 = vector.broadcast %92 : i32 to vector<4x1xi32>
    %95 = arith.addi %94, %93 : vector<4x1xi32>
    %96 = vector.broadcast %91 : i32 to vector<4x1xi32>
    %97 = arith.cmpi slt, %95, %96 : vector<4x1xi32>
    %cst_45 = arith.constant 0.000000e+00 : f32
    %98 = vector.shape_cast %97 : vector<4x1xi1> to vector<4x1xi1>
    %99 = vector.broadcast %98 : vector<4x1xi1> to vector<4x128xi1>
    %100 = vector.broadcast %cst_45 : f32 to vector<4x128xf32>
    %101 = arith.select %99, %89, %100 : vector<4x128xi1>, vector<4x128xf32>
    %c0_46 = arith.constant 0 : index
    %c0_47 = arith.constant 0 : index
    %c0_48 = arith.constant 0 : index
    %102 = vector.load %arg15[%c0_46, %c0_47, %c0_48] : memref<1x4x128xf32, #tpu.memory_space<vmem>>, vector<1x4x128xf32>
    %103 = vector.shape_cast %102 : vector<1x4x128xf32> to vector<4x128xf32>
    %104 = vector.shape_cast %101 : vector<4x128xf32> to vector<1x4x128xf32>
    tpu.vector_store %arg15[%c0_46, %c0_47, %c0_48], %104 {strides = array<i32>} : memref<1x4x128xf32, #tpu.memory_space<vmem>>, vector<1x4x128xf32>,
    %cst_49 = arith.constant 0.000000e+00 : f32
    %105 = vector.shape_cast %97 : vector<4x1xi1> to vector<4x1xi1>
    %106 = vector.broadcast %105 : vector<4x1xi1> to vector<4x16xi1>
    %107 = vector.broadcast %cst_49 : f32 to vector<4x16xf32>
    %108 = arith.select %106, %27, %107 : vector<4x16xi1>, vector<4x16xf32>
    %cst_50 = arith.constant 0.000000e+00 : f32
    %109 = vector.broadcast %cst_50 : f32 to vector<4x112xf32>
    %110 = tpu.concatenate %108, %109 in 1 : vector<4x16xf32>, vector<4x112xf32> -> vector<4x128xf32>
    %c0_51 = arith.constant 0 : index
    %c0_52 = arith.constant 0 : index
    %c0_53 = arith.constant 0 : index
    %111 = vector.load %arg16[%c0_51, %c0_52, %c0_53] : memref<1x4x128xf32, #tpu.memory_space<vmem>>, vector<1x4x128xf32>
    %112 = vector.shape_cast %111 : vector<1x4x128xf32> to vector<4x128xf32>
    %113 = vector.shape_cast %110 : vector<4x128xf32> to vector<1x4x128xf32>
    tpu.vector_store %arg16[%c0_51, %c0_52, %c0_53], %113 {strides = array<i32>} : memref<1x4x128xf32, #tpu.memory_space<vmem>>, vector<1x4x128xf32>,
    %c0_54 = arith.constant 0 : index
    %c0_55 = arith.constant 0 : index
    %114 = vector.load %arg17[%c0_54, %c0_55] : memref<4x512xf32, #tpu.memory_space<vmem>>, vector<4x512xf32>
    tpu.vector_store %arg17[%c0_54, %c0_55], %80 {strides = array<i32>} : memref<4x512xf32, #tpu.memory_space<vmem>>, vector<4x512xf32>,
    %c0_56 = arith.constant 0 : index
    %c0_57 = arith.constant 0 : index
    %115 = vector.load %arg18[%c0_56, %c0_57] : memref<4x512xf32, #tpu.memory_space<vmem>>, vector<4x512xf32>
    tpu.vector_store %arg18[%c0_56, %c0_57], %78 {strides = array<i32>} : memref<4x512xf32, #tpu.memory_space<vmem>>, vector<4x512xf32>,
    return
  }
  func.func @transform_0(%arg0: i32, %arg1: i32, %arg2: memref<5xi32, #tpu.memory_space<smem>>) -> (i32, i32, i32) {
    %c0_i32 = arith.constant 0 : i32
    %c0_i32_0 = arith.constant 0 : i32
    %c0_i32_1 = arith.constant 0 : i32
    return %arg0, %c0_i32, %c0_i32_0 : i32, i32, i32
  }
  func.func @transform_1(%arg0: i32, %arg1: i32, %arg2: memref<5xi32, #tpu.memory_space<smem>>) -> (i32, i32, i32) {
    %c0_i32 = arith.constant 0 : i32
    %c0_i32_0 = arith.constant 0 : i32
    %c0_i32_1 = arith.constant 0 : i32
    return %arg0, %c0_i32, %c0_i32_0 : i32, i32, i32
  }
  func.func @transform_2(%arg0: i32, %arg1: i32, %arg2: memref<5xi32, #tpu.memory_space<smem>>) -> (i32, i32, i32) {
    %c0_i32 = arith.constant 0 : i32
    %c0_i32_0 = arith.constant 0 : i32
    return %arg0, %c0_i32, %arg1 : i32, i32, i32
  }
  func.func @transform_3(%arg0: i32, %arg1: i32, %arg2: memref<5xi32, #tpu.memory_space<smem>>) -> (i32, i32) {
    %c0_i32 = arith.constant 0 : i32
    %c0_i32_0 = arith.constant 0 : i32
    %c0_i32_1 = arith.constant 0 : i32
    return %c0_i32, %c0_i32_0 : i32, i32
  }
  func.func @transform_4(%arg0: i32, %arg1: i32, %arg2: memref<5xi32, #tpu.memory_space<smem>>) -> (i32, i32) {
    %c0_i32 = arith.constant 0 : i32
    %c0_i32_0 = arith.constant 0 : i32
    %c0_i32_1 = arith.constant 0 : i32
    return %c0_i32, %c0_i32_0 : i32, i32
  }
  func.func @transform_5(%arg0: i32, %arg1: i32, %arg2: memref<5xi32, #tpu.memory_space<smem>>) -> (i32, i32) {
    %c0_i32 = arith.constant 0 : i32
    %c0_i32_0 = arith.constant 0 : i32
    %c0_i32_1 = arith.constant 0 : i32
    return %c0_i32, %c0_i32_0 : i32, i32
  }
  func.func @transform_6(%arg0: i32, %arg1: i32, %arg2: memref<5xi32, #tpu.memory_space<smem>>) -> (i32, i32) {
    %c0_i32 = arith.constant 0 : i32
    %c0_i32_0 = arith.constant 0 : i32
    %c0_i32_1 = arith.constant 0 : i32
    return %c0_i32, %c0_i32_0 : i32, i32
  }
  func.func @transform_7(%arg0: i32, %arg1: i32, %arg2: memref<5xi32, #tpu.memory_space<smem>>) -> (i32, i32) {
    %c0_i32 = arith.constant 0 : i32
    %c0_i32_0 = arith.constant 0 : i32
    %c0_i32_1 = arith.constant 0 : i32
    return %c0_i32, %c0_i32_0 : i32, i32
  }
  func.func @transform_8(%arg0: i32, %arg1: i32, %arg2: memref<5xi32, #tpu.memory_space<smem>>) -> (i32, i32) {
    %c0_i32 = arith.constant 0 : i32
    %c0_i32_0 = arith.constant 0 : i32
    %c0_i32_1 = arith.constant 0 : i32
    return %c0_i32, %c0_i32_0 : i32, i32
  }
  func.func @transform_11(%arg0: i32, %arg1: i32, %arg2: memref<5xi32, #tpu.memory_space<smem>>) -> (i32, i32) {
    %c0_i32 = arith.constant 0 : i32
    %c0_i32_0 = arith.constant 0 : i32
    %c0_i32_1 = arith.constant 0 : i32
    return %c0_i32, %c0_i32_0 : i32, i32
  }
  func.func @transform_12(%arg0: i32, %arg1: i32, %arg2: memref<5xi32, #tpu.memory_space<smem>>) -> (i32, i32, i32) {
    %c0_i32 = arith.constant 0 : i32
    %c0_i32_0 = arith.constant 0 : i32
    return %arg0, %c0_i32, %arg1 : i32, i32, i32
  }
  func.func @transform_13(%arg0: i32, %arg1: i32, %arg2: memref<5xi32, #tpu.memory_space<smem>>) -> (i32, i32, i32) {
    %c0_i32 = arith.constant 0 : i32
    %c0_i32_0 = arith.constant 0 : i32
    return %arg0, %c0_i32, %arg1 : i32, i32, i32
  }
}

</mosaic_0001>

<bundles_post_ra>
// kernel: tpu_custom_call.1
= control target key start
LH: loop header
LB: loop body
LE: loop exit
PB: predicated region body
PF: predicated region fallthrough
CT: control target
= control target key end

     0   :  { %s13361_s0 = inlined_call_operand.hbm [shape: s32[5], index: 0, kind: input, shape index: {}]   ;;  %s13362_s1 = inlined_call_operand.hbm [shape: bf16[4,16,768], index: 1, kind: input, shape index: {}]   ;;  %s13363_s2 = inlined_call_operand.hbm [shape: f32[1,4,1024], index: 2, kind: input, shape index: {}]   ;;  %s13364_s3 = inlined_call_operand.hbm [shape: f32[1,4,10240], index: 3, kind: input, shape index: {}]   ;;  %s13365_s4 = inlined_call_operand.hbm [shape: bf16[768,512], index: 4, kind: input, shape index: {}]   ;;  %s13366_s5 = inlined_call_operand.hbm [shape: f32[1,512], index: 5, kind: input, shape index: {}]   ;;  %s13367_s6 = inlined_call_operand.hbm [shape: bf16[512,512], index: 6, kind: input, shape index: {}]   ;;  %s13368_s7 = inlined_call_operand.hbm [shape: f32[1,512], index: 7, kind: input, shape index: {}]   ;;  %s13369_s8 = inlined_call_operand.hbm [shape: bf16[512,768], index: 8, kind: input, shape index: {}]   ;;  %s13370_s9 = inlined_call_operand.hbm [shape: f32[1,768], index: 9, kind: input, shape index: {}]   ;;  %s13371_s10 = inlined_call_operand.hbm [shape: bf16[1280,2048], index: 10, kind: input, shape index: {}]   ;;  %s13372_s11 = inlined_call_operand.hbm [shape: bf16[512,128], index: 11, kind: input, shape index: {}]   ;;  %s13373_s12 = inlined_call_operand.hbm [shape: f32[1,128], index: 12, kind: input, shape index: {}]   ;;  %s13374_s13 = inlined_call_operand.hbm [shape: f32[1,4,640], index: 13, kind: output, shape index: {0}]   ;;  %s13375_s14 = inlined_call_operand.hbm [shape: f32[1,4,640], index: 14, kind: output, shape index: {1}]  }
   0x1   :  { %13388 = sst [smem:[#allocation49_spill]] %s13362_s1  ;;  %s11709_s15 = scalar_lea.hbm %s13361_s0, 16 }
   0x2   :  { %13389 = sst [smem:[#allocation50_spill]] %s13363_s2  ;;  %p11710_p0 = scmp.ne.s32.totalorder %s13361_s0, %s11709_s15 }
   0x3   :  { %13390 = sst [smem:[#allocation51_spill]] %s13364_s3  ;;  %p11713_p1 = scmp.lt.u32.totalorder %s11709_s15, %s13361_s0 }
   0x4   :  { %13391 = sst [smem:[#allocation52_spill]] %s13365_s4 }
   0x5   :  { %13392 = sst [smem:[#allocation53_spill]] %s13366_s5  ;;  %p11715_p2 = pnand %p11713_p1, %p11710_p0 }
   0x6   :  { %13393 = sst [smem:[#allocation54_spill]] %s13367_s6 }
   0x7   :  { %13394 = sst [smem:[#allocation55_spill]] %s13368_s7 }
   0x8   :  { %13395 = sst [smem:[#allocation56_spill]] %s13371_s10 }
   0x9   :  { %13396 = sst [smem:[#allocation57_spill]] %s13372_s11 }
   0xa   :  { %13397 = sst [smem:[#allocation58_spill]] %s13374_s13 }
   0xb   :  { %13398 = sst [smem:[#allocation59_spill]] %s13375_s14 }
   0xc   :  { %11718 = shalt.err (!%p11715_p2)  }
   0xd   :  { %s12173_s20 = smov [#allocation9]  }
   0xe   :  { %21 = dma.hbm_to_smem %s13361_s0, 16, %s12173_s20, [#allocation8] }
   0xf   :  { %12103 = dma.done.wait [#allocation8], 16 }
  0x10   :  { %12104 = vsyncadd [#allocation8], 4294967280 }
  0x11   :  { %23 = sfence }
  0x12   :  { %24 = vsyncpa [#allocation11], 0 }
  0x13   :  { %25 = vsyncpa [#allocation14], 0 }
  0x14   :  { %26 = vsyncpa [#allocation18], 0 }
  0x15   :  { %27 = vsyncpa [#allocation21], 0 }
  0x16   :  { %28 = vsyncpa [#allocation24], 0 }
  0x17   :  { %29 = vsyncpa [#allocation12], 0 }
  0x18   :  { %31 = vsyncpa [#allocation12 + $0x1], 0 }
  0x19   :  { %32 = vsyncpa [#allocation28], 0 }
  0x1a   :  { %34 = vsyncpa [#allocation28 + $0x1], 0  ;;  %s12290_s23 = smov 0   ;;  %s12292_s24 = smov 0  }
  0x1b   :  { %s12294_s25 = smov 0   ;;  %s12296_s26 = smov 0  }
  0x1c   :  { %s12298_s0 = smov 0   ;;  %s12300_s27 = smov 0  }
  0x1d LB: > { %13399 = sst [smem:[#allocation47_spill]] %s12163_s26  ;;  %s12321_s28 = sadd.s32 4294967295, %s12171_s27   ;;  %s12171_s27 = sphi %s12300_s27, %s40_s27   ;;  %s12167_s0 = sphi %s12298_s0, %s13447_s0   ;;  %s12163_s26 = sphi %s12296_s26, %s13446_s26   ;;  %s12159_s25 = sphi %s12294_s25, %s13445_s25   ;;  %s12155_s24 = sphi %s12292_s24, %s13444_s24   ;;  %s12151_s23 = sphi %s12290_s23, %s13443_s23  }
  0x1e   : > { %p9713_p3 = scmp.ge.s32.totalorder %s12171_s27, 1  ;;  %p13382_p4 = scmp.eq.s32.totalorder %s12321_s28, 0 }
  0x1f   : > { %p340_p5 = scmp.lt.s32.totalorder %s12171_s27, 6  ;;  %s12174_s30 = smov [#allocation10]  }
  0x20   : > { %s356_s15 = sshll.u32 %s12174_s30, 4  ;;  %s12175_s17 = smov [#allocation13]   ;;  %s12330_s15 = int_to_ptr.vmem [resolvable:$true] %s356_s15 }
  0x21   : > { %p12326_p6 = pnand %p9713_p3, %p340_p5  ;;  %s373_s18 = sshll.u32 %s12175_s17, 4  ;;  %s12340_s18 = int_to_ptr.vmem [resolvable:$true] %s373_s18 }
  0x22   : > { %s12176_s19 = smov [#allocation17]   ;;  %s13403_s1 = sld [smem:[#allocation49_spill]] }
  0x23   : > { %s13400_s29 = scalar_select %p12326_p6, 1, 0 }
  0x24   : > { %p10647_p7 = pneg %p12326_p6  ;;  %s12342_s20 = sshll.u32 %s12176_s19, 4  ;;  %s398_s20 = int_to_ptr.vmem [resolvable:$true] %s12342_s20 }
  0x25   : > { %13401 = sst [smem:[#allocation48_spill]] %s13400_s29 }
  0x26   : > { %p12336_p8 = pnand %p10647_p7, %p13382_p4 }
  0x28   : > { %s11719_s30 = scalar_lea.hbm %s13403_s1, 3072  ;;  %p12352_p10 = pneg %p12336_p8 }
  0x29   : > { %p11720_p9 = scmp.ne.s32.totalorder %s13403_s1, %s11719_s30  ;;  %p11726_p13 = scmp.lt.u32.totalorder %s11719_s30, %s13403_s1 }
  0x2b   : > { %p11722_p11 = pnand %p12352_p10, %p11720_p9 }
  0x2d   : > { %p11723_p12 = pneg %p11722_p11 }
  0x2f   : > { %p11728_p0 = pnand %p11726_p13, %p11723_p12 }
  0x31   : > { %11731 = shalt.err (!%p11728_p0)
}
  0x32   : > { %s11732_s13 = scalar_lea.vmem %s12330_s15, 3072  ;;  %p11740_p5 = scmp.lt.s32.totalorder %s12330_s15, %s12330_s15 }
  0x33   : > { %p11733_p1 = scmp.ne.s32.totalorder %s12330_s15, %s11732_s13  ;;  %p11741_p7 = scmp.lt.s32.totalorder %s11732_s13, %s11732_s13 }
  0x35   : > { %p11735_p2 = pnand %p11733_p1, %p12352_p10  ;;  %p11742_p9 = por %p11741_p7, %p11740_p5 }
  0x37   : > { %p11736_p3 = pneg %p11735_p2 }
  0x39   : > { %p11743_p11 = pnand %p11742_p9, %p11736_p3 }
  0x3b   : > { %11746 = shalt.err (!%p11743_p11)
}
  0x3c   : > { %s13384_s14 = smov 384   ;;  %s13385_s21 = smov 24  }
  0x3d   : > { %10650 = dma.hbm_to_vmem [thread:$0]  (!%p12336_p8), %s13403_s1, 3072, %s12330_s15, [#allocation11], %s13384_s14, %s13384_s14, %s13385_s21  }
  0x3e   : > { %s13405_s2 = sld [smem:[#allocation50_spill]] }
  0x44   : > { %s11747_s13 = scalar_lea.hbm %s13405_s2, 512 }
  0x45   : > { %p11748_p12 = scmp.ne.s32.totalorder %s13405_s2, %s11747_s13  ;;  %p11754_p1 = scmp.lt.u32.totalorder %s11747_s13, %s13405_s2 }
  0x47   : > { %p11750_p13 = pnand %p11748_p12, %p12352_p10 }
  0x49   : > { %p11751_p0 = pneg %p11750_p13 }
  0x4b   : > { %p11756_p2 = pnand %p11754_p1, %p11751_p0 }
  0x4d   : > { %11759 = shalt.err (!%p11756_p2)
}
  0x4e   : > { %s11760_s15 = scalar_lea.vmem %s12340_s18, 512  ;;  %p11768_p9 = scmp.lt.s32.totalorder %s12340_s18, %s12340_s18 }
  0x4f   : > { %p11761_p3 = scmp.ne.s32.totalorder %s12340_s18, %s11760_s15  ;;  %p11769_p11 = scmp.lt.s32.totalorder %s11760_s15, %s11760_s15 }
  0x51   : > { %p11763_p5 = pnand %p11761_p3, %p12352_p10  ;;  %p11770_p12 = por %p11769_p11, %p11768_p9 }
  0x53   : > { %p11764_p7 = pneg %p11763_p5 }
  0x55   : > { %p11771_p13 = pnand %p11770_p12, %p11764_p7 }
  0x57   : > { %11774 = shalt.err (!%p11771_p13)
}
  0x58   : > { %10653 = dma.hbm_to_vmem [thread:$0]  (!%p12336_p8), %s13405_s2, 512, %s12340_s18, [#allocation14]  }
  0x59   : > { %s13406_s5 = sld [smem:[#allocation53_spill]] }
  0x5f   : > { %s11775_s22 = scalar_lea.hbm %s13406_s5, 64 }
  0x60   : > { %p11776_p0 = scmp.ne.s32.totalorder %s13406_s5, %s11775_s22  ;;  %p11782_p3 = scmp.lt.u32.totalorder %s11775_s22, %s13406_s5 }
  0x62   : > { %p11778_p1 = pnand %p11776_p0, %p12352_p10 }
  0x64   : > { %p11779_p2 = pneg %p11778_p1 }
  0x66   : > { %p11784_p5 = pnand %p11782_p3, %p11779_p2 }
  0x68   : > { %11787 = shalt.err (!%p11784_p5)
}
  0x69   : > { %s11788_s15 = scalar_lea.vmem %s398_s20, 64  ;;  %p11796_p12 = scmp.lt.s32.totalorder %s398_s20, %s398_s20 }
  0x6a   : > { %p11789_p7 = scmp.ne.s32.totalorder %s398_s20, %s11788_s15  ;;  %p11797_p13 = scmp.lt.s32.totalorder %s11788_s15, %s11788_s15 }
  0x6c   : > { %p11791_p9 = pnand %p11789_p7, %p12352_p10  ;;  %p11798_p4 = por %p11797_p13, %p11796_p12 }
  0x6e   : > { %p11792_p11 = pneg %p11791_p9 }
  0x70   : > { %p11799_p6 = pnand %p11798_p4, %p11792_p11 }
  0x72   : > { %11802 = shalt.err (!%p11799_p6)
}
  0x73   : > { %10659 = dma.hbm_to_vmem [thread:$0]  (!%p12336_p8), %s13406_s5, 64, %s398_s20, [#allocation18]  }
  0x74   : > { %s12179_s10 = smov [#allocation20]   ;;  %s12180_s29 = smov [#allocation23]  }
  0x75   : > { %s421_s26 = sshll.u32 %s12179_s10, 4  ;;  %s445_s22 = sshll.u32 %s12180_s29, 4  ;;  %s422_s26 = int_to_ptr.vmem [resolvable:$true] %s421_s26  ;;  %s446_s22 = int_to_ptr.vmem [resolvable:$true] %s445_s22 }
  0x76   : > { %s13407_s7 = sld [smem:[#allocation55_spill]] }
  0x7c   : > { %s11803_s19 = scalar_lea.hbm %s13407_s7, 64 }
  0x7d   : > { %p11804_p4 = scmp.ne.s32.totalorder %s13407_s7, %s11803_s19  ;;  %p11810_p1 = scmp.lt.u32.totalorder %s11803_s19, %s13407_s7 }
  0x7f   : > { %p11806_p6 = pnand %p11804_p4, %p12352_p10 }
  0x81   : > { %p11807_p0 = pneg %p11806_p6 }
  0x83   : > { %p11812_p2 = pnand %p11810_p1, %p11807_p0 }
  0x85   : > { %11815 = shalt.err (!%p11812_p2)
}
  0x86   : > { %s11816_s20 = scalar_lea.vmem %s422_s26, 64  ;;  %p11824_p9 = scmp.lt.s32.totalorder %s422_s26, %s422_s26 }
  0x87   : > { %p11817_p3 = scmp.ne.s32.totalorder %s422_s26, %s11816_s20  ;;  %p11825_p11 = scmp.lt.s32.totalorder %s11816_s20, %s11816_s20 }
  0x89   : > { %p11819_p5 = pnand %p11817_p3, %p12352_p10  ;;  %p11826_p12 = por %p11825_p11, %p11824_p9 }
  0x8b   : > { %p11820_p7 = pneg %p11819_p5 }
  0x8d   : > { %p11827_p13 = pnand %p11826_p12, %p11820_p7 }
  0x8f   : > { %11830 = shalt.err (!%p11827_p13)
}
  0x90   : > { %10665 = dma.hbm_to_vmem [thread:$0]  (!%p12336_p8), %s13407_s7, 64, %s422_s26, [#allocation21]  }
  0x91   : > { %s11831_s30 = scalar_lea.hbm %s13370_s9, 96 }
  0x92   : > { %p11832_p4 = scmp.ne.s32.totalorder %s13370_s9, %s11831_s30  ;;  %p11838_p1 = scmp.lt.u32.totalorder %s11831_s30, %s13370_s9 }
  0x94   : > { %p11834_p6 = pnand %p11832_p4, %p12352_p10 }
  0x96   : > { %p11835_p0 = pneg %p11834_p6 }
  0x98   : > { %p11840_p2 = pnand %p11838_p1, %p11835_p0 }
  0x9a   : > { %11843 = shalt.err (!%p11840_p2)
}
  0x9b   : > { %s11844_s18 = scalar_lea.vmem %s446_s22, 96  ;;  %p11852_p9 = scmp.lt.s32.totalorder %s446_s22, %s446_s22 }
  0x9c   : > { %p11845_p3 = scmp.ne.s32.totalorder %s446_s22, %s11844_s18  ;;  %p11853_p11 = scmp.lt.s32.totalorder %s11844_s18, %s11844_s18 }
  0x9e   : > { %p11847_p5 = pnand %p11845_p3, %p12352_p10  ;;  %p11854_p12 = por %p11853_p11, %p11852_p9 }
  0xa0   : > { %p11848_p7 = pneg %p11847_p5 }
  0xa2   : > { %p11855_p13 = pnand %p11854_p12, %p11848_p7 }
  0xa4   : > { %11858 = shalt.err (!%p11855_p13)
}
  0xa5   : > { %10671 = dma.hbm_to_vmem [thread:$0]  (!%p12336_p8), %s13370_s9, 96, %s446_s22, [#allocation24]  }
  0xa6   : > { %s12181_s3 = smov [#allocation16]   ;;  %s13408_s4 = sld [smem:[#allocation52_spill]] }
  0xa7   : > { %s383_s10 = sshll.u32 %s12181_s3, 4  ;;  %s384_s10 = int_to_ptr.vmem [resolvable:$true] %s383_s10 }
  0xac   : > { %s11859_s30 = scalar_lea.hbm %s13408_s4, 24576 }
  0xad   : > { %p11860_p4 = scmp.ne.s32.totalorder %s13408_s4, %s11859_s30  ;;  %p11866_p1 = scmp.lt.u32.totalorder %s11859_s30, %s13408_s4 }
  0xaf   : > { %p11862_p6 = pnand %p11860_p4, %p12352_p10 }
  0xb1   : > { %p11863_p0 = pneg %p11862_p6 }
  0xb3   : > { %p11868_p2 = pnand %p11866_p1, %p11863_p0 }
  0xb5   : > { %11871 = shalt.err (!%p11868_p2)
}
  0xb6   : > { %s11872_s22 = scalar_lea.vmem %s384_s10, 24576  ;;  %p11880_p9 = scmp.lt.s32.totalorder %s384_s10, %s384_s10 }
  0xb7   : > { %p11873_p3 = scmp.ne.s32.totalorder %s384_s10, %s11872_s22  ;;  %p11881_p11 = scmp.lt.s32.totalorder %s11872_s22, %s11872_s22 }
  0xb9   : > { %p11875_p5 = pnand %p11873_p3, %p12352_p10  ;;  %p11882_p12 = por %p11881_p11, %p11880_p9 }
  0xbb   : > { %p11876_p7 = pneg %p11875_p5 }
  0xbd   : > { %p11883_p13 = pnand %p11882_p12, %p11876_p7 }
  0xbf   : > { %11886 = shalt.err (!%p11883_p13)
}
  0xc0   : > { %s12182_s18 = smov 256   ;;  %s12183_s26 = smov 16  }
  0xc1   : > { %10656 = dma.hbm_to_vmem [thread:$0]  (!%p12336_p8), %s13408_s4, 24576, %s384_s10, [#allocation14], %s12182_s18, %s12182_s18, %s12183_s26  }
  0xc2   : > { %s12184_s14 = smov [#allocation19]   ;;  %s12185_s30 = smov [#allocation22]  }
  0xc3   : > { %s407_s29 = sshll.u32 %s12184_s14, 4  ;;  %s431_s17 = sshll.u32 %s12185_s30, 4  ;;  %s408_s29 = int_to_ptr.vmem [resolvable:$true] %s407_s29  ;;  %s12472_s17 = int_to_ptr.vmem [resolvable:$true] %s431_s17 }
  0xc4   : > { %s13409_s6 = sld [smem:[#allocation54_spill]] }
  0xca   : > { %s11887_s15 = scalar_lea.hbm %s13409_s6, 16384 }
  0xcb   : > { %p11888_p4 = scmp.ne.s32.totalorder %s13409_s6, %s11887_s15  ;;  %p11894_p1 = scmp.lt.u32.totalorder %s11887_s15, %s13409_s6 }
  0xcd   : > { %p11890_p6 = pnand %p11888_p4, %p12352_p10 }
  0xcf   : > { %p11891_p0 = pneg %p11890_p6 }
  0xd1   : > { %p11896_p2 = pnand %p11894_p1, %p11891_p0 }
  0xd3   : > { %11899 = shalt.err (!%p11896_p2)
}
  0xd4   : > { %s11900_s3 = scalar_lea.vmem %s408_s29, 16384  ;;  %p11908_p9 = scmp.lt.s32.totalorder %s408_s29, %s408_s29 }
  0xd5   : > { %p11901_p3 = scmp.ne.s32.totalorder %s408_s29, %s11900_s3  ;;  %p11909_p11 = scmp.lt.s32.totalorder %s11900_s3, %s11900_s3 }
  0xd7   : > { %p11903_p5 = pnand %p11901_p3, %p12352_p10  ;;  %p11910_p12 = por %p11909_p11, %p11908_p9 }
  0xd9   : > { %p11904_p7 = pneg %p11903_p5 }
  0xdb   : > { %p11911_p13 = pnand %p11910_p12, %p11904_p7 }
  0xdd   : > { %11914 = shalt.err (!%p11911_p13)
}
  0xde   : > { %10662 = dma.hbm_to_vmem [thread:$0]  (!%p12336_p8), %s13409_s6, 16384, %s408_s29, [#allocation18], %s12182_s18, %s12182_s18, %s12183_s26  }
  0xdf   : > { %s11915_s13 = scalar_lea.hbm %s13369_s8, 24576 }
  0xe0   : > { %p11916_p4 = scmp.ne.s32.totalorder %s13369_s8, %s11915_s13  ;;  %p11922_p1 = scmp.lt.u32.totalorder %s11915_s13, %s13369_s8 }
  0xe2   : > { %p11918_p6 = pnand %p11916_p4, %p12352_p10 }
  0xe4   : > { %p11919_p0 = pneg %p11918_p6 }
  0xe6   : > { %p11924_p2 = pnand %p11922_p1, %p11919_p0 }
  0xe8   : > { %11927 = shalt.err (!%p11924_p2)
}
  0xe9   : > { %s11928_s18 = scalar_lea.vmem %s12472_s17, 24576  ;;  %p11936_p9 = scmp.lt.s32.totalorder %s12472_s17, %s12472_s17 }
  0xea   : > { %p11929_p3 = scmp.ne.s32.totalorder %s12472_s17, %s11928_s18  ;;  %p11937_p11 = scmp.lt.s32.totalorder %s11928_s18, %s11928_s18 }
  0xec   : > { %p11931_p5 = pnand %p11929_p3, %p12352_p10  ;;  %p11938_p12 = por %p11937_p11, %p11936_p9 }
  0xee   : > { %p11932_p7 = pneg %p11931_p5 }
  0xf0   : > { %p11939_p13 = pnand %p11938_p12, %p11932_p7 }
  0xf2   : > { %11942 = shalt.err (!%p11939_p13)
}
  0xf3   : > { %s13410_s26 = smov 24   ;;  %s13411_s29 = smov 384  }
  0xf4   : > { %10668 = dma.hbm_to_vmem [thread:$0]  (!%p12336_p8), %s13369_s8, 24576, %s12472_s17, [#allocation21], %s13411_s29, %s13411_s29, %s13410_s26  }
  0xf5   : > { %s12186_s14 = smov [#allocation25]   ;;  %s11943_s15 = scalar_lea.hbm %s13373_s12, 16 }
  0xf6   : > { %s456_s30 = sshll.u32 %s12186_s14, 4  ;;  %p11944_p4 = scmp.ne.s32.totalorder %s13373_s12, %s11943_s15  ;;  %s457_s30 = int_to_ptr.vmem [resolvable:$true] %s456_s30 }
  0xf7   : > { %p11950_p1 = scmp.lt.u32.totalorder %s11943_s15, %s13373_s12 }
  0xf8   : > { %p11946_p6 = pnand %p11944_p4, %p12352_p10 }
  0xfa   : > { %p11947_p0 = pneg %p11946_p6 }
  0xfc   : > { %p11952_p2 = pnand %p11950_p1, %p11947_p0 }
  0xfe   : > { %11955 = shalt.err (!%p11952_p2)
}
  0xff   : > { %s11956_s17 = scalar_lea.vmem %s457_s30, 16  ;;  %s11963_s26 = scalar_lea.vmem %s457_s30, 32 }
 0x100   : > { %p11957_p3 = scmp.ne.s32.totalorder %s457_s30, %s11956_s17  ;;  %p11964_p9 = scmp.lt.s32.totalorder %s457_s30, %s457_s30 }
 0x101   : > { %p11965_p11 = scmp.lt.s32.totalorder %s11963_s26, %s11956_s17 }
 0x102   : > { %p11959_p5 = pnand %p11957_p3, %p12352_p10 }
 0x103   : > { %p11966_p12 = por %p11965_p11, %p11964_p9 }
 0x104   : > { %p11960_p7 = pneg %p11959_p5 }
 0x106   : > { %p11967_p13 = pnand %p11966_p12, %p11960_p7 }
 0x108   : > { %11970 = shalt.err (!%p11967_p13)
}
 0x109   : > { %10674 = dma.hbm_to_vmem [thread:$0]  (!%p12336_p8), %s13373_s12, 16, %s457_s30, [#allocation24]  }
 0x10a   : > { %s9712_s11 = sadd.s32 4294967294, %s12171_s27   ;;  %s49_s21 = sadd.s32 1, %s12167_s0 }
 0x10b   : > { %s113_s16 = sadd.s32 1, %s12159_s25  ;;  %p50_p10 = scmp.ge.s32.totalorder %s49_s21, 5 }
 0x10c   : > { %p120_p4 = scmp.ne.s32.totalorder %s12159_s25, %s12155_s24  ;;  %p121_p6 = scmp.eq.s32.totalorder %s12171_s27, 0 }
 0x10d   : > { %p126_p0 = scmp.ne.s32.totalorder %s12155_s24, %s12151_s23  ;;  %s13449_s21 = smov (%p50_p10, %s49_s21), 0 }
 0x10e   : > { %p12546_p1 = por %p121_p6, %p120_p4  ;;  %p13413_p8 = scmp.eq.s32.totalorder %s12321_s28, 0 }
 0x10f   : > { %s109_s19 = ssub.s32 %s12167_s0, %s13449_s21  ;;  %p299_p3 = scmp.eq.s32.totalorder %s12321_s28, 4 }
 0x110   : > { %p12552_p2 = por %p13413_p8, %p126_p0  ;;  %p111_p5 = scmp.eq.s32.totalorder %s109_s19, 0 }
 0x111   : > { %p305_p7 = scmp.eq.s32.totalorder %s9712_s11, 4  ;;  %p12559_p9 = por %p299_p3, %p120_p4 }
 0x112   : > { %p10695_p11 = scmp.lt.s32.totalorder %s12171_s27, 5  ;;  %s467_s20 = sand.u32 1, %s12171_s27  }
 0x113   : > { %s13415_s13 = scalar_select %p12559_p9, 1, 0 }
 0x114   : > { %s12565_s15 = scalar_select %p111_p5, %s12159_s25, %s113_s16  }
 0x115   : > { %p12567_p12 = por %p305_p7, %p126_p0  ;;  %s469_s10 = sand.u32 1, %s12159_s25  }
 0x116   : > { %s9724_s18 = sshll.u32 %s469_s10, 6  ;;  %s10338_s17 = sshll.u32 %s12167_s0, 10 }
 0x117   : > { %s13416_s22 = scalar_select %p12567_p12, 1, 0 }
 0x118   : > { %s13417_s3 = sld [smem:[#allocation51_spill]]  ;;  %s471_s11 = scalar_lea.vmem [#allocation15], %s9724_s18 }
 0x119   : > { %s481_s16 = sshll.u32 %s471_s11, 4  ;;  %p12581_p13 = pnand %p10695_p11, %p12546_p1  ;;  %s12585_s16 = int_to_ptr.vmem [resolvable:$true] %s481_s16 }
 0x11a   : > { %s468_s10 = scalar_lea.sflag [#allocation11], %s467_s20 }
 0x11b   : > { %p11973_p4 = pneg %p12581_p13 }
 0x11e   : > { %s12577_s19 = scalar_lea.hbm %s13417_s3, %s10338_s17  ;;  %s11976_s14 = scalar_lea.hbm %s13417_s3, 5120 }
 0x11f   : > { %s11971_s2 = scalar_lea.hbm %s12577_s19, 1024  ;;  %p11977_p1 = scmp.lt.u32.totalorder %s12577_s19, %s13417_s3 }
 0x120   : > { %p11972_p10 = scmp.ne.s32.totalorder %s12577_s19, %s11971_s2  ;;  %p11978_p8 = scmp.lt.u32.totalorder %s11976_s14, %s11971_s2 }
 0x121   : > { %p11980_p5 = scmp.lt.u32.totalorder %s11971_s2, %s12577_s19 }
 0x122   : > { %p11974_p6 = pnand %p11973_p4, %p11972_p10  ;;  %p11979_p3 = por %p11978_p8, %p11977_p1 }
 0x124   : > { %p11975_p0 = pneg %p11974_p6  ;;  %p11981_p7 = por %p11980_p5, %p11979_p3 }
 0x126   : > { %p11982_p11 = pnand %p11981_p7, %p11975_p0 }
 0x128   : > { %11985 = shalt.err (!%p11982_p11)
}
 0x129   : > { %s11986_s20 = scalar_lea.vmem %s12585_s16, 1024  ;;  %s12187_s11 = smov [#allocation15]  }
 0x12a   : > { %p11987_p10 = scmp.ne.s32.totalorder %s12585_s16, %s11986_s20  ;;  %s11991_s18 = sshll.u32 %s12187_s11, 4  ;;  %s11992_s18 = int_to_ptr.vmem [resolvable:$false] %s11991_s18 }
 0x12b   : > { %s11993_s17 = scalar_lea.vmem %s11992_s18, 2048  ;;  %p11994_p9 = scmp.lt.s32.totalorder %s12585_s16, %s11992_s18 }
 0x12c   : > { %p11989_p6 = pnand %p11987_p10, %p11973_p4  ;;  %p11995_p1 = scmp.lt.s32.totalorder %s11993_s17, %s11986_s20 }
 0x12e   : > { %p11990_p12 = pneg %p11989_p6  ;;  %p11996_p8 = por %p11995_p1, %p11994_p9 }
 0x130   : > { %p11997_p3 = pnand %p11996_p8, %p11990_p12 }
 0x132   : > { %12000 = shalt.err (!%p11997_p3)
}
 0x133   : > { %10678 = dma.hbm_to_vmem [thread:$0]  (!%p12581_p13), %s12577_s19, 1024, %s12585_s16, %s468_s10  }
 0x134   : > { %s13419_s2 = sld [smem:[#allocation48_spill]] }
 0x13a   : > { %p13420_p0 = scmp.ne.s32.totalorder %s13419_s2, 0 }
 0x13b   : > { %p13421_p4 = scmp.eq.s32.totalorder (!%p13420_p0), %s12321_s28, 0 }
 0x13c   : > { %490 = sbr.rel (%p13420_p0) target bundleno = 4298 (0x10ca), region = 60 }
 0x143   : > { %12106 = dma.done.wait (%p13421_p4), [#allocation11], 3072   ;;  %p13422_p5 = pmov %p13421_p4 }
 0x144   : > { %p13423_p7 = pmov %p13421_p4 }
 0x145   : > { %12108 = vsyncadd (%p13422_p5), [#allocation11], 4294964224 }
 0x146   : > { %12110 = dma.done.wait (%p13423_p7), [#allocation14], 512   ;;  %p13424_p9 = pmov %p13421_p4 }
 0x147   : > { %s500_s1 = sand.u32 1, %s12321_s28   ;;  %s12624_s19 = sand.u32 1, %s12155_s24  }
 0x148   : > { %12112 = vsyncadd (%p13424_p9), [#allocation14], 4294966784  ;;  %s9730_s16 = sshll.u32 %s12624_s19, 6  ;;  %s501_s10 = scalar_lea.sflag [#allocation11], %s500_s1 }
 0x149   : > { %s12627_s14 = scalar_lea.vmem [#allocation15], %s9730_s16 }
 0x14a   : > { %12114 = dma.done.wait (%p12552_p2), %s501_s10, 1024  }
 0x14b   : > { %12116 = vsyncadd (%p12552_p2), %s501_s10, 4294966272  ;;  %p13425_p12 = pmov %p13421_p4 }
 0x14c   : > { %p13426_p13 = pmov %p13421_p4 }
 0x14d   : > { %12118 = dma.done.wait (%p13425_p12), [#allocation14], 24576  }
 0x14e   : > { %12120 = vsyncadd (%p13426_p13), [#allocation14], 4294942720  ;;  %p13427_p11 = pmov %p13421_p4 }
 0x14f   : > { %p13428_p10 = pmov %p13421_p4 }
 0x150   : > { %12122 = dma.done.wait (%p13427_p11), [#allocation18], 16448  }
 0x151   : > { %12124 = vsyncadd (%p13428_p10), [#allocation18], 4294950848  ;;  %p13429_p6 = pmov %p13421_p4 }
 0x152   : > { %p13430_p1 = pmov %p13421_p4 }
 0x153   : > { %12126 = dma.done.wait (%p13429_p6), [#allocation21], 24640  }
 0x154   : > { %12128 = vsyncadd (%p13430_p1), [#allocation21], 4294942656  ;;  %p13431_p2 = pmov %p13430_p1 }
 0x155   : > { %p13432_p8 = pmov %p13430_p1 }
 0x156   : > { %12130 = dma.done.wait (%p13431_p2), [#allocation24], 112  }
 0x157   : > { %12132 = vsyncadd (%p13432_p8), [#allocation24], 4294967184  ;;  %s9738_s30 = sshll.u32 %s12624_s19, 2  ;;  %s13433_s20 = sld [smem:[#allocation47_spill]] }
 0x158   : > { %s12650_s26 = scalar_lea.vmem [#allocation26], %s9738_s30  ;;  %s12652_s29 = scalar_lea.vmem [#allocation27], %s9738_s30 }
 0x15d   : > { %p9740_p3 = scmp.ne.s32.totalorder %s13433_s20, 0 }
 0x15f   : > { %582 = sbr.rel (%p9740_p3) target bundleno = 813 (0x32d), region = 104 }
 0x166   : > { %s587_s11 = sld [smem:[#allocation0]]   ;;  %s12188_s18 = smov [#allocation5]  }
 0x167   : > { %s595_s17 = sshll.u32 %s12188_s18, 4  ;;  %s12189_s2 = smov 2048   ;;  %s596_s17 = int_to_ptr.vmem [resolvable:$true] %s595_s17 }
 0x168   : > { %599 = sst [smem:[#allocation30]] %s12189_s2  ;;  %s12190_s1 = smov 16  }
 0x169   : > { %601 = sst [smem:[#allocation30 + $0x1]] %s12189_s2  ;;  %s12191_s28 = smov 64  }
 0x16a   : > { %603 = sst [smem:[#allocation30 + $0x2]] %s12190_s1  ;;  %s12192_s10 = smov 128  }
 0x16b   : > { %605 = sst [smem:[#allocation30 + $0x3]] %s12191_s28  ;;  %s12193_s30 = smov 2  }
 0x16c   : > { %s9741_s16 = sshll.u32 %s587_s11, 26  ;;  %607 = sst [smem:[#allocation30 + $0x4]] %s12192_s10 }
 0x16d   : > { %s9742_s3 = sadd.s32 134217728, %s9741_s16  ;;  %609 = sst [smem:[#allocation30 + $0x5]] %s12193_s30 }
 0x16e   : > { %s12194_s4 = smov 1024   ;;  %613 = sst [smem:[#allocation30 + $0x7]] %s12191_s28 }
 0x16f   : > { %611 = sst [smem:[#allocation30 + $0x6]] %s12194_s4  ;;  %s12195_s20 = smov 4  }
 0x170   : > { %615 = sst [smem:[#allocation30 + $0x8]] %s12195_s20  ;;  %s12196_s18 = smov [#allocation7]  }
 0x171   : > { %s12197_s5 = smov [#allocation29]   ;;  %s13434_s2 = sld [smem:[#allocation56_spill]] }
 0x172   : > { %s12198_s4 = smov [#allocation6]  }
 0x177   : > { %617 = dma.general %s13434_s2, 163840, %s596_s17, %s12196_s18, %s12197_s5, [#allocation30], %s9742_s3, 0  }
 0x178   : > { %v630_v0 = vld [vmem:[#allocation13] sm:$0xff]  ;;  %v631_v1 = vld [vmem:[#allocation13 + $0x8] sm:$0xff]  ;;  %v634_v2 = vld [vmem:[#allocation13 + $0x10] sm:$0xff]  ;;  %s626_s5 = sshll.u32 %s12198_s4, 4  ;;  %s13435_s3 = sld [smem:[#allocation57_spill]]  ;;  %s627_s5 = int_to_ptr.vmem [resolvable:$true] %s626_s5 }
 0x179   : > { %632 = vst [vmem:[#allocation2] sm:$0xff] %v630_v0  ;;  %633 = vst [vmem:[#allocation2 + $0x8] sm:$0xff] %v631_v1  ;;  %v635_v3 = vld [vmem:[#allocation13 + $0x18] sm:$0xff]  ;;  %v10783_v4 = vld [vmem:[#allocation16 + $0x4] ss:$16 sps:$4 sm:$0xff]  }
 0x17a   : > { %636 = vst [vmem:[#allocation3] sm:$0xff] %v634_v2  ;;  %637 = vst [vmem:[#allocation3 + $0x8] sm:$0xff] %v635_v3  ;;  %v10785_v5 = vld [vmem:[#allocation16 + $0xc] ss:$16 sps:$4 sm:$0xff]   ;;  %v10787_v6 = vld [vmem:[#allocation16] ss:$16 sps:$4 sm:$0xff]   ;;  %1956 = vmatprep.subr.bf16.mxu0 %v10783_v4 }
 0x17b   : > { %v10788_v7 = vld [vmem:[#allocation16 + $0x8] ss:$16 sps:$4 sm:$0xff]   ;;  %v10789_v8 = vld [vmem:[#allocation16 + $0x24] ss:$16 sps:$4 sm:$0xff]   ;;  %2175 = vmatprep.subr.bf16.mxu1 %v10785_v5  ;;  %1957 = vmatpush1.bf16.msra.mxu0 %v10787_v6  ;;  %v10791_v9 = vld [vmem:[#allocation16 + $0x2c] ss:$16 sps:$4 sm:$0xff]  }
 0x17c   : > { %2176 = vmatpush1.bf16.msra.mxu1 %v10788_v7  ;;  %1958 = vmatprep.subr.bf16.mxu0 %v10789_v8  ;;  %v10793_v10 = vld [vmem:[#allocation16 + $0x20] ss:$16 sps:$4 sm:$0xff]   ;;  %v10794_v11 = vld [vmem:[#allocation16 + $0x28] ss:$16 sps:$4 sm:$0xff]   ;;  %v10795_v12 = vld [vmem:[#allocation16 + $0x44] ss:$16 sps:$4 sm:$0xff]  }
 0x17d   : > { %2177 = vmatprep.subr.bf16.mxu1 %v10791_v9  ;;  %v10797_v13 = vld [vmem:[#allocation16 + $0x4c] ss:$16 sps:$4 sm:$0xff]   ;;  %v10799_v14 = vld [vmem:[#allocation16 + $0x40] ss:$16 sps:$4 sm:$0xff]   ;;  %v10800_v15 = vld [vmem:[#allocation16 + $0x48] ss:$16 sps:$4 sm:$0xff]  }
 0x17e   : > { %v10801_v16 = vld [vmem:[#allocation16 + $0x64] ss:$16 sps:$4 sm:$0xff]   ;;  %v10803_v17 = vld [vmem:[#allocation16 + $0x6c] ss:$16 sps:$4 sm:$0xff]   ;;  %v10805_v18 = vld [vmem:[#allocation16 + $0x60] ss:$16 sps:$4 sm:$0xff]  }
 0x17f   : > { %1959 = vmatpush1.bf16.msra.mxu0 %v10793_v10  ;;  %v10806_v19 = vld [vmem:[#allocation16 + $0x68] ss:$16 sps:$4 sm:$0xff]   ;;  %v10807_v20 = vld [vmem:[#allocation16 + $0x84] ss:$16 sps:$4 sm:$0xff]   ;;  %v10809_v21 = vld [vmem:[#allocation16 + $0x8c] ss:$16 sps:$4 sm:$0xff]  }
 0x180   : > { %2178 = vmatpush1.bf16.msra.mxu1 %v10794_v11  ;;  %1960 = vmatprep.subr.bf16.mxu0 %v10795_v12  ;;  %v10811_v22 = vld [vmem:[#allocation16 + $0x80] ss:$16 sps:$4 sm:$0xff]   ;;  %v10812_v23 = vld [vmem:[#allocation16 + $0x88] ss:$16 sps:$4 sm:$0xff]   ;;  %v10813_v24 = vld [vmem:[#allocation16 + $0xa4] ss:$16 sps:$4 sm:$0xff]  }
 0x181   : > { %2179 = vmatprep.subr.bf16.mxu1 %v10797_v13  ;;  %v10815_v25 = vld [vmem:[#allocation16 + $0xac] ss:$16 sps:$4 sm:$0xff]   ;;  %v10817_v26 = vld [vmem:[#allocation16 + $0xa0] ss:$16 sps:$4 sm:$0xff]   ;;  %v10818_v27 = vld [vmem:[#allocation16 + $0xa8] ss:$16 sps:$4 sm:$0xff]  }
 0x182   : > { %v10819_v28 = vld [vmem:[#allocation16 + $0xc4] ss:$16 sps:$4 sm:$0xff]   ;;  %v10821_v29 = vld [vmem:[#allocation16 + $0xcc] ss:$16 sps:$4 sm:$0xff]   ;;  %v10823_v30 = vld [vmem:[#allocation16 + $0xc0] ss:$16 sps:$4 sm:$0xff]  }
 0x183   : > { %1961 = vmatpush1.bf16.msra.mxu0 %v10799_v14  ;;  %v10824_v31 = vld [vmem:[#allocation16 + $0xc8] ss:$16 sps:$4 sm:$0xff]   ;;  %v10825_v32 = vld [vmem:[#allocation16 + $0xe4] ss:$16 sps:$4 sm:$0xff]   ;;  %v10827_v33 = vld [vmem:[#allocation16 + $0xec] ss:$16 sps:$4 sm:$0xff]  }
 0x184   : > { %2180 = vmatpush1.bf16.msra.mxu1 %v10800_v15  ;;  %1962 = vmatprep.subr.bf16.mxu0 %v10801_v16  ;;  %v10829_v34 = vld [vmem:[#allocation16 + $0xe0] ss:$16 sps:$4 sm:$0xff]   ;;  %v10830_v35 = vld [vmem:[#allocation16 + $0xe8] ss:$16 sps:$4 sm:$0xff]   ;;  %v10831_v36 = vld [vmem:[#allocation16 + $0x104] ss:$16 sps:$4 sm:$0xff]  }
 0x185   : > { %2181 = vmatprep.subr.bf16.mxu1 %v10803_v17  ;;  %v10833_v37 = vld [vmem:[#allocation16 + $0x10c] ss:$16 sps:$4 sm:$0xff]   ;;  %v10835_v38 = vld [vmem:[#allocation16 + $0x100] ss:$16 sps:$4 sm:$0xff]   ;;  %v10836_v39 = vld [vmem:[#allocation16 + $0x108] ss:$16 sps:$4 sm:$0xff]  }
 0x186   : > { %v10837_v40 = vld [vmem:[#allocation16 + $0x124] ss:$16 sps:$4 sm:$0xff]   ;;  %v10839_v41 = vld [vmem:[#allocation16 + $0x12c] ss:$16 sps:$4 sm:$0xff]   ;;  %v10841_v42 = vld [vmem:[#allocation16 + $0x120] ss:$16 sps:$4 sm:$0xff]  }
 0x187   : > { %1963 = vmatpush1.bf16.msra.mxu0 %v10805_v18  ;;  %v10842_v43 = vld [vmem:[#allocation16 + $0x128] ss:$16 sps:$4 sm:$0xff]   ;;  %v10843_v44 = vld [vmem:[#allocation16 + $0x144] ss:$16 sps:$4 sm:$0xff]   ;;  %v10845_v45 = vld [vmem:[#allocation16 + $0x14c] ss:$16 sps:$4 sm:$0xff]  }
 0x188   : > { %2182 = vmatpush1.bf16.msra.mxu1 %v10806_v19  ;;  %1964 = vmatprep.subr.bf16.mxu0 %v10807_v20  ;;  %v10847_v46 = vld [vmem:[#allocation16 + $0x140] ss:$16 sps:$4 sm:$0xff]   ;;  %v10848_v47 = vld [vmem:[#allocation16 + $0x148] ss:$16 sps:$4 sm:$0xff]   ;;  %v10849_v48 = vld [vmem:[#allocation16 + $0x164] ss:$16 sps:$4 sm:$0xff]  }
 0x189   : > { %2183 = vmatprep.subr.bf16.mxu1 %v10809_v21  ;;  %v10851_v49 = vld [vmem:[#allocation16 + $0x16c] ss:$16 sps:$4 sm:$0xff]   ;;  %v10853_v50 = vld [vmem:[#allocation16 + $0x160] ss:$16 sps:$4 sm:$0xff]   ;;  %v10854_v52 = vld [vmem:[#allocation16 + $0x168] ss:$16 sps:$4 sm:$0xff]  }
 0x18a   : > { %v10881_v51 = vld [vmem:[#allocation10 + $0x4] ss:$24 sps:$4 sm:$0xff]   ;;  %v10859_v55 = vld [vmem:[#allocation16 + $0x180] ss:$16 sps:$4 sm:$0xff]   ;;  %v10860_v56 = vld [vmem:[#allocation16 + $0x188] ss:$16 sps:$4 sm:$0xff]  }
 0x18b   : > { %1965 = vmatpush1.bf16.msra.mxu0 %v10811_v22  ;;  %v10855_v53 = vld [vmem:[#allocation16 + $0x184] ss:$16 sps:$4 sm:$0xff]   ;;  %v10857_v54 = vld [vmem:[#allocation16 + $0x18c] ss:$16 sps:$4 sm:$0xff]   ;;  %1988 = vmatprep.mubr.bf16.mxu0 %v10881_v51  ;;  %v10865_v59 = vld [vmem:[#allocation16 + $0x1a0] ss:$16 sps:$4 sm:$0xff]  }
 0x18c   : > { %2184 = vmatpush1.bf16.msra.mxu1 %v10812_v23  ;;  %1966 = vmatprep.subr.bf16.mxu0 %v10813_v24  ;;  %v10861_v57 = vld [vmem:[#allocation16 + $0x1a4] ss:$16 sps:$4 sm:$0xff]   ;;  %v10863_v58 = vld [vmem:[#allocation16 + $0x1ac] ss:$16 sps:$4 sm:$0xff]   ;;  %v10866_v60 = vld [vmem:[#allocation16 + $0x1a8] ss:$16 sps:$4 sm:$0xff]  }
 0x18d   : > { %2185 = vmatprep.subr.bf16.mxu1 %v10815_v25  ;;  %2207 = vmatprep.mubr.bf16.mxu1 %v10881_v51  ;;  %v10867_v61 = vld [vmem:[#allocation16 + $0x1c4] ss:$16 sps:$4 sm:$0xff]   ;;  %v10869_v62 = vld [vmem:[#allocation16 + $0x1cc] ss:$16 sps:$4 sm:$0xff]   ;;  %v10871_v63 = vld [vmem:[#allocation16 + $0x1c0] ss:$16 sps:$4 sm:$0xff]  }
 0x18e   : > { %v10872_v0 = vld [vmem:[#allocation16 + $0x1c8] ss:$16 sps:$4 sm:$0xff]   ;;  %v10873_v1 = vld [vmem:[#allocation16 + $0x1e4] ss:$16 sps:$4 sm:$0xff]   ;;  %v10875_v2 = vld [vmem:[#allocation16 + $0x1ec] ss:$16 sps:$4 sm:$0xff]  }
 0x18f   : > { %1967 = vmatpush1.bf16.msra.mxu0 %v10817_v26  ;;  %v10877_v3 = vld [vmem:[#allocation16 + $0x1e0] ss:$16 sps:$4 sm:$0xff]   ;;  %v10878_v4 = vld [vmem:[#allocation16 + $0x1e8] ss:$16 sps:$4 sm:$0xff]   ;;  %v10884_v5 = vld [vmem:[#allocation16 + $0x204] ss:$16 sps:$4 sm:$0xff]  }
 0x190   : > { %2186 = vmatpush1.bf16.msra.mxu1 %v10818_v27  ;;  %1968 = vmatprep.subr.bf16.mxu0 %v10819_v28  ;;  %v10887_v6 = vld [vmem:[#allocation16 + $0x20c] ss:$16 sps:$4 sm:$0xff]   ;;  %v10879_v7 = vld [vmem:[#allocation10] ss:$24 sps:$4 sm:$0xff]   ;;  %v10890_v10 = vld [vmem:[#allocation16 + $0x224] ss:$16 sps:$4 sm:$0xff]  }
 0x191   : > { %2187 = vmatprep.subr.bf16.mxu1 %v10821_v29  ;;  %v10882_v8 = vld [vmem:[#allocation16 + $0x200] ss:$16 sps:$4 sm:$0xff]   ;;  %v10885_v9 = vld [vmem:[#allocation16 + $0x208] ss:$16 sps:$4 sm:$0xff]   ;;  %v10893_v11 = vld [vmem:[#allocation16 + $0x22c] ss:$16 sps:$4 sm:$0xff]  }
 0x192   : > { %v10888_v12 = vld [vmem:[#allocation16 + $0x220] ss:$16 sps:$4 sm:$0xff]   ;;  %v10891_v13 = vld [vmem:[#allocation16 + $0x228] ss:$16 sps:$4 sm:$0xff]   ;;  %v10896_v14 = vld [vmem:[#allocation16 + $0x244] ss:$16 sps:$4 sm:$0xff]  }
 0x193   : > { %1969 = vmatpush1.bf16.msra.mxu0 %v10823_v30  ;;  %v10894_v15 = vld [vmem:[#allocation16 + $0x240] ss:$16 sps:$4 sm:$0xff]   ;;  %v10899_v16 = vld [vmem:[#allocation16 + $0x24c] ss:$16 sps:$4 sm:$0xff]   ;;  %v10897_v18 = vld [vmem:[#allocation16 + $0x248] ss:$16 sps:$4 sm:$0xff]  }
 0x194   : > { %2188 = vmatpush1.bf16.msra.mxu1 %v10824_v31  ;;  %1970 = vmatprep.subr.bf16.mxu0 %v10825_v32  ;;  %v10942_v17 = vld [vmem:[#allocation10 + $0x34] ss:$24 sps:$4 sm:$0xff]   ;;  %v10950_v21 = vld [vmem:[#allocation10 + $0x30] ss:$24 sps:$4 sm:$0xff]   ;;  %v10957_v26 = vld [vmem:[#allocation10 + $0x64] ss:$24 sps:$4 sm:$0xff]  }
 0x195   : > { %2189 = vmatprep.subr.bf16.mxu1 %v10827_v33  ;;  %v10902_v19 = vld [vmem:[#allocation16 + $0x264] ss:$16 sps:$4 sm:$0xff]   ;;  %v10905_v20 = vld [vmem:[#allocation16 + $0x26c] ss:$16 sps:$4 sm:$0xff]   ;;  %v10900_v22 = vld [vmem:[#allocation16 + $0x260] ss:$16 sps:$4 sm:$0xff]  }
 0x196   : > { %v10903_v23 = vld [vmem:[#allocation16 + $0x268] ss:$16 sps:$4 sm:$0xff]   ;;  %v10908_v24 = vld [vmem:[#allocation16 + $0x284] ss:$16 sps:$4 sm:$0xff]   ;;  %v10911_v25 = vld [vmem:[#allocation16 + $0x28c] ss:$16 sps:$4 sm:$0xff]  }
 0x197   : > { %1971 = vmatpush1.bf16.msra.mxu0 %v10829_v34  ;;  %v10906_v27 = vld [vmem:[#allocation16 + $0x280] ss:$16 sps:$4 sm:$0xff]   ;;  %v10909_v28 = vld [vmem:[#allocation16 + $0x288] ss:$16 sps:$4 sm:$0xff]   ;;  %v10914_v29 = vld [vmem:[#allocation16 + $0x2a4] ss:$16 sps:$4 sm:$0xff]  }
 0x198   : > { %2190 = vmatpush1.bf16.msra.mxu1 %v10830_v35  ;;  %1972 = vmatprep.subr.bf16.mxu0 %v10831_v36  ;;  %v10965_v30 = vld [vmem:[#allocation10 + $0x60] ss:$24 sps:$4 sm:$0xff]   ;;  %v10917_v32 = vld [vmem:[#allocation16 + $0x2ac] ss:$16 sps:$4 sm:$0xff]   ;;  %v10920_v34 = vld [vmem:[#allocation16 + $0x2c4] ss:$16 sps:$4 sm:$0xff]  }
 0x199   : > { %2191 = vmatprep.subr.bf16.mxu1 %v10833_v37  ;;  %v10912_v31 = vld [vmem:[#allocation16 + $0x2a0] ss:$16 sps:$4 sm:$0xff]   ;;  %v10915_v33 = vld [vmem:[#allocation16 + $0x2a8] ss:$16 sps:$4 sm:$0xff]   ;;  %v10972_v35 = vld [vmem:[#allocation10 + $0x94] ss:$24 sps:$4 sm:$0xff]  }
 0x19a   : > { %v10923_v36 = vld [vmem:[#allocation16 + $0x2cc] ss:$16 sps:$4 sm:$0xff]   ;;  %v10918_v37 = vld [vmem:[#allocation16 + $0x2c0] ss:$16 sps:$4 sm:$0xff]   ;;  %s12001_s11 = scalar_lea.hbm %s13435_s3, 4096 }
 0x19b   : > { %1973 = vmatpush1.bf16.msra.mxu0 %v10835_v38  ;;  %v10980_v38 = vld [vmem:[#allocation10 + $0x90] ss:$24 sps:$4 sm:$0xff]   ;;  %p12002_p0 = scmp.ne.s32.totalorder %s13435_s3, %s12001_s11  ;;  %p12005_p4 = scmp.lt.u32.totalorder %s12001_s11, %s13435_s3 }
 0x19c   : > { %2192 = vmatpush1.bf16.msra.mxu1 %v10836_v39  ;;  %1974 = vmatprep.subr.bf16.mxu0 %v10837_v40  ;;  %v10921_v39 = vld [vmem:[#allocation16 + $0x2c8] ss:$16 sps:$4 sm:$0xff]   ;;  %v10926_v40 = vld [vmem:[#allocation16 + $0x2e4] ss:$16 sps:$4 sm:$0xff]   ;;  %v10936_v51 = vld [vmem:[#allocation16 + $0x320] ss:$16 sps:$4 sm:$0xff]  }
 0x19d   : > { %2193 = vmatprep.subr.bf16.mxu1 %v10839_v41  ;;  %v10929_v41 = vld [vmem:[#allocation16 + $0x2ec] ss:$16 sps:$4 sm:$0xff]   ;;  %p12007_p5 = pnand %p12005_p4, %p12002_p0 }
 0x19f   : > { %1975 = vmatpush1.bf16.msra.mxu0 %v10841_v42  ;;  %v10924_v42 = vld [vmem:[#allocation16 + $0x2e0] ss:$16 sps:$4 sm:$0xff]  }
 0x1a0   : > { %2194 = vmatpush1.bf16.msra.mxu1 %v10842_v43  ;;  %1976 = vmatprep.subr.bf16.mxu0 %v10843_v44  ;;  %v10989_v43 = vld [vmem:[#allocation10 + $0xc] ss:$24 sps:$4 sm:$0xff]   ;;  %v10927_v44 = vld [vmem:[#allocation16 + $0x2e8] ss:$16 sps:$4 sm:$0xff]  }
 0x1a1   : > { %2195 = vmatprep.subr.bf16.mxu1 %v10845_v45  ;;  %v10932_v45 = vld [vmem:[#allocation16 + $0x304] ss:$16 sps:$4 sm:$0xff]  }
 0x1a3   : > { %1977 = vmatpush1.bf16.msra.mxu0 %v10847_v46  ;;  %v10935_v46 = vld [vmem:[#allocation16 + $0x30c] ss:$16 sps:$4 sm:$0xff]  }
 0x1a4   : > { %2196 = vmatpush1.bf16.msra.mxu1 %v10848_v47  ;;  %1978 = vmatprep.subr.bf16.mxu0 %v10849_v48  ;;  %v10930_v47 = vld [vmem:[#allocation16 + $0x300] ss:$16 sps:$4 sm:$0xff]   ;;  %v10933_v48 = vld [vmem:[#allocation16 + $0x308] ss:$16 sps:$4 sm:$0xff]  }
 0x1a5   : > { %2197 = vmatprep.subr.bf16.mxu1 %v10851_v49  ;;  %v10938_v49 = vld [vmem:[#allocation16 + $0x324] ss:$16 sps:$4 sm:$0xff]  }
 0x1a7   : > { %1979 = vmatpush1.bf16.msra.mxu0 %v10853_v50  ;;  %v10941_v50 = vld [vmem:[#allocation16 + $0x32c] ss:$16 sps:$4 sm:$0xff]  }
 0x1a8   : > { %2198 = vmatpush1.bf16.msra.mxu1 %v10854_v52  ;;  %1980 = vmatprep.subr.bf16.mxu0 %v10855_v53  ;;  %v10939_v52 = vld [vmem:[#allocation16 + $0x328] ss:$16 sps:$4 sm:$0xff]   ;;  %v10946_v53 = vld [vmem:[#allocation16 + $0x344] ss:$16 sps:$4 sm:$0xff]  }
 0x1a9   : > { %2199 = vmatprep.subr.bf16.mxu1 %v10857_v54  ;;  %v10949_v54 = vld [vmem:[#allocation16 + $0x34c] ss:$16 sps:$4 sm:$0xff]  }
 0x1ab   : > { %1981 = vmatpush1.bf16.msra.mxu0 %v10859_v55  ;;  %v10944_v55 = vld [vmem:[#allocation16 + $0x340] ss:$16 sps:$4 sm:$0xff]  }
 0x1ac   : > { %2200 = vmatpush1.bf16.msra.mxu1 %v10860_v56  ;;  %1982 = vmatprep.subr.bf16.mxu0 %v10861_v57  ;;  %v10947_v56 = vld [vmem:[#allocation16 + $0x348] ss:$16 sps:$4 sm:$0xff]   ;;  %v10953_v57 = vld [vmem:[#allocation16 + $0x364] ss:$16 sps:$4 sm:$0xff]  }
 0x1ad   : > { %2201 = vmatprep.subr.bf16.mxu1 %v10863_v58  ;;  %v10956_v58 = vld [vmem:[#allocation16 + $0x36c] ss:$16 sps:$4 sm:$0xff]  }
 0x1af   : > { %1983 = vmatpush1.bf16.msra.mxu0 %v10865_v59  ;;  %v10951_v59 = vld [vmem:[#allocation16 + $0x360] ss:$16 sps:$4 sm:$0xff]  }
 0x1b0   : > { %2202 = vmatpush1.bf16.msra.mxu1 %v10866_v60  ;;  %1984 = vmatprep.subr.bf16.mxu0 %v10867_v61  ;;  %v10954_v60 = vld [vmem:[#allocation16 + $0x368] ss:$16 sps:$4 sm:$0xff]   ;;  %v10961_v61 = vld [vmem:[#allocation16 + $0x384] ss:$16 sps:$4 sm:$0xff]  }
 0x1b1   : > { %2203 = vmatprep.subr.bf16.mxu1 %v10869_v62  ;;  %v10964_v62 = vld [vmem:[#allocation16 + $0x38c] ss:$16 sps:$4 sm:$0xff]  }
 0x1b3   : > { %1985 = vmatpush1.bf16.msra.mxu0 %v10871_v63  ;;  %v10959_v63 = vld [vmem:[#allocation16 + $0x380] ss:$16 sps:$4 sm:$0xff]  }
 0x1b4   : > { %2204 = vmatpush1.bf16.msra.mxu1 %v10872_v0  ;;  %1986 = vmatprep.subr.bf16.mxu0 %v10873_v1  ;;  %v10962_v0 = vld [vmem:[#allocation16 + $0x388] ss:$16 sps:$4 sm:$0xff]   ;;  %v10968_v1 = vld [vmem:[#allocation16 + $0x3a4] ss:$16 sps:$4 sm:$0xff]  }
 0x1b5   : > { %2205 = vmatprep.subr.bf16.mxu1 %v10875_v2  ;;  %v10971_v2 = vld [vmem:[#allocation16 + $0x3ac] ss:$16 sps:$4 sm:$0xff]  }
 0x1b7   : > { %1987 = vmatpush1.bf16.msra.mxu0 %v10877_v3  ;;  %v10966_v3 = vld [vmem:[#allocation16 + $0x3a0] ss:$16 sps:$4 sm:$0xff]  }
 0x1b8   : > { %2206 = vmatpush1.bf16.msra.mxu1 %v10878_v4  ;;  %2029 = vmatprep.subr.bf16.mxu0 %v10884_v5  ;;  %v10969_v4 = vld [vmem:[#allocation16 + $0x3a8] ss:$16 sps:$4 sm:$0xff]   ;;  %v10976_v5 = vld [vmem:[#allocation16 + $0x3c4] ss:$16 sps:$4 sm:$0xff]  }
 0x1b9   : > { %2248 = vmatprep.subr.bf16.mxu1 %v10887_v6  ;;  %v10979_v6 = vld [vmem:[#allocation16 + $0x3cc] ss:$16 sps:$4 sm:$0xff]  }
 0x1ba   : > { %1989 = vmatmul.mubr.bf16.vlgmr.msra.gmra.mrb[0].mxu0 %v10879_v7 }
 0x1bb   : > { %2030 = vmatpush1.bf16.msra.mxu0 %v10882_v8  ;;  %2208 = vmatmul.mubr.bf16.vlgmr.msra.gmra.mrb[0].mxu1 %v10879_v7  ;;  %v10974_v7 = vld [vmem:[#allocation16 + $0x3c0] ss:$16 sps:$4 sm:$0xff]   ;;  %v10977_v8 = vld [vmem:[#allocation16 + $0x3c8] ss:$16 sps:$4 sm:$0xff]  }
 0x1bc   : > { %2249 = vmatpush1.bf16.msra.mxu1 %v10885_v9  ;;  %2031 = vmatprep.subr.bf16.mxu0 %v10890_v10  ;;  %v10983_v9 = vld [vmem:[#allocation16 + $0x3e4] ss:$16 sps:$4 sm:$0xff]   ;;  %v10986_v10 = vld [vmem:[#allocation16 + $0x3ec] ss:$16 sps:$4 sm:$0xff]  }
 0x1bd   : > { %2250 = vmatprep.subr.bf16.mxu1 %v10893_v11  ;;  %1998 = vmatprep.mubr.bf16.mxu0 %v10942_v17  ;;  %v10981_v11 = vld [vmem:[#allocation16 + $0x3e0] ss:$16 sps:$4 sm:$0xff]  }
 0x1be   : > { %2217 = vmatprep.mubr.bf16.mxu1 %v10942_v17  ;;  %v10993_v17 = vld [vmem:[#allocation16 + $0x408] ss:$16 sps:$4 sm:$0xff]  }
 0x1bf   : > { %2032 = vmatpush1.bf16.msra.mxu0 %v10888_v12  ;;  %v10984_v12 = vld [vmem:[#allocation16 + $0x3e8] ss:$16 sps:$4 sm:$0xff]  }
 0x1c0   : > { %2251 = vmatpush1.bf16.msra.mxu1 %v10891_v13  ;;  %2033 = vmatprep.subr.bf16.mxu0 %v10896_v14  ;;  %v10992_v13 = vld [vmem:[#allocation16 + $0x404] ss:$16 sps:$4 sm:$0xff]   ;;  %v10995_v14 = vld [vmem:[#allocation16 + $0x40c] ss:$16 sps:$4 sm:$0xff]  }
 0x1c1   : > { %2252 = vmatprep.subr.bf16.mxu1 %v10899_v16  ;;  %v10990_v16 = vld [vmem:[#allocation16 + $0x400] ss:$16 sps:$4 sm:$0xff]  }
 0x1c2   : > { %1999 = vmatmul.mubr.bf16.gmra.mrb[4].mxu0 %v10950_v21 }
 0x1c3   : > { %2034 = vmatpush1.bf16.msra.mxu0 %v10894_v15  ;;  %2218 = vmatmul.mubr.bf16.gmra.mrb[4].mxu1 %v10950_v21  ;;  %v10987_v15 = vld [vmem:[#allocation10 + $0x8] ss:$24 sps:$4 sm:$0xff]  }
 0x1c4   : > { %2253 = vmatpush1.bf16.msra.mxu1 %v10897_v18  ;;  %2035 = vmatprep.subr.bf16.mxu0 %v10902_v19  ;;  %v10998_v18 = vld [vmem:[#allocation16 + $0x424] ss:$16 sps:$4 sm:$0xff]   ;;  %v11001_v19 = vld [vmem:[#allocation16 + $0x42c] ss:$16 sps:$4 sm:$0xff]   ;;  %v10996_v21 = vld [vmem:[#allocation16 + $0x420] ss:$16 sps:$4 sm:$0xff]  }
 0x1c5   : > { %2254 = vmatprep.subr.bf16.mxu1 %v10905_v20  ;;  %2008 = vmatprep.mubr.bf16.mxu0 %v10957_v26  ;;  %v11050_v20 = vld [vmem:[#allocation10 + $0x3c] ss:$24 sps:$4 sm:$0xff]  }
 0x1c6   : > { %2227 = vmatprep.mubr.bf16.mxu1 %v10957_v26  ;;  %v11002_v26 = vld [vmem:[#allocation16 + $0x440] ss:$16 sps:$4 sm:$0xff]  }
 0x1c7   : > { %2036 = vmatpush1.bf16.msra.mxu0 %v10900_v22  ;;  %v10999_v22 = vld [vmem:[#allocation16 + $0x428] ss:$16 sps:$4 sm:$0xff]  }
 0x1c8   : > { %2255 = vmatpush1.bf16.msra.mxu1 %v10903_v23  ;;  %2037 = vmatprep.subr.bf16.mxu0 %v10908_v24  ;;  %v11004_v23 = vld [vmem:[#allocation16 + $0x444] ss:$16 sps:$4 sm:$0xff]   ;;  %v11007_v24 = vld [vmem:[#allocation16 + $0x44c] ss:$16 sps:$4 sm:$0xff]  }
 0x1c9   : > { %2256 = vmatprep.subr.bf16.mxu1 %v10911_v25  ;;  %v11052_v25 = vld [vmem:[#allocation10 + $0x38] ss:$24 sps:$4 sm:$0xff]  }
 0x1ca   : > { %2009 = vmatmul.mubr.bf16.gmra.mrb[8].mxu0 %v10965_v30 }
 0x1cb   : > { %2038 = vmatpush1.bf16.msra.mxu0 %v10906_v27  ;;  %2228 = vmatmul.mubr.bf16.gmra.mrb[8].mxu1 %v10965_v30  ;;  %v11005_v27 = vld [vmem:[#allocation16 + $0x448] ss:$16 sps:$4 sm:$0xff]   ;;  %v11065_v30 = vld [vmem:[#allocation10 + $0x6c] ss:$24 sps:$4 sm:$0xff]  }
 0x1cc   : > { %2257 = vmatpush1.bf16.msra.mxu1 %v10909_v28  ;;  %2039 = vmatprep.subr.bf16.mxu0 %v10914_v29  ;;  %v11010_v28 = vld [vmem:[#allocation16 + $0x464] ss:$16 sps:$4 sm:$0xff]   ;;  %v11013_v29 = vld [vmem:[#allocation16 + $0x46c] ss:$16 sps:$4 sm:$0xff]  }
 0x1cd   : > { %2258 = vmatprep.subr.bf16.mxu1 %v10917_v32  ;;  %2018 = vmatprep.mubr.bf16.mxu0 %v10972_v35  ;;  %v11011_v32 = vld [vmem:[#allocation16 + $0x468] ss:$16 sps:$4 sm:$0xff]  }
 0x1ce   : > { %2237 = vmatprep.mubr.bf16.mxu1 %v10972_v35  ;;  %v11067_v35 = vld [vmem:[#allocation10 + $0x68] ss:$24 sps:$4 sm:$0xff]  }
 0x1cf   : > { %2040 = vmatpush1.bf16.msra.mxu0 %v10912_v31  ;;  %v11008_v31 = vld [vmem:[#allocation16 + $0x460] ss:$16 sps:$4 sm:$0xff]  }
 0x1d0   : > { %2259 = vmatpush1.bf16.msra.mxu1 %v10915_v33  ;;  %2041 = vmatprep.subr.bf16.mxu0 %v10920_v34  ;;  %v11016_v33 = vld [vmem:[#allocation16 + $0x484] ss:$16 sps:$4 sm:$0xff]   ;;  %v11019_v34 = vld [vmem:[#allocation16 + $0x48c] ss:$16 sps:$4 sm:$0xff]  }
 0x1d1   : > { %2260 = vmatprep.subr.bf16.mxu1 %v10923_v36  ;;  %v11014_v36 = vld [vmem:[#allocation16 + $0x480] ss:$16 sps:$4 sm:$0xff]  }
 0x1d2   : > { %2019 = vmatmul.mubr.bf16.gmra.mrb[12].mxu0 %v10980_v38 }
 0x1d3   : > { %2042 = vmatpush1.bf16.msra.mxu0 %v10918_v37  ;;  %2238 = vmatmul.mubr.bf16.gmra.mrb[12].mxu1 %v10980_v38  ;;  %v11017_v37 = vld [vmem:[#allocation16 + $0x488] ss:$16 sps:$4 sm:$0xff]   ;;  %v11022_v38 = vld [vmem:[#allocation16 + $0x4a4] ss:$16 sps:$4 sm:$0xff]  }
 0x1d4   : > { %2261 = vmatpush1.bf16.msra.mxu1 %v10921_v39  ;;  %2043 = vmatprep.subr.bf16.mxu0 %v10926_v40  ;;  %v11025_v39 = vld [vmem:[#allocation16 + $0x4ac] ss:$16 sps:$4 sm:$0xff]  }
 0x1d5   : > { %2262 = vmatprep.subr.bf16.mxu1 %v10929_v41  ;;  %2061 = vmatprep.mubr.bf16.mxu0 %v10989_v43  ;;  %v11080_v40 = vld [vmem:[#allocation10 + $0x9c] ss:$24 sps:$4 sm:$0xff]   ;;  %v11020_v41 = vld [vmem:[#allocation16 + $0x4a0] ss:$16 sps:$4 sm:$0xff]  }
 0x1d6   : > { %2280 = vmatprep.mubr.bf16.mxu1 %v10989_v43  ;;  %v11028_v43 = vld [vmem:[#allocation16 + $0x4c4] ss:$16 sps:$4 sm:$0xff]  }
 0x1d7   : > { %2044 = vmatpush1.bf16.msra.mxu0 %v10924_v42  ;;  %v11023_v42 = vld [vmem:[#allocation16 + $0x4a8] ss:$16 sps:$4 sm:$0xff]  }
 0x1d8   : > { %2263 = vmatpush1.bf16.msra.mxu1 %v10927_v44  ;;  %2045 = vmatprep.subr.bf16.mxu0 %v10932_v45  ;;  %v11031_v44 = vld [vmem:[#allocation16 + $0x4cc] ss:$16 sps:$4 sm:$0xff]   ;;  %v11082_v45 = vld [vmem:[#allocation10 + $0x98] ss:$24 sps:$4 sm:$0xff]  }
 0x1d9   : > { %2264 = vmatprep.subr.bf16.mxu1 %v10935_v46  ;;  %v11026_v46 = vld [vmem:[#allocation16 + $0x4c0] ss:$16 sps:$4 sm:$0xff]  }
 0x1db   : > { %2046 = vmatpush1.bf16.msra.mxu0 %v10930_v47  ;;  %v11029_v47 = vld [vmem:[#allocation16 + $0x4c8] ss:$16 sps:$4 sm:$0xff]  }
 0x1dc   : > { %2265 = vmatpush1.bf16.msra.mxu1 %v10933_v48  ;;  %2047 = vmatprep.subr.bf16.mxu0 %v10938_v49  ;;  %v11034_v48 = vld [vmem:[#allocation16 + $0x4e4] ss:$16 sps:$4 sm:$0xff]   ;;  %v11037_v49 = vld [vmem:[#allocation16 + $0x4ec] ss:$16 sps:$4 sm:$0xff]  }
 0x1dd   : > { %2266 = vmatprep.subr.bf16.mxu1 %v10941_v50  ;;  %v11097_v50 = vld [vmem:[#allocation10 + $0x14] ss:$24 sps:$4 sm:$0xff]  }
 0x1df   : > { %2048 = vmatpush1.bf16.msra.mxu0 %v10936_v51  ;;  %v11032_v51 = vld [vmem:[#allocation16 + $0x4e0] ss:$16 sps:$4 sm:$0xff]  }
 0x1e0   : > { %2267 = vmatpush1.bf16.msra.mxu1 %v10939_v52  ;;  %2049 = vmatprep.subr.bf16.mxu0 %v10946_v53  ;;  %v11035_v52 = vld [vmem:[#allocation16 + $0x4e8] ss:$16 sps:$4 sm:$0xff]   ;;  %v11040_v53 = vld [vmem:[#allocation16 + $0x504] ss:$16 sps:$4 sm:$0xff]  }
 0x1e1   : > { %2268 = vmatprep.subr.bf16.mxu1 %v10949_v54  ;;  %v11043_v54 = vld [vmem:[#allocation16 + $0x50c] ss:$16 sps:$4 sm:$0xff]  }
 0x1e3   : > { %2050 = vmatpush1.bf16.msra.mxu0 %v10944_v55  ;;  %v11038_v55 = vld [vmem:[#allocation16 + $0x500] ss:$16 sps:$4 sm:$0xff]  }
 0x1e4   : > { %2269 = vmatpush1.bf16.msra.mxu1 %v10947_v56  ;;  %2051 = vmatprep.subr.bf16.mxu0 %v10953_v57  ;;  %v11041_v56 = vld [vmem:[#allocation16 + $0x508] ss:$16 sps:$4 sm:$0xff]   ;;  %v11046_v57 = vld [vmem:[#allocation16 + $0x524] ss:$16 sps:$4 sm:$0xff]  }
 0x1e5   : > { %2270 = vmatprep.subr.bf16.mxu1 %v10956_v58  ;;  %v11049_v58 = vld [vmem:[#allocation16 + $0x52c] ss:$16 sps:$4 sm:$0xff]  }
 0x1e7   : > { %2052 = vmatpush1.bf16.msra.mxu0 %v10951_v59  ;;  %v11044_v59 = vld [vmem:[#allocation16 + $0x520] ss:$16 sps:$4 sm:$0xff]  }
 0x1e8   : > { %2271 = vmatpush1.bf16.msra.mxu1 %v10954_v60  ;;  %2053 = vmatprep.subr.bf16.mxu0 %v10961_v61  ;;  %v11047_v60 = vld [vmem:[#allocation16 + $0x528] ss:$16 sps:$4 sm:$0xff]   ;;  %v11055_v61 = vld [vmem:[#allocation16 + $0x544] ss:$16 sps:$4 sm:$0xff]  }
 0x1e9   : > { %2272 = vmatprep.subr.bf16.mxu1 %v10964_v62  ;;  %v11058_v62 = vld [vmem:[#allocation16 + $0x54c] ss:$16 sps:$4 sm:$0xff]  }
 0x1eb   : > { %2054 = vmatpush1.bf16.msra.mxu0 %v10959_v63  ;;  %v11053_v63 = vld [vmem:[#allocation16 + $0x540] ss:$16 sps:$4 sm:$0xff]  }
 0x1ec   : > { %2273 = vmatpush1.bf16.msra.mxu1 %v10962_v0  ;;  %2055 = vmatprep.subr.bf16.mxu0 %v10968_v1  ;;  %v11056_v0 = vld [vmem:[#allocation16 + $0x548] ss:$16 sps:$4 sm:$0xff]   ;;  %v11061_v1 = vld [vmem:[#allocation16 + $0x564] ss:$16 sps:$4 sm:$0xff]  }
 0x1ed   : > { %2274 = vmatprep.subr.bf16.mxu1 %v10971_v2  ;;  %v11064_v2 = vld [vmem:[#allocation16 + $0x56c] ss:$16 sps:$4 sm:$0xff]  }
 0x1ef   : > { %2056 = vmatpush1.bf16.msra.mxu0 %v10966_v3  ;;  %v11059_v3 = vld [vmem:[#allocation16 + $0x560] ss:$16 sps:$4 sm:$0xff]  }
 0x1f0   : > { %2275 = vmatpush1.bf16.msra.mxu1 %v10969_v4  ;;  %2057 = vmatprep.subr.bf16.mxu0 %v10976_v5  ;;  %v11062_v4 = vld [vmem:[#allocation16 + $0x568] ss:$16 sps:$4 sm:$0xff]   ;;  %v11070_v5 = vld [vmem:[#allocation16 + $0x584] ss:$16 sps:$4 sm:$0xff]  }
 0x1f1   : > { %2276 = vmatprep.subr.bf16.mxu1 %v10979_v6  ;;  %v11073_v6 = vld [vmem:[#allocation16 + $0x58c] ss:$16 sps:$4 sm:$0xff]  }
 0x1f3   : > { %2058 = vmatpush1.bf16.msra.mxu0 %v10974_v7  ;;  %v11068_v7 = vld [vmem:[#allocation16 + $0x580] ss:$16 sps:$4 sm:$0xff]  }
 0x1f4   : > { %2277 = vmatpush1.bf16.msra.mxu1 %v10977_v8  ;;  %2059 = vmatprep.subr.bf16.mxu0 %v10983_v9  ;;  %v11071_v8 = vld [vmem:[#allocation16 + $0x588] ss:$16 sps:$4 sm:$0xff]   ;;  %v11076_v9 = vld [vmem:[#allocation16 + $0x5a4] ss:$16 sps:$4 sm:$0xff]  }
 0x1f5   : > { %2278 = vmatprep.subr.bf16.mxu1 %v10986_v10  ;;  %v11079_v10 = vld [vmem:[#allocation16 + $0x5ac] ss:$16 sps:$4 sm:$0xff]  }
 0x1f7   : > { %2060 = vmatpush1.bf16.msra.mxu0 %v10981_v11  ;;  %v11074_v11 = vld [vmem:[#allocation16 + $0x5a0] ss:$16 sps:$4 sm:$0xff]  }
 0x1f8   : > { %2279 = vmatpush1.bf16.msra.mxu1 %v10984_v12  ;;  %2102 = vmatprep.subr.bf16.mxu0 %v10992_v13  ;;  %v11077_v12 = vld [vmem:[#allocation16 + $0x5a8] ss:$16 sps:$4 sm:$0xff]   ;;  %v11085_v13 = vld [vmem:[#allocation16 + $0x5c4] ss:$16 sps:$4 sm:$0xff]  }
 0x1f9   : > { %2321 = vmatprep.subr.bf16.mxu1 %v10995_v14  ;;  %v11088_v14 = vld [vmem:[#allocation16 + $0x5cc] ss:$16 sps:$4 sm:$0xff]  }
 0x1fa   : > { %2062 = vmatmul.mubr.bf16.vlgmr.msra.gmra.mrb[0].mxu0 %v10987_v15 }
 0x1fb   : > { %2103 = vmatpush1.bf16.msra.mxu0 %v10990_v16  ;;  %2281 = vmatmul.mubr.bf16.vlgmr.msra.gmra.mrb[0].mxu1 %v10987_v15  ;;  %v11083_v15 = vld [vmem:[#allocation16 + $0x5c0] ss:$16 sps:$4 sm:$0xff]   ;;  %v11086_v16 = vld [vmem:[#allocation16 + $0x5c8] ss:$16 sps:$4 sm:$0xff]  }
 0x1fc   : > { %2322 = vmatpush1.bf16.msra.mxu1 %v10993_v17  ;;  %2104 = vmatprep.subr.bf16.mxu0 %v10998_v18  ;;  %v11091_v17 = vld [vmem:[#allocation16 + $0x5e4] ss:$16 sps:$4 sm:$0xff]   ;;  %v11094_v18 = vld [vmem:[#allocation16 + $0x5ec] ss:$16 sps:$4 sm:$0xff]  }
 0x1fd   : > { %2323 = vmatprep.subr.bf16.mxu1 %v11001_v19  ;;  %2071 = vmatprep.mubr.bf16.mxu0 %v11050_v20  ;;  %v11089_v19 = vld [vmem:[#allocation16 + $0x5e0] ss:$16 sps:$4 sm:$0xff]  }
 0x1fe   : > { %2290 = vmatprep.mubr.bf16.mxu1 %v11050_v20  ;;  %v11092_v20 = vld [vmem:[#allocation16 + $0x5e8] ss:$16 sps:$4 sm:$0xff]  }
 0x1ff   : > { %2105 = vmatpush1.bf16.msra.mxu0 %v10996_v21  ;;  %v11095_v21 = vld [vmem:[#allocation10 + $0x10] ss:$24 sps:$4 sm:$0xff]  }
 0x200   : > { %2324 = vmatpush1.bf16.msra.mxu1 %v10999_v22  ;;  %2106 = vmatprep.subr.bf16.mxu0 %v11004_v23  ;;  %v11098_v22 = vld [vmem:[#allocation10 + $0x44] ss:$24 sps:$4 sm:$0xff]   ;;  %v11100_v23 = vld [vmem:[#allocation10 + $0x40] ss:$24 sps:$4 sm:$0xff]  }
 0x201   : > { %2325 = vmatprep.subr.bf16.mxu1 %v11007_v24  ;;  %v11101_v24 = vld [vmem:[#allocation10 + $0x74] ss:$24 sps:$4 sm:$0xff]  }
 0x202   : > { %2072 = vmatmul.mubr.bf16.gmra.mrb[4].mxu0 %v11052_v25 }
 0x203   : > { %2107 = vmatpush1.bf16.msra.mxu0 %v11002_v26  ;;  %2291 = vmatmul.mubr.bf16.gmra.mrb[4].mxu1 %v11052_v25  ;;  %v11103_v25 = vld [vmem:[#allocation10 + $0x70] ss:$24 sps:$4 sm:$0xff]   ;;  %v11104_v26 = vld [vmem:[#allocation10 + $0xa4] ss:$24 sps:$4 sm:$0xff]  }
 0x204   : > { %2326 = vmatpush1.bf16.msra.mxu1 %v11005_v27  ;;  %2108 = vmatprep.subr.bf16.mxu0 %v11010_v28  ;;  %v11106_v27 = vld [vmem:[#allocation10 + $0xa0] ss:$24 sps:$4 sm:$0xff]  }
 0x205   : > { %2327 = vmatprep.subr.bf16.mxu1 %v11013_v29  ;;  %2081 = vmatprep.mubr.bf16.mxu0 %v11065_v30 }
 0x206   : > { %2300 = vmatprep.mubr.bf16.mxu1 %v11065_v30 }
 0x207   : > { %2109 = vmatpush1.bf16.msra.mxu0 %v11008_v31 }
 0x208   : > { %2328 = vmatpush1.bf16.msra.mxu1 %v11011_v32  ;;  %2110 = vmatprep.subr.bf16.mxu0 %v11016_v33 }
 0x209   : > { %2329 = vmatprep.subr.bf16.mxu1 %v11019_v34 }
 0x20a   : > { %2082 = vmatmul.mubr.bf16.gmra.mrb[8].mxu0 %v11067_v35 }
 0x20b   : > { %2111 = vmatpush1.bf16.msra.mxu0 %v11014_v36  ;;  %2301 = vmatmul.mubr.bf16.gmra.mrb[8].mxu1 %v11067_v35 }
 0x20c   : > { %2330 = vmatpush1.bf16.msra.mxu1 %v11017_v37  ;;  %2112 = vmatprep.subr.bf16.mxu0 %v11022_v38 }
 0x20d   : > { %2331 = vmatprep.subr.bf16.mxu1 %v11025_v39  ;;  %2091 = vmatprep.mubr.bf16.mxu0 %v11080_v40 }
 0x20e   : > { %2310 = vmatprep.mubr.bf16.mxu1 %v11080_v40 }
 0x20f   : > { %2113 = vmatpush1.bf16.msra.mxu0 %v11020_v41 }
 0x210   : > { %2332 = vmatpush1.bf16.msra.mxu1 %v11023_v42  ;;  %2114 = vmatprep.subr.bf16.mxu0 %v11028_v43 }
 0x211   : > { %2333 = vmatprep.subr.bf16.mxu1 %v11031_v44 }
 0x212   : > { %2092 = vmatmul.mubr.bf16.gmra.mrb[12].mxu0 %v11082_v45 }
 0x213   : > { %2115 = vmatpush1.bf16.msra.mxu0 %v11026_v46  ;;  %2311 = vmatmul.mubr.bf16.gmra.mrb[12].mxu1 %v11082_v45 }
 0x214   : > { %2334 = vmatpush1.bf16.msra.mxu1 %v11029_v47  ;;  %2116 = vmatprep.subr.bf16.mxu0 %v11034_v48 }
 0x215   : > { %2335 = vmatprep.subr.bf16.mxu1 %v11037_v49  ;;  %2134 = vmatprep.mubr.bf16.mxu0 %v11097_v50 }
 0x216   : > { %2353 = vmatprep.mubr.bf16.mxu1 %v11097_v50 }
 0x217   : > { %2117 = vmatpush1.bf16.msra.mxu0 %v11032_v51 }
 0x218   : > { %2336 = vmatpush1.bf16.msra.mxu1 %v11035_v52  ;;  %2118 = vmatprep.subr.bf16.mxu0 %v11040_v53 }
 0x219   : > { %2337 = vmatprep.subr.bf16.mxu1 %v11043_v54 }
 0x21b   : > { %2119 = vmatpush1.bf16.msra.mxu0 %v11038_v55 }
 0x21c   : > { %2338 = vmatpush1.bf16.msra.mxu1 %v11041_v56  ;;  %2120 = vmatprep.subr.bf16.mxu0 %v11046_v57 }
 0x21d   : > { %2339 = vmatprep.subr.bf16.mxu1 %v11049_v58 }
 0x21f   : > { %2121 = vmatpush1.bf16.msra.mxu0 %v11044_v59 }
 0x220   : > { %2340 = vmatpush1.bf16.msra.mxu1 %v11047_v60  ;;  %2122 = vmatprep.subr.bf16.mxu0 %v11055_v61 }
 0x221   : > { %2341 = vmatprep.subr.bf16.mxu1 %v11058_v62 }
 0x223   : > { %2123 = vmatpush1.bf16.msra.mxu0 %v11053_v63 }
 0x224   : > { %2342 = vmatpush1.bf16.msra.mxu1 %v11056_v0  ;;  %2124 = vmatprep.subr.bf16.mxu0 %v11061_v1 }
 0x225   : > { %2343 = vmatprep.subr.bf16.mxu1 %v11064_v2 }
 0x227   : > { %2125 = vmatpush1.bf16.msra.mxu0 %v11059_v3 }
 0x228   : > { %2344 = vmatpush1.bf16.msra.mxu1 %v11062_v4  ;;  %2126 = vmatprep.subr.bf16.mxu0 %v11070_v5 }
 0x229   : > { %2345 = vmatprep.subr.bf16.mxu1 %v11073_v6 }
 0x22b   : > { %2127 = vmatpush1.bf16.msra.mxu0 %v11068_v7 }
 0x22c   : > { %2346 = vmatpush1.bf16.msra.mxu1 %v11071_v8  ;;  %2128 = vmatprep.subr.bf16.mxu0 %v11076_v9 }
 0x22d   : > { %2347 = vmatprep.subr.bf16.mxu1 %v11079_v10 }
 0x22f   : > { %2129 = vmatpush1.bf16.msra.mxu0 %v11074_v11 }
 0x230   : > { %2348 = vmatpush1.bf16.msra.mxu1 %v11077_v12  ;;  %2130 = vmatprep.subr.bf16.mxu0 %v11085_v13 }
 0x231   : > { %2349 = vmatprep.subr.bf16.mxu1 %v11088_v14 }
 0x233   : > { %2131 = vmatpush1.bf16.msra.mxu0 %v11083_v15 }
 0x234   : > { %2350 = vmatpush1.bf16.msra.mxu1 %v11086_v16  ;;  %2132 = vmatprep.subr.bf16.mxu0 %v11091_v17 }
 0x235   : > { %2351 = vmatprep.subr.bf16.mxu1 %v11094_v18 }
 0x237   : > { %2133 = vmatpush1.bf16.msra.mxu0 %v11089_v19 }
 0x238   : > { %2352 = vmatpush1.bf16.msra.mxu1 %v11092_v20 }
 0x23a   : > { %2135 = vmatmul.mubr.bf16.vlgmr.msra.gmra.mrb[0].mxu0 %v11095_v21 }
 0x23b   : > { %2354 = vmatmul.mubr.bf16.vlgmr.msra.gmra.mrb[0].mxu1 %v11095_v21  ;;  %2144 = vmatprep.mubr.bf16.mxu0 %v11098_v22 }
 0x23c   : > { %2363 = vmatprep.mubr.bf16.mxu1 %v11098_v22 }
 0x242   : > { %2145 = vmatmul.mubr.bf16.gmra.mrb[4].mxu0 %v11100_v23 }
 0x243   : > { %2364 = vmatmul.mubr.bf16.gmra.mrb[4].mxu1 %v11100_v23  ;;  %2154 = vmatprep.mubr.bf16.mxu0 %v11101_v24 }
 0x244   : > { %2373 = vmatprep.mubr.bf16.mxu1 %v11101_v24 }
 0x24a   : > { %2155 = vmatmul.mubr.bf16.gmra.mrb[8].mxu0 %v11103_v25 }
 0x24b   : > { %2374 = vmatmul.mubr.bf16.gmra.mrb[8].mxu1 %v11103_v25  ;;  %2164 = vmatprep.mubr.bf16.mxu0 %v11104_v26 }
 0x24c   : > { %2383 = vmatprep.mubr.bf16.mxu1 %v11104_v26 }
 0x252   : > { %2165 = vmatmul.mubr.bf16.gmra.mrb[12].mxu0 %v11106_v27 }
 0x253   : > { %2384 = vmatmul.mubr.bf16.gmra.mrb[12].mxu1 %v11106_v27 }
 0x254   : > { %12010 = shalt.err (!%p12007_p5)  }
 0x255   : > { %s12011_s10 = scalar_lea.vmem %s627_s5, 4096  ;;  %p12016_p9 = scmp.lt.s32.totalorder %s627_s5, %s627_s5 }
 0x256   : > { %p12012_p7 = scmp.ne.s32.totalorder %s627_s5, %s12011_s10  ;;  %p12017_p12 = scmp.lt.s32.totalorder %s12011_s10, %s12011_s10 }
 0x258   : > { %p12018_p13 = por %p12017_p12, %p12016_p9 }
 0x25a   : > { %p12019_p11 = pnand %p12018_p13, %p12012_p7 }
 0x25c   : > { %12022 = shalt.err (!%p12019_p11)  }
 0x25d   : > { %629 = dma.hbm_to_vmem [thread:$0]  %s13435_s3, 4096, %s627_s5, [#allocation7 + $0x1]  ;;  %v856_v28 = vlaneseq  ;;  %v854_v31 = vld [vmem:[#allocation17] sm:$0xf] }
 0x25f   : > { %v857_v29 = vshrl.u32 %v856_v28, 7 }
 0x261   : > { %v858_v30 = vsub.s32 0, %v857_v29  ;;  %v866_v32 = vsub.s32 2, %v857_v29  ;;  %v862_v33 = vsub.s32 1, %v857_v29  ;;  %v870_v34 = vsub.s32 3, %v857_v29 }
 0x263   : > { %v12670_v35 = vrot.slane %v854_v31, %v858_v30  ;;  %v12672_v36 = vrot.slane %v854_v31, %v866_v32  ;;  %v12674_v37 = vrot.slane %v854_v31, %v862_v33  ;;  %v12676_v38 = vrot.slane %v854_v31, %v870_v34 }
 0x30d   : > { %v2136_v39 = vpop.f32.mrb[0].mxu0 }
 0x30e   : > { %v10383_v40 = vadd.f32 %v2136_v39, %v12670_v35  ;;  %v2355_v41 = vpop.f32.mrb[0].mxu1  ;;  %v2138_v42 = vpop.f32.mrb[1].mxu0 }
 0x30f   : > { %v10399_v43 = vadd.f32 %v2355_v41, %v12672_v36  ;;  %v10384_v44 = vadd.f32 %v2138_v42, %v12674_v37  ;;  %v2357_v45 = vpop.f32.mrb[1].mxu1  ;;  %v2140_v46 = vpop.f32.mrb[2].mxu0 }
 0x310   : > { %2394 = vst [vmem:[#allocation4] sm:$0xff] %v10383_v40  ;;  %v10400_v47 = vadd.f32 %v2357_v45, %v12676_v38  ;;  %v10385_v48 = vadd.f32 %v2140_v46, %v12670_v35  ;;  %v2359_v49 = vpop.f32.mrb[2].mxu1  ;;  %v2142_v50 = vpop.f32.mrb[3].mxu0 }
 0x311   : > { %2396 = vst [vmem:[#allocation4 + $0x10] sm:$0xff] %v10399_v43  ;;  %2395 = vst [vmem:[#allocation4 + $0x8] sm:$0xff] %v10384_v44  ;;  %v10401_v51 = vadd.f32 %v2359_v49, %v12672_v36  ;;  %v10386_v52 = vadd.f32 %v2142_v50, %v12674_v37  ;;  %v2361_v53 = vpop.f32.mrb[3].mxu1 }
 0x312   : > { %2397 = vst [vmem:[#allocation4 + $0x18] sm:$0xff] %v10400_v47  ;;  %2398 = vst [vmem:[#allocation4 + $0x20] sm:$0xff] %v10385_v48  ;;  %v10402_v54 = vadd.f32 %v2361_v53, %v12676_v38 }
 0x313   : > { %2400 = vst [vmem:[#allocation4 + $0x30] sm:$0xff] %v10401_v51  ;;  %2399 = vst [vmem:[#allocation4 + $0x28] sm:$0xff] %v10386_v52 }
 0x314   : > { %2401 = vst [vmem:[#allocation4 + $0x38] sm:$0xff] %v10402_v54 }
 0x315   : > { %v2146_v55 = vpop.f32.mrb[4].mxu0 }
 0x316   : > { %v10387_v56 = vadd.f32 %v2146_v55, %v12670_v35  ;;  %v2365_v57 = vpop.f32.mrb[4].mxu1  ;;  %v2148_v58 = vpop.f32.mrb[5].mxu0 }
 0x317   : > { %v10403_v59 = vadd.f32 %v2365_v57, %v12672_v36  ;;  %v10388_v60 = vadd.f32 %v2148_v58, %v12674_v37  ;;  %v2367_v61 = vpop.f32.mrb[5].mxu1  ;;  %v2150_v62 = vpop.f32.mrb[6].mxu0 }
 0x318   : > { %2402 = vst [vmem:[#allocation4 + $0x40] sm:$0xff] %v10387_v56  ;;  %v10404_v63 = vadd.f32 %v2367_v61, %v12676_v38  ;;  %v10389_v0 = vadd.f32 %v2150_v62, %v12670_v35  ;;  %v2369_v1 = vpop.f32.mrb[6].mxu1  ;;  %v2152_v2 = vpop.f32.mrb[7].mxu0 }
 0x319   : > { %2404 = vst [vmem:[#allocation4 + $0x50] sm:$0xff] %v10403_v59  ;;  %2403 = vst [vmem:[#allocation4 + $0x48] sm:$0xff] %v10388_v60  ;;  %v10405_v3 = vadd.f32 %v2369_v1, %v12672_v36  ;;  %v10390_v4 = vadd.f32 %v2152_v2, %v12674_v37  ;;  %v2371_v5 = vpop.f32.mrb[7].mxu1 }
 0x31a   : > { %2405 = vst [vmem:[#allocation4 + $0x58] sm:$0xff] %v10404_v63  ;;  %2406 = vst [vmem:[#allocation4 + $0x60] sm:$0xff] %v10389_v0  ;;  %v10406_v6 = vadd.f32 %v2371_v5, %v12676_v38 }
 0x31b   : > { %2408 = vst [vmem:[#allocation4 + $0x70] sm:$0xff] %v10405_v3  ;;  %2407 = vst [vmem:[#allocation4 + $0x68] sm:$0xff] %v10390_v4 }
 0x31c   : > { %2409 = vst [vmem:[#allocation4 + $0x78] sm:$0xff] %v10406_v6 }
 0x31d   : > { %v2156_v7 = vpop.f32.mrb[8].mxu0 }
 0x31e   : > { %v10391_v8 = vadd.f32 %v2156_v7, %v12670_v35  ;;  %v2375_v9 = vpop.f32.mrb[8].mxu1  ;;  %v2158_v10 = vpop.f32.mrb[9].mxu0 }
 0x31f   : > { %v10407_v11 = vadd.f32 %v2375_v9, %v12672_v36  ;;  %v10392_v12 = vadd.f32 %v2158_v10, %v12674_v37  ;;  %v2377_v13 = vpop.f32.mrb[9].mxu1  ;;  %v2160_v14 = vpop.f32.mrb[10].mxu0 }
 0x320   : > { %2410 = vst [vmem:[#allocation4 + $0x80] sm:$0xff] %v10391_v8  ;;  %v10408_v15 = vadd.f32 %v2377_v13, %v12676_v38  ;;  %v10393_v16 = vadd.f32 %v2160_v14, %v12670_v35  ;;  %v2379_v17 = vpop.f32.mrb[10].mxu1  ;;  %v2162_v18 = vpop.f32.mrb[11].mxu0 }
 0x321   : > { %2412 = vst [vmem:[#allocation4 + $0x90] sm:$0xff] %v10407_v11  ;;  %2411 = vst [vmem:[#allocation4 + $0x88] sm:$0xff] %v10392_v12  ;;  %v10409_v19 = vadd.f32 %v2379_v17, %v12672_v36  ;;  %v10394_v20 = vadd.f32 %v2162_v18, %v12674_v37  ;;  %v2381_v21 = vpop.f32.mrb[11].mxu1 }
 0x322   : > { %2413 = vst [vmem:[#allocation4 + $0x98] sm:$0xff] %v10408_v15  ;;  %2414 = vst [vmem:[#allocation4 + $0xa0] sm:$0xff] %v10393_v16  ;;  %v10410_v22 = vadd.f32 %v2381_v21, %v12676_v38 }
 0x323   : > { %2416 = vst [vmem:[#allocation4 + $0xb0] sm:$0xff] %v10409_v19  ;;  %2415 = vst [vmem:[#allocation4 + $0xa8] sm:$0xff] %v10394_v20 }
 0x324   : > { %2417 = vst [vmem:[#allocation4 + $0xb8] sm:$0xff] %v10410_v22 }
 0x325   : > { %v2166_v23 = vpop.f32.mrb[12].mxu0 }
 0x326   : > { %v10395_v24 = vadd.f32 %v2166_v23, %v12670_v35  ;;  %v2385_v25 = vpop.f32.mrb[12].mxu1  ;;  %v2168_v26 = vpop.f32.mrb[13].mxu0 }
 0x327   : > { %v10411_v27 = vadd.f32 %v2385_v25, %v12672_v36  ;;  %v10396_v28 = vadd.f32 %v2168_v26, %v12674_v37  ;;  %v2387_v29 = vpop.f32.mrb[13].mxu1  ;;  %v2170_v30 = vpop.f32.mrb[14].mxu0 }
 0x328   : > { %2418 = vst [vmem:[#allocation4 + $0xc0] sm:$0xff] %v10395_v24  ;;  %v10412_v31 = vadd.f32 %v2387_v29, %v12676_v38  ;;  %v10397_v32 = vadd.f32 %v2170_v30, %v12670_v35  ;;  %v2389_v33 = vpop.f32.mrb[14].mxu1  ;;  %v2172_v34 = vpop.f32.mrb[15].mxu0 }
 0x329   : > { %2420 = vst [vmem:[#allocation4 + $0xd0] sm:$0xff] %v10411_v27  ;;  %2419 = vst [vmem:[#allocation4 + $0xc8] sm:$0xff] %v10396_v28  ;;  %v10413_v39 = vadd.f32 %v2389_v33, %v12672_v36  ;;  %v10398_v40 = vadd.f32 %v2172_v34, %v12674_v37  ;;  %v2391_v41 = vpop.f32.mrb[15].mxu1 }
 0x32a   : > { %2421 = vst [vmem:[#allocation4 + $0xd8] sm:$0xff] %v10412_v31  ;;  %2422 = vst [vmem:[#allocation4 + $0xe0] sm:$0xff] %v10397_v32  ;;  %v10414_v42 = vadd.f32 %v2391_v41, %v12676_v38 }
 0x32b   : > { %2424 = vst [vmem:[#allocation4 + $0xf0] sm:$0xff] %v10413_v39  ;;  %2423 = vst [vmem:[#allocation4 + $0xe8] sm:$0xff] %v10398_v40 }
 0x32c   : > { %2425 = vst [vmem:[#allocation4 + $0xf8] sm:$0xff] %v10414_v42 }
 0x32d PF: > { %v12710_v43 = vld [vmem:[#allocation3] sm:$0xff]  ;;  %v12712_v35 = vld [vmem:[#allocation3 + $0x8] sm:$0xff]  ;;  %v2426_v23 = vld [vmem:[#allocation2] sm:$0xff]  ;;  %vm3699_vm0 = vcmask 130112   ;;  %vm3728_vm1 = vcmask 1041409   ;;  %vm3730_vm2 = vcmask 1042434  }
 0x32e   : > { %v11109_v44 = vld [vmem:[#allocation19 + $0x4] ss:$16 sps:$4 sm:$0xff]   ;;  %v11111_v45 = vld [vmem:[#allocation19 + $0xc] ss:$16 sps:$4 sm:$0xff]   ;;  %v11113_v46 = vld [vmem:[#allocation19] ss:$16 sps:$4 sm:$0xff]   ;;  %v2432_v26 = vcombine.high %v2426_v23, %v2426_v23 }
 0x32f   : > { %3208 = vmatprep.subr.bf16.mxu0 %v11109_v44  ;;  %v11114_v36 = vld [vmem:[#allocation19 + $0x8] ss:$16 sps:$4 sm:$0xff]   ;;  %3290 = vmatprep.subr.bf16.mxu1 %v11111_v45  ;;  %v11115_v37 = vld [vmem:[#allocation19 + $0x24] ss:$16 sps:$4 sm:$0xff]   ;;  %v11117_v47 = vld [vmem:[#allocation19 + $0x2c] ss:$16 sps:$4 sm:$0xff]  }
 0x330   : > { %3209 = vmatpush1.bf16.msra.mxu0 %v11113_v46  ;;  %3291 = vmatpush1.bf16.msra.mxu1 %v11114_v36  ;;  %v11119_v48 = vld [vmem:[#allocation19 + $0x20] ss:$16 sps:$4 sm:$0xff]   ;;  %v11120_v38 = vld [vmem:[#allocation19 + $0x28] ss:$16 sps:$4 sm:$0xff]   ;;  %v11121_v49 = vld [vmem:[#allocation19 + $0x44] ss:$16 sps:$4 sm:$0xff]   ;;  %v12714_v29 = vpack.c.bf16 %v2432_v26, %v2432_v26 }
 0x331   : > { %3210 = vmatprep.subr.bf16.mxu0 %v11115_v37  ;;  %3292 = vmatprep.subr.bf16.mxu1 %v11117_v47  ;;  %v11123_v50 = vld [vmem:[#allocation19 + $0x4c] ss:$16 sps:$4 sm:$0xff]   ;;  %v11125_v51 = vld [vmem:[#allocation19 + $0x40] ss:$16 sps:$4 sm:$0xff]   ;;  %v11126_v52 = vld [vmem:[#allocation19 + $0x48] ss:$16 sps:$4 sm:$0xff]  }
 0x332   : > { %v11127_v53 = vld [vmem:[#allocation19 + $0x64] ss:$16 sps:$4 sm:$0xff]   ;;  %v11129_v54 = vld [vmem:[#allocation19 + $0x6c] ss:$16 sps:$4 sm:$0xff]   ;;  %v11131_v55 = vld [vmem:[#allocation19 + $0x60] ss:$16 sps:$4 sm:$0xff]   ;;  %3240 = vmatprep.mubr.bf16.mxu0 %v12714_v29  ;;  %3322 = vmatprep.mubr.bf16.mxu1 %v12714_v29 }
 0x333   : > { %v11132_v56 = vld [vmem:[#allocation19 + $0x68] ss:$16 sps:$4 sm:$0xff]   ;;  %v11133_v57 = vld [vmem:[#allocation19 + $0x84] ss:$16 sps:$4 sm:$0xff]   ;;  %v11135_v58 = vld [vmem:[#allocation19 + $0x8c] ss:$16 sps:$4 sm:$0xff]  }
 0x334   : > { %3211 = vmatpush1.bf16.msra.mxu0 %v11119_v48  ;;  %3293 = vmatpush1.bf16.msra.mxu1 %v11120_v38  ;;  %v11137_v59 = vld [vmem:[#allocation19 + $0x80] ss:$16 sps:$4 sm:$0xff]   ;;  %v11138_v60 = vld [vmem:[#allocation19 + $0x88] ss:$16 sps:$4 sm:$0xff]   ;;  %v11139_v61 = vld [vmem:[#allocation19 + $0xa4] ss:$16 sps:$4 sm:$0xff]   ;;  %v12718_v38 = vpack.c.bf16 %v2426_v23, %v2426_v23 }
 0x335   : > { %3212 = vmatprep.subr.bf16.mxu0 %v11121_v49  ;;  %3294 = vmatprep.subr.bf16.mxu1 %v11123_v50  ;;  %v11141_v62 = vld [vmem:[#allocation19 + $0xac] ss:$16 sps:$4 sm:$0xff]   ;;  %v11143_v63 = vld [vmem:[#allocation19 + $0xa0] ss:$16 sps:$4 sm:$0xff]   ;;  %v11144_v0 = vld [vmem:[#allocation19 + $0xa8] ss:$16 sps:$4 sm:$0xff]  }
 0x336   : > { %v11145_v1 = vld [vmem:[#allocation19 + $0xc4] ss:$16 sps:$4 sm:$0xff]   ;;  %v11147_v2 = vld [vmem:[#allocation19 + $0xcc] ss:$16 sps:$4 sm:$0xff]   ;;  %v11149_v3 = vld [vmem:[#allocation19 + $0xc0] ss:$16 sps:$4 sm:$0xff]  }
 0x337   : > { %v11150_v4 = vld [vmem:[#allocation19 + $0xc8] ss:$16 sps:$4 sm:$0xff]   ;;  %v11151_v5 = vld [vmem:[#allocation19 + $0xe4] ss:$16 sps:$4 sm:$0xff]   ;;  %v11153_v6 = vld [vmem:[#allocation19 + $0xec] ss:$16 sps:$4 sm:$0xff]  }
 0x338   : > { %3213 = vmatpush1.bf16.msra.mxu0 %v11125_v51  ;;  %3295 = vmatpush1.bf16.msra.mxu1 %v11126_v52  ;;  %v11155_v7 = vld [vmem:[#allocation19 + $0xe0] ss:$16 sps:$4 sm:$0xff]   ;;  %v11156_v8 = vld [vmem:[#allocation19 + $0xe8] ss:$16 sps:$4 sm:$0xff]   ;;  %v11157_v9 = vld [vmem:[#allocation19 + $0x104] ss:$16 sps:$4 sm:$0xff]  }
 0x339   : > { %3214 = vmatprep.subr.bf16.mxu0 %v11127_v53  ;;  %3296 = vmatprep.subr.bf16.mxu1 %v11129_v54  ;;  %v11159_v10 = vld [vmem:[#allocation19 + $0x10c] ss:$16 sps:$4 sm:$0xff]   ;;  %v11161_v11 = vld [vmem:[#allocation19 + $0x100] ss:$16 sps:$4 sm:$0xff]   ;;  %v11162_v12 = vld [vmem:[#allocation19 + $0x108] ss:$16 sps:$4 sm:$0xff]  }
 0x33a   : > { %v11163_v13 = vld [vmem:[#allocation19 + $0x124] ss:$16 sps:$4 sm:$0xff]   ;;  %v11165_v14 = vld [vmem:[#allocation19 + $0x12c] ss:$16 sps:$4 sm:$0xff]   ;;  %v11167_v15 = vld [vmem:[#allocation19 + $0x120] ss:$16 sps:$4 sm:$0xff]  }
 0x33b   : > { %v11168_v16 = vld [vmem:[#allocation19 + $0x128] ss:$16 sps:$4 sm:$0xff]   ;;  %v11169_v17 = vld [vmem:[#allocation19 + $0x144] ss:$16 sps:$4 sm:$0xff]   ;;  %v11171_v18 = vld [vmem:[#allocation19 + $0x14c] ss:$16 sps:$4 sm:$0xff]  }
 0x33c   : > { %3215 = vmatpush1.bf16.msra.mxu0 %v11131_v55  ;;  %3297 = vmatpush1.bf16.msra.mxu1 %v11132_v56  ;;  %v11173_v19 = vld [vmem:[#allocation19 + $0x140] ss:$16 sps:$4 sm:$0xff]   ;;  %v11174_v20 = vld [vmem:[#allocation19 + $0x148] ss:$16 sps:$4 sm:$0xff]   ;;  %v11175_v21 = vld [vmem:[#allocation19 + $0x164] ss:$16 sps:$4 sm:$0xff]  }
 0x33d   : > { %3216 = vmatprep.subr.bf16.mxu0 %v11133_v57  ;;  %3298 = vmatprep.subr.bf16.mxu1 %v11135_v58  ;;  %v11177_v22 = vld [vmem:[#allocation19 + $0x16c] ss:$16 sps:$4 sm:$0xff]   ;;  %v11179_v24 = vld [vmem:[#allocation19 + $0x160] ss:$16 sps:$4 sm:$0xff]   ;;  %v11180_v25 = vld [vmem:[#allocation19 + $0x168] ss:$16 sps:$4 sm:$0xff]  }
 0x33e   : > { %v11181_v27 = vld [vmem:[#allocation19 + $0x184] ss:$16 sps:$4 sm:$0xff]   ;;  %v11183_v28 = vld [vmem:[#allocation19 + $0x18c] ss:$16 sps:$4 sm:$0xff]   ;;  %v11185_v30 = vld [vmem:[#allocation19 + $0x180] ss:$16 sps:$4 sm:$0xff]  }
 0x33f   : > { %v11186_v31 = vld [vmem:[#allocation19 + $0x188] ss:$16 sps:$4 sm:$0xff]   ;;  %v11187_v32 = vld [vmem:[#allocation19 + $0x1a4] ss:$16 sps:$4 sm:$0xff]   ;;  %v11189_v33 = vld [vmem:[#allocation19 + $0x1ac] ss:$16 sps:$4 sm:$0xff]  }
 0x340   : > { %3217 = vmatpush1.bf16.msra.mxu0 %v11137_v59  ;;  %3299 = vmatpush1.bf16.msra.mxu1 %v11138_v60  ;;  %v11191_v34 = vld [vmem:[#allocation19 + $0x1a0] ss:$16 sps:$4 sm:$0xff]   ;;  %v11192_v39 = vld [vmem:[#allocation19 + $0x1a8] ss:$16 sps:$4 sm:$0xff]   ;;  %v11193_v40 = vld [vmem:[#allocation19 + $0x1c4] ss:$16 sps:$4 sm:$0xff]  }
 0x341   : > { %3218 = vmatprep.subr.bf16.mxu0 %v11139_v61  ;;  %3300 = vmatprep.subr.bf16.mxu1 %v11141_v62  ;;  %v11195_v41 = vld [vmem:[#allocation19 + $0x1cc] ss:$16 sps:$4 sm:$0xff]   ;;  %v11197_v42 = vld [vmem:[#allocation19 + $0x1c0] ss:$16 sps:$4 sm:$0xff]   ;;  %v11198_v44 = vld [vmem:[#allocation19 + $0x1c8] ss:$16 sps:$4 sm:$0xff]  }
 0x342   : > { %v11199_v45 = vld [vmem:[#allocation19 + $0x1e4] ss:$16 sps:$4 sm:$0xff]   ;;  %v11201_v46 = vld [vmem:[#allocation19 + $0x1ec] ss:$16 sps:$4 sm:$0xff]   ;;  %v11203_v36 = vld [vmem:[#allocation19 + $0x1e0] ss:$16 sps:$4 sm:$0xff]  }
 0x343   : > { %v11204_v37 = vld [vmem:[#allocation19 + $0x1e8] ss:$16 sps:$4 sm:$0xff]   ;;  %v11208_v47 = vld [vmem:[#allocation19 + $0x204] ss:$16 sps:$4 sm:$0xff]   ;;  %v11211_v48 = vld [vmem:[#allocation19 + $0x20c] ss:$16 sps:$4 sm:$0xff]  }
 0x344   : > { %3219 = vmatpush1.bf16.msra.mxu0 %v11143_v63  ;;  %3301 = vmatpush1.bf16.msra.mxu1 %v11144_v0  ;;  %v11206_v49 = vld [vmem:[#allocation19 + $0x200] ss:$16 sps:$4 sm:$0xff]   ;;  %v11209_v50 = vld [vmem:[#allocation19 + $0x208] ss:$16 sps:$4 sm:$0xff]   ;;  %v11214_v51 = vld [vmem:[#allocation19 + $0x224] ss:$16 sps:$4 sm:$0xff]  }
 0x345   : > { %3220 = vmatprep.subr.bf16.mxu0 %v11145_v1  ;;  %3302 = vmatprep.subr.bf16.mxu1 %v11147_v2  ;;  %v11217_v52 = vld [vmem:[#allocation19 + $0x22c] ss:$16 sps:$4 sm:$0xff]   ;;  %v11212_v53 = vld [vmem:[#allocation19 + $0x220] ss:$16 sps:$4 sm:$0xff]   ;;  %v11215_v54 = vld [vmem:[#allocation19 + $0x228] ss:$16 sps:$4 sm:$0xff]  }
 0x346   : > { %v11220_v55 = vld [vmem:[#allocation19 + $0x244] ss:$16 sps:$4 sm:$0xff]   ;;  %v11223_v56 = vld [vmem:[#allocation19 + $0x24c] ss:$16 sps:$4 sm:$0xff]   ;;  %v11218_v57 = vld [vmem:[#allocation19 + $0x240] ss:$16 sps:$4 sm:$0xff]  }
 0x347   : > { %v11221_v58 = vld [vmem:[#allocation19 + $0x248] ss:$16 sps:$4 sm:$0xff]   ;;  %v11226_v59 = vld [vmem:[#allocation19 + $0x264] ss:$16 sps:$4 sm:$0xff]   ;;  %v11229_v60 = vld [vmem:[#allocation19 + $0x26c] ss:$16 sps:$4 sm:$0xff]  }
 0x348   : > { %3221 = vmatpush1.bf16.msra.mxu0 %v11149_v3  ;;  %3303 = vmatpush1.bf16.msra.mxu1 %v11150_v4  ;;  %v11224_v61 = vld [vmem:[#allocation19 + $0x260] ss:$16 sps:$4 sm:$0xff]   ;;  %v11227_v62 = vld [vmem:[#allocation19 + $0x268] ss:$16 sps:$4 sm:$0xff]   ;;  %v11232_v63 = vld [vmem:[#allocation19 + $0x284] ss:$16 sps:$4 sm:$0xff]  }
 0x349   : > { %3222 = vmatprep.subr.bf16.mxu0 %v11151_v5  ;;  %3304 = vmatprep.subr.bf16.mxu1 %v11153_v6  ;;  %v11235_v0 = vld [vmem:[#allocation19 + $0x28c] ss:$16 sps:$4 sm:$0xff]   ;;  %v11230_v1 = vld [vmem:[#allocation19 + $0x280] ss:$16 sps:$4 sm:$0xff]   ;;  %v11233_v2 = vld [vmem:[#allocation19 + $0x288] ss:$16 sps:$4 sm:$0xff]  }
 0x34a   : > { %v11238_v3 = vld [vmem:[#allocation19 + $0x2a4] ss:$16 sps:$4 sm:$0xff]   ;;  %v11241_v4 = vld [vmem:[#allocation19 + $0x2ac] ss:$16 sps:$4 sm:$0xff]   ;;  %v11236_v5 = vld [vmem:[#allocation19 + $0x2a0] ss:$16 sps:$4 sm:$0xff]  }
 0x34b   : > { %v11239_v6 = vld [vmem:[#allocation19 + $0x2a8] ss:$16 sps:$4 sm:$0xff]   ;;  %v11265_v23 = vld [vmem:[#allocation19 + $0x32c] ss:$16 sps:$4 sm:$0xff]   ;;  %v11268_v26 = vld [vmem:[#allocation19 + $0x344] ss:$16 sps:$4 sm:$0xff]  }
 0x34c   : > { %3223 = vmatpush1.bf16.msra.mxu0 %v11155_v7  ;;  %3305 = vmatpush1.bf16.msra.mxu1 %v11156_v8  ;;  %v11244_v7 = vld [vmem:[#allocation19 + $0x2c4] ss:$16 sps:$4 sm:$0xff]   ;;  %v11242_v8 = vld [vmem:[#allocation19 + $0x2c0] ss:$16 sps:$4 sm:$0xff]   ;;  %vm3732_vm3 = vcmask 1043459   ;;  %vm3735_vm4 = vcmask 125952  }
 0x34d   : > { %3224 = vmatprep.subr.bf16.mxu0 %v11157_v9  ;;  %3306 = vmatprep.subr.bf16.mxu1 %v11159_v10  ;;  %v11247_v9 = vld [vmem:[#allocation19 + $0x2cc] ss:$16 sps:$4 sm:$0xff]   ;;  %v12722_v10 = vld [vmem:[#allocation2 + $0x8] sm:$0xff]  ;;  %vm3969_vm5 = vcmask 130048   ;;  %s13436_s18 = sld [smem:[#allocation47_spill]] }
 0x350   : > { %3225 = vmatpush1.bf16.msra.mxu0 %v11161_v11  ;;  %3307 = vmatpush1.bf16.msra.mxu1 %v11162_v12  ;;  %v11245_v11 = vld [vmem:[#allocation19 + $0x2c8] ss:$16 sps:$4 sm:$0xff]   ;;  %v11250_v12 = vld [vmem:[#allocation19 + $0x2e4] ss:$16 sps:$4 sm:$0xff]  }
 0x351   : > { %3226 = vmatprep.subr.bf16.mxu0 %v11163_v13  ;;  %3308 = vmatprep.subr.bf16.mxu1 %v11165_v14  ;;  %v2433_v13 = vcombine.high %v12722_v10, %v12722_v10  ;;  %v11253_v14 = vld [vmem:[#allocation19 + $0x2ec] ss:$16 sps:$4 sm:$0xff]  }
 0x353   : > { %p10705_p10 = scmp.eq.s32.totalorder %s13436_s18, 0 }
 0x354   : > { %3227 = vmatpush1.bf16.msra.mxu0 %v11167_v15  ;;  %3309 = vmatpush1.bf16.msra.mxu1 %v11168_v16  ;;  %v12726_v15 = vpack.c.bf16 %v2433_v13, %v2433_v13  ;;  %v11248_v16 = vld [vmem:[#allocation19 + $0x2e0] ss:$16 sps:$4 sm:$0xff]  }
 0x355   : > { %3228 = vmatprep.subr.bf16.mxu0 %v11169_v17  ;;  %3310 = vmatprep.subr.bf16.mxu1 %v11171_v18  ;;  %v11251_v17 = vld [vmem:[#allocation19 + $0x2e8] ss:$16 sps:$4 sm:$0xff]   ;;  %v11256_v18 = vld [vmem:[#allocation19 + $0x304] ss:$16 sps:$4 sm:$0xff]  }
 0x358   : > { %3229 = vmatpush1.bf16.msra.mxu0 %v11173_v19  ;;  %3311 = vmatpush1.bf16.msra.mxu1 %v11174_v20  ;;  %v11259_v19 = vld [vmem:[#allocation19 + $0x30c] ss:$16 sps:$4 sm:$0xff]   ;;  %v11254_v20 = vld [vmem:[#allocation19 + $0x300] ss:$16 sps:$4 sm:$0xff]  }
 0x359   : > { %3230 = vmatprep.subr.bf16.mxu0 %v11175_v21  ;;  %3312 = vmatprep.subr.bf16.mxu1 %v11177_v22  ;;  %v11257_v21 = vld [vmem:[#allocation19 + $0x308] ss:$16 sps:$4 sm:$0xff]   ;;  %v11262_v22 = vld [vmem:[#allocation19 + $0x324] ss:$16 sps:$4 sm:$0xff]  }
 0x35c   : > { %3231 = vmatpush1.bf16.msra.mxu0 %v11179_v24  ;;  %3313 = vmatpush1.bf16.msra.mxu1 %v11180_v25  ;;  %v11260_v24 = vld [vmem:[#allocation19 + $0x320] ss:$16 sps:$4 sm:$0xff]   ;;  %v11263_v25 = vld [vmem:[#allocation19 + $0x328] ss:$16 sps:$4 sm:$0xff]  }
 0x35d   : > { %3232 = vmatprep.subr.bf16.mxu0 %v11181_v27  ;;  %3314 = vmatprep.subr.bf16.mxu1 %v11183_v28  ;;  %v11271_v27 = vld [vmem:[#allocation19 + $0x34c] ss:$16 sps:$4 sm:$0xff]   ;;  %v11266_v28 = vld [vmem:[#allocation19 + $0x340] ss:$16 sps:$4 sm:$0xff]  }
 0x360   : > { %3233 = vmatpush1.bf16.msra.mxu0 %v11185_v30  ;;  %3315 = vmatpush1.bf16.msra.mxu1 %v11186_v31  ;;  %v11269_v30 = vld [vmem:[#allocation19 + $0x348] ss:$16 sps:$4 sm:$0xff]   ;;  %v11274_v31 = vld [vmem:[#allocation19 + $0x364] ss:$16 sps:$4 sm:$0xff]  }
 0x361   : > { %3234 = vmatprep.subr.bf16.mxu0 %v11187_v32  ;;  %3316 = vmatprep.subr.bf16.mxu1 %v11189_v33  ;;  %v11277_v32 = vld [vmem:[#allocation19 + $0x36c] ss:$16 sps:$4 sm:$0xff]   ;;  %v11272_v33 = vld [vmem:[#allocation19 + $0x360] ss:$16 sps:$4 sm:$0xff]  }
 0x364   : > { %3235 = vmatpush1.bf16.msra.mxu0 %v11191_v34  ;;  %3317 = vmatpush1.bf16.msra.mxu1 %v11192_v39  ;;  %v11275_v34 = vld [vmem:[#allocation19 + $0x368] ss:$16 sps:$4 sm:$0xff]   ;;  %v11280_v39 = vld [vmem:[#allocation19 + $0x384] ss:$16 sps:$4 sm:$0xff]  }
 0x365   : > { %3236 = vmatprep.subr.bf16.mxu0 %v11193_v40  ;;  %3318 = vmatprep.subr.bf16.mxu1 %v11195_v41  ;;  %v11283_v40 = vld [vmem:[#allocation19 + $0x38c] ss:$16 sps:$4 sm:$0xff]   ;;  %v11278_v41 = vld [vmem:[#allocation19 + $0x380] ss:$16 sps:$4 sm:$0xff]  }
 0x368   : > { %3237 = vmatpush1.bf16.msra.mxu0 %v11197_v42  ;;  %3319 = vmatpush1.bf16.msra.mxu1 %v11198_v44  ;;  %v11281_v42 = vld [vmem:[#allocation19 + $0x388] ss:$16 sps:$4 sm:$0xff]   ;;  %v11286_v44 = vld [vmem:[#allocation19 + $0x3a4] ss:$16 sps:$4 sm:$0xff]  }
 0x369   : > { %3238 = vmatprep.subr.bf16.mxu0 %v11199_v45  ;;  %3320 = vmatprep.subr.bf16.mxu1 %v11201_v46  ;;  %v11289_v45 = vld [vmem:[#allocation19 + $0x3ac] ss:$16 sps:$4 sm:$0xff]   ;;  %v11284_v46 = vld [vmem:[#allocation19 + $0x3a0] ss:$16 sps:$4 sm:$0xff]  }
 0x36c   : > { %3239 = vmatpush1.bf16.msra.mxu0 %v11203_v36  ;;  %3321 = vmatpush1.bf16.msra.mxu1 %v11204_v37  ;;  %v11287_v36 = vld [vmem:[#allocation19 + $0x3a8] ss:$16 sps:$4 sm:$0xff]   ;;  %v11292_v37 = vld [vmem:[#allocation19 + $0x3c4] ss:$16 sps:$4 sm:$0xff]  }
 0x36d   : > { %3249 = vmatprep.subr.bf16.mxu0 %v11208_v47  ;;  %3331 = vmatprep.subr.bf16.mxu1 %v11211_v48  ;;  %v11295_v47 = vld [vmem:[#allocation19 + $0x3cc] ss:$16 sps:$4 sm:$0xff]   ;;  %v11290_v48 = vld [vmem:[#allocation19 + $0x3c0] ss:$16 sps:$4 sm:$0xff]  }
 0x36f   : > { %3241 = vmatmul.mubr.bf16.vlgmr.msra.gmra.mrb[0].mxu0 %v12718_v38  ;;  %3323 = vmatmul.mubr.bf16.vlgmr.msra.gmra.mrb[0].mxu1 %v12718_v38 }
 0x370   : > { %3250 = vmatpush1.bf16.msra.mxu0 %v11206_v49  ;;  %3332 = vmatpush1.bf16.msra.mxu1 %v11209_v50  ;;  %v11293_v49 = vld [vmem:[#allocation19 + $0x3c8] ss:$16 sps:$4 sm:$0xff]   ;;  %v11298_v50 = vld [vmem:[#allocation19 + $0x3e4] ss:$16 sps:$4 sm:$0xff]  }
 0x371   : > { %3251 = vmatprep.subr.bf16.mxu0 %v11214_v51  ;;  %3333 = vmatprep.subr.bf16.mxu1 %v11217_v52  ;;  %v11301_v51 = vld [vmem:[#allocation19 + $0x3ec] ss:$16 sps:$4 sm:$0xff]   ;;  %v11296_v52 = vld [vmem:[#allocation19 + $0x3e0] ss:$16 sps:$4 sm:$0xff]  }
 0x372   : > { %3281 = vmatprep.mubr.bf16.mxu0 %v12726_v15  ;;  %3363 = vmatprep.mubr.bf16.mxu1 %v12726_v15 }
 0x374   : > { %3252 = vmatpush1.bf16.msra.mxu0 %v11212_v53  ;;  %3334 = vmatpush1.bf16.msra.mxu1 %v11215_v54  ;;  %v11299_v53 = vld [vmem:[#allocation19 + $0x3e8] ss:$16 sps:$4 sm:$0xff]   ;;  %v12732_v54 = vpack.c.bf16 %v12722_v10, %v12722_v10 }
 0x375   : > { %3253 = vmatprep.subr.bf16.mxu0 %v11220_v55  ;;  %3335 = vmatprep.subr.bf16.mxu1 %v11223_v56  ;;  %v12199_v55 = vmov 1966171168  }
 0x376   : > { %v3411_v56 = vunpack.c.l.s4 %v12199_v55 }
 0x378   : > { %3254 = vmatpush1.bf16.msra.mxu0 %v11218_v57  ;;  %3336 = vmatpush1.bf16.msra.mxu1 %v11221_v58  ;;  %v3413_v57 = vlaneseq  ;;  %v3412_v58 = vunpack.c.0.s8 %v3411_v56  ;;  %v3384_v56 = vld [vmem:[#allocation4 + $0x60] sm:$0xff] }
 0x379   : > { %3255 = vmatprep.subr.bf16.mxu0 %v11226_v59  ;;  %3337 = vmatprep.subr.bf16.mxu1 %v11229_v60 }
 0x37a   : > { %v12737_v59 = vshrl.u32 %v3413_v57, 7 }
 0x37c   : > { %3256 = vmatpush1.bf16.msra.mxu0 %v11224_v61  ;;  %3338 = vmatpush1.bf16.msra.mxu1 %v11227_v62  ;;  %v3415_v61 = vsub.s32 %v3412_v58, %v12737_v59  ;;  %v12744_v10 = vsub.s32 1, %v12737_v59  ;;  %v12747_v13 = vsub.s32 2, %v12737_v59 }
 0x37d   : > { %3257 = vmatprep.subr.bf16.mxu0 %v11232_v63  ;;  %3339 = vmatprep.subr.bf16.mxu1 %v11235_v0 }
 0x380   : > { %3258 = vmatpush1.bf16.msra.mxu0 %v11230_v1  ;;  %3340 = vmatpush1.bf16.msra.mxu1 %v11233_v2 }
 0x381   : > { %3259 = vmatprep.subr.bf16.mxu0 %v11238_v3  ;;  %3341 = vmatprep.subr.bf16.mxu1 %v11241_v4 }
 0x384   : > { %3260 = vmatpush1.bf16.msra.mxu0 %v11236_v5  ;;  %3342 = vmatpush1.bf16.msra.mxu1 %v11239_v6 }
 0x385   : > { %3261 = vmatprep.subr.bf16.mxu0 %v11244_v7  ;;  %3343 = vmatprep.subr.bf16.mxu1 %v11247_v9  ;;  %v12741_v9 = vsub.s32 0, %v12737_v59 }
 0x388   : > { %3262 = vmatpush1.bf16.msra.mxu0 %v11242_v8  ;;  %3344 = vmatpush1.bf16.msra.mxu1 %v11245_v11 }
 0x389   : > { %3263 = vmatprep.subr.bf16.mxu0 %v11250_v12  ;;  %3345 = vmatprep.subr.bf16.mxu1 %v11253_v14  ;;  %v12750_v14 = vsub.s32 3, %v12737_v59 }
 0x38c   : > { %3264 = vmatpush1.bf16.msra.mxu0 %v11248_v16  ;;  %3346 = vmatpush1.bf16.msra.mxu1 %v11251_v17  ;;  %v3586_v16 = vld [vmem:[#allocation20] sm:$0xf] }
 0x38d   : > { %3265 = vmatprep.subr.bf16.mxu0 %v11256_v18  ;;  %3347 = vmatprep.subr.bf16.mxu1 %v11259_v19  ;;  %v3380_v19 = vld [vmem:[#allocation4 + $0x40] sm:$0xff] }
 0x390   : > { %3266 = vmatpush1.bf16.msra.mxu0 %v11254_v20  ;;  %3348 = vmatpush1.bf16.msra.mxu1 %v11257_v21  ;;  %v3381_v20 = vld [vmem:[#allocation4 + $0x48] sm:$0xff]  ;;  %v3382_v21 = vld [vmem:[#allocation4 + $0x50] sm:$0xff] }
 0x391   : > { %3267 = vmatprep.subr.bf16.mxu0 %v11262_v22  ;;  %3349 = vmatprep.subr.bf16.mxu1 %v11265_v23  ;;  %v3383_v22 = vld [vmem:[#allocation4 + $0x58] sm:$0xff]  ;;  %v12757_v23 = vrot.slane %v3586_v16, %v12741_v9 }
 0x394   : > { %3268 = vmatpush1.bf16.msra.mxu0 %v11260_v24  ;;  %3350 = vmatpush1.bf16.msra.mxu1 %v11263_v25  ;;  %v12760_v24 = vrot.slane %v3586_v16, %v12744_v10  ;;  %v12763_v25 = vrot.slane %v3586_v16, %v12747_v13 }
 0x395   : > { %3269 = vmatprep.subr.bf16.mxu0 %v11268_v26  ;;  %3351 = vmatprep.subr.bf16.mxu1 %v11271_v27  ;;  %v12766_v26 = vrot.slane %v3586_v16, %v12750_v14  ;;  %v3372_v27 = vld [vmem:[#allocation4] sm:$0xff] }
 0x398   : > { %3270 = vmatpush1.bf16.msra.mxu0 %v11266_v28  ;;  %3352 = vmatpush1.bf16.msra.mxu1 %v11269_v30 }
 0x399   : > { %3271 = vmatprep.subr.bf16.mxu0 %v11274_v31  ;;  %3353 = vmatprep.subr.bf16.mxu1 %v11277_v32 }
 0x39c   : > { %3272 = vmatpush1.bf16.msra.mxu0 %v11272_v33  ;;  %3354 = vmatpush1.bf16.msra.mxu1 %v11275_v34  ;;  %v3373_v33 = vld [vmem:[#allocation4 + $0x8] sm:$0xff]  ;;  %v3374_v34 = vld [vmem:[#allocation4 + $0x10] sm:$0xff] }
 0x39d   : > { %3273 = vmatprep.subr.bf16.mxu0 %v11280_v39  ;;  %3355 = vmatprep.subr.bf16.mxu1 %v11283_v40  ;;  %v3375_v39 = vld [vmem:[#allocation4 + $0x18] sm:$0xff] }
 0x3a0   : > { %3274 = vmatpush1.bf16.msra.mxu0 %v11278_v41  ;;  %3356 = vmatpush1.bf16.msra.mxu1 %v11281_v42 }
 0x3a1   : > { %3275 = vmatprep.subr.bf16.mxu0 %v11286_v44  ;;  %3357 = vmatprep.subr.bf16.mxu1 %v11289_v45 }
 0x3a4   : > { %3276 = vmatpush1.bf16.msra.mxu0 %v11284_v46  ;;  %3358 = vmatpush1.bf16.msra.mxu1 %v11287_v36 }
 0x3a5   : > { %3277 = vmatprep.subr.bf16.mxu0 %v11292_v37  ;;  %3359 = vmatprep.subr.bf16.mxu1 %v11295_v47 }
 0x3a8   : > { %3278 = vmatpush1.bf16.msra.mxu0 %v11290_v48  ;;  %3360 = vmatpush1.bf16.msra.mxu1 %v11293_v49 }
 0x3a9   : > { %3279 = vmatprep.subr.bf16.mxu0 %v11298_v50  ;;  %3361 = vmatprep.subr.bf16.mxu1 %v11301_v51 }
 0x3ac   : > { %3280 = vmatpush1.bf16.msra.mxu0 %v11296_v52  ;;  %3362 = vmatpush1.bf16.msra.mxu1 %v11299_v53 }
 0x3af   : > { %3282 = vmatmul.mubr.bf16.vlgmr.msra.gmra.mrb[0].mxu0 %v12732_v54  ;;  %3364 = vmatmul.mubr.bf16.vlgmr.msra.gmra.mrb[0].mxu1 %v12732_v54 }
 0x482   : > { %v3283_v60 = vpop.f32.mrb[0].mxu0  ;;  %v3365_v62 = vpop.f32.mrb[0].mxu1 }
 0x483   : > { %v3285_v63 = vpop.f32.mrb[1].mxu0  ;;  %v3367_v1 = vpop.f32.mrb[1].mxu1 }
 0x484   : > { %v3408_v0 = vcombine.low %v3283_v60, %v3285_v63  ;;  %v3287_v2 = vpop.f32.mrb[2].mxu0  ;;  %v3409_v3 = vcombine.low %v3365_v62, %v3367_v1  ;;  %v3369_v4 = vpop.f32.mrb[2].mxu1  ;;  %v3385_v63 = vld [vmem:[#allocation4 + $0x68] sm:$0xff] }
 0x485   : > { %v3288_v5 = vpop.f32.mrb[3].mxu0  ;;  %v3370_v7 = vpop.f32.mrb[3].mxu1 }
 0x486   : > { %v3416_v6 = vrot.slane %v3408_v0, %v3415_v61  ;;  %v3423_v8 = vrot.slane %v3409_v3, %v3415_v61  ;;  %v3386_v0 = vld [vmem:[#allocation4 + $0x70] sm:$0xff]  ;;  %v3387_v5 = vld [vmem:[#allocation4 + $0x78] sm:$0xff]  ;;  %v3377_v7 = vld [vmem:[#allocation4 + $0x28] sm:$0xff] }
 0x488   : > { %v3424_v11 = vcombine.low %v3416_v6, %v3423_v8  ;;  %v3425_v12 = vcombine.high %v3416_v6, %v3423_v8  ;;  %v3376_v6 = vld [vmem:[#allocation4 + $0x20] sm:$0xff] }
 0x48a   : > { %v12752_v17 = vrot.slane %v3424_v11, %v3415_v61  ;;  %v12754_v18 = vrot.slane %v3425_v12, %v3415_v61 }
 0x48c   : > { %v3461_v28 = vrot.slane %v12754_v18, %v12741_v9  ;;  %v3465_v30 = vrot.slane %v12754_v18, %v12744_v10  ;;  %v3469_v31 = vrot.slane %v12754_v18, %v12747_v13  ;;  %v3473_v32 = vrot.slane %v12754_v18, %v12750_v14 }
 0x48d   : > { %v3445_v40 = vrot.slane %v12752_v17, %v12741_v9  ;;  %v3449_v41 = vrot.slane %v12752_v17, %v12744_v10  ;;  %v3453_v42 = vrot.slane %v12752_v17, %v12747_v13  ;;  %v3457_v44 = vrot.slane %v12752_v17, %v12750_v14 }
 0x48e   : > { %v3530_v45 = vadd.f32 %v3461_v28, %v3380_v19  ;;  %v3531_v46 = vadd.f32 %v3465_v30, %v3381_v20  ;;  %v3532_v36 = vadd.f32 %v3469_v31, %v3382_v21  ;;  %v3533_v37 = vadd.f32 %v3473_v32, %v3383_v22 }
 0x48f   : > { %v3522_v47 = vadd.f32 %v3445_v40, %v3372_v27  ;;  %v3523_v48 = vadd.f32 %v3449_v41, %v3373_v33  ;;  %v3524_v49 = vadd.f32 %v3453_v42, %v3374_v34  ;;  %v3525_v50 = vadd.f32 %v3457_v44, %v3375_v39  ;;  %v3378_v27 = vld [vmem:[#allocation4 + $0x30] sm:$0xff]  ;;  %v3379_v33 = vld [vmem:[#allocation4 + $0x38] sm:$0xff] }
 0x490   : > { %v3562_v51 = vmax.f32 %v3530_v45, 0.0  ;;  %v3563_v52 = vmax.f32 %v3531_v46, 0.0  ;;  %v3564_v53 = vmax.f32 %v3532_v36, 0.0  ;;  %v3565_v55 = vmax.f32 %v3533_v37, 0.0 }
 0x491   : > { %v3554_v58 = vmax.f32 %v3522_v47, 0.0  ;;  %v3555_v60 = vmax.f32 %v3523_v48, 0.0  ;;  %v3556_v61 = vmax.f32 %v3524_v49, 0.0  ;;  %v3557_v62 = vmax.f32 %v3525_v50, 0.0 }
 0x492   : > { %v3616_v1 = vmul.f32 %v12757_v23, %v3562_v51  ;;  %v3617_v2 = vmul.f32 %v12760_v24, %v3563_v52  ;;  %v3618_v3 = vmul.f32 %v12763_v25, %v3564_v53  ;;  %v3619_v4 = vmul.f32 %v12766_v26, %v3565_v55 }
 0x493   : > { %v3608_v8 = vmul.f32 %v12757_v23, %v3554_v58  ;;  %v3609_v11 = vmul.f32 %v12760_v24, %v3555_v60  ;;  %v3610_v12 = vmul.f32 %v12763_v25, %v3556_v61  ;;  %v3611_v16 = vmul.f32 %v12766_v26, %v3557_v62  ;;  %v3392_v62 = vld [vmem:[#allocation4 + $0xa0] sm:$0xff] }
 0x494   : > { %v3650_v19 = vadd.f32 %v3617_v2, %v3616_v1  ;;  %v3534_v20 = vadd.f32 %v3461_v28, %v3384_v56  ;;  %v3535_v21 = vadd.f32 %v3465_v30, %v3385_v63  ;;  %v3536_v22 = vadd.f32 %v3469_v31, %v3386_v0  ;;  %v3388_v63 = vld [vmem:[#allocation4 + $0x80] sm:$0xff] }
 0x495   : > { %v3640_v34 = vadd.f32 %v3609_v11, %v3608_v8  ;;  %v3537_v39 = vadd.f32 %v3473_v32, %v3387_v5  ;;  %v3526_v45 = vadd.f32 %v3445_v40, %v3376_v6  ;;  %v3527_v46 = vadd.f32 %v3449_v41, %v3377_v7  ;;  %v3394_v5 = vld [vmem:[#allocation4 + $0xb0] sm:$0xff] }
 0x496   : > { %v3651_v36 = vadd.f32 %v3650_v19, %v3618_v3  ;;  %v3566_v37 = vmax.f32 %v3534_v20, 0.0  ;;  %v3567_v47 = vmax.f32 %v3535_v21, 0.0  ;;  %v3568_v48 = vmax.f32 %v3536_v22, 0.0  ;;  %v3390_v19 = vld [vmem:[#allocation4 + $0x90] sm:$0xff] }
 0x497   : > { %v3641_v49 = vadd.f32 %v3640_v34, %v3610_v12  ;;  %v3569_v50 = vmax.f32 %v3537_v39, 0.0  ;;  %v3528_v51 = vadd.f32 %v3453_v42, %v3378_v27  ;;  %v3529_v52 = vadd.f32 %v3457_v44, %v3379_v33 }
 0x498   : > { %v3652_v53 = vadd.f32 %v3651_v36, %v3619_v4  ;;  %v3620_v55 = vmul.f32 %v12757_v23, %v3566_v37  ;;  %v3621_v28 = vmul.f32 %v12760_v24, %v3567_v47  ;;  %v3622_v31 = vmul.f32 %v12763_v25, %v3568_v48  ;;  %v3393_v4 = vld [vmem:[#allocation4 + $0xa8] sm:$0xff] }
 0x499   : > { %v3642_v30 = vadd.f32 %v3641_v49, %v3611_v16  ;;  %v3558_v56 = vmax.f32 %v3526_v45, 0.0  ;;  %v3559_v32 = vmax.f32 %v3527_v46, 0.0  ;;  %v3560_v41 = vmax.f32 %v3528_v51, 0.0  ;;  %v3389_v16 = vld [vmem:[#allocation4 + $0x88] sm:$0xff] }
 0x49a   : > { %3653 = vadd.xlane.f32.xlu1 %v3652_v53  ;;  %v3655_v40 = vadd.f32 %v3621_v28, %v3620_v55  ;;  %v3561_v58 = vmax.f32 %v3529_v52, 0.0  ;;  %v3440_v60 = vcombine.high %v12752_v17, %v12752_v17  ;;  %v3623_v42 = vmul.f32 %v12766_v26, %v3569_v50  ;;  %v3395_v17 = vld [vmem:[#allocation4 + $0xb8] sm:$0xff] }
 0x49b   : > { %3643 = vadd.xlane.f32.xlu0 %v3642_v30  ;;  %v3612_v44 = vmul.f32 %v12757_v23, %v3558_v56  ;;  %v3613_v61 = vmul.f32 %v12760_v24, %v3559_v32  ;;  %v3441_v0 = vcombine.high %v12754_v18, %v12754_v18  ;;  %v3614_v2 = vmul.f32 %v12763_v25, %v3560_v41  ;;  %v3391_v18 = vld [vmem:[#allocation4 + $0x98] sm:$0xff]  ;;  %v3401_v41 = vld [vmem:[#allocation4 + $0xe8] sm:$0xff] }
 0x49c   : > { %v3656_v1 = vadd.f32 %v3655_v40, %v3622_v31  ;;  %v3615_v3 = vmul.f32 %v12766_v26, %v3561_v58  ;;  %v3477_v6 = vrot.slane %v3440_v60, %v12741_v9  ;;  %v3481_v8 = vrot.slane %v3440_v60, %v12744_v10  ;;  %v3400_v40 = vld [vmem:[#allocation4 + $0xe0] sm:$0xff] }
 0x49d   : > { %v3645_v7 = vadd.f32 %v3613_v61, %v3612_v44  ;;  %v3485_v11 = vrot.slane %v3440_v60, %v12747_v13  ;;  %v3489_v12 = vrot.slane %v3440_v60, %v12750_v14  ;;  %v3493_v27 = vrot.slane %v3441_v0, %v12741_v9  ;;  %v3396_v58 = vld [vmem:[#allocation4 + $0xc0] sm:$0xff]  ;;  %v3402_v61 = vld [vmem:[#allocation4 + $0xf0] sm:$0xff] }
 0x49e   : > { %v3657_v20 = vadd.f32 %v3656_v1, %v3623_v42  ;;  %v3542_v21 = vadd.f32 %v3477_v6, %v3392_v62  ;;  %v3538_v22 = vadd.f32 %v3477_v6, %v3388_v63  ;;  %v3543_v34 = vadd.f32 %v3481_v8, %v3393_v4  ;;  %v3403_v62 = vld [vmem:[#allocation4 + $0xf8] sm:$0xff]  ;;  %v3397_v1 = vld [vmem:[#allocation4 + $0xc8] sm:$0xff] }
 0x49f   : > { %v3646_v33 = vadd.f32 %v3645_v7, %v3614_v2  ;;  %v3544_v39 = vadd.f32 %v3485_v11, %v3394_v5  ;;  %v3545_v45 = vadd.f32 %v3489_v12, %v3395_v17  ;;  %v3539_v36 = vadd.f32 %v3481_v8, %v3389_v16  ;;  %v3398_v17 = vld [vmem:[#allocation4 + $0xd0] sm:$0xff] }
 0x4a0   : > { %3658 = vadd.xlane.f32.xlu1 %v3657_v20  ;;  %v3574_v46 = vmax.f32 %v3542_v21, 0.0  ;;  %v3540_v37 = vadd.f32 %v3485_v11, %v3390_v19  ;;  %v3541_v47 = vadd.f32 %v3489_v12, %v3391_v18  ;;  %v3575_v49 = vmax.f32 %v3543_v34, 0.0  ;;  %v3399_v11 = vld [vmem:[#allocation4 + $0xd8] sm:$0xff] }
 0x4a1   : > { %v3647_v48 = vadd.f32 %v3646_v33, %v3615_v3  ;;  %v3576_v50 = vmax.f32 %v3544_v39, 0.0  ;;  %v3577_v51 = vmax.f32 %v3545_v45, 0.0  ;;  %v3570_v53 = vmax.f32 %v3538_v22, 0.0 }
 0x4a2   : > { %v3628_v52 = vmul.f32 %v12757_v23, %v3574_v46  ;;  %v3571_v55 = vmax.f32 %v3539_v36, 0.0  ;;  %v3572_v28 = vmax.f32 %v3540_v37, 0.0  ;;  %v3629_v30 = vmul.f32 %v12760_v24, %v3575_v49 }
 0x4a3   : > { %3648 = vadd.xlane.f32.xlu0 %v3647_v48  ;;  %v3630_v31 = vmul.f32 %v12763_v25, %v3576_v50  ;;  %v3631_v56 = vmul.f32 %v12766_v26, %v3577_v51  ;;  %v3573_v32 = vmax.f32 %v3541_v47, 0.0  ;;  %v3624_v60 = vmul.f32 %v12757_v23, %v3570_v53 }
 0x4a4   : > { %v3625_v42 = vmul.f32 %v12760_v24, %v3571_v55  ;;  %v3626_v44 = vmul.f32 %v12763_v25, %v3572_v28  ;;  %v3497_v63 = vrot.slane %v3441_v0, %v12744_v10  ;;  %v3665_v2 = vadd.f32 %v3629_v30, %v3628_v52 }
 0x4a5   : > { %v3627_v3 = vmul.f32 %v12766_v26, %v3573_v32  ;;  %v3501_v4 = vrot.slane %v3441_v0, %v12747_v13  ;;  %v3505_v5 = vrot.slane %v3441_v0, %v12750_v14  ;;  %v3550_v7 = vadd.f32 %v3493_v27, %v3400_v40 }
 0x4a6   : > { %v3660_v6 = vadd.f32 %v3625_v42, %v3624_v60  ;;  %v3551_v8 = vadd.f32 %v3497_v63, %v3401_v41  ;;  %v3546_v12 = vadd.f32 %v3493_v27, %v3396_v58  ;;  %v3666_v16 = vadd.f32 %v3665_v2, %v3630_v31 }
 0x4a7   : > { %v3552_v19 = vadd.f32 %v3501_v4, %v3402_v61  ;;  %v3553_v18 = vadd.f32 %v3505_v5, %v3403_v62  ;;  %v3547_v20 = vadd.f32 %v3497_v63, %v3397_v1  ;;  %v3582_v22 = vmax.f32 %v3550_v7, 0.0 }
 0x4a8   : > { %v3661_v21 = vadd.f32 %v3660_v6, %v3626_v44  ;;  %v3583_v33 = vmax.f32 %v3551_v8, 0.0  ;;  %v3548_v34 = vadd.f32 %v3501_v4, %v3398_v17  ;;  %v3667_v39 = vadd.f32 %v3666_v16, %v3631_v56 }
 0x4a9   : > { %v3584_v45 = vmax.f32 %v3552_v19, 0.0  ;;  %v3585_v46 = vmax.f32 %v3553_v18, 0.0  ;;  %v3549_v36 = vadd.f32 %v3505_v5, %v3399_v11  ;;  %v3636_v0 = vmul.f32 %v12757_v23, %v3582_v22 }
 0x4aa   : > { %v3662_v37 = vadd.f32 %v3661_v21, %v3627_v3  ;;  %v3637_v47 = vmul.f32 %v12760_v24, %v3583_v33  ;;  %v3578_v48 = vmax.f32 %v3546_v12, 0.0  ;;  %3668 = vadd.xlane.f32.xlu1 %v3667_v39  ;;  %v3579_v27 = vmax.f32 %v3547_v20, 0.0 }
 0x4ab   : > { %v3580_v49 = vmax.f32 %v3548_v34, 0.0  ;;  %v3638_v50 = vmul.f32 %v12763_v25, %v3584_v45  ;;  %v3581_v53 = vmax.f32 %v3549_v36, 0.0  ;;  %v3639_v28 = vmul.f32 %v12766_v26, %v3585_v46 }
 0x4ac   : > { %3663 = vadd.xlane.f32.xlu0 %v3662_v37  ;;  %v3675_v51 = vadd.f32 %v3637_v47, %v3636_v0  ;;  %v3632_v52 = vmul.f32 %v12757_v23, %v3578_v48  ;;  %v3633_v55 = vmul.f32 %v12760_v24, %v3579_v27  ;;  %v3689_v23 = vand.u32 127, %v3413_v57 }
 0x4ad   : > { %v3634_v31 = vmul.f32 %v12763_v25, %v3580_v49  ;;  %v3635_v40 = vmul.f32 %v12766_v26, %v3581_v53  ;;  %v12200_v33 = vmov 0  }
 0x4ae   : > { %v3676_v30 = vadd.f32 %v3675_v51, %v3638_v50  ;;  %v3670_v56 = vadd.f32 %v3633_v55, %v3632_v52  ;;  %v3694_v61 = vadd.s32 4294967288, %v3689_v23  ;;  %v12833_v25 = vsub.s32 %v3689_v23, %v12737_v59  ;;  %11108 = vset.pattern.permute.xlu0 %v12200_v33  ;;  %11107 = vset.pattern.permute.xlu1 %v12200_v33 }
 0x4af   : > { %4437 = vmatprep.mubr.bf16.mxu0 %v12200_v33  ;;  %4005 = vmatprep.mubr.bf16.mxu1 %v12200_v33 }
 0x4b0   : > { %v3677_v32 = vadd.f32 %v3676_v30, %v3639_v28  ;;  %v3671_v41 = vadd.f32 %v3670_v56, %v3634_v31  ;;  %v12830_v62 = vsub.s32 %v3694_v61, %v12737_v59 }
 0x4b2   : > { %3678 = vadd.xlane.f32.xlu1 %v3677_v32  ;;  %v3672_v58 = vadd.f32 %v3671_v41, %v3635_v40 }
 0x4b4   : > { %3673 = vadd.xlane.f32.xlu0 %v3672_v58 }
 0x527   : > { %v3654_v60 = vpop.xlane.xlu1 %3653 }
 0x528   : > { %v3644_v42 = vpop.xlane.xlu0 %3643  ;;  %v3704_v4 = vrot.slane %v3654_v60, %v12833_v25 }
 0x529   : > { %v3693_v5 = vrot.slane %v3644_v42, %v12833_v25 }
 0x52d   : > { %v3659_v44 = vpop.xlane.xlu1 %3658 }
 0x52e   : > { %v3708_v26 = vrot.slane %v3659_v44, %v12830_v62 }
 0x530   : > { %v3649_v24 = vpop.xlane.xlu0 %3648  ;;  %v3709_v6 = vsel %vm3699_vm0, %v3708_v26, %v3704_v4 }
 0x531   : > { %v3698_v2 = vrot.slane %v3649_v24, %v12830_v62 }
 0x533   : > { %v3700_v7 = vsel %vm3699_vm0, %v3698_v2, %v3693_v5 }
 0x534   : > { %v3729_v19 = vsel %vm3728_vm1, %v3709_v6, %v3700_v7 }
 0x537   : > { %v3669_v63 = vpop.xlane.xlu1 %3668 }
 0x538   : > { %v3717_v3 = vrot.slane %v3669_v63, %v12830_v62 }
 0x539   : > { %v3664_v1 = vpop.xlane.xlu0 %3663 }
 0x53a   : > { %v3713_v57 = vrot.slane %v3664_v1, %v12833_v25 }
 0x53c   : > { %v3718_v12 = vsel %vm3699_vm0, %v3717_v3, %v3713_v57 }
 0x53d   : > { %v3731_v20 = vsel %vm3730_vm2, %v3718_v12, %v3729_v19 }
 0x53f   : > { %v3679_v17 = vpop.xlane.xlu1 %3678 }
 0x540   : > { %v3726_v8 = vrot.slane %v3679_v17, %v12830_v62 }
 0x541   : > { %v3674_v11 = vpop.xlane.xlu0 %3673 }
 0x542   : > { %v3722_v16 = vrot.slane %v3674_v11, %v12833_v25 }
 0x544   : > { %v3727_v18 = vsel %vm3699_vm0, %v3726_v8, %v3722_v16 }
 0x545   : > { %v3733_v21 = vsel %vm3732_vm3, %v3727_v18, %v3731_v20 }
 0x546   : > { %v3736_v22 = vsel %vm3735_vm4, %v3733_v21, -inf }
 0x547   : > { %3737 = vmax.xlane.f32.xlu0 %v3736_v22 }
 0x5d4   : > { %v3738_v34 = vpop.xlane.xlu0 %3737 }
 0x5d5   : > { %v3743_v39 = vrot.slane %v3738_v34, %v12741_v9  ;;  %v3747_v45 = vrot.slane %v3738_v34, %v12744_v10  ;;  %v3751_v48 = vrot.slane %v3738_v34, %v12747_v13  ;;  %v3755_v52 = vrot.slane %v3738_v34, %v12750_v14 }
 0x5d7   : > { %v3760_v46 = vsub.f32 %v3644_v42, %v3743_v39  ;;  %v3761_v36 = vsub.f32 %v3649_v24, %v3743_v39  ;;  %v3762_v37 = vsub.f32 %v3654_v60, %v3747_v45  ;;  %v3763_v27 = vsub.f32 %v3659_v44, %v3747_v45 }
 0x5d8   : > { %v3764_v50 = vsub.f32 %v3664_v1, %v3751_v48  ;;  %v3765_v53 = vsub.f32 %v3669_v63, %v3751_v48  ;;  %v3766_v31 = vsub.f32 %v3674_v11, %v3755_v52  ;;  %v3767_v40 = vsub.f32 %v3679_v17, %v3755_v52 }
 0x5d9   : > { %v3768_v0 = vmul.f32 1.442695, %v3760_v46  ;;  %v3770_v47 = vmul.f32 1.442695, %v3761_v36  ;;  %v3772_v49 = vmul.f32 1.442695, %v3762_v37 }
 0x5da   : > { %v3774_v51 = vmul.f32 1.442695, %v3763_v27  ;;  %v3776_v55 = vmul.f32 1.442695, %v3764_v50  ;;  %v3778_v56 = vmul.f32 1.442695, %v3765_v53 }
 0x5db   : > { %11627 = vpow2.f32 %v3768_v0  ;;  %v3780_v41 = vmul.f32 1.442695, %v3766_v31  ;;  %v3782_v60 = vmul.f32 1.442695, %v3767_v40  ;;  %v11303_v31 = vld [vmem:[#allocation10 + $0x70] ss:$24 sps:$4 sm:$0xff]  }
 0x5dc   : > { %11629 = vpow2.f32 %v3770_v47 }
 0x5dd   : > { %11631 = vpow2.f32 %v3772_v49 }
 0x5de   : > { %11633 = vpow2.f32 %v3774_v51 }
 0x5df   : > { %11635 = vpow2.f32 %v3776_v55 }
 0x5e0   : > { %11637 = vpow2.f32 %v3778_v56  ;;  %v11305_v56 = vld [vmem:[#allocation10 + $0x74] ss:$24 sps:$4 sm:$0xff]  }
 0x5e1   : > { %11639 = vpow2.f32 %v3780_v41  ;;  %4405 = vmatprep.subr.bf16.mxu0 %v11305_v56 }
 0x5e2   : > { %11641 = vpow2.f32 %v3782_v60  ;;  %4406 = vmatpush1.bf16.msra.mxu0 %v11303_v31  ;;  %v11324_v31 = vld [vmem:[#allocation10 + $0x8] ss:$24 sps:$4 sm:$0xff]  }
 0x5e5   : > { %v12859_v28 = vpop.eup %11627 }
 0x5e6   : > { %v12861_v30 = vpop.eup %11629  ;;  %3793 = vperm.xlu1 %11107, %v12859_v28  }
 0x5e7   : > { %3796 = vperm.xlu0 %11108, %v12861_v30   ;;  %v12865_v32 = vpop.eup %11631 }
 0x5e8   : > { %v12868_v58 = vpop.eup %11633 }
 0x5e9   : > { %v11636_v42 = vpop.eup %11635 }
 0x5ea   : > { %3799 = vperm.xlu1 %11107, %v12865_v32   ;;  %v11638_v23 = vpop.eup %11637 }
 0x5eb   : > { %v11640_v44 = vpop.eup %11639 }
 0x5ec   : > { %v11642_v61 = vpop.eup %11641 }
 0x5ee   : > { %3802 = vperm.xlu1 %11107, %v12868_v58  }
 0x5f2   : > { %3805 = vperm.xlu1 %11107, %v11636_v42  }
 0x5f6   : > { %3808 = vperm.xlu1 %11107, %v11638_v23  }
 0x5fa   : > { %3811 = vperm.xlu1 %11107, %v11640_v44  }
 0x5fe   : > { %3814 = vperm.xlu1 %11107, %v11642_v61  }
 0x665   : > { %v3794_v24 = vpop.permute.xlu1 %3793 }
 0x666   : > { %v3797_v3 = vpop.permute.xlu0 %3796  ;;  %v3819_v6 = vrot.slane %v3794_v24, %v12833_v25 }
 0x667   : > { %v3823_v17 = vrot.slane %v3797_v3, %v12830_v62 }
 0x669   : > { %v3800_v63 = vpop.permute.xlu1 %3799  ;;  %v3824_v19 = vsel %vm3699_vm0, %v3823_v17, %v3819_v6  ;;  %v11326_v6 = vld [vmem:[#allocation10 + $0xc] ss:$24 sps:$4 sm:$0xff]  }
 0x66a   : > { %v3828_v7 = vrot.slane %v3800_v63, %v12833_v25 }
 0x66d   : > { %v3803_v1 = vpop.permute.xlu1 %3802 }
 0x66e   : > { %v3832_v57 = vrot.slane %v3803_v1, %v12830_v62 }
 0x670   : > { %v3833_v11 = vsel %vm3699_vm0, %v3832_v57, %v3828_v7 }
 0x671   : > { %v3806_v26 = vpop.permute.xlu1 %3805  ;;  %v3852_v21 = vsel %vm3728_vm1, %v3833_v11, %v3824_v19 }
 0x672   : > { %v3837_v8 = vrot.slane %v3806_v26, %v12833_v25 }
 0x675   : > { %v3809_v2 = vpop.permute.xlu1 %3808 }
 0x676   : > { %v3841_v4 = vrot.slane %v3809_v2, %v12830_v62 }
 0x678   : > { %v3842_v12 = vsel %vm3699_vm0, %v3841_v4, %v3837_v8  ;;  %v11315_v4 = vld [vmem:[#allocation10] ss:$24 sps:$4 sm:$0xff]  }
 0x679   : > { %v3812_v5 = vpop.permute.xlu1 %3811  ;;  %v3853_v34 = vsel %vm3730_vm2, %v3842_v12, %v3852_v21  ;;  %v11306_v12 = vld [vmem:[#allocation10 + $0x98] ss:$24 sps:$4 sm:$0xff]  }
 0x67a   : > { %v3846_v18 = vrot.slane %v3812_v5, %v12833_v25  ;;  %v11317_v5 = vld [vmem:[#allocation10 + $0x4] ss:$24 sps:$4 sm:$0xff]  }
 0x67b   : > { %3973 = vmatprep.subr.bf16.mxu1 %v11317_v5  ;;  %v11342_v5 = vld [vmem:[#allocation10 + $0x30] ss:$24 sps:$4 sm:$0xff]  }
 0x67c   : > { %3974 = vmatpush1.bf16.msra.mxu1 %v11315_v4  ;;  %v11336_v4 = vld [vmem:[#allocation22 + $0x120] ss:$24 sps:$4 sm:$0xff]  }
 0x67d   : > { %v3815_v16 = vpop.permute.xlu1 %3814  ;;  %4014 = vmatprep.subr.bf16.mxu1 %v11326_v6 }
 0x67e   : > { %v3850_v20 = vrot.slane %v3815_v16, %v12830_v62 }
 0x680   : > { %v3851_v22 = vsel %vm3699_vm0, %v3850_v20, %v3846_v18  ;;  %v11311_v18 = vld [vmem:[#allocation22 + $0x4] ss:$24 sps:$4 sm:$0xff]  }
 0x681   : > { %v3854_v39 = vsel %vm3732_vm3, %v3851_v22, %v3853_v34 }
 0x682   : > { %v3856_v45 = vsel %vm3735_vm4, %v3854_v39, 0.0  ;;  %v11309_v39 = vld [vmem:[#allocation22] ss:$24 sps:$4 sm:$0xff]  }
 0x683   : > { %3857 = vadd.xlane.f32.xlu1 %v3856_v45 }
 0x710   : > { %v3858_v46 = vpop.xlane.xlu1 %3857 }
 0x711   : > { %v3871_v36 = vrot.slane %v3858_v46, %v12747_v13  ;;  %v3875_v37 = vrot.slane %v3858_v46, %v12750_v14  ;;  %v3863_v0 = vrot.slane %v3858_v46, %v12741_v9  ;;  %v3867_v51 = vrot.slane %v3858_v46, %v12744_v10 }
 0x713   : > { %11643 = vrcp.f32 %v3871_v36  ;;  %v11314_v36 = vld [vmem:[#allocation22 + $0x34] ss:$24 sps:$4 sm:$0xff]  }
 0x714   : > { %11645 = vrcp.f32 %v3875_v37  ;;  %v11312_v37 = vld [vmem:[#allocation22 + $0x30] ss:$24 sps:$4 sm:$0xff]  }
 0x715   : > { %11647 = vrcp.f32 %v3863_v0 }
 0x716   : > { %11649 = vrcp.f32 %v3867_v51 }
 0x71d   : > { %v11644_v47 = vpop.eup %11643 }
 0x71e   : > { %v12890_v48 = vmul.f32 %v11644_v47, %v11636_v42  ;;  %v12892_v27 = vmul.f32 %v11644_v47, %v11638_v23  ;;  %v11646_v49 = vpop.eup %11645  ;;  %v11320_v47 = vld [vmem:[#allocation22 + $0x64] ss:$24 sps:$4 sm:$0xff]  }
 0x71f   : > { %v12897_v53 = vmul.f32 %v11646_v49, %v11640_v44  ;;  %v12899_v55 = vmul.f32 %v11646_v49, %v11642_v61  ;;  %v11648_v60 = vpop.eup %11647  ;;  %v11308_v61 = vld [vmem:[#allocation10 + $0x9c] ss:$24 sps:$4 sm:$0xff]  }
 0x720   : > { %v3894_v50 = vpack.c.bf16 %v12892_v27, %v12890_v48  ;;  %v12904_v23 = vmul.f32 %v11648_v60, %v12859_v28  ;;  %v12907_v44 = vmul.f32 %v11648_v60, %v12861_v30  ;;  %4539 = vmatprep.subr.bf16.mxu0 %v11308_v61  ;;  %v11650_v1 = vpop.eup %11649  ;;  %v11321_v60 = vld [vmem:[#allocation22 + $0x90] ss:$24 sps:$4 sm:$0xff]   ;;  %v11327_v61 = vld [vmem:[#allocation22 + $0xc0] ss:$24 sps:$4 sm:$0xff]  }
 0x721   : > { %v3895_v41 = vpack.c.bf16 %v12899_v55, %v12897_v53  ;;  %v12912_v2 = vmul.f32 %v11650_v1, %v12865_v32  ;;  %v12915_v3 = vmul.f32 %v11650_v1, %v12868_v58  ;;  %v11332_v1 = vld [vmem:[#allocation22 + $0xf4] ss:$24 sps:$4 sm:$0xff]  }
 0x722   : > { %v4272_v52 = vunpack.c.l.b16 %v3894_v50  ;;  %v4273_v40 = vunpack.c.h.b16 %v3894_v50  ;;  %v3892_v63 = vpack.c.bf16 %v12907_v44, %v12904_v23 }
 0x723   : > { %v4447_v42 = vunpack.c.l.b16 %v3895_v41  ;;  %v4448_v24 = vunpack.c.h.b16 %v3895_v41  ;;  %v3893_v30 = vpack.c.bf16 %v12915_v3, %v12912_v2  ;;  %v11335_v41 = vld [vmem:[#allocation10 + $0x14] ss:$24 sps:$4 sm:$0xff]  }
 0x724   : > { %4275 = vperm.xlu0 %11108, %v4272_v52   ;;  %v3921_v26 = vunpack.c.l.b16 %v3892_v63  ;;  %v3922_v28 = vunpack.c.h.b16 %v3892_v63  ;;  %v11318_v52 = vld [vmem:[#allocation22 + $0x60] ss:$24 sps:$4 sm:$0xff]  }
 0x725   : > { %v4097_v57 = vunpack.c.l.b16 %v3893_v30  ;;  %v4098_v17 = vunpack.c.h.b16 %v3893_v30  ;;  %v11338_v30 = vld [vmem:[#allocation22 + $0x124] ss:$24 sps:$4 sm:$0xff]  }
 0x728   : > { %4278 = vperm.xlu0 %11108, %v4273_v40   ;;  %v11323_v40 = vld [vmem:[#allocation22 + $0x94] ss:$24 sps:$4 sm:$0xff]  }
 0x72c   : > { %4450 = vperm.xlu0 %11108, %v4447_v42   ;;  %v11329_v42 = vld [vmem:[#allocation22 + $0xc4] ss:$24 sps:$4 sm:$0xff]  }
 0x730   : > { %4453 = vperm.xlu0 %11108, %v4448_v24   ;;  %v11333_v24 = vld [vmem:[#allocation10 + $0x10] ss:$24 sps:$4 sm:$0xff]  }
 0x734   : > { %3924 = vperm.xlu0 %11108, %v3921_v26   ;;  %v11344_v26 = vld [vmem:[#allocation10 + $0x34] ss:$24 sps:$4 sm:$0xff]  }
 0x738   : > { %3927 = vperm.xlu0 %11108, %v3922_v28   ;;  %v11330_v28 = vld [vmem:[#allocation22 + $0xf0] ss:$24 sps:$4 sm:$0xff]  }
 0x73c   : > { %4100 = vperm.xlu0 %11108, %v4097_v57  }
 0x740   : > { %4103 = vperm.xlu0 %11108, %v4098_v17   ;;  %v11341_v17 = vld [vmem:[#allocation22 + $0x154] ss:$24 sps:$4 sm:$0xff]  }
 0x7a3   : > { %v4276_v32 = vpop.permute.xlu0 %4275 }
 0x7a4   : > { %v4283_v58 = vrot.slane %v4276_v32, %v12833_v25  ;;  %v11353_v32 = vld [vmem:[#allocation10 + $0x3c] ss:$24 sps:$4 sm:$0xff]  }
 0x7a7   : > { %v4279_v7 = vpop.permute.xlu0 %4278 }
 0x7a8   : > { %v4287_v8 = vrot.slane %v4279_v7, %v12830_v62 }
 0x7aa   : > { %v4288_v11 = vsel %vm3699_vm0, %v4287_v8, %v4283_v58  ;;  %v11339_v58 = vld [vmem:[#allocation22 + $0x150] ss:$24 sps:$4 sm:$0xff]   ;;  %v11347_v8 = vld [vmem:[#allocation22 + $0x184] ss:$24 sps:$4 sm:$0xff]  }
 0x7ab   : > { %v12922_v16 = vpack.c.b16 %v4288_v11, %v4288_v11  ;;  %v4451_v19 = vpop.permute.xlu0 %4450 }
 0x7ac   : > { %v4458_v21 = vrot.slane %v4451_v19, %v12833_v25  ;;  %v11351_v19 = vld [vmem:[#allocation10 + $0x38] ss:$24 sps:$4 sm:$0xff]  }
 0x7ad   : > { %10113 = vmatmul.mubr.msk.bf16.vlgmr.msra.gmra.mrb[4].mxu0 %vm3969_vm5, %v12922_v16 }
 0x7ae   : > { %4540 = vmatpush1.bf16.msra.mxu0 %v11306_v12  ;;  %4571 = vmatprep.mubr.bf16.mxu0 %v12200_v33  ;;  %v11345_v12 = vld [vmem:[#allocation22 + $0x180] ss:$24 sps:$4 sm:$0xff]  }
 0x7af   : > { %v4454_v20 = vpop.permute.xlu0 %4453  ;;  %5805 = vmatprep.subr.bf16.mxu0 %v11311_v18 }
 0x7b0   : > { %v4462_v22 = vrot.slane %v4454_v20, %v12830_v62  ;;  %v11350_v20 = vld [vmem:[#allocation22 + $0x1b4] ss:$24 sps:$4 sm:$0xff]  }
 0x7b2   : > { %v4463_v34 = vsel %vm3699_vm0, %v4462_v22, %v4458_v21  ;;  %v11362_v21 = vld [vmem:[#allocation10 + $0x44] ss:$24 sps:$4 sm:$0xff]   ;;  %v11348_v22 = vld [vmem:[#allocation22 + $0x1b0] ss:$24 sps:$4 sm:$0xff]  }
 0x7b3   : > { %v12930_v45 = vpack.c.b16 %v4463_v34, %v4463_v34  ;;  %v3925_v46 = vpop.permute.xlu0 %3924  ;;  %v11356_v34 = vld [vmem:[#allocation22 + $0x1e4] ss:$24 sps:$4 sm:$0xff]  }
 0x7b4   : > { %v3932_v49 = vrot.slane %v3925_v46, %v12833_v25  ;;  %v11360_v46 = vld [vmem:[#allocation10 + $0x40] ss:$24 sps:$4 sm:$0xff]  }
 0x7b5   : > { %10121 = vmatmul.mubr.msk.bf16.vlgmr.msra.gmra.mrb[8].mxu0 %vm3969_vm5, %v12930_v45 }
 0x7b6   : > { %5806 = vmatpush1.bf16.msra.mxu0 %v11309_v39  ;;  %5837 = vmatprep.mubr.bf16.mxu0 %v12714_v29  ;;  %v11354_v39 = vld [vmem:[#allocation22 + $0x1e0] ss:$24 sps:$4 sm:$0xff]  }
 0x7b7   : > { %v3928_v0 = vpop.permute.xlu0 %3927  ;;  %5807 = vmatprep.subr.bf16.mxu0 %v11314_v36  ;;  %v11359_v36 = vld [vmem:[#allocation22 + $0x214] ss:$24 sps:$4 sm:$0xff]  }
 0x7b8   : > { %v3936_v50 = vrot.slane %v3928_v0, %v12830_v62  ;;  %v11357_v0 = vld [vmem:[#allocation22 + $0x210] ss:$24 sps:$4 sm:$0xff]  }
 0x7ba   : > { %v3937_v51 = vsel %vm3699_vm0, %v3936_v50, %v3932_v49  ;;  %5808 = vmatpush1.bf16.msra.mxu0 %v11312_v37  ;;  %v11371_v37 = vld [vmem:[#allocation10 + $0x64] ss:$24 sps:$4 sm:$0xff]   ;;  %v11363_v49 = vld [vmem:[#allocation22 + $0x240] ss:$24 sps:$4 sm:$0xff]  }
 0x7bb   : > { %v3938_v56 = vpack.c.b16 %v3937_v51, %v3937_v51  ;;  %5809 = vmatprep.subr.bf16.mxu0 %v11320_v47  ;;  %v4101_v63 = vpop.permute.xlu0 %4100  ;;  %v11365_v47 = vld [vmem:[#allocation22 + $0x244] ss:$24 sps:$4 sm:$0xff]   ;;  %v11369_v50 = vld [vmem:[#allocation10 + $0x60] ss:$24 sps:$4 sm:$0xff]   ;;  %v11368_v51 = vld [vmem:[#allocation22 + $0x274] ss:$24 sps:$4 sm:$0xff]  }
 0x7bc   : > { %v4108_v7 = vrot.slane %v4101_v63, %v12833_v25  ;;  %v11381_v63 = vld [vmem:[#allocation22 + $0x300] ss:$24 sps:$4 sm:$0xff]  }
 0x7bd   : > { %10093 = vmatmul.mubr.msk.bf16.vlgmr.msra.gmra.mrb[4].mxu1 %vm3969_vm5, %v3938_v56 }
 0x7be   : > { %5810 = vmatpush1.bf16.msra.mxu0 %v11318_v52  ;;  %4015 = vmatpush1.bf16.msra.mxu1 %v11324_v31  ;;  %v11380_v52 = vld [vmem:[#allocation10 + $0x6c] ss:$24 sps:$4 sm:$0xff]   ;;  %v11366_v31 = vld [vmem:[#allocation22 + $0x270] ss:$24 sps:$4 sm:$0xff]  }
 0x7bf   : > { %5811 = vmatprep.subr.bf16.mxu0 %v11323_v40  ;;  %4046 = vmatprep.mubr.bf16.mxu1 %v12200_v33  ;;  %v4104_v57 = vpop.permute.xlu0 %4103  ;;  %v11372_v40 = vld [vmem:[#allocation22 + $0x2a0] ss:$24 sps:$4 sm:$0xff]  }
 0x7c0   : > { %4055 = vmatprep.subr.bf16.mxu1 %v11335_v41  ;;  %v4112_v6 = vrot.slane %v4104_v57, %v12830_v62  ;;  %v11378_v41 = vld [vmem:[#allocation10 + $0x68] ss:$24 sps:$4 sm:$0xff]   ;;  %v11392_v57 = vld [vmem:[#allocation22 + $0x364] ss:$24 sps:$4 sm:$0xff]  }
 0x7c2   : > { %5812 = vmatpush1.bf16.msra.mxu0 %v11321_v60  ;;  %v4113_v11 = vsel %vm3699_vm0, %v4112_v6, %v4108_v7  ;;  %v11377_v60 = vld [vmem:[#allocation22 + $0x2d4] ss:$24 sps:$4 sm:$0xff]   ;;  %v11399_v7 = vld [vmem:[#allocation22 + $0x3c0] ss:$24 sps:$4 sm:$0xff]  }
 0x7c3   : > { %5813 = vmatprep.subr.bf16.mxu0 %v11329_v42  ;;  %v4114_v18 = vpack.c.b16 %v4113_v11, %v4113_v11  ;;  %v11389_v42 = vld [vmem:[#allocation10 + $0x94] ss:$24 sps:$4 sm:$0xff]   ;;  %v11410_v11 = vld [vmem:[#allocation22 + $0x3c] ss:$24 sps:$4 sm:$0xff]  }
 0x7c4   : > { %v11404_v6 = vld [vmem:[#allocation22 + $0xc] ss:$24 sps:$4 sm:$0xff]  }
 0x7c5   : > { %10094 = vmatmul.mubr.msk.bf16.vlgmr.msra.gmra.mrb[8].mxu1 %vm3969_vm5, %v3938_v56 }
 0x7c6   : > { %5814 = vmatpush1.bf16.msra.mxu0 %v11327_v61  ;;  %4056 = vmatpush1.bf16.msra.mxu1 %v11333_v24  ;;  %v11375_v61 = vld [vmem:[#allocation22 + $0x2d0] ss:$24 sps:$4 sm:$0xff]   ;;  %v11383_v24 = vld [vmem:[#allocation22 + $0x304] ss:$24 sps:$4 sm:$0xff]  }
 0x7c7   : > { %5815 = vmatprep.subr.bf16.mxu0 %v11332_v1  ;;  %4087 = vmatprep.mubr.bf16.mxu1 %v12200_v33  ;;  %v11387_v1 = vld [vmem:[#allocation10 + $0x90] ss:$24 sps:$4 sm:$0xff]  }
 0x7c8   : > { %4148 = vmatprep.subr.bf16.mxu1 %v11344_v26  ;;  %v11386_v26 = vld [vmem:[#allocation22 + $0x334] ss:$24 sps:$4 sm:$0xff]  }
 0x7ca   : > { %5816 = vmatpush1.bf16.msra.mxu0 %v11330_v28  ;;  %v11395_v28 = vld [vmem:[#allocation10 + $0xa4] ss:$24 sps:$4 sm:$0xff]  }
 0x7cb   : > { %5817 = vmatprep.subr.bf16.mxu0 %v11338_v30  ;;  %v11384_v30 = vld [vmem:[#allocation22 + $0x330] ss:$24 sps:$4 sm:$0xff]  }
 0x7cd   : > { %10095 = vmatmul.mubr.msk.bf16.vlgmr.msra.gmra.mrb[12].mxu1 %vm3969_vm5, %v3938_v56  ;;  %v11374_v56 = vld [vmem:[#allocation22 + $0x2a4] ss:$24 sps:$4 sm:$0xff]  }
 0x7ce   : > { %5818 = vmatpush1.bf16.msra.mxu0 %v11336_v4  ;;  %4149 = vmatpush1.bf16.msra.mxu1 %v11342_v5  ;;  %v11390_v4 = vld [vmem:[#allocation22 + $0x360] ss:$24 sps:$4 sm:$0xff]  }
 0x7cf   : > { %5819 = vmatprep.subr.bf16.mxu0 %v11341_v17  ;;  %4180 = vmatprep.mubr.bf16.mxu1 %v12200_v33  ;;  %v11393_v5 = vld [vmem:[#allocation10 + $0xa0] ss:$24 sps:$4 sm:$0xff]   ;;  %v11398_v17 = vld [vmem:[#allocation22 + $0x394] ss:$24 sps:$4 sm:$0xff]  }
 0x7d0   : > { %4189 = vmatprep.subr.bf16.mxu1 %v11353_v32  ;;  %v11401_v32 = vld [vmem:[#allocation22 + $0x3c4] ss:$24 sps:$4 sm:$0xff]  }
 0x7d2   : > { %5820 = vmatpush1.bf16.msra.mxu0 %v11339_v58  ;;  %v11402_v58 = vld [vmem:[#allocation22 + $0x8] ss:$24 sps:$4 sm:$0xff]  }
 0x7d3   : > { %5821 = vmatprep.subr.bf16.mxu0 %v11347_v8  ;;  %v11407_v8 = vld [vmem:[#allocation22 + $0x3f4] ss:$24 sps:$4 sm:$0xff]  }
 0x7d5   : > { %10102 = vmatmul.mubr.msk.bf16.vlgmr.msra.gmra.mrb[16].mxu1 %vm3969_vm5, %v4114_v18 }
 0x7d6   : > { %5822 = vmatpush1.bf16.msra.mxu0 %v11345_v12  ;;  %4190 = vmatpush1.bf16.msra.mxu1 %v11351_v19  ;;  %v11405_v12 = vld [vmem:[#allocation22 + $0x3f0] ss:$24 sps:$4 sm:$0xff]  }
 0x7d7   : > { %5823 = vmatprep.subr.bf16.mxu0 %v11350_v20  ;;  %4221 = vmatprep.mubr.bf16.mxu1 %v12200_v33  ;;  %v11408_v19 = vld [vmem:[#allocation22 + $0x38] ss:$24 sps:$4 sm:$0xff]   ;;  %v11416_v20 = vld [vmem:[#allocation22 + $0x6c] ss:$24 sps:$4 sm:$0xff]  }
 0x7d8   : > { %4230 = vmatprep.subr.bf16.mxu1 %v11362_v21  ;;  %v11411_v21 = vld [vmem:[#allocation22 + $0x420] ss:$24 sps:$4 sm:$0xff]  }
 0x7da   : > { %5824 = vmatpush1.bf16.msra.mxu0 %v11348_v22  ;;  %v11414_v22 = vld [vmem:[#allocation22 + $0x68] ss:$24 sps:$4 sm:$0xff]  }
 0x7db   : > { %5825 = vmatprep.subr.bf16.mxu0 %v11356_v34  ;;  %v11419_v34 = vld [vmem:[#allocation22 + $0x454] ss:$24 sps:$4 sm:$0xff]  }
 0x7dd   : > { %10103 = vmatmul.mubr.msk.bf16.vlgmr.msra.gmra.mrb[20].mxu1 %vm3969_vm5, %v4114_v18 }
 0x7de   : > { %5826 = vmatpush1.bf16.msra.mxu0 %v11354_v39  ;;  %4231 = vmatpush1.bf16.msra.mxu1 %v11360_v46  ;;  %v11422_v39 = vld [vmem:[#allocation22 + $0x9c] ss:$24 sps:$4 sm:$0xff]   ;;  %v11420_v46 = vld [vmem:[#allocation22 + $0x98] ss:$24 sps:$4 sm:$0xff]  }
 0x7df   : > { %5827 = vmatprep.subr.bf16.mxu0 %v11359_v36  ;;  %4262 = vmatprep.mubr.bf16.mxu1 %v12200_v33  ;;  %v11425_v36 = vld [vmem:[#allocation22 + $0x484] ss:$24 sps:$4 sm:$0xff]  }
 0x7e0   : > { %4323 = vmatprep.subr.bf16.mxu1 %v11371_v37  ;;  %v11428_v37 = vld [vmem:[#allocation22 + $0xcc] ss:$24 sps:$4 sm:$0xff]  }
 0x7e2   : > { %5828 = vmatpush1.bf16.msra.mxu0 %v11357_v0  ;;  %v11423_v0 = vld [vmem:[#allocation22 + $0x480] ss:$24 sps:$4 sm:$0xff]  }
 0x7e3   : > { %5829 = vmatprep.subr.bf16.mxu0 %v11365_v47  ;;  %v11426_v47 = vld [vmem:[#allocation22 + $0xc8] ss:$24 sps:$4 sm:$0xff]  }
 0x7e5   : > { %10104 = vmatmul.mubr.msk.bf16.vlgmr.msra.gmra.mrb[24].mxu1 %vm3969_vm5, %v4114_v18  ;;  %v11413_v18 = vld [vmem:[#allocation22 + $0x424] ss:$24 sps:$4 sm:$0xff]  }
 0x7e6   : > { %5830 = vmatpush1.bf16.msra.mxu0 %v11363_v49  ;;  %4324 = vmatpush1.bf16.msra.mxu1 %v11369_v50  ;;  %v11431_v49 = vld [vmem:[#allocation22 + $0x4b4] ss:$24 sps:$4 sm:$0xff]  }
 0x7e7   : > { %5831 = vmatprep.subr.bf16.mxu0 %v11368_v51  ;;  %4355 = vmatprep.mubr.bf16.mxu1 %v12200_v33  ;;  %v11434_v50 = vld [vmem:[#allocation22 + $0xfc] ss:$24 sps:$4 sm:$0xff]   ;;  %v11429_v51 = vld [vmem:[#allocation22 + $0x4b0] ss:$24 sps:$4 sm:$0xff]  }
 0x7e8   : > { %4364 = vmatprep.subr.bf16.mxu1 %v11380_v52  ;;  %v11432_v52 = vld [vmem:[#allocation22 + $0xf8] ss:$24 sps:$4 sm:$0xff]  }
 0x7ea   : > { %5832 = vmatpush1.bf16.msra.mxu0 %v11366_v31  ;;  %v11437_v31 = vld [vmem:[#allocation22 + $0x4e4] ss:$24 sps:$4 sm:$0xff]  }
 0x7eb   : > { %5833 = vmatprep.subr.bf16.mxu0 %v11374_v56  ;;  %v11440_v56 = vld [vmem:[#allocation22 + $0x12c] ss:$24 sps:$4 sm:$0xff]  }
 0x7ed   : > { %10111 = vmatmul.mubr.msk.bf16.vlgmr.msra.gmra.mrb[28].mxu1 %vm3969_vm5, %v12922_v16 }
 0x7ee   : > { %5834 = vmatpush1.bf16.msra.mxu0 %v11372_v40  ;;  %4365 = vmatpush1.bf16.msra.mxu1 %v11378_v41  ;;  %v11435_v40 = vld [vmem:[#allocation22 + $0x4e0] ss:$24 sps:$4 sm:$0xff]  }
 0x7ef   : > { %5835 = vmatprep.subr.bf16.mxu0 %v11377_v60  ;;  %4396 = vmatprep.mubr.bf16.mxu1 %v12200_v33  ;;  %v11438_v41 = vld [vmem:[#allocation22 + $0x128] ss:$24 sps:$4 sm:$0xff]   ;;  %v11443_v60 = vld [vmem:[#allocation22 + $0x514] ss:$24 sps:$4 sm:$0xff]  }
 0x7f0   : > { %4498 = vmatprep.subr.bf16.mxu1 %v11389_v42  ;;  %v11446_v42 = vld [vmem:[#allocation22 + $0x15c] ss:$24 sps:$4 sm:$0xff]  }
 0x7f2   : > { %5836 = vmatpush1.bf16.msra.mxu0 %v11375_v61  ;;  %v11441_v61 = vld [vmem:[#allocation22 + $0x510] ss:$24 sps:$4 sm:$0xff]  }
 0x7f3   : > { %5846 = vmatprep.subr.bf16.mxu0 %v11383_v24  ;;  %v11444_v24 = vld [vmem:[#allocation22 + $0x158] ss:$24 sps:$4 sm:$0xff]  }
 0x7f5   : > { %10112 = vmatmul.mubr.msk.bf16.vlgmr.msra.gmra.mrb[32].mxu1 %vm3969_vm5, %v12922_v16  ;;  %5838 = vmatmul.mubr.bf16.vlgmr.msra.gmra.mrb[12].mxu0 %v12718_v38  ;;  %v11396_v16 = vld [vmem:[#allocation22 + $0x390] ss:$24 sps:$4 sm:$0xff]  }
 0x7f6   : > { %5847 = vmatpush1.bf16.msra.mxu0 %v11381_v63  ;;  %4499 = vmatpush1.bf16.msra.mxu1 %v11387_v1  ;;  %v11449_v63 = vld [vmem:[#allocation22 + $0x544] ss:$24 sps:$4 sm:$0xff]  }
 0x7f7   : > { %5848 = vmatprep.subr.bf16.mxu0 %v11386_v26  ;;  %4530 = vmatprep.mubr.bf16.mxu1 %v12200_v33  ;;  %v11452_v1 = vld [vmem:[#allocation22 + $0x18c] ss:$24 sps:$4 sm:$0xff]   ;;  %v11447_v26 = vld [vmem:[#allocation22 + $0x540] ss:$24 sps:$4 sm:$0xff]  }
 0x7f8   : > { %4580 = vmatprep.subr.bf16.mxu1 %v11395_v28  ;;  %5878 = vmatprep.mubr.bf16.mxu0 %v12726_v15  ;;  %v11450_v28 = vld [vmem:[#allocation22 + $0x188] ss:$24 sps:$4 sm:$0xff]  }
 0x7fa   : > { %5849 = vmatpush1.bf16.msra.mxu0 %v11384_v30  ;;  %v11455_v30 = vld [vmem:[#allocation22 + $0x574] ss:$24 sps:$4 sm:$0xff]  }
 0x7fb   : > { %5850 = vmatprep.subr.bf16.mxu0 %v11392_v57  ;;  %v11458_v57 = vld [vmem:[#allocation22 + $0x1bc] ss:$24 sps:$4 sm:$0xff]  }
 0x7fd   : > { %10120 = vmatmul.mubr.msk.bf16.vlgmr.msra.gmra.mrb[36].mxu1 %vm3969_vm5, %v12930_v45 }
 0x7fe   : > { %5851 = vmatpush1.bf16.msra.mxu0 %v11390_v4  ;;  %4581 = vmatpush1.bf16.msra.mxu1 %v11393_v5  ;;  %v11453_v4 = vld [vmem:[#allocation22 + $0x570] ss:$24 sps:$4 sm:$0xff]  }
 0x7ff   : > { %5852 = vmatprep.subr.bf16.mxu0 %v11398_v17  ;;  %4612 = vmatprep.mubr.bf16.mxu1 %v12200_v33  ;;  %v11456_v5 = vld [vmem:[#allocation22 + $0x1b8] ss:$24 sps:$4 sm:$0xff]   ;;  %v11461_v17 = vld [vmem:[#allocation22 + $0x5a4] ss:$24 sps:$4 sm:$0xff]  }
 0x800   : > { %5887 = vmatprep.subr.bf16.mxu1 %v11404_v6  ;;  %v11464_v6 = vld [vmem:[#allocation22 + $0x1ec] ss:$24 sps:$4 sm:$0xff]  }
 0x802   : > { %5853 = vmatpush1.bf16.msra.mxu0 %v11396_v16  ;;  %v11459_v16 = vld [vmem:[#allocation22 + $0x5a0] ss:$24 sps:$4 sm:$0xff]  }
 0x803   : > { %5854 = vmatprep.subr.bf16.mxu0 %v11401_v32  ;;  %v11462_v32 = vld [vmem:[#allocation22 + $0x1e8] ss:$24 sps:$4 sm:$0xff]  }
 0x805   : > { %10122 = vmatmul.mubr.msk.bf16.vlgmr.msra.gmra.mrb[40].mxu1 %vm3969_vm5, %v12930_v45  ;;  %v11417_v45 = vld [vmem:[#allocation22 + $0x450] ss:$24 sps:$4 sm:$0xff]  }
 0x806   : > { %5855 = vmatpush1.bf16.msra.mxu0 %v11399_v7  ;;  %5888 = vmatpush1.bf16.msra.mxu1 %v11402_v58  ;;  %v11467_v7 = vld [vmem:[#allocation22 + $0x5d4] ss:$24 sps:$4 sm:$0xff]  }
 0x807   : > { %5856 = vmatprep.subr.bf16.mxu0 %v11407_v8  ;;  %5889 = vmatprep.subr.bf16.mxu1 %v11410_v11  ;;  %v11470_v58 = vld [vmem:[#allocation22 + $0x21c] ss:$24 sps:$4 sm:$0xff]   ;;  %v11465_v8 = vld [vmem:[#allocation22 + $0x5d0] ss:$24 sps:$4 sm:$0xff]  }
 0x808   : > { %5919 = vmatprep.mubr.bf16.mxu1 %v12714_v29  ;;  %v11468_v11 = vld [vmem:[#allocation22 + $0x218] ss:$24 sps:$4 sm:$0xff]  }
 0x80a   : > { %5857 = vmatpush1.bf16.msra.mxu0 %v11405_v12  ;;  %5890 = vmatpush1.bf16.msra.mxu1 %v11408_v19  ;;  %v11473_v12 = vld [vmem:[#allocation22 + $0x24c] ss:$24 sps:$4 sm:$0xff]  }
 0x80b   : > { %5858 = vmatprep.subr.bf16.mxu0 %v11413_v18  ;;  %5891 = vmatprep.subr.bf16.mxu1 %v11416_v20  ;;  %v11476_v19 = vld [vmem:[#allocation22 + $0x14] ss:$24 sps:$4 sm:$0xff]   ;;  %v11471_v18 = vld [vmem:[#allocation22 + $0x248] ss:$24 sps:$4 sm:$0xff]  }
 0x80c   : > { %v11474_v20 = vld [vmem:[#allocation22 + $0x10] ss:$24 sps:$4 sm:$0xff]  }
 0x80e   : > { %5859 = vmatpush1.bf16.msra.mxu0 %v11411_v21  ;;  %5892 = vmatpush1.bf16.msra.mxu1 %v11414_v22  ;;  %v11479_v21 = vld [vmem:[#allocation22 + $0x27c] ss:$24 sps:$4 sm:$0xff]  }
 0x80f   : > { %5860 = vmatprep.subr.bf16.mxu0 %v11419_v34  ;;  %5893 = vmatprep.subr.bf16.mxu1 %v11422_v39  ;;  %v11482_v22 = vld [vmem:[#allocation22 + $0x44] ss:$24 sps:$4 sm:$0xff]   ;;  %v11477_v34 = vld [vmem:[#allocation22 + $0x278] ss:$24 sps:$4 sm:$0xff]  }
 0x810   : > { %v11480_v39 = vld [vmem:[#allocation22 + $0x40] ss:$24 sps:$4 sm:$0xff]  }
 0x812   : > { %5861 = vmatpush1.bf16.msra.mxu0 %v11417_v45  ;;  %5894 = vmatpush1.bf16.msra.mxu1 %v11420_v46  ;;  %v11485_v45 = vld [vmem:[#allocation22 + $0x2ac] ss:$24 sps:$4 sm:$0xff]  }
 0x813   : > { %5862 = vmatprep.subr.bf16.mxu0 %v11425_v36  ;;  %5895 = vmatprep.subr.bf16.mxu1 %v11428_v37  ;;  %v11488_v46 = vld [vmem:[#allocation22 + $0x74] ss:$24 sps:$4 sm:$0xff]   ;;  %v11483_v36 = vld [vmem:[#allocation22 + $0x2a8] ss:$24 sps:$4 sm:$0xff]  }
 0x814   : > { %v11486_v37 = vld [vmem:[#allocation22 + $0x70] ss:$24 sps:$4 sm:$0xff]  }
 0x816   : > { %5863 = vmatpush1.bf16.msra.mxu0 %v11423_v0  ;;  %5896 = vmatpush1.bf16.msra.mxu1 %v11426_v47  ;;  %v11491_v0 = vld [vmem:[#allocation22 + $0x2dc] ss:$24 sps:$4 sm:$0xff]  }
 0x817   : > { %5864 = vmatprep.subr.bf16.mxu0 %v11431_v49  ;;  %5897 = vmatprep.subr.bf16.mxu1 %v11434_v50  ;;  %v11494_v47 = vld [vmem:[#allocation22 + $0xa4] ss:$24 sps:$4 sm:$0xff]   ;;  %v11489_v49 = vld [vmem:[#allocation22 + $0x2d8] ss:$24 sps:$4 sm:$0xff]  }
 0x818   : > { %v11492_v50 = vld [vmem:[#allocation22 + $0xa0] ss:$24 sps:$4 sm:$0xff]  }
 0x81a   : > { %5865 = vmatpush1.bf16.msra.mxu0 %v11429_v51  ;;  %5898 = vmatpush1.bf16.msra.mxu1 %v11432_v52  ;;  %v11497_v51 = vld [vmem:[#allocation22 + $0x30c] ss:$24 sps:$4 sm:$0xff]  }
 0x81b   : > { %5866 = vmatprep.subr.bf16.mxu0 %v11437_v31  ;;  %5899 = vmatprep.subr.bf16.mxu1 %v11440_v56  ;;  %v11500_v52 = vld [vmem:[#allocation22 + $0xd4] ss:$24 sps:$4 sm:$0xff]   ;;  %v11495_v31 = vld [vmem:[#allocation22 + $0x308] ss:$24 sps:$4 sm:$0xff]  }
 0x81c   : > { %v11498_v56 = vld [vmem:[#allocation22 + $0xd0] ss:$24 sps:$4 sm:$0xff]  }
 0x81e   : > { %5867 = vmatpush1.bf16.msra.mxu0 %v11435_v40  ;;  %5900 = vmatpush1.bf16.msra.mxu1 %v11438_v41  ;;  %v11503_v40 = vld [vmem:[#allocation22 + $0x33c] ss:$24 sps:$4 sm:$0xff]  }
 0x81f   : > { %5868 = vmatprep.subr.bf16.mxu0 %v11443_v60  ;;  %5901 = vmatprep.subr.bf16.mxu1 %v11446_v42  ;;  %v11506_v41 = vld [vmem:[#allocation22 + $0x104] ss:$24 sps:$4 sm:$0xff]   ;;  %v11501_v60 = vld [vmem:[#allocation22 + $0x338] ss:$24 sps:$4 sm:$0xff]  }
 0x820   : > { %v11504_v42 = vld [vmem:[#allocation22 + $0x100] ss:$24 sps:$4 sm:$0xff]  }
 0x822   : > { %5869 = vmatpush1.bf16.msra.mxu0 %v11441_v61  ;;  %5902 = vmatpush1.bf16.msra.mxu1 %v11444_v24  ;;  %v11509_v61 = vld [vmem:[#allocation22 + $0x36c] ss:$24 sps:$4 sm:$0xff]  }
 0x823   : > { %5870 = vmatprep.subr.bf16.mxu0 %v11449_v63  ;;  %5903 = vmatprep.subr.bf16.mxu1 %v11452_v1  ;;  %v11512_v24 = vld [vmem:[#allocation22 + $0x134] ss:$24 sps:$4 sm:$0xff]   ;;  %v11507_v63 = vld [vmem:[#allocation22 + $0x368] ss:$24 sps:$4 sm:$0xff]  }
 0x824   : > { %v11510_v1 = vld [vmem:[#allocation22 + $0x130] ss:$24 sps:$4 sm:$0xff]  }
 0x826   : > { %5871 = vmatpush1.bf16.msra.mxu0 %v11447_v26  ;;  %5904 = vmatpush1.bf16.msra.mxu1 %v11450_v28  ;;  %v11515_v26 = vld [vmem:[#allocation22 + $0x39c] ss:$24 sps:$4 sm:$0xff]  }
 0x827   : > { %5872 = vmatprep.subr.bf16.mxu0 %v11455_v30  ;;  %5905 = vmatprep.subr.bf16.mxu1 %v11458_v57  ;;  %v11518_v28 = vld [vmem:[#allocation22 + $0x164] ss:$24 sps:$4 sm:$0xff]   ;;  %v11513_v30 = vld [vmem:[#allocation22 + $0x398] ss:$24 sps:$4 sm:$0xff]  }
 0x828   : > { %v11516_v57 = vld [vmem:[#allocation22 + $0x160] ss:$24 sps:$4 sm:$0xff]  }
 0x82a   : > { %5873 = vmatpush1.bf16.msra.mxu0 %v11453_v4  ;;  %5906 = vmatpush1.bf16.msra.mxu1 %v11456_v5  ;;  %v11521_v4 = vld [vmem:[#allocation22 + $0x3cc] ss:$24 sps:$4 sm:$0xff]  }
 0x82b   : > { %5874 = vmatprep.subr.bf16.mxu0 %v11461_v17  ;;  %5907 = vmatprep.subr.bf16.mxu1 %v11464_v6  ;;  %v11524_v5 = vld [vmem:[#allocation22 + $0x194] ss:$24 sps:$4 sm:$0xff]   ;;  %v11519_v17 = vld [vmem:[#allocation22 + $0x3c8] ss:$24 sps:$4 sm:$0xff]  }
 0x82c   : > { %v11522_v6 = vld [vmem:[#allocation22 + $0x190] ss:$24 sps:$4 sm:$0xff]  }
 0x82e   : > { %5875 = vmatpush1.bf16.msra.mxu0 %v11459_v16  ;;  %5908 = vmatpush1.bf16.msra.mxu1 %v11462_v32  ;;  %v11527_v16 = vld [vmem:[#allocation22 + $0x3fc] ss:$24 sps:$4 sm:$0xff]  }
 0x82f   : > { %5876 = vmatprep.subr.bf16.mxu0 %v11467_v7  ;;  %5909 = vmatprep.subr.bf16.mxu1 %v11470_v58  ;;  %v11530_v32 = vld [vmem:[#allocation22 + $0x1c4] ss:$24 sps:$4 sm:$0xff]   ;;  %v11525_v7 = vld [vmem:[#allocation22 + $0x3f8] ss:$24 sps:$4 sm:$0xff]  }
 0x830   : > { %v11528_v58 = vld [vmem:[#allocation22 + $0x1c0] ss:$24 sps:$4 sm:$0xff]  }
 0x832   : > { %5877 = vmatpush1.bf16.msra.mxu0 %v11465_v8  ;;  %5910 = vmatpush1.bf16.msra.mxu1 %v11468_v11  ;;  %v11533_v8 = vld [vmem:[#allocation22 + $0x42c] ss:$24 sps:$4 sm:$0xff]  }
 0x833   : > { %5911 = vmatprep.subr.bf16.mxu1 %v11473_v12  ;;  %5969 = vmatprep.subr.bf16.mxu0 %v11476_v19  ;;  %v11536_v11 = vld [vmem:[#allocation22 + $0x1f4] ss:$24 sps:$4 sm:$0xff]   ;;  %v11531_v12 = vld [vmem:[#allocation22 + $0x428] ss:$24 sps:$4 sm:$0xff]  }
 0x834   : > { %v11534_v19 = vld [vmem:[#allocation22 + $0x1f0] ss:$24 sps:$4 sm:$0xff]  }
 0x835   : > { %5879 = vmatmul.mubr.bf16.vlgmr.msra.gmra.mrb[12].mxu0 %v12732_v54 }
 0x836   : > { %5912 = vmatpush1.bf16.msra.mxu1 %v11471_v18  ;;  %5970 = vmatpush1.bf16.msra.mxu0 %v11474_v20  ;;  %v11539_v18 = vld [vmem:[#allocation22 + $0x45c] ss:$24 sps:$4 sm:$0xff]  }
 0x837   : > { %5913 = vmatprep.subr.bf16.mxu1 %v11479_v21  ;;  %5971 = vmatprep.subr.bf16.mxu0 %v11482_v22  ;;  %v11542_v20 = vld [vmem:[#allocation22 + $0x224] ss:$24 sps:$4 sm:$0xff]   ;;  %v11537_v21 = vld [vmem:[#allocation22 + $0x458] ss:$24 sps:$4 sm:$0xff]  }
 0x838   : > { %6001 = vmatprep.mubr.bf16.mxu0 %v12714_v29  ;;  %v11540_v22 = vld [vmem:[#allocation22 + $0x220] ss:$24 sps:$4 sm:$0xff]  }
 0x83a   : > { %5914 = vmatpush1.bf16.msra.mxu1 %v11477_v34  ;;  %5972 = vmatpush1.bf16.msra.mxu0 %v11480_v39  ;;  %v11545_v34 = vld [vmem:[#allocation22 + $0x48c] ss:$24 sps:$4 sm:$0xff]  }
 0x83b   : > { %5915 = vmatprep.subr.bf16.mxu1 %v11485_v45  ;;  %5973 = vmatprep.subr.bf16.mxu0 %v11488_v46  ;;  %v11548_v39 = vld [vmem:[#allocation22 + $0x254] ss:$24 sps:$4 sm:$0xff]   ;;  %v11543_v45 = vld [vmem:[#allocation22 + $0x488] ss:$24 sps:$4 sm:$0xff]  }
 0x83c   : > { %v11546_v46 = vld [vmem:[#allocation22 + $0x250] ss:$24 sps:$4 sm:$0xff]  }
 0x83e   : > { %5916 = vmatpush1.bf16.msra.mxu1 %v11483_v36  ;;  %5974 = vmatpush1.bf16.msra.mxu0 %v11486_v37  ;;  %v11551_v36 = vld [vmem:[#allocation22 + $0x4bc] ss:$24 sps:$4 sm:$0xff]  }
 0x83f   : > { %5917 = vmatprep.subr.bf16.mxu1 %v11491_v0  ;;  %5975 = vmatprep.subr.bf16.mxu0 %v11494_v47  ;;  %v11554_v37 = vld [vmem:[#allocation22 + $0x284] ss:$24 sps:$4 sm:$0xff]   ;;  %v11549_v0 = vld [vmem:[#allocation22 + $0x4b8] ss:$24 sps:$4 sm:$0xff]  }
 0x840   : > { %v11552_v47 = vld [vmem:[#allocation22 + $0x280] ss:$24 sps:$4 sm:$0xff]  }
 0x842   : > { %5918 = vmatpush1.bf16.msra.mxu1 %v11489_v49  ;;  %5976 = vmatpush1.bf16.msra.mxu0 %v11492_v50  ;;  %v11557_v49 = vld [vmem:[#allocation22 + $0x4ec] ss:$24 sps:$4 sm:$0xff]  }
 0x843   : > { %5928 = vmatprep.subr.bf16.mxu1 %v11497_v51  ;;  %5977 = vmatprep.subr.bf16.mxu0 %v11500_v52  ;;  %v11560_v50 = vld [vmem:[#allocation22 + $0x2b4] ss:$24 sps:$4 sm:$0xff]   ;;  %v11555_v51 = vld [vmem:[#allocation22 + $0x4e8] ss:$24 sps:$4 sm:$0xff]  }
 0x844   : > { %v11558_v52 = vld [vmem:[#allocation22 + $0x2b0] ss:$24 sps:$4 sm:$0xff]  }
 0x845   : > { %5920 = vmatmul.mubr.bf16.vlgmr.msra.gmra.mrb[44].mxu1 %v12718_v38 }
 0x846   : > { %5929 = vmatpush1.bf16.msra.mxu1 %v11495_v31  ;;  %5978 = vmatpush1.bf16.msra.mxu0 %v11498_v56  ;;  %v11563_v31 = vld [vmem:[#allocation22 + $0x51c] ss:$24 sps:$4 sm:$0xff]  }
 0x847   : > { %5930 = vmatprep.subr.bf16.mxu1 %v11503_v40  ;;  %5979 = vmatprep.subr.bf16.mxu0 %v11506_v41  ;;  %v11566_v56 = vld [vmem:[#allocation22 + $0x2e4] ss:$24 sps:$4 sm:$0xff]   ;;  %v11561_v40 = vld [vmem:[#allocation22 + $0x518] ss:$24 sps:$4 sm:$0xff]  }
 0x848   : > { %5960 = vmatprep.mubr.bf16.mxu1 %v12726_v15  ;;  %v11564_v41 = vld [vmem:[#allocation22 + $0x2e0] ss:$24 sps:$4 sm:$0xff]  }
 0x84a   : > { %5931 = vmatpush1.bf16.msra.mxu1 %v11501_v60  ;;  %5980 = vmatpush1.bf16.msra.mxu0 %v11504_v42  ;;  %v11569_v60 = vld [vmem:[#allocation22 + $0x54c] ss:$24 sps:$4 sm:$0xff]  }
 0x84b   : > { %5932 = vmatprep.subr.bf16.mxu1 %v11509_v61  ;;  %5981 = vmatprep.subr.bf16.mxu0 %v11512_v24  ;;  %v11572_v42 = vld [vmem:[#allocation22 + $0x314] ss:$24 sps:$4 sm:$0xff]   ;;  %v11567_v61 = vld [vmem:[#allocation22 + $0x548] ss:$24 sps:$4 sm:$0xff]  }
 0x84c   : > { %v11570_v24 = vld [vmem:[#allocation22 + $0x310] ss:$24 sps:$4 sm:$0xff]  }
 0x84e   : > { %5933 = vmatpush1.bf16.msra.mxu1 %v11507_v63  ;;  %5982 = vmatpush1.bf16.msra.mxu0 %v11510_v1  ;;  %v11575_v63 = vld [vmem:[#allocation22 + $0x57c] ss:$24 sps:$4 sm:$0xff]  }
 0x84f   : > { %5934 = vmatprep.subr.bf16.mxu1 %v11515_v26  ;;  %5983 = vmatprep.subr.bf16.mxu0 %v11518_v28  ;;  %v11578_v1 = vld [vmem:[#allocation22 + $0x344] ss:$24 sps:$4 sm:$0xff]   ;;  %v11573_v26 = vld [vmem:[#allocation22 + $0x578] ss:$24 sps:$4 sm:$0xff]  }
 0x850   : > { %v11576_v28 = vld [vmem:[#allocation22 + $0x340] ss:$24 sps:$4 sm:$0xff]  }
 0x852   : > { %5935 = vmatpush1.bf16.msra.mxu1 %v11513_v30  ;;  %5984 = vmatpush1.bf16.msra.mxu0 %v11516_v57  ;;  %v11581_v30 = vld [vmem:[#allocation22 + $0x5ac] ss:$24 sps:$4 sm:$0xff]  }
 0x853   : > { %5936 = vmatprep.subr.bf16.mxu1 %v11521_v4  ;;  %5985 = vmatprep.subr.bf16.mxu0 %v11524_v5  ;;  %v11584_v57 = vld [vmem:[#allocation22 + $0x374] ss:$24 sps:$4 sm:$0xff]   ;;  %v11579_v4 = vld [vmem:[#allocation22 + $0x5a8] ss:$24 sps:$4 sm:$0xff]  }
 0x854   : > { %v11582_v5 = vld [vmem:[#allocation22 + $0x370] ss:$24 sps:$4 sm:$0xff]  }
 0x856   : > { %5937 = vmatpush1.bf16.msra.mxu1 %v11519_v17  ;;  %5986 = vmatpush1.bf16.msra.mxu0 %v11522_v6  ;;  %v11587_v17 = vld [vmem:[#allocation22 + $0x5dc] ss:$24 sps:$4 sm:$0xff]  }
 0x857   : > { %5938 = vmatprep.subr.bf16.mxu1 %v11527_v16  ;;  %5987 = vmatprep.subr.bf16.mxu0 %v11530_v32  ;;  %v11590_v6 = vld [vmem:[#allocation22 + $0x3a4] ss:$24 sps:$4 sm:$0xff]   ;;  %v11585_v16 = vld [vmem:[#allocation22 + $0x5d8] ss:$24 sps:$4 sm:$0xff]  }
 0x858   : > { %v11588_v32 = vld [vmem:[#allocation22 + $0x3a0] ss:$24 sps:$4 sm:$0xff]  }
 0x85a   : > { %5939 = vmatpush1.bf16.msra.mxu1 %v11525_v7  ;;  %5988 = vmatpush1.bf16.msra.mxu0 %v11528_v58  ;;  %v11593_v7 = vld [vmem:[#allocation22 + $0x3d4] ss:$24 sps:$4 sm:$0xff]  }
 0x85b   : > { %5940 = vmatprep.subr.bf16.mxu1 %v11533_v8  ;;  %5989 = vmatprep.subr.bf16.mxu0 %v11536_v11 }
 0x85e   : > { %5941 = vmatpush1.bf16.msra.mxu1 %v11531_v12  ;;  %5990 = vmatpush1.bf16.msra.mxu0 %v11534_v19  ;;  %v11591_v12 = vld [vmem:[#allocation22 + $0x3d0] ss:$24 sps:$4 sm:$0xff]  }
 0x85f   : > { %5942 = vmatprep.subr.bf16.mxu1 %v11539_v18  ;;  %5991 = vmatprep.subr.bf16.mxu0 %v11542_v20  ;;  %v11596_v18 = vld [vmem:[#allocation22 + $0x404] ss:$24 sps:$4 sm:$0xff]   ;;  %v11594_v20 = vld [vmem:[#allocation22 + $0x400] ss:$24 sps:$4 sm:$0xff]  }
 0x862   : > { %5943 = vmatpush1.bf16.msra.mxu1 %v11537_v21  ;;  %5992 = vmatpush1.bf16.msra.mxu0 %v11540_v22  ;;  %v11599_v21 = vld [vmem:[#allocation22 + $0x434] ss:$24 sps:$4 sm:$0xff]  }
 0x863   : > { %5944 = vmatprep.subr.bf16.mxu1 %v11545_v34  ;;  %5993 = vmatprep.subr.bf16.mxu0 %v11548_v39 }
 0x866   : > { %5945 = vmatpush1.bf16.msra.mxu1 %v11543_v45  ;;  %5994 = vmatpush1.bf16.msra.mxu0 %v11546_v46  ;;  %v11597_v45 = vld [vmem:[#allocation22 + $0x430] ss:$24 sps:$4 sm:$0xff]  }
 0x867   : > { %5946 = vmatprep.subr.bf16.mxu1 %v11551_v36  ;;  %5995 = vmatprep.subr.bf16.mxu0 %v11554_v37  ;;  %v11602_v36 = vld [vmem:[#allocation22 + $0x464] ss:$24 sps:$4 sm:$0xff]   ;;  %v11600_v37 = vld [vmem:[#allocation22 + $0x460] ss:$24 sps:$4 sm:$0xff]  }
 0x86a   : > { %5947 = vmatpush1.bf16.msra.mxu1 %v11549_v0  ;;  %5996 = vmatpush1.bf16.msra.mxu0 %v11552_v47  ;;  %v11605_v0 = vld [vmem:[#allocation22 + $0x494] ss:$24 sps:$4 sm:$0xff]  }
 0x86b   : > { %5948 = vmatprep.subr.bf16.mxu1 %v11557_v49  ;;  %5997 = vmatprep.subr.bf16.mxu0 %v11560_v50 }
 0x86e   : > { %5949 = vmatpush1.bf16.msra.mxu1 %v11555_v51  ;;  %5998 = vmatpush1.bf16.msra.mxu0 %v11558_v52  ;;  %v11603_v51 = vld [vmem:[#allocation22 + $0x490] ss:$24 sps:$4 sm:$0xff]  }
 0x86f   : > { %5950 = vmatprep.subr.bf16.mxu1 %v11563_v31  ;;  %5999 = vmatprep.subr.bf16.mxu0 %v11566_v56  ;;  %v11608_v31 = vld [vmem:[#allocation22 + $0x4c4] ss:$24 sps:$4 sm:$0xff]   ;;  %v11606_v56 = vld [vmem:[#allocation22 + $0x4c0] ss:$24 sps:$4 sm:$0xff]  }
 0x872   : > { %5951 = vmatpush1.bf16.msra.mxu1 %v11561_v40  ;;  %6000 = vmatpush1.bf16.msra.mxu0 %v11564_v41  ;;  %v11611_v40 = vld [vmem:[#allocation22 + $0x4f4] ss:$24 sps:$4 sm:$0xff]  }
 0x873   : > { %5952 = vmatprep.subr.bf16.mxu1 %v11569_v60  ;;  %6010 = vmatprep.subr.bf16.mxu0 %v11572_v42 }
 0x875   : > { %6002 = vmatmul.mubr.bf16.vlgmr.msra.gmra.mrb[16].mxu0 %v12718_v38 }
 0x876   : > { %5953 = vmatpush1.bf16.msra.mxu1 %v11567_v61  ;;  %6011 = vmatpush1.bf16.msra.mxu0 %v11570_v24  ;;  %v11609_v61 = vld [vmem:[#allocation22 + $0x4f0] ss:$24 sps:$4 sm:$0xff]  }
 0x877   : > { %5954 = vmatprep.subr.bf16.mxu1 %v11575_v63  ;;  %6012 = vmatprep.subr.bf16.mxu0 %v11578_v1  ;;  %v11614_v63 = vld [vmem:[#allocation22 + $0x524] ss:$24 sps:$4 sm:$0xff]   ;;  %v11612_v1 = vld [vmem:[#allocation22 + $0x520] ss:$24 sps:$4 sm:$0xff]  }
 0x878   : > { %6042 = vmatprep.mubr.bf16.mxu0 %v12726_v15 }
 0x87a   : > { %5955 = vmatpush1.bf16.msra.mxu1 %v11573_v26  ;;  %6013 = vmatpush1.bf16.msra.mxu0 %v11576_v28  ;;  %v11617_v26 = vld [vmem:[#allocation22 + $0x554] ss:$24 sps:$4 sm:$0xff]  }
 0x87b   : > { %5956 = vmatprep.subr.bf16.mxu1 %v11581_v30  ;;  %6014 = vmatprep.subr.bf16.mxu0 %v11584_v57 }
 0x87e   : > { %5957 = vmatpush1.bf16.msra.mxu1 %v11579_v4  ;;  %6015 = vmatpush1.bf16.msra.mxu0 %v11582_v5  ;;  %v11615_v4 = vld [vmem:[#allocation22 + $0x550] ss:$24 sps:$4 sm:$0xff]  }
 0x87f   : > { %5958 = vmatprep.subr.bf16.mxu1 %v11587_v17  ;;  %6016 = vmatprep.subr.bf16.mxu0 %v11590_v6  ;;  %v11620_v17 = vld [vmem:[#allocation22 + $0x584] ss:$24 sps:$4 sm:$0xff]   ;;  %v11618_v6 = vld [vmem:[#allocation22 + $0x580] ss:$24 sps:$4 sm:$0xff]  }
 0x880   : > { %v12973_v58 = vpop.f32.mrb[4].mxu0 }
 0x881   : > { %v12975_v8 = vpop.f32.mrb[5].mxu0 }
 0x882   : > { %5959 = vmatpush1.bf16.msra.mxu1 %v11585_v16  ;;  %6017 = vmatpush1.bf16.msra.mxu0 %v11588_v32  ;;  %v4443_v11 = vpop.f32.mrb[6].mxu0  ;;  %v11623_v16 = vld [vmem:[#allocation22 + $0x5b4] ss:$24 sps:$4 sm:$0xff]  }
 0x883   : > { %v4444_v19 = vpop.f32.mrb[7].mxu0  ;;  %6018 = vmatprep.subr.bf16.mxu0 %v11593_v7 }
 0x885   : > { %5961 = vmatmul.mubr.bf16.vlgmr.msra.gmra.mrb[44].mxu1 %v12732_v54 }
 0x886   : > { %6019 = vmatpush1.bf16.msra.mxu0 %v11591_v12 }
 0x887   : > { %6020 = vmatprep.subr.bf16.mxu0 %v11596_v18  ;;  %v11621_v18 = vld [vmem:[#allocation22 + $0x5b0] ss:$24 sps:$4 sm:$0xff]  }
 0x888   : > { %v12978_v22 = vpop.f32.mrb[8].mxu0 }
 0x889   : > { %v12980_v34 = vpop.f32.mrb[9].mxu0 }
 0x88a   : > { %6021 = vmatpush1.bf16.msra.mxu0 %v11594_v20  ;;  %v4577_v39 = vpop.f32.mrb[10].mxu0 }
 0x88b   : > { %v4578_v46 = vpop.f32.mrb[11].mxu0  ;;  %6022 = vmatprep.subr.bf16.mxu0 %v11599_v21  ;;  %v11626_v39 = vld [vmem:[#allocation22 + $0x5e4] ss:$24 sps:$4 sm:$0xff]  }
 0x88c   : > { %v11624_v46 = vld [vmem:[#allocation22 + $0x5e0] ss:$24 sps:$4 sm:$0xff]  }
 0x88e   : > { %6023 = vmatpush1.bf16.msra.mxu0 %v11597_v45 }
 0x88f   : > { %6024 = vmatprep.subr.bf16.mxu0 %v11602_v36 }
 0x890   : > { %v4007_v47 = vpop.f32.mrb[4].mxu1 }
 0x891   : > { %v4009_v49 = vpop.f32.mrb[5].mxu1 }
 0x892   : > { %6025 = vmatpush1.bf16.msra.mxu0 %v11600_v37  ;;  %v4011_v50 = vpop.f32.mrb[6].mxu1 }
 0x893   : > { %v4012_v52 = vpop.f32.mrb[7].mxu1  ;;  %6026 = vmatprep.subr.bf16.mxu0 %v11605_v0 }
 0x896   : > { %6027 = vmatpush1.bf16.msra.mxu0 %v11603_v51 }
 0x897   : > { %6028 = vmatprep.subr.bf16.mxu0 %v11608_v31 }
 0x898   : > { %v4048_v41 = vpop.f32.mrb[8].mxu1 }
 0x899   : > { %v4050_v60 = vpop.f32.mrb[9].mxu1 }
 0x89a   : > { %6029 = vmatpush1.bf16.msra.mxu0 %v11606_v56  ;;  %v4052_v42 = vpop.f32.mrb[10].mxu1 }
 0x89b   : > { %v4053_v24 = vpop.f32.mrb[11].mxu1  ;;  %6030 = vmatprep.subr.bf16.mxu0 %v11611_v40 }
 0x89e   : > { %6031 = vmatpush1.bf16.msra.mxu0 %v11609_v61 }
 0x89f   : > { %6032 = vmatprep.subr.bf16.mxu0 %v11614_v63  ;;  %v6143_v63 = vrot.slane %v12975_v8, 6 }
 0x8a0   : > { %v4089_v28 = vpop.f32.mrb[12].mxu1 }
 0x8a1   : > { %v4091_v30 = vpop.f32.mrb[13].mxu1 }
 0x8a2   : > { %6033 = vmatpush1.bf16.msra.mxu0 %v11612_v1  ;;  %v4093_v57 = vpop.f32.mrb[14].mxu1 }
 0x8a3   : > { %v4094_v5 = vpop.f32.mrb[15].mxu1  ;;  %6034 = vmatprep.subr.bf16.mxu0 %v11617_v26 }
 0x8a6   : > { %6035 = vmatpush1.bf16.msra.mxu0 %v11615_v4 }
 0x8a7   : > { %6036 = vmatprep.subr.bf16.mxu0 %v11620_v17 }
 0x8a8   : > { %v4182_v32 = vpop.f32.mrb[16].mxu1 }
 0x8a9   : > { %v6111_v7 = vrot.slane %v4182_v32, 7  ;;  %v4184_v11 = vpop.f32.mrb[17].mxu1 }
 0x8aa   : > { %v6117_v12 = vrot.slane %v4184_v11, 7  ;;  %6037 = vmatpush1.bf16.msra.mxu0 %v11618_v6  ;;  %v4186_v19 = vpop.f32.mrb[18].mxu1 }
 0x8ab   : > { %v6112_v20 = vsel %vm3728_vm1, %v6111_v7, %v4007_v47  ;;  %v4187_v21 = vpop.f32.mrb[19].mxu1  ;;  %6038 = vmatprep.subr.bf16.mxu0 %v11623_v16 }
 0x8ac   : > { %v6118_v45 = vsel %vm3728_vm1, %v6117_v12, %v4009_v49  ;;  %v6137_v49 = vrot.slane %v12973_v58, 6  ;;  %v6127_v12 = vrot.slane %v12978_v22, 5 }
 0x8ae   : > { %6039 = vmatpush1.bf16.msra.mxu0 %v11621_v18  ;;  %v6133_v18 = vrot.slane %v12980_v34, 5 }
 0x8af   : > { %6040 = vmatprep.subr.bf16.mxu0 %v11626_v39 }
 0x8b0   : > { %v4223_v36 = vpop.f32.mrb[20].mxu1 }
 0x8b1   : > { %v6123_v37 = vrot.slane %v4223_v36, 7  ;;  %v4225_v0 = vpop.f32.mrb[21].mxu1 }
 0x8b2   : > { %v6129_v50 = vrot.slane %v4225_v0, 7  ;;  %6041 = vmatpush1.bf16.msra.mxu0 %v11624_v46  ;;  %v4227_v51 = vpop.f32.mrb[22].mxu1 }
 0x8b3   : > { %v6124_v52 = vsel %vm3728_vm1, %v6123_v37, %v4048_v41  ;;  %v4228_v31 = vpop.f32.mrb[23].mxu1 }
 0x8b4   : > { %v6130_v56 = vsel %vm3728_vm1, %v6129_v50, %v4050_v60 }
 0x8b5   : > { %6043 = vmatmul.mubr.bf16.vlgmr.msra.gmra.mrb[16].mxu0 %v12732_v54 }
 0x8b8   : > { %v4264_v47 = vpop.f32.mrb[24].mxu1 }
 0x8b9   : > { %v6135_v40 = vrot.slane %v4264_v47, 7  ;;  %v4266_v42 = vpop.f32.mrb[25].mxu1 }
 0x8ba   : > { %v6141_v61 = vrot.slane %v4266_v42, 7  ;;  %v4268_v24 = vpop.f32.mrb[26].mxu1 }
 0x8bb   : > { %v6136_v1 = vsel %vm3728_vm1, %v6135_v40, %v4089_v28  ;;  %v4269_v26 = vpop.f32.mrb[27].mxu1 }
 0x8bc   : > { %v6142_v57 = vsel %vm3728_vm1, %v6141_v61, %v4091_v30  ;;  %v6138_v41 = vsel %vm3730_vm2, %v6137_v49, %v6136_v1 }
 0x8bd   : > { %v6144_v60 = vsel %vm3730_vm2, %v6143_v63, %v6142_v57  ;;  %v4813_v63 = vld [vmem:[#allocation23] sm:$0x3f] }
 0x8be   : > { %v4818_v1 = vrot.slane %v4813_v63, %v12741_v9  ;;  %v4822_v26 = vrot.slane %v4813_v63, %v12744_v10 }
 0x8c0   : > { %v4357_v4 = vpop.f32.mrb[28].mxu1 }
 0x8c1   : > { %v6113_v5 = vrot.slane %v4357_v4, 6  ;;  %v4359_v17 = vpop.f32.mrb[29].mxu1 }
 0x8c2   : > { %v6119_v6 = vrot.slane %v4359_v17, 6  ;;  %v4361_v16 = vpop.f32.mrb[30].mxu1 }
 0x8c3   : > { %v6114_v58 = vsel %vm3730_vm2, %v6113_v5, %v6112_v20  ;;  %v4362_v32 = vpop.f32.mrb[31].mxu1 }
 0x8c4   : > { %v6120_v7 = vsel %vm3730_vm2, %v6119_v6, %v6118_v45 }
 0x8c8   : > { %v4398_v8 = vpop.f32.mrb[32].mxu1 }
 0x8c9   : > { %v6125_v11 = vrot.slane %v4398_v8, 6  ;;  %v4400_v28 = vpop.f32.mrb[33].mxu1 }
 0x8ca   : > { %v6131_v30 = vrot.slane %v4400_v28, 6  ;;  %v4402_v19 = vpop.f32.mrb[34].mxu1 }
 0x8cb   : > { %v6126_v21 = vsel %vm3730_vm2, %v6125_v11, %v6124_v52  ;;  %v4403_v39 = vpop.f32.mrb[35].mxu1 }
 0x8cc   : > { %v12999_v46 = vsel %vm3732_vm3, %v6127_v12, %v6126_v21  ;;  %v6132_v20 = vsel %vm3730_vm2, %v6131_v30, %v6130_v56  ;;  %v4826_v12 = vrot.slane %v4813_v63, %v12747_v13  ;;  %v4830_v30 = vrot.slane %v4813_v63, %v12750_v14 }
 0x8cd   : > { %v6134_v36 = vsel %vm3732_vm3, %v6133_v18, %v6132_v20 }
 0x8d0   : > { %v4532_v45 = vpop.f32.mrb[36].mxu1 }
 0x8d1   : > { %v6115_v37 = vrot.slane %v4532_v45, 5  ;;  %v4534_v0 = vpop.f32.mrb[37].mxu1 }
 0x8d2   : > { %v6121_v50 = vrot.slane %v4534_v0, 5  ;;  %v4536_v51 = vpop.f32.mrb[38].mxu1 }
 0x8d3   : > { %v6116_v22 = vsel %vm3732_vm3, %v6115_v37, %v6114_v58  ;;  %v4537_v31 = vpop.f32.mrb[39].mxu1 }
 0x8d4   : > { %v6122_v34 = vsel %vm3732_vm3, %v6121_v50, %v6120_v7 }
 0x8d8   : > { %v4614_v47 = vpop.f32.mrb[40].mxu1 }
 0x8d9   : > { %v6139_v52 = vrot.slane %v4614_v47, 5  ;;  %v4616_v40 = vpop.f32.mrb[41].mxu1 }
 0x8da   : > { %v6145_v42 = vrot.slane %v4616_v40, 5  ;;  %v4618_v49 = vpop.f32.mrb[42].mxu1  ;;  %v4837_v40 = vsub.s32 5, %v12737_v59 }
 0x8db   : > { %v13006_v61 = vsel %vm3732_vm3, %v6139_v52, %v6138_v41  ;;  %v4619_v56 = vpop.f32.mrb[43].mxu1  ;;  %v4833_v52 = vsub.s32 4, %v12737_v59 }
 0x8dc   : > { %v13009_v24 = vsel %vm3732_vm3, %v6145_v42, %v6144_v60  ;;  %v4838_v49 = vrot.slane %v4813_v63, %v4837_v40 }
 0x8dd   : > { %v4834_v42 = vrot.slane %v4813_v63, %v4833_v52 }
 0x908   : > { %v5880_v57 = vpop.f32.mrb[12].mxu0 }
 0x909   : > { %v10479_v4 = vadd.f32 %v5880_v57, %v4818_v1  ;;  %v5882_v5 = vpop.f32.mrb[13].mxu0 }
 0x90a   : > { %v10480_v17 = vadd.f32 %v5882_v5, %v4822_v26  ;;  %v5884_v6 = vpop.f32.mrb[14].mxu0 }
 0x90b   : > { %v10315_v16 = vmul.f32 -1.442695, %v10479_v4  ;;  %v5885_v58 = vpop.f32.mrb[15].mxu0 }
 0x90c   : > { %v10316_v32 = vmul.f32 -1.442695, %v10480_v17 }
 0x90d   : > { %11651 = vpow2.f32 %v10315_v16 }
 0x90e   : > { %11653 = vpow2.f32 %v10316_v32 }
 0x917   : > { %v11652_v41 = vpop.eup %11651 }
 0x918   : > { %v11654_v7 = vpop.eup %11653  ;;  %v6069_v60 = vadd.f32 1.0, %v11652_v41 }
 0x919   : > { %v6070_v8 = vadd.f32 1.0, %v11654_v7 }
 0x91a   : > { %11655 = vrcp.f32 %v6069_v60 }
 0x91b   : > { %11657 = vrcp.f32 %v6070_v8 }
 0x924   : > { %v11656_v9 = vpop.eup %11655 }
 0x925   : > { %v11658_v11 = vpop.eup %11657  ;;  %v13013_v10 = vmul.f32 %v11656_v9, %v6116_v22 }
 0x926   : > { %v6154_v28 = vmul.f32 %v11658_v11, %v6122_v34 }
 0x958   : > { %v5962_v19 = vpop.f32.mrb[44].mxu1 }
 0x959   : > { %v10481_v18 = vadd.f32 %v5962_v19, %v4826_v12  ;;  %v5964_v21 = vpop.f32.mrb[45].mxu1 }
 0x95a   : > { %v10482_v39 = vadd.f32 %v5964_v21, %v4830_v30  ;;  %v5966_v20 = vpop.f32.mrb[46].mxu1 }
 0x95b   : > { %v10317_v45 = vmul.f32 -1.442695, %v10481_v18  ;;  %v5967_v37 = vpop.f32.mrb[47].mxu1 }
 0x95c   : > { %v10318_v0 = vmul.f32 -1.442695, %v10482_v39 }
 0x95d   : > { %11659 = vpow2.f32 %v10317_v45 }
 0x95e   : > { %11661 = vpow2.f32 %v10318_v0 }
 0x967   : > { %v11660_v50 = vpop.eup %11659 }
 0x968   : > { %v11662_v51 = vpop.eup %11661  ;;  %v6071_v22 = vadd.f32 1.0, %v11660_v50 }
 0x969   : > { %v6072_v31 = vadd.f32 1.0, %v11662_v51 }
 0x96a   : > { %11663 = vrcp.f32 %v6071_v22 }
 0x96b   : > { %11665 = vrcp.f32 %v6072_v31 }
 0x974   : > { %v11664_v34 = vpop.eup %11663 }
 0x975   : > { %v11666_v13 = vpop.eup %11665  ;;  %v13019_v14 = vmul.f32 %v11664_v34, %v12999_v46 }
 0x976   : > { %v13021_v47 = vmul.f32 %v11666_v13, %v6134_v36 }
 0x988   : > { %v6044_v56 = vpop.f32.mrb[16].mxu0 }
 0x989   : > { %v10483_v1 = vadd.f32 %v6044_v56, %v4834_v42  ;;  %v6046_v26 = vpop.f32.mrb[17].mxu0 }
 0x98a   : > { %v10484_v57 = vadd.f32 %v6046_v26, %v4838_v49  ;;  %v6048_v4 = vpop.f32.mrb[18].mxu0 }
 0x98b   : > { %v10319_v5 = vmul.f32 -1.442695, %v10483_v1  ;;  %v6049_v17 = vpop.f32.mrb[19].mxu0 }
 0x98c   : > { %v10320_v6 = vmul.f32 -1.442695, %v10484_v57 }
 0x98d   : > { %11667 = vpow2.f32 %v10319_v5 }
 0x98e   : > { %11669 = vpow2.f32 %v10320_v6 }
 0x997   : > { %v11668_v46 = vpop.eup %11667 }
 0x998   : > { %v11670_v36 = vpop.eup %11669  ;;  %v6073_v16 = vadd.f32 1.0, %v11668_v46 }
 0x999   : > { %v6074_v58 = vadd.f32 1.0, %v11670_v36 }
 0x99a   : > { %11671 = vrcp.f32 %v6073_v16 }
 0x99b   : > { %11673 = vrcp.f32 %v6074_v58 }
 0x9a4   : > { %v11672_v32 = vpop.eup %11671 }
 0x9a5   : > { %v11674_v41 = vpop.eup %11673  ;;  %v13026_v63 = vmul.f32 %v11672_v32, %v13006_v61 }
 0x9a6   : > { %v13029_v7 = vmul.f32 %v11674_v41, %v13009_v24 }
 0x9a7   : > { %12134 = dma.done.wait (%p10705_p10), [#allocation7], 163840 }
 0x9a8   : > { %12136 = vsyncadd (%p10705_p10), [#allocation7], 4294803456  ;;  %v13035_v60 = vpack.c.bf16 %v6154_v28, %v6154_v28  ;;  %v6181_v8 = vld [vmem:[#allocation5 + $0x8] sm:$0xff]  ;;  %v6183_v9 = vld [vmem:[#allocation5 + $0x18] sm:$0xff] }
 0x9a9   : > { %v6180_v11 = vld [vmem:[#allocation5] sm:$0xff]  ;;  %6948 = vmatprep.subr.bf16.mxu1 %v6181_v8  ;;  %7071 = vmatprep.subr.bf16.mxu0 %v6183_v9  ;;  %v6182_v61 = vld [vmem:[#allocation5 + $0x10] sm:$0xff]  ;;  %v6197_v12 = vld [vmem:[#allocation5 + $0x88] sm:$0xff] }
 0x9aa   : > { %6980 = vmatprep.mubr.bf16.mxu1 %v13035_v60  ;;  %7103 = vmatprep.mubr.bf16.mxu0 %v13035_v60  ;;  %v6199_v24 = vld [vmem:[#allocation5 + $0x98] sm:$0xff]  ;;  %v6196_v30 = vld [vmem:[#allocation5 + $0x80] sm:$0xff]  ;;  %v6198_v19 = vld [vmem:[#allocation5 + $0x90] sm:$0xff] }
 0x9ab   : > { %6949 = vmatpush1.bf16.msra.mxu1 %v6180_v11  ;;  %7072 = vmatpush1.bf16.msra.mxu0 %v6182_v61  ;;  %v6213_v28 = vld [vmem:[#allocation5 + $0x108] sm:$0xff]  ;;  %v6215_v18 = vld [vmem:[#allocation5 + $0x118] sm:$0xff]  ;;  %v6212_v21 = vld [vmem:[#allocation5 + $0x100] sm:$0xff] }
 0x9ac   : > { %6950 = vmatprep.subr.bf16.mxu1 %v6197_v12  ;;  %7073 = vmatprep.subr.bf16.mxu0 %v6199_v24  ;;  %v6214_v39 = vld [vmem:[#allocation5 + $0x110] sm:$0xff]  ;;  %v6229_v20 = vld [vmem:[#allocation5 + $0x188] sm:$0xff]  ;;  %v6231_v45 = vld [vmem:[#allocation5 + $0x198] sm:$0xff] }
 0x9ad   : > { %v6228_v37 = vld [vmem:[#allocation5 + $0x180] sm:$0xff]  ;;  %v6230_v0 = vld [vmem:[#allocation5 + $0x190] sm:$0xff]  ;;  %v6245_v50 = vld [vmem:[#allocation5 + $0x208] sm:$0xff] }
 0x9ae   : > { %v6247_v51 = vld [vmem:[#allocation5 + $0x218] sm:$0xff]  ;;  %v6244_v22 = vld [vmem:[#allocation5 + $0x200] sm:$0xff]  ;;  %v6246_v31 = vld [vmem:[#allocation5 + $0x210] sm:$0xff] }
 0x9af   : > { %6951 = vmatpush1.bf16.msra.mxu1 %v6196_v30  ;;  %7074 = vmatpush1.bf16.msra.mxu0 %v6198_v19  ;;  %v6261_v34 = vld [vmem:[#allocation5 + $0x288] sm:$0xff]  ;;  %v6263_v13 = vld [vmem:[#allocation5 + $0x298] sm:$0xff]  ;;  %v6260_v52 = vld [vmem:[#allocation5 + $0x280] sm:$0xff] }
 0x9b0   : > { %6952 = vmatprep.subr.bf16.mxu1 %v6213_v28  ;;  %7075 = vmatprep.subr.bf16.mxu0 %v6215_v18  ;;  %v6262_v40 = vld [vmem:[#allocation5 + $0x290] sm:$0xff]  ;;  %v6277_v42 = vld [vmem:[#allocation5 + $0x308] sm:$0xff]  ;;  %v6279_v49 = vld [vmem:[#allocation5 + $0x318] sm:$0xff] }
 0x9b1   : > { %v6276_v56 = vld [vmem:[#allocation5 + $0x300] sm:$0xff]  ;;  %v6278_v1 = vld [vmem:[#allocation5 + $0x310] sm:$0xff]  ;;  %v6293_v26 = vld [vmem:[#allocation5 + $0x388] sm:$0xff] }
 0x9b2   : > { %v6295_v57 = vld [vmem:[#allocation5 + $0x398] sm:$0xff]  ;;  %v6292_v4 = vld [vmem:[#allocation5 + $0x380] sm:$0xff]  ;;  %v6294_v5 = vld [vmem:[#allocation5 + $0x390] sm:$0xff] }
 0x9b3   : > { %6953 = vmatpush1.bf16.msra.mxu1 %v6212_v21  ;;  %7076 = vmatpush1.bf16.msra.mxu0 %v6214_v39  ;;  %v6309_v17 = vld [vmem:[#allocation5 + $0x408] sm:$0xff]  ;;  %v6311_v6 = vld [vmem:[#allocation5 + $0x418] sm:$0xff]  ;;  %v6308_v46 = vld [vmem:[#allocation5 + $0x400] sm:$0xff] }
 0x9b4   : > { %6954 = vmatprep.subr.bf16.mxu1 %v6229_v20  ;;  %7077 = vmatprep.subr.bf16.mxu0 %v6231_v45  ;;  %v6310_v36 = vld [vmem:[#allocation5 + $0x410] sm:$0xff]  ;;  %v6325_v16 = vld [vmem:[#allocation5 + $0x488] sm:$0xff]  ;;  %v6327_v58 = vld [vmem:[#allocation5 + $0x498] sm:$0xff] }
 0x9b5   : > { %v6324_v32 = vld [vmem:[#allocation5 + $0x480] sm:$0xff]  ;;  %v6326_v41 = vld [vmem:[#allocation5 + $0x490] sm:$0xff]  ;;  %v6341_v8 = vld [vmem:[#allocation5 + $0x508] sm:$0xff] }
 0x9b6   : > { %v6343_v9 = vld [vmem:[#allocation5 + $0x518] sm:$0xff]  ;;  %v6340_v11 = vld [vmem:[#allocation5 + $0x500] sm:$0xff]  ;;  %v6342_v61 = vld [vmem:[#allocation5 + $0x510] sm:$0xff] }
 0x9b7   : > { %6955 = vmatpush1.bf16.msra.mxu1 %v6228_v37  ;;  %7078 = vmatpush1.bf16.msra.mxu0 %v6230_v0  ;;  %v6357_v12 = vld [vmem:[#allocation5 + $0x588] sm:$0xff]  ;;  %v6359_v24 = vld [vmem:[#allocation5 + $0x598] sm:$0xff]  ;;  %v6356_v30 = vld [vmem:[#allocation5 + $0x580] sm:$0xff] }
 0x9b8   : > { %6956 = vmatprep.subr.bf16.mxu1 %v6245_v50  ;;  %7079 = vmatprep.subr.bf16.mxu0 %v6247_v51  ;;  %v6358_v19 = vld [vmem:[#allocation5 + $0x590] sm:$0xff]  ;;  %v6373_v28 = vld [vmem:[#allocation5 + $0x608] sm:$0xff]  ;;  %v6375_v18 = vld [vmem:[#allocation5 + $0x618] sm:$0xff] }
 0x9b9   : > { %v6372_v21 = vld [vmem:[#allocation5 + $0x600] sm:$0xff]  ;;  %v6374_v39 = vld [vmem:[#allocation5 + $0x610] sm:$0xff]  ;;  %v6389_v20 = vld [vmem:[#allocation5 + $0x688] sm:$0xff] }
 0x9ba   : > { %v6391_v45 = vld [vmem:[#allocation5 + $0x698] sm:$0xff]  ;;  %v6388_v37 = vld [vmem:[#allocation5 + $0x680] sm:$0xff]  ;;  %v6390_v0 = vld [vmem:[#allocation5 + $0x690] sm:$0xff] }
 0x9bb   : > { %6957 = vmatpush1.bf16.msra.mxu1 %v6244_v22  ;;  %7080 = vmatpush1.bf16.msra.mxu0 %v6246_v31  ;;  %v6405_v50 = vld [vmem:[#allocation5 + $0x708] sm:$0xff]  ;;  %v6407_v51 = vld [vmem:[#allocation5 + $0x718] sm:$0xff]  ;;  %v6404_v22 = vld [vmem:[#allocation5 + $0x700] sm:$0xff] }
 0x9bc   : > { %6958 = vmatprep.subr.bf16.mxu1 %v6261_v34  ;;  %7081 = vmatprep.subr.bf16.mxu0 %v6263_v13  ;;  %v6406_v31 = vld [vmem:[#allocation5 + $0x710] sm:$0xff]  ;;  %v6421_v34 = vld [vmem:[#allocation5 + $0x788] sm:$0xff]  ;;  %v6423_v13 = vld [vmem:[#allocation5 + $0x798] sm:$0xff] }
 0x9bf   : > { %6959 = vmatpush1.bf16.msra.mxu1 %v6260_v52  ;;  %7082 = vmatpush1.bf16.msra.mxu0 %v6262_v40  ;;  %v6420_v52 = vld [vmem:[#allocation5 + $0x780] sm:$0xff]  ;;  %v6422_v40 = vld [vmem:[#allocation5 + $0x790] sm:$0xff] }
 0x9c0   : > { %6960 = vmatprep.subr.bf16.mxu1 %v6277_v42  ;;  %7083 = vmatprep.subr.bf16.mxu0 %v6279_v49  ;;  %v6437_v42 = vld [vmem:[#allocation5 + $0x808] sm:$0xff]  ;;  %v6439_v49 = vld [vmem:[#allocation5 + $0x818] sm:$0xff] }
 0x9c3   : > { %6961 = vmatpush1.bf16.msra.mxu1 %v6276_v56  ;;  %7084 = vmatpush1.bf16.msra.mxu0 %v6278_v1  ;;  %v13041_v56 = vpack.c.bf16 %v13013_v10, %v13013_v10  ;;  %v6436_v1 = vld [vmem:[#allocation5 + $0x800] sm:$0xff] }
 0x9c4   : > { %6962 = vmatprep.subr.bf16.mxu1 %v6293_v26  ;;  %7085 = vmatprep.subr.bf16.mxu0 %v6295_v57  ;;  %v6438_v26 = vld [vmem:[#allocation5 + $0x810] sm:$0xff]  ;;  %v6453_v57 = vld [vmem:[#allocation5 + $0x888] sm:$0xff]  ;;  %v6452_v10 = vld [vmem:[#allocation5 + $0x880] sm:$0xff] }
 0x9c7   : > { %6963 = vmatpush1.bf16.msra.mxu1 %v6292_v4  ;;  %7086 = vmatpush1.bf16.msra.mxu0 %v6294_v5  ;;  %v6455_v4 = vld [vmem:[#allocation5 + $0x898] sm:$0xff]  ;;  %v13045_v5 = vpack.c.bf16 %v13021_v47, %v13021_v47  ;;  %v6468_v47 = vld [vmem:[#allocation5 + $0x900] sm:$0xff] }
 0x9c8   : > { %6964 = vmatprep.subr.bf16.mxu1 %v6309_v17  ;;  %7087 = vmatprep.subr.bf16.mxu0 %v6311_v6  ;;  %v6454_v17 = vld [vmem:[#allocation5 + $0x890] sm:$0xff]  ;;  %v6469_v6 = vld [vmem:[#allocation5 + $0x908] sm:$0xff] }
 0x9cb   : > { %6965 = vmatpush1.bf16.msra.mxu1 %v6308_v46  ;;  %7088 = vmatpush1.bf16.msra.mxu0 %v6310_v36  ;;  %v6471_v46 = vld [vmem:[#allocation5 + $0x918] sm:$0xff]  ;;  %v6470_v36 = vld [vmem:[#allocation5 + $0x910] sm:$0xff] }
 0x9cc   : > { %6966 = vmatprep.subr.bf16.mxu1 %v6325_v16  ;;  %7089 = vmatprep.subr.bf16.mxu0 %v6327_v58  ;;  %v6485_v16 = vld [vmem:[#allocation5 + $0x988] sm:$0xff]  ;;  %v6487_v58 = vld [vmem:[#allocation5 + $0x998] sm:$0xff] }
 0x9cf   : > { %6967 = vmatpush1.bf16.msra.mxu1 %v6324_v32  ;;  %7090 = vmatpush1.bf16.msra.mxu0 %v6326_v41  ;;  %v6484_v32 = vld [vmem:[#allocation5 + $0x980] sm:$0xff]  ;;  %v6486_v41 = vld [vmem:[#allocation5 + $0x990] sm:$0xff] }
 0x9d0   : > { %6968 = vmatprep.subr.bf16.mxu1 %v6341_v8  ;;  %7091 = vmatprep.subr.bf16.mxu0 %v6343_v9  ;;  %v6501_v8 = vld [vmem:[#allocation5 + $0xa08] sm:$0xff]  ;;  %v6503_v9 = vld [vmem:[#allocation5 + $0xa18] sm:$0xff] }
 0x9d3   : > { %6969 = vmatpush1.bf16.msra.mxu1 %v6340_v11  ;;  %7092 = vmatpush1.bf16.msra.mxu0 %v6342_v61  ;;  %v6500_v11 = vld [vmem:[#allocation5 + $0xa00] sm:$0xff]  ;;  %v6502_v61 = vld [vmem:[#allocation5 + $0xa10] sm:$0xff] }
 0x9d4   : > { %6970 = vmatprep.subr.bf16.mxu1 %v6357_v12  ;;  %7093 = vmatprep.subr.bf16.mxu0 %v6359_v24  ;;  %v6517_v12 = vld [vmem:[#allocation5 + $0xa88] sm:$0xff]  ;;  %v6519_v24 = vld [vmem:[#allocation5 + $0xa98] sm:$0xff] }
 0x9d7   : > { %6971 = vmatpush1.bf16.msra.mxu1 %v6356_v30  ;;  %7094 = vmatpush1.bf16.msra.mxu0 %v6358_v19  ;;  %v6516_v30 = vld [vmem:[#allocation5 + $0xa80] sm:$0xff]  ;;  %v6518_v19 = vld [vmem:[#allocation5 + $0xa90] sm:$0xff] }
 0x9d8   : > { %6972 = vmatprep.subr.bf16.mxu1 %v6373_v28  ;;  %7095 = vmatprep.subr.bf16.mxu0 %v6375_v18  ;;  %v6533_v28 = vld [vmem:[#allocation5 + $0xb08] sm:$0xff]  ;;  %v6535_v18 = vld [vmem:[#allocation5 + $0xb18] sm:$0xff] }
 0x9db   : > { %6973 = vmatpush1.bf16.msra.mxu1 %v6372_v21  ;;  %7096 = vmatpush1.bf16.msra.mxu0 %v6374_v39  ;;  %v6532_v21 = vld [vmem:[#allocation5 + $0xb00] sm:$0xff]  ;;  %v6534_v39 = vld [vmem:[#allocation5 + $0xb10] sm:$0xff] }
 0x9dc   : > { %6974 = vmatprep.subr.bf16.mxu1 %v6389_v20  ;;  %7097 = vmatprep.subr.bf16.mxu0 %v6391_v45  ;;  %v6549_v20 = vld [vmem:[#allocation5 + $0xb88] sm:$0xff]  ;;  %v6551_v45 = vld [vmem:[#allocation5 + $0xb98] sm:$0xff] }
 0x9df   : > { %6975 = vmatpush1.bf16.msra.mxu1 %v6388_v37  ;;  %7098 = vmatpush1.bf16.msra.mxu0 %v6390_v0  ;;  %v6548_v37 = vld [vmem:[#allocation5 + $0xb80] sm:$0xff]  ;;  %v6550_v0 = vld [vmem:[#allocation5 + $0xb90] sm:$0xff] }
 0x9e0   : > { %6976 = vmatprep.subr.bf16.mxu1 %v6405_v50  ;;  %7099 = vmatprep.subr.bf16.mxu0 %v6407_v51  ;;  %v6565_v50 = vld [vmem:[#allocation5 + $0xc08] sm:$0xff]  ;;  %v6567_v51 = vld [vmem:[#allocation5 + $0xc18] sm:$0xff] }
 0x9e3   : > { %6977 = vmatpush1.bf16.msra.mxu1 %v6404_v22  ;;  %7100 = vmatpush1.bf16.msra.mxu0 %v6406_v31  ;;  %v6564_v22 = vld [vmem:[#allocation5 + $0xc00] sm:$0xff]  ;;  %v6566_v31 = vld [vmem:[#allocation5 + $0xc10] sm:$0xff] }
 0x9e4   : > { %6978 = vmatprep.subr.bf16.mxu1 %v6421_v34  ;;  %7101 = vmatprep.subr.bf16.mxu0 %v6423_v13  ;;  %v6581_v34 = vld [vmem:[#allocation5 + $0xc88] sm:$0xff]  ;;  %v6583_v13 = vld [vmem:[#allocation5 + $0xc98] sm:$0xff] }
 0x9e7   : > { %6979 = vmatpush1.bf16.msra.mxu1 %v6420_v52  ;;  %7102 = vmatpush1.bf16.msra.mxu0 %v6422_v40  ;;  %v6580_v52 = vld [vmem:[#allocation5 + $0xc80] sm:$0xff]  ;;  %v6582_v40 = vld [vmem:[#allocation5 + $0xc90] sm:$0xff] }
 0x9e8   : > { %6989 = vmatprep.subr.bf16.mxu1 %v6437_v42  ;;  %7112 = vmatprep.subr.bf16.mxu0 %v6439_v49  ;;  %v6597_v42 = vld [vmem:[#allocation5 + $0xd08] sm:$0xff]  ;;  %v6599_v49 = vld [vmem:[#allocation5 + $0xd18] sm:$0xff] }
 0x9ea   : > { %6981 = vmatmul.mubr.bf16.vlgmr.msra.gmra.mrb[48].mxu1 %v13041_v56  ;;  %7104 = vmatmul.mubr.bf16.vlgmr.msra.gmra.mrb[20].mxu0 %v13041_v56 }
 0x9eb   : > { %6990 = vmatpush1.bf16.msra.mxu1 %v6436_v1  ;;  %7113 = vmatpush1.bf16.msra.mxu0 %v6438_v26  ;;  %v6596_v1 = vld [vmem:[#allocation5 + $0xd00] sm:$0xff]  ;;  %v6598_v26 = vld [vmem:[#allocation5 + $0xd10] sm:$0xff] }
 0x9ec   : > { %6991 = vmatprep.subr.bf16.mxu1 %v6453_v57  ;;  %7114 = vmatprep.subr.bf16.mxu0 %v6455_v4  ;;  %v6613_v57 = vld [vmem:[#allocation5 + $0xd88] sm:$0xff]  ;;  %v6615_v4 = vld [vmem:[#allocation5 + $0xd98] sm:$0xff] }
 0x9ed   : > { %7021 = vmatprep.mubr.bf16.mxu1 %v13045_v5  ;;  %7144 = vmatprep.mubr.bf16.mxu0 %v13045_v5 }
 0x9ef   : > { %6992 = vmatpush1.bf16.msra.mxu1 %v6452_v10  ;;  %7115 = vmatpush1.bf16.msra.mxu0 %v6454_v17  ;;  %v6612_v10 = vld [vmem:[#allocation5 + $0xd80] sm:$0xff]  ;;  %v6614_v17 = vld [vmem:[#allocation5 + $0xd90] sm:$0xff] }
 0x9f0   : > { %6993 = vmatprep.subr.bf16.mxu1 %v6469_v6  ;;  %7116 = vmatprep.subr.bf16.mxu0 %v6471_v46  ;;  %v6629_v6 = vld [vmem:[#allocation5 + $0xe08] sm:$0xff]  ;;  %v6631_v46 = vld [vmem:[#allocation5 + $0xe18] sm:$0xff] }
 0x9f3   : > { %6994 = vmatpush1.bf16.msra.mxu1 %v6468_v47  ;;  %7117 = vmatpush1.bf16.msra.mxu0 %v6470_v36  ;;  %v6628_v47 = vld [vmem:[#allocation5 + $0xe00] sm:$0xff]  ;;  %v6630_v36 = vld [vmem:[#allocation5 + $0xe10] sm:$0xff] }
 0x9f4   : > { %6995 = vmatprep.subr.bf16.mxu1 %v6485_v16  ;;  %7118 = vmatprep.subr.bf16.mxu0 %v6487_v58  ;;  %v6645_v16 = vld [vmem:[#allocation5 + $0xe88] sm:$0xff]  ;;  %v6647_v58 = vld [vmem:[#allocation5 + $0xe98] sm:$0xff] }
 0x9f7   : > { %6996 = vmatpush1.bf16.msra.mxu1 %v6484_v32  ;;  %7119 = vmatpush1.bf16.msra.mxu0 %v6486_v41  ;;  %v6644_v32 = vld [vmem:[#allocation5 + $0xe80] sm:$0xff]  ;;  %v6646_v41 = vld [vmem:[#allocation5 + $0xe90] sm:$0xff] }
 0x9f8   : > { %6997 = vmatprep.subr.bf16.mxu1 %v6501_v8  ;;  %7120 = vmatprep.subr.bf16.mxu0 %v6503_v9  ;;  %v6661_v8 = vld [vmem:[#allocation5 + $0xf08] sm:$0xff]  ;;  %v6663_v9 = vld [vmem:[#allocation5 + $0xf18] sm:$0xff] }
 0x9fb   : > { %6998 = vmatpush1.bf16.msra.mxu1 %v6500_v11  ;;  %7121 = vmatpush1.bf16.msra.mxu0 %v6502_v61  ;;  %v6660_v11 = vld [vmem:[#allocation5 + $0xf00] sm:$0xff]  ;;  %v6662_v61 = vld [vmem:[#allocation5 + $0xf10] sm:$0xff] }
 0x9fc   : > { %6999 = vmatprep.subr.bf16.mxu1 %v6517_v12  ;;  %7122 = vmatprep.subr.bf16.mxu0 %v6519_v24  ;;  %v6677_v12 = vld [vmem:[#allocation5 + $0xf88] sm:$0xff]  ;;  %v6679_v24 = vld [vmem:[#allocation5 + $0xf98] sm:$0xff] }
 0x9ff   : > { %7000 = vmatpush1.bf16.msra.mxu1 %v6516_v30  ;;  %7123 = vmatpush1.bf16.msra.mxu0 %v6518_v19  ;;  %v6676_v30 = vld [vmem:[#allocation5 + $0xf80] sm:$0xff]  ;;  %v6678_v19 = vld [vmem:[#allocation5 + $0xf90] sm:$0xff] }
 0xa00   : > { %7001 = vmatprep.subr.bf16.mxu1 %v6533_v28  ;;  %7124 = vmatprep.subr.bf16.mxu0 %v6535_v18  ;;  %v6693_v28 = vld [vmem:[#allocation5 + $0x1008] sm:$0xff]  ;;  %v6695_v18 = vld [vmem:[#allocation5 + $0x1018] sm:$0xff] }
 0xa03   : > { %7002 = vmatpush1.bf16.msra.mxu1 %v6532_v21  ;;  %7125 = vmatpush1.bf16.msra.mxu0 %v6534_v39  ;;  %v13053_v21 = vpack.c.bf16 %v13019_v14, %v13019_v14  ;;  %v6692_v39 = vld [vmem:[#allocation5 + $0x1000] sm:$0xff] }
 0xa04   : > { %7003 = vmatprep.subr.bf16.mxu1 %v6549_v20  ;;  %7126 = vmatprep.subr.bf16.mxu0 %v6551_v45  ;;  %v6694_v20 = vld [vmem:[#allocation5 + $0x1010] sm:$0xff]  ;;  %v6709_v45 = vld [vmem:[#allocation5 + $0x1088] sm:$0xff]  ;;  %v6708_v14 = vld [vmem:[#allocation5 + $0x1080] sm:$0xff] }
 0xa07   : > { %7004 = vmatpush1.bf16.msra.mxu1 %v6548_v37  ;;  %7127 = vmatpush1.bf16.msra.mxu0 %v6550_v0  ;;  %v6711_v37 = vld [vmem:[#allocation5 + $0x1098] sm:$0xff]  ;;  %v13057_v0 = vpack.c.bf16 %v13029_v7, %v13029_v7  ;;  %v6724_v7 = vld [vmem:[#allocation5 + $0x1100] sm:$0xff] }
 0xa08   : > { %7005 = vmatprep.subr.bf16.mxu1 %v6565_v50  ;;  %7128 = vmatprep.subr.bf16.mxu0 %v6567_v51  ;;  %v6710_v50 = vld [vmem:[#allocation5 + $0x1090] sm:$0xff]  ;;  %v6725_v51 = vld [vmem:[#allocation5 + $0x1108] sm:$0xff] }
 0xa0b   : > { %7006 = vmatpush1.bf16.msra.mxu1 %v6564_v22  ;;  %7129 = vmatpush1.bf16.msra.mxu0 %v6566_v31  ;;  %v6727_v22 = vld [vmem:[#allocation5 + $0x1118] sm:$0xff]  ;;  %v6726_v31 = vld [vmem:[#allocation5 + $0x1110] sm:$0xff] }
 0xa0c   : > { %7007 = vmatprep.subr.bf16.mxu1 %v6581_v34  ;;  %7130 = vmatprep.subr.bf16.mxu0 %v6583_v13  ;;  %v6741_v34 = vld [vmem:[#allocation5 + $0x1188] sm:$0xff]  ;;  %v6743_v13 = vld [vmem:[#allocation5 + $0x1198] sm:$0xff] }
 0xa0f   : > { %7008 = vmatpush1.bf16.msra.mxu1 %v6580_v52  ;;  %7131 = vmatpush1.bf16.msra.mxu0 %v6582_v40  ;;  %v6740_v52 = vld [vmem:[#allocation5 + $0x1180] sm:$0xff]  ;;  %v6742_v40 = vld [vmem:[#allocation5 + $0x1190] sm:$0xff] }
 0xa10   : > { %7009 = vmatprep.subr.bf16.mxu1 %v6597_v42  ;;  %7132 = vmatprep.subr.bf16.mxu0 %v6599_v49  ;;  %v6757_v42 = vld [vmem:[#allocation5 + $0x1208] sm:$0xff]  ;;  %v6759_v49 = vld [vmem:[#allocation5 + $0x1218] sm:$0xff] }
 0xa13   : > { %7010 = vmatpush1.bf16.msra.mxu1 %v6596_v1  ;;  %7133 = vmatpush1.bf16.msra.mxu0 %v6598_v26  ;;  %v6756_v1 = vld [vmem:[#allocation5 + $0x1200] sm:$0xff]  ;;  %v6758_v26 = vld [vmem:[#allocation5 + $0x1210] sm:$0xff] }
 0xa14   : > { %7011 = vmatprep.subr.bf16.mxu1 %v6613_v57  ;;  %7134 = vmatprep.subr.bf16.mxu0 %v6615_v4  ;;  %v6773_v57 = vld [vmem:[#allocation5 + $0x1288] sm:$0xff]  ;;  %v6775_v4 = vld [vmem:[#allocation5 + $0x1298] sm:$0xff] }
 0xa17   : > { %7012 = vmatpush1.bf16.msra.mxu1 %v6612_v10  ;;  %7135 = vmatpush1.bf16.msra.mxu0 %v6614_v17  ;;  %v6772_v10 = vld [vmem:[#allocation5 + $0x1280] sm:$0xff]  ;;  %v6774_v17 = vld [vmem:[#allocation5 + $0x1290] sm:$0xff] }
 0xa18   : > { %7013 = vmatprep.subr.bf16.mxu1 %v6629_v6  ;;  %7136 = vmatprep.subr.bf16.mxu0 %v6631_v46  ;;  %v6789_v6 = vld [vmem:[#allocation5 + $0x1308] sm:$0xff]  ;;  %v6791_v46 = vld [vmem:[#allocation5 + $0x1318] sm:$0xff] }
 0xa1b   : > { %7014 = vmatpush1.bf16.msra.mxu1 %v6628_v47  ;;  %7137 = vmatpush1.bf16.msra.mxu0 %v6630_v36  ;;  %v6788_v47 = vld [vmem:[#allocation5 + $0x1300] sm:$0xff]  ;;  %v6790_v36 = vld [vmem:[#allocation5 + $0x1310] sm:$0xff] }
 0xa1c   : > { %7015 = vmatprep.subr.bf16.mxu1 %v6645_v16  ;;  %7138 = vmatprep.subr.bf16.mxu0 %v6647_v58  ;;  %v6805_v16 = vld [vmem:[#allocation5 + $0x1388] sm:$0xff]  ;;  %v6807_v58 = vld [vmem:[#allocation5 + $0x1398] sm:$0xff] }
 0xa1f   : > { %7016 = vmatpush1.bf16.msra.mxu1 %v6644_v32  ;;  %7139 = vmatpush1.bf16.msra.mxu0 %v6646_v41  ;;  %v6804_v32 = vld [vmem:[#allocation5 + $0x1380] sm:$0xff]  ;;  %v6806_v41 = vld [vmem:[#allocation5 + $0x1390] sm:$0xff] }
 0xa20   : > { %7017 = vmatprep.subr.bf16.mxu1 %v6661_v8  ;;  %7140 = vmatprep.subr.bf16.mxu0 %v6663_v9  ;;  %v6821_v8 = vld [vmem:[#allocation5 + $0x1408] sm:$0xff]  ;;  %v6823_v9 = vld [vmem:[#allocation5 + $0x1418] sm:$0xff] }
 0xa23   : > { %7018 = vmatpush1.bf16.msra.mxu1 %v6660_v11  ;;  %7141 = vmatpush1.bf16.msra.mxu0 %v6662_v61  ;;  %v6820_v11 = vld [vmem:[#allocation5 + $0x1400] sm:$0xff]  ;;  %v6822_v61 = vld [vmem:[#allocation5 + $0x1410] sm:$0xff] }
 0xa24   : > { %7019 = vmatprep.subr.bf16.mxu1 %v6677_v12  ;;  %7142 = vmatprep.subr.bf16.mxu0 %v6679_v24  ;;  %v6837_v12 = vld [vmem:[#allocation5 + $0x1488] sm:$0xff]  ;;  %v6839_v24 = vld [vmem:[#allocation5 + $0x1498] sm:$0xff] }
 0xa27   : > { %7020 = vmatpush1.bf16.msra.mxu1 %v6676_v30  ;;  %7143 = vmatpush1.bf16.msra.mxu0 %v6678_v19  ;;  %v6836_v30 = vld [vmem:[#allocation5 + $0x1480] sm:$0xff]  ;;  %v6838_v19 = vld [vmem:[#allocation5 + $0x1490] sm:$0xff] }
 0xa28   : > { %7030 = vmatprep.subr.bf16.mxu1 %v6693_v28  ;;  %7153 = vmatprep.subr.bf16.mxu0 %v6695_v18  ;;  %v6853_v28 = vld [vmem:[#allocation5 + $0x1508] sm:$0xff]  ;;  %v6855_v18 = vld [vmem:[#allocation5 + $0x1518] sm:$0xff] }
 0xa2a   : > { %7022 = vmatmul.mubr.bf16.vlgmr.msra.gmra.mrb[48].mxu1 %v13053_v21  ;;  %7145 = vmatmul.mubr.bf16.vlgmr.msra.gmra.mrb[20].mxu0 %v13053_v21 }
 0xa2b   : > { %7031 = vmatpush1.bf16.msra.mxu1 %v6692_v39  ;;  %7154 = vmatpush1.bf16.msra.mxu0 %v6694_v20  ;;  %v6852_v39 = vld [vmem:[#allocation5 + $0x1500] sm:$0xff]  ;;  %v6854_v20 = vld [vmem:[#allocation5 + $0x1510] sm:$0xff] }
 0xa2c   : > { %7032 = vmatprep.subr.bf16.mxu1 %v6709_v45  ;;  %7155 = vmatprep.subr.bf16.mxu0 %v6711_v37  ;;  %v6869_v45 = vld [vmem:[#allocation5 + $0x1588] sm:$0xff]  ;;  %v6871_v37 = vld [vmem:[#allocation5 + $0x1598] sm:$0xff] }
 0xa2d   : > { %7062 = vmatprep.mubr.bf16.mxu1 %v13057_v0  ;;  %7185 = vmatprep.mubr.bf16.mxu0 %v13057_v0 }
 0xa2f   : > { %7033 = vmatpush1.bf16.msra.mxu1 %v6708_v14  ;;  %7156 = vmatpush1.bf16.msra.mxu0 %v6710_v50  ;;  %v6868_v14 = vld [vmem:[#allocation5 + $0x1580] sm:$0xff]  ;;  %v6870_v50 = vld [vmem:[#allocation5 + $0x1590] sm:$0xff] }
 0xa30   : > { %7034 = vmatprep.subr.bf16.mxu1 %v6725_v51  ;;  %7157 = vmatprep.subr.bf16.mxu0 %v6727_v22  ;;  %v6885_v51 = vld [vmem:[#allocation5 + $0x1608] sm:$0xff]  ;;  %v6887_v22 = vld [vmem:[#allocation5 + $0x1618] sm:$0xff] }
 0xa33   : > { %7035 = vmatpush1.bf16.msra.mxu1 %v6724_v7  ;;  %7158 = vmatpush1.bf16.msra.mxu0 %v6726_v31  ;;  %v6884_v7 = vld [vmem:[#allocation5 + $0x1600] sm:$0xff]  ;;  %v6886_v31 = vld [vmem:[#allocation5 + $0x1610] sm:$0xff] }
 0xa34   : > { %7036 = vmatprep.subr.bf16.mxu1 %v6741_v34  ;;  %7159 = vmatprep.subr.bf16.mxu0 %v6743_v13  ;;  %v6901_v34 = vld [vmem:[#allocation5 + $0x1688] sm:$0xff]  ;;  %v6903_v13 = vld [vmem:[#allocation5 + $0x1698] sm:$0xff] }
 0xa37   : > { %7037 = vmatpush1.bf16.msra.mxu1 %v6740_v52  ;;  %7160 = vmatpush1.bf16.msra.mxu0 %v6742_v40  ;;  %v6900_v52 = vld [vmem:[#allocation5 + $0x1680] sm:$0xff]  ;;  %v6902_v40 = vld [vmem:[#allocation5 + $0x1690] sm:$0xff] }
 0xa38   : > { %7038 = vmatprep.subr.bf16.mxu1 %v6757_v42  ;;  %7161 = vmatprep.subr.bf16.mxu0 %v6759_v49  ;;  %v6917_v42 = vld [vmem:[#allocation5 + $0x1708] sm:$0xff]  ;;  %v6919_v49 = vld [vmem:[#allocation5 + $0x1718] sm:$0xff] }
 0xa3b   : > { %7039 = vmatpush1.bf16.msra.mxu1 %v6756_v1  ;;  %7162 = vmatpush1.bf16.msra.mxu0 %v6758_v26  ;;  %v6916_v1 = vld [vmem:[#allocation5 + $0x1700] sm:$0xff]  ;;  %v6918_v26 = vld [vmem:[#allocation5 + $0x1710] sm:$0xff] }
 0xa3c   : > { %7040 = vmatprep.subr.bf16.mxu1 %v6773_v57  ;;  %7163 = vmatprep.subr.bf16.mxu0 %v6775_v4  ;;  %v6933_v57 = vld [vmem:[#allocation5 + $0x1788] sm:$0xff]  ;;  %v6935_v4 = vld [vmem:[#allocation5 + $0x1798] sm:$0xff] }
 0xa3f   : > { %7041 = vmatpush1.bf16.msra.mxu1 %v6772_v10  ;;  %7164 = vmatpush1.bf16.msra.mxu0 %v6774_v17  ;;  %v6932_v10 = vld [vmem:[#allocation5 + $0x1780] sm:$0xff]  ;;  %v6934_v17 = vld [vmem:[#allocation5 + $0x1790] sm:$0xff] }
 0xa40   : > { %7042 = vmatprep.subr.bf16.mxu1 %v6789_v6  ;;  %7165 = vmatprep.subr.bf16.mxu0 %v6791_v46  ;;  %v6185_v6 = vld [vmem:[#allocation5 + $0x28] sm:$0xff]  ;;  %v6187_v46 = vld [vmem:[#allocation5 + $0x38] sm:$0xff] }
 0xa43   : > { %7043 = vmatpush1.bf16.msra.mxu1 %v6788_v47  ;;  %7166 = vmatpush1.bf16.msra.mxu0 %v6790_v36  ;;  %v13065_v47 = vpack.c.bf16 %v13026_v63, %v13026_v63  ;;  %v6184_v36 = vld [vmem:[#allocation5 + $0x20] sm:$0xff]  ;;  %v6217_v63 = vld [vmem:[#allocation5 + $0x128] sm:$0xff] }
 0xa44   : > { %7044 = vmatprep.subr.bf16.mxu1 %v6805_v16  ;;  %7167 = vmatprep.subr.bf16.mxu0 %v6807_v58  ;;  %v6186_v16 = vld [vmem:[#allocation5 + $0x30] sm:$0xff]  ;;  %v6201_v58 = vld [vmem:[#allocation5 + $0xa8] sm:$0xff] }
 0xa47   : > { %7045 = vmatpush1.bf16.msra.mxu1 %v6804_v32  ;;  %7168 = vmatpush1.bf16.msra.mxu0 %v6806_v41  ;;  %v6203_v32 = vld [vmem:[#allocation5 + $0xb8] sm:$0xff]  ;;  %v6200_v41 = vld [vmem:[#allocation5 + $0xa0] sm:$0xff] }
 0xa48   : > { %7046 = vmatprep.subr.bf16.mxu1 %v6821_v8  ;;  %7169 = vmatprep.subr.bf16.mxu0 %v6823_v9  ;;  %v6202_v8 = vld [vmem:[#allocation5 + $0xb0] sm:$0xff]  ;;  %v6219_v9 = vld [vmem:[#allocation5 + $0x138] sm:$0xff] }
 0xa4b   : > { %7047 = vmatpush1.bf16.msra.mxu1 %v6820_v11  ;;  %7170 = vmatpush1.bf16.msra.mxu0 %v6822_v61  ;;  %v6216_v11 = vld [vmem:[#allocation5 + $0x120] sm:$0xff]  ;;  %v6218_v61 = vld [vmem:[#allocation5 + $0x130] sm:$0xff] }
 0xa4c   : > { %7048 = vmatprep.subr.bf16.mxu1 %v6837_v12  ;;  %7171 = vmatprep.subr.bf16.mxu0 %v6839_v24  ;;  %v6233_v12 = vld [vmem:[#allocation5 + $0x1a8] sm:$0xff]  ;;  %v6235_v24 = vld [vmem:[#allocation5 + $0x1b8] sm:$0xff] }
 0xa4f   : > { %7049 = vmatpush1.bf16.msra.mxu1 %v6836_v30  ;;  %7172 = vmatpush1.bf16.msra.mxu0 %v6838_v19  ;;  %v6232_v30 = vld [vmem:[#allocation5 + $0x1a0] sm:$0xff]  ;;  %v6234_v19 = vld [vmem:[#allocation5 + $0x1b0] sm:$0xff] }
 0xa50   : > { %7050 = vmatprep.subr.bf16.mxu1 %v6853_v28  ;;  %7173 = vmatprep.subr.bf16.mxu0 %v6855_v18  ;;  %v6249_v28 = vld [vmem:[#allocation5 + $0x228] sm:$0xff]  ;;  %v6251_v18 = vld [vmem:[#allocation5 + $0x238] sm:$0xff] }
 0xa53   : > { %7051 = vmatpush1.bf16.msra.mxu1 %v6852_v39  ;;  %7174 = vmatpush1.bf16.msra.mxu0 %v6854_v20  ;;  %v6248_v39 = vld [vmem:[#allocation5 + $0x220] sm:$0xff]  ;;  %v6250_v20 = vld [vmem:[#allocation5 + $0x230] sm:$0xff] }
 0xa54   : > { %7052 = vmatprep.subr.bf16.mxu1 %v6869_v45  ;;  %7175 = vmatprep.subr.bf16.mxu0 %v6871_v37  ;;  %v6265_v45 = vld [vmem:[#allocation5 + $0x2a8] sm:$0xff]  ;;  %v6267_v37 = vld [vmem:[#allocation5 + $0x2b8] sm:$0xff] }
 0xa57   : > { %7053 = vmatpush1.bf16.msra.mxu1 %v6868_v14  ;;  %7176 = vmatpush1.bf16.msra.mxu0 %v6870_v50  ;;  %v6264_v14 = vld [vmem:[#allocation5 + $0x2a0] sm:$0xff]  ;;  %v6266_v50 = vld [vmem:[#allocation5 + $0x2b0] sm:$0xff] }
 0xa58   : > { %7054 = vmatprep.subr.bf16.mxu1 %v6885_v51  ;;  %7177 = vmatprep.subr.bf16.mxu0 %v6887_v22  ;;  %v6281_v51 = vld [vmem:[#allocation5 + $0x328] sm:$0xff]  ;;  %v6283_v22 = vld [vmem:[#allocation5 + $0x338] sm:$0xff] }
 0xa5b   : > { %7055 = vmatpush1.bf16.msra.mxu1 %v6884_v7  ;;  %7178 = vmatpush1.bf16.msra.mxu0 %v6886_v31  ;;  %v6280_v7 = vld [vmem:[#allocation5 + $0x320] sm:$0xff]  ;;  %v6282_v31 = vld [vmem:[#allocation5 + $0x330] sm:$0xff] }
 0xa5c   : > { %7056 = vmatprep.subr.bf16.mxu1 %v6901_v34  ;;  %7179 = vmatprep.subr.bf16.mxu0 %v6903_v13  ;;  %v6297_v34 = vld [vmem:[#allocation5 + $0x3a8] sm:$0xff]  ;;  %v6299_v13 = vld [vmem:[#allocation5 + $0x3b8] sm:$0xff] }
 0xa5f   : > { %7057 = vmatpush1.bf16.msra.mxu1 %v6900_v52  ;;  %7180 = vmatpush1.bf16.msra.mxu0 %v6902_v40  ;;  %v6296_v52 = vld [vmem:[#allocation5 + $0x3a0] sm:$0xff]  ;;  %v6298_v40 = vld [vmem:[#allocation5 + $0x3b0] sm:$0xff] }
 0xa60   : > { %7058 = vmatprep.subr.bf16.mxu1 %v6917_v42  ;;  %7181 = vmatprep.subr.bf16.mxu0 %v6919_v49  ;;  %v6313_v42 = vld [vmem:[#allocation5 + $0x428] sm:$0xff]  ;;  %v6315_v49 = vld [vmem:[#allocation5 + $0x438] sm:$0xff] }
 0xa63   : > { %7059 = vmatpush1.bf16.msra.mxu1 %v6916_v1  ;;  %7182 = vmatpush1.bf16.msra.mxu0 %v6918_v26  ;;  %v6312_v1 = vld [vmem:[#allocation5 + $0x420] sm:$0xff]  ;;  %v6314_v26 = vld [vmem:[#allocation5 + $0x430] sm:$0xff] }
 0xa64   : > { %7060 = vmatprep.subr.bf16.mxu1 %v6933_v57  ;;  %7183 = vmatprep.subr.bf16.mxu0 %v6935_v4  ;;  %v6329_v57 = vld [vmem:[#allocation5 + $0x4a8] sm:$0xff]  ;;  %v6331_v4 = vld [vmem:[#allocation5 + $0x4b8] sm:$0xff] }
 0xa67   : > { %7061 = vmatpush1.bf16.msra.mxu1 %v6932_v10  ;;  %7184 = vmatpush1.bf16.msra.mxu0 %v6934_v17  ;;  %v6328_v10 = vld [vmem:[#allocation5 + $0x4a0] sm:$0xff]  ;;  %v6330_v17 = vld [vmem:[#allocation5 + $0x4b0] sm:$0xff] }
 0xa68   : > { %7194 = vmatprep.subr.bf16.mxu1 %v6185_v6  ;;  %7317 = vmatprep.subr.bf16.mxu0 %v6187_v46  ;;  %v6345_v6 = vld [vmem:[#allocation5 + $0x528] sm:$0xff]  ;;  %v6347_v46 = vld [vmem:[#allocation5 + $0x538] sm:$0xff] }
 0xa6a   : > { %7063 = vmatmul.mubr.bf16.vlgmr.msra.gmra.mrb[48].mxu1 %v13065_v47  ;;  %7186 = vmatmul.mubr.bf16.vlgmr.msra.gmra.mrb[20].mxu0 %v13065_v47 }
 0xa6b   : > { %7195 = vmatpush1.bf16.msra.mxu1 %v6184_v36  ;;  %7318 = vmatpush1.bf16.msra.mxu0 %v6186_v16  ;;  %v6344_v36 = vld [vmem:[#allocation5 + $0x520] sm:$0xff]  ;;  %v6346_v16 = vld [vmem:[#allocation5 + $0x530] sm:$0xff] }
 0xa6c   : > { %7196 = vmatprep.subr.bf16.mxu1 %v6201_v58  ;;  %7319 = vmatprep.subr.bf16.mxu0 %v6203_v32  ;;  %v6361_v58 = vld [vmem:[#allocation5 + $0x5a8] sm:$0xff]  ;;  %v6363_v32 = vld [vmem:[#allocation5 + $0x5b8] sm:$0xff] }
 0xa6d   : > { %7226 = vmatprep.mubr.bf16.mxu1 %v13035_v60  ;;  %7349 = vmatprep.mubr.bf16.mxu0 %v13035_v60 }
 0xa6f   : > { %7197 = vmatpush1.bf16.msra.mxu1 %v6200_v41  ;;  %7320 = vmatpush1.bf16.msra.mxu0 %v6202_v8  ;;  %v6360_v41 = vld [vmem:[#allocation5 + $0x5a0] sm:$0xff]  ;;  %v6362_v8 = vld [vmem:[#allocation5 + $0x5b0] sm:$0xff] }
 0xa70   : > { %7198 = vmatprep.subr.bf16.mxu1 %v6217_v63  ;;  %7321 = vmatprep.subr.bf16.mxu0 %v6219_v9  ;;  %v6377_v63 = vld [vmem:[#allocation5 + $0x628] sm:$0xff]  ;;  %v6379_v9 = vld [vmem:[#allocation5 + $0x638] sm:$0xff] }
 0xa73   : > { %7199 = vmatpush1.bf16.msra.mxu1 %v6216_v11  ;;  %7322 = vmatpush1.bf16.msra.mxu0 %v6218_v61  ;;  %v6376_v11 = vld [vmem:[#allocation5 + $0x620] sm:$0xff]  ;;  %v6378_v61 = vld [vmem:[#allocation5 + $0x630] sm:$0xff] }
 0xa74   : > { %7200 = vmatprep.subr.bf16.mxu1 %v6233_v12  ;;  %7323 = vmatprep.subr.bf16.mxu0 %v6235_v24  ;;  %v6393_v12 = vld [vmem:[#allocation5 + $0x6a8] sm:$0xff]  ;;  %v6395_v24 = vld [vmem:[#allocation5 + $0x6b8] sm:$0xff] }
 0xa77   : > { %7201 = vmatpush1.bf16.msra.mxu1 %v6232_v30  ;;  %7324 = vmatpush1.bf16.msra.mxu0 %v6234_v19  ;;  %v6392_v30 = vld [vmem:[#allocation5 + $0x6a0] sm:$0xff]  ;;  %v6394_v19 = vld [vmem:[#allocation5 + $0x6b0] sm:$0xff] }
 0xa78   : > { %7202 = vmatprep.subr.bf16.mxu1 %v6249_v28  ;;  %7325 = vmatprep.subr.bf16.mxu0 %v6251_v18  ;;  %v6409_v28 = vld [vmem:[#allocation5 + $0x728] sm:$0xff]  ;;  %v6411_v18 = vld [vmem:[#allocation5 + $0x738] sm:$0xff] }
 0xa7b   : > { %7203 = vmatpush1.bf16.msra.mxu1 %v6248_v39  ;;  %7326 = vmatpush1.bf16.msra.mxu0 %v6250_v20  ;;  %v6408_v39 = vld [vmem:[#allocation5 + $0x720] sm:$0xff]  ;;  %v6410_v20 = vld [vmem:[#allocation5 + $0x730] sm:$0xff] }
 0xa7c   : > { %7204 = vmatprep.subr.bf16.mxu1 %v6265_v45  ;;  %7327 = vmatprep.subr.bf16.mxu0 %v6267_v37  ;;  %v6425_v45 = vld [vmem:[#allocation5 + $0x7a8] sm:$0xff]  ;;  %v6427_v37 = vld [vmem:[#allocation5 + $0x7b8] sm:$0xff] }
 0xa7f   : > { %7205 = vmatpush1.bf16.msra.mxu1 %v6264_v14  ;;  %7328 = vmatpush1.bf16.msra.mxu0 %v6266_v50  ;;  %v6424_v14 = vld [vmem:[#allocation5 + $0x7a0] sm:$0xff]  ;;  %v6426_v50 = vld [vmem:[#allocation5 + $0x7b0] sm:$0xff] }
 0xa80   : > { %7206 = vmatprep.subr.bf16.mxu1 %v6281_v51  ;;  %7329 = vmatprep.subr.bf16.mxu0 %v6283_v22  ;;  %v6441_v51 = vld [vmem:[#allocation5 + $0x828] sm:$0xff]  ;;  %v6443_v22 = vld [vmem:[#allocation5 + $0x838] sm:$0xff] }
 0xa83   : > { %7207 = vmatpush1.bf16.msra.mxu1 %v6280_v7  ;;  %7330 = vmatpush1.bf16.msra.mxu0 %v6282_v31  ;;  %v6440_v7 = vld [vmem:[#allocation5 + $0x820] sm:$0xff]  ;;  %v6442_v31 = vld [vmem:[#allocation5 + $0x830] sm:$0xff] }
 0xa84   : > { %7208 = vmatprep.subr.bf16.mxu1 %v6297_v34  ;;  %7331 = vmatprep.subr.bf16.mxu0 %v6299_v13  ;;  %v6457_v34 = vld [vmem:[#allocation5 + $0x8a8] sm:$0xff]  ;;  %v6459_v13 = vld [vmem:[#allocation5 + $0x8b8] sm:$0xff] }
 0xa87   : > { %7209 = vmatpush1.bf16.msra.mxu1 %v6296_v52  ;;  %7332 = vmatpush1.bf16.msra.mxu0 %v6298_v40  ;;  %v6456_v52 = vld [vmem:[#allocation5 + $0x8a0] sm:$0xff]  ;;  %v6458_v40 = vld [vmem:[#allocation5 + $0x8b0] sm:$0xff] }
 0xa88   : > { %7210 = vmatprep.subr.bf16.mxu1 %v6313_v42  ;;  %7333 = vmatprep.subr.bf16.mxu0 %v6315_v49  ;;  %v6473_v42 = vld [vmem:[#allocation5 + $0x928] sm:$0xff]  ;;  %v6475_v49 = vld [vmem:[#allocation5 + $0x938] sm:$0xff] }
 0xa8b   : > { %7211 = vmatpush1.bf16.msra.mxu1 %v6312_v1  ;;  %7334 = vmatpush1.bf16.msra.mxu0 %v6314_v26  ;;  %v6472_v1 = vld [vmem:[#allocation5 + $0x920] sm:$0xff]  ;;  %v6474_v26 = vld [vmem:[#allocation5 + $0x930] sm:$0xff] }
 0xa8c   : > { %7212 = vmatprep.subr.bf16.mxu1 %v6329_v57  ;;  %7335 = vmatprep.subr.bf16.mxu0 %v6331_v4  ;;  %v6489_v57 = vld [vmem:[#allocation5 + $0x9a8] sm:$0xff]  ;;  %v6491_v4 = vld [vmem:[#allocation5 + $0x9b8] sm:$0xff] }
 0xa8f   : > { %7213 = vmatpush1.bf16.msra.mxu1 %v6328_v10  ;;  %7336 = vmatpush1.bf16.msra.mxu0 %v6330_v17  ;;  %v6488_v10 = vld [vmem:[#allocation5 + $0x9a0] sm:$0xff]  ;;  %v6490_v17 = vld [vmem:[#allocation5 + $0x9b0] sm:$0xff] }
 0xa90   : > { %7214 = vmatprep.subr.bf16.mxu1 %v6345_v6  ;;  %7337 = vmatprep.subr.bf16.mxu0 %v6347_v46  ;;  %v6505_v6 = vld [vmem:[#allocation5 + $0xa28] sm:$0xff]  ;;  %v6507_v46 = vld [vmem:[#allocation5 + $0xa38] sm:$0xff] }
 0xa93   : > { %7215 = vmatpush1.bf16.msra.mxu1 %v6344_v36  ;;  %7338 = vmatpush1.bf16.msra.mxu0 %v6346_v16  ;;  %v6504_v36 = vld [vmem:[#allocation5 + $0xa20] sm:$0xff]  ;;  %v6506_v16 = vld [vmem:[#allocation5 + $0xa30] sm:$0xff] }
 0xa94   : > { %7216 = vmatprep.subr.bf16.mxu1 %v6361_v58  ;;  %7339 = vmatprep.subr.bf16.mxu0 %v6363_v32  ;;  %v6521_v58 = vld [vmem:[#allocation5 + $0xaa8] sm:$0xff]  ;;  %v6523_v32 = vld [vmem:[#allocation5 + $0xab8] sm:$0xff] }
 0xa97   : > { %7217 = vmatpush1.bf16.msra.mxu1 %v6360_v41  ;;  %7340 = vmatpush1.bf16.msra.mxu0 %v6362_v8  ;;  %v6520_v41 = vld [vmem:[#allocation5 + $0xaa0] sm:$0xff]  ;;  %v6522_v8 = vld [vmem:[#allocation5 + $0xab0] sm:$0xff] }
 0xa98   : > { %7218 = vmatprep.subr.bf16.mxu1 %v6377_v63  ;;  %7341 = vmatprep.subr.bf16.mxu0 %v6379_v9  ;;  %v6537_v63 = vld [vmem:[#allocation5 + $0xb28] sm:$0xff]  ;;  %v6539_v9 = vld [vmem:[#allocation5 + $0xb38] sm:$0xff] }
 0xa9b   : > { %7219 = vmatpush1.bf16.msra.mxu1 %v6376_v11  ;;  %7342 = vmatpush1.bf16.msra.mxu0 %v6378_v61  ;;  %v6536_v11 = vld [vmem:[#allocation5 + $0xb20] sm:$0xff]  ;;  %v6538_v61 = vld [vmem:[#allocation5 + $0xb30] sm:$0xff] }
 0xa9c   : > { %7220 = vmatprep.subr.bf16.mxu1 %v6393_v12  ;;  %7343 = vmatprep.subr.bf16.mxu0 %v6395_v24  ;;  %v6553_v12 = vld [vmem:[#allocation5 + $0xba8] sm:$0xff]  ;;  %v6555_v24 = vld [vmem:[#allocation5 + $0xbb8] sm:$0xff] }
 0xa9f   : > { %7221 = vmatpush1.bf16.msra.mxu1 %v6392_v30  ;;  %7344 = vmatpush1.bf16.msra.mxu0 %v6394_v19  ;;  %v6552_v30 = vld [vmem:[#allocation5 + $0xba0] sm:$0xff]  ;;  %v6554_v19 = vld [vmem:[#allocation5 + $0xbb0] sm:$0xff] }
 0xaa0   : > { %7222 = vmatprep.subr.bf16.mxu1 %v6409_v28  ;;  %7345 = vmatprep.subr.bf16.mxu0 %v6411_v18  ;;  %v6569_v28 = vld [vmem:[#allocation5 + $0xc28] sm:$0xff]  ;;  %v6571_v18 = vld [vmem:[#allocation5 + $0xc38] sm:$0xff] }
 0xaa3   : > { %7223 = vmatpush1.bf16.msra.mxu1 %v6408_v39  ;;  %7346 = vmatpush1.bf16.msra.mxu0 %v6410_v20  ;;  %v6568_v39 = vld [vmem:[#allocation5 + $0xc20] sm:$0xff]  ;;  %v6570_v20 = vld [vmem:[#allocation5 + $0xc30] sm:$0xff] }
 0xaa4   : > { %7224 = vmatprep.subr.bf16.mxu1 %v6425_v45  ;;  %7347 = vmatprep.subr.bf16.mxu0 %v6427_v37  ;;  %v6585_v45 = vld [vmem:[#allocation5 + $0xca8] sm:$0xff]  ;;  %v6587_v37 = vld [vmem:[#allocation5 + $0xcb8] sm:$0xff] }
 0xaa7   : > { %7225 = vmatpush1.bf16.msra.mxu1 %v6424_v14  ;;  %7348 = vmatpush1.bf16.msra.mxu0 %v6426_v50  ;;  %v6584_v14 = vld [vmem:[#allocation5 + $0xca0] sm:$0xff]  ;;  %v6586_v50 = vld [vmem:[#allocation5 + $0xcb0] sm:$0xff] }
 0xaa8   : > { %7235 = vmatprep.subr.bf16.mxu1 %v6441_v51  ;;  %7358 = vmatprep.subr.bf16.mxu0 %v6443_v22  ;;  %v6601_v51 = vld [vmem:[#allocation5 + $0xd28] sm:$0xff]  ;;  %v6603_v22 = vld [vmem:[#allocation5 + $0xd38] sm:$0xff] }
 0xaaa   : > { %7227 = vmatmul.mubr.bf16.vlgmr.msra.gmra.mrb[52].mxu1 %v13041_v56  ;;  %7350 = vmatmul.mubr.bf16.vlgmr.msra.gmra.mrb[24].mxu0 %v13041_v56 }
 0xaab   : > { %7236 = vmatpush1.bf16.msra.mxu1 %v6440_v7  ;;  %7359 = vmatpush1.bf16.msra.mxu0 %v6442_v31  ;;  %v6600_v7 = vld [vmem:[#allocation5 + $0xd20] sm:$0xff]  ;;  %v6602_v31 = vld [vmem:[#allocation5 + $0xd30] sm:$0xff] }
 0xaac   : > { %7237 = vmatprep.subr.bf16.mxu1 %v6457_v34  ;;  %7360 = vmatprep.subr.bf16.mxu0 %v6459_v13  ;;  %v6617_v34 = vld [vmem:[#allocation5 + $0xda8] sm:$0xff]  ;;  %v6619_v13 = vld [vmem:[#allocation5 + $0xdb8] sm:$0xff] }
 0xaad   : > { %7267 = vmatprep.mubr.bf16.mxu1 %v13045_v5  ;;  %7390 = vmatprep.mubr.bf16.mxu0 %v13045_v5 }
 0xaaf   : > { %7238 = vmatpush1.bf16.msra.mxu1 %v6456_v52  ;;  %7361 = vmatpush1.bf16.msra.mxu0 %v6458_v40  ;;  %v6616_v52 = vld [vmem:[#allocation5 + $0xda0] sm:$0xff]  ;;  %v6618_v40 = vld [vmem:[#allocation5 + $0xdb0] sm:$0xff] }
 0xab0   : > { %7239 = vmatprep.subr.bf16.mxu1 %v6473_v42  ;;  %7362 = vmatprep.subr.bf16.mxu0 %v6475_v49  ;;  %v6633_v42 = vld [vmem:[#allocation5 + $0xe28] sm:$0xff]  ;;  %v6635_v49 = vld [vmem:[#allocation5 + $0xe38] sm:$0xff] }
 0xab3   : > { %7240 = vmatpush1.bf16.msra.mxu1 %v6472_v1  ;;  %7363 = vmatpush1.bf16.msra.mxu0 %v6474_v26  ;;  %v6632_v1 = vld [vmem:[#allocation5 + $0xe20] sm:$0xff]  ;;  %v6634_v26 = vld [vmem:[#allocation5 + $0xe30] sm:$0xff] }
 0xab4   : > { %7241 = vmatprep.subr.bf16.mxu1 %v6489_v57  ;;  %7364 = vmatprep.subr.bf16.mxu0 %v6491_v4  ;;  %v6649_v57 = vld [vmem:[#allocation5 + $0xea8] sm:$0xff]  ;;  %v6651_v4 = vld [vmem:[#allocation5 + $0xeb8] sm:$0xff] }
 0xab7   : > { %7242 = vmatpush1.bf16.msra.mxu1 %v6488_v10  ;;  %7365 = vmatpush1.bf16.msra.mxu0 %v6490_v17  ;;  %v6648_v10 = vld [vmem:[#allocation5 + $0xea0] sm:$0xff]  ;;  %v6650_v17 = vld [vmem:[#allocation5 + $0xeb0] sm:$0xff] }
 0xab8   : > { %7243 = vmatprep.subr.bf16.mxu1 %v6505_v6  ;;  %7366 = vmatprep.subr.bf16.mxu0 %v6507_v46  ;;  %v6665_v6 = vld [vmem:[#allocation5 + $0xf28] sm:$0xff]  ;;  %v6667_v46 = vld [vmem:[#allocation5 + $0xf38] sm:$0xff] }
 0xabb   : > { %7244 = vmatpush1.bf16.msra.mxu1 %v6504_v36  ;;  %7367 = vmatpush1.bf16.msra.mxu0 %v6506_v16  ;;  %v6664_v36 = vld [vmem:[#allocation5 + $0xf20] sm:$0xff]  ;;  %v6666_v16 = vld [vmem:[#allocation5 + $0xf30] sm:$0xff] }
 0xabc   : > { %7245 = vmatprep.subr.bf16.mxu1 %v6521_v58  ;;  %7368 = vmatprep.subr.bf16.mxu0 %v6523_v32  ;;  %v6681_v58 = vld [vmem:[#allocation5 + $0xfa8] sm:$0xff]  ;;  %v6683_v32 = vld [vmem:[#allocation5 + $0xfb8] sm:$0xff] }
 0xabf   : > { %7246 = vmatpush1.bf16.msra.mxu1 %v6520_v41  ;;  %7369 = vmatpush1.bf16.msra.mxu0 %v6522_v8  ;;  %v6680_v41 = vld [vmem:[#allocation5 + $0xfa0] sm:$0xff]  ;;  %v6682_v8 = vld [vmem:[#allocation5 + $0xfb0] sm:$0xff] }
 0xac0   : > { %7247 = vmatprep.subr.bf16.mxu1 %v6537_v63  ;;  %7370 = vmatprep.subr.bf16.mxu0 %v6539_v9  ;;  %v6697_v63 = vld [vmem:[#allocation5 + $0x1028] sm:$0xff]  ;;  %v6699_v9 = vld [vmem:[#allocation5 + $0x1038] sm:$0xff] }
 0xac3   : > { %7248 = vmatpush1.bf16.msra.mxu1 %v6536_v11  ;;  %7371 = vmatpush1.bf16.msra.mxu0 %v6538_v61  ;;  %v6696_v11 = vld [vmem:[#allocation5 + $0x1020] sm:$0xff]  ;;  %v6698_v61 = vld [vmem:[#allocation5 + $0x1030] sm:$0xff] }
 0xac4   : > { %7249 = vmatprep.subr.bf16.mxu1 %v6553_v12  ;;  %7372 = vmatprep.subr.bf16.mxu0 %v6555_v24  ;;  %v6713_v12 = vld [vmem:[#allocation5 + $0x10a8] sm:$0xff]  ;;  %v6715_v24 = vld [vmem:[#allocation5 + $0x10b8] sm:$0xff] }
 0xac7   : > { %7250 = vmatpush1.bf16.msra.mxu1 %v6552_v30  ;;  %7373 = vmatpush1.bf16.msra.mxu0 %v6554_v19  ;;  %v6712_v30 = vld [vmem:[#allocation5 + $0x10a0] sm:$0xff]  ;;  %v6714_v19 = vld [vmem:[#allocation5 + $0x10b0] sm:$0xff] }
 0xac8   : > { %7251 = vmatprep.subr.bf16.mxu1 %v6569_v28  ;;  %7374 = vmatprep.subr.bf16.mxu0 %v6571_v18  ;;  %v6729_v28 = vld [vmem:[#allocation5 + $0x1128] sm:$0xff]  ;;  %v6731_v18 = vld [vmem:[#allocation5 + $0x1138] sm:$0xff] }
 0xacb   : > { %7252 = vmatpush1.bf16.msra.mxu1 %v6568_v39  ;;  %7375 = vmatpush1.bf16.msra.mxu0 %v6570_v20  ;;  %v6728_v39 = vld [vmem:[#allocation5 + $0x1120] sm:$0xff]  ;;  %v6730_v20 = vld [vmem:[#allocation5 + $0x1130] sm:$0xff] }
 0xacc   : > { %7253 = vmatprep.subr.bf16.mxu1 %v6585_v45  ;;  %7376 = vmatprep.subr.bf16.mxu0 %v6587_v37  ;;  %v6745_v45 = vld [vmem:[#allocation5 + $0x11a8] sm:$0xff]  ;;  %v6747_v37 = vld [vmem:[#allocation5 + $0x11b8] sm:$0xff] }
 0xacf   : > { %7254 = vmatpush1.bf16.msra.mxu1 %v6584_v14  ;;  %7377 = vmatpush1.bf16.msra.mxu0 %v6586_v50  ;;  %v6744_v14 = vld [vmem:[#allocation5 + $0x11a0] sm:$0xff]  ;;  %v6746_v50 = vld [vmem:[#allocation5 + $0x11b0] sm:$0xff] }
 0xad0   : > { %7255 = vmatprep.subr.bf16.mxu1 %v6601_v51  ;;  %7378 = vmatprep.subr.bf16.mxu0 %v6603_v22  ;;  %v6761_v51 = vld [vmem:[#allocation5 + $0x1228] sm:$0xff]  ;;  %v6763_v22 = vld [vmem:[#allocation5 + $0x1238] sm:$0xff] }
 0xad3   : > { %7256 = vmatpush1.bf16.msra.mxu1 %v6600_v7  ;;  %7379 = vmatpush1.bf16.msra.mxu0 %v6602_v31  ;;  %v6760_v7 = vld [vmem:[#allocation5 + $0x1220] sm:$0xff]  ;;  %v6762_v31 = vld [vmem:[#allocation5 + $0x1230] sm:$0xff] }
 0xad4   : > { %7257 = vmatprep.subr.bf16.mxu1 %v6617_v34  ;;  %7380 = vmatprep.subr.bf16.mxu0 %v6619_v13  ;;  %v6777_v34 = vld [vmem:[#allocation5 + $0x12a8] sm:$0xff]  ;;  %v6779_v13 = vld [vmem:[#allocation5 + $0x12b8] sm:$0xff] }
 0xad7   : > { %7258 = vmatpush1.bf16.msra.mxu1 %v6616_v52  ;;  %7381 = vmatpush1.bf16.msra.mxu0 %v6618_v40  ;;  %v6776_v52 = vld [vmem:[#allocation5 + $0x12a0] sm:$0xff]  ;;  %v6778_v40 = vld [vmem:[#allocation5 + $0x12b0] sm:$0xff] }
 0xad8   : > { %7259 = vmatprep.subr.bf16.mxu1 %v6633_v42  ;;  %7382 = vmatprep.subr.bf16.mxu0 %v6635_v49  ;;  %v6793_v42 = vld [vmem:[#allocation5 + $0x1328] sm:$0xff]  ;;  %v6795_v49 = vld [vmem:[#allocation5 + $0x1338] sm:$0xff] }
 0xadb   : > { %7260 = vmatpush1.bf16.msra.mxu1 %v6632_v1  ;;  %7383 = vmatpush1.bf16.msra.mxu0 %v6634_v26  ;;  %v6792_v1 = vld [vmem:[#allocation5 + $0x1320] sm:$0xff]  ;;  %v6794_v26 = vld [vmem:[#allocation5 + $0x1330] sm:$0xff] }
 0xadc   : > { %7261 = vmatprep.subr.bf16.mxu1 %v6649_v57  ;;  %7384 = vmatprep.subr.bf16.mxu0 %v6651_v4  ;;  %v6809_v57 = vld [vmem:[#allocation5 + $0x13a8] sm:$0xff]  ;;  %v6811_v4 = vld [vmem:[#allocation5 + $0x13b8] sm:$0xff] }
 0xadf   : > { %7262 = vmatpush1.bf16.msra.mxu1 %v6648_v10  ;;  %7385 = vmatpush1.bf16.msra.mxu0 %v6650_v17  ;;  %v6808_v10 = vld [vmem:[#allocation5 + $0x13a0] sm:$0xff]  ;;  %v6810_v17 = vld [vmem:[#allocation5 + $0x13b0] sm:$0xff] }
 0xae0   : > { %7263 = vmatprep.subr.bf16.mxu1 %v6665_v6  ;;  %7386 = vmatprep.subr.bf16.mxu0 %v6667_v46  ;;  %v6825_v6 = vld [vmem:[#allocation5 + $0x1428] sm:$0xff]  ;;  %v6827_v46 = vld [vmem:[#allocation5 + $0x1438] sm:$0xff] }
 0xae3   : > { %7264 = vmatpush1.bf16.msra.mxu1 %v6664_v36  ;;  %7387 = vmatpush1.bf16.msra.mxu0 %v6666_v16  ;;  %v6824_v36 = vld [vmem:[#allocation5 + $0x1420] sm:$0xff]  ;;  %v6826_v16 = vld [vmem:[#allocation5 + $0x1430] sm:$0xff] }
 0xae4   : > { %7265 = vmatprep.subr.bf16.mxu1 %v6681_v58  ;;  %7388 = vmatprep.subr.bf16.mxu0 %v6683_v32  ;;  %v6841_v58 = vld [vmem:[#allocation5 + $0x14a8] sm:$0xff]  ;;  %v6843_v32 = vld [vmem:[#allocation5 + $0x14b8] sm:$0xff] }
 0xae7   : > { %7266 = vmatpush1.bf16.msra.mxu1 %v6680_v41  ;;  %7389 = vmatpush1.bf16.msra.mxu0 %v6682_v8  ;;  %v6840_v41 = vld [vmem:[#allocation5 + $0x14a0] sm:$0xff]  ;;  %v6842_v8 = vld [vmem:[#allocation5 + $0x14b0] sm:$0xff] }
 0xae8   : > { %7276 = vmatprep.subr.bf16.mxu1 %v6697_v63  ;;  %7399 = vmatprep.subr.bf16.mxu0 %v6699_v9  ;;  %v6857_v63 = vld [vmem:[#allocation5 + $0x1528] sm:$0xff]  ;;  %v6859_v9 = vld [vmem:[#allocation5 + $0x1538] sm:$0xff] }
 0xaea   : > { %7268 = vmatmul.mubr.bf16.vlgmr.msra.gmra.mrb[52].mxu1 %v13053_v21  ;;  %7391 = vmatmul.mubr.bf16.vlgmr.msra.gmra.mrb[24].mxu0 %v13053_v21 }
 0xaeb   : > { %7277 = vmatpush1.bf16.msra.mxu1 %v6696_v11  ;;  %7400 = vmatpush1.bf16.msra.mxu0 %v6698_v61  ;;  %v6856_v11 = vld [vmem:[#allocation5 + $0x1520] sm:$0xff]  ;;  %v6858_v61 = vld [vmem:[#allocation5 + $0x1530] sm:$0xff] }
 0xaec   : > { %7278 = vmatprep.subr.bf16.mxu1 %v6713_v12  ;;  %7401 = vmatprep.subr.bf16.mxu0 %v6715_v24  ;;  %v6873_v12 = vld [vmem:[#allocation5 + $0x15a8] sm:$0xff]  ;;  %v6875_v24 = vld [vmem:[#allocation5 + $0x15b8] sm:$0xff] }
 0xaed   : > { %7308 = vmatprep.mubr.bf16.mxu1 %v13057_v0  ;;  %7431 = vmatprep.mubr.bf16.mxu0 %v13057_v0 }
 0xaef   : > { %7279 = vmatpush1.bf16.msra.mxu1 %v6712_v30  ;;  %7402 = vmatpush1.bf16.msra.mxu0 %v6714_v19  ;;  %v6872_v30 = vld [vmem:[#allocation5 + $0x15a0] sm:$0xff]  ;;  %v6874_v19 = vld [vmem:[#allocation5 + $0x15b0] sm:$0xff] }
 0xaf0   : > { %7280 = vmatprep.subr.bf16.mxu1 %v6729_v28  ;;  %7403 = vmatprep.subr.bf16.mxu0 %v6731_v18  ;;  %v6889_v28 = vld [vmem:[#allocation5 + $0x1628] sm:$0xff]  ;;  %v6891_v18 = vld [vmem:[#allocation5 + $0x1638] sm:$0xff] }
 0xaf3   : > { %7281 = vmatpush1.bf16.msra.mxu1 %v6728_v39  ;;  %7404 = vmatpush1.bf16.msra.mxu0 %v6730_v20  ;;  %v6888_v39 = vld [vmem:[#allocation5 + $0x1620] sm:$0xff]  ;;  %v6890_v20 = vld [vmem:[#allocation5 + $0x1630] sm:$0xff] }
 0xaf4   : > { %7282 = vmatprep.subr.bf16.mxu1 %v6745_v45  ;;  %7405 = vmatprep.subr.bf16.mxu0 %v6747_v37  ;;  %v6905_v45 = vld [vmem:[#allocation5 + $0x16a8] sm:$0xff]  ;;  %v6907_v37 = vld [vmem:[#allocation5 + $0x16b8] sm:$0xff] }
 0xaf7   : > { %7283 = vmatpush1.bf16.msra.mxu1 %v6744_v14  ;;  %7406 = vmatpush1.bf16.msra.mxu0 %v6746_v50  ;;  %v6904_v14 = vld [vmem:[#allocation5 + $0x16a0] sm:$0xff]  ;;  %v6906_v50 = vld [vmem:[#allocation5 + $0x16b0] sm:$0xff] }
 0xaf8   : > { %7284 = vmatprep.subr.bf16.mxu1 %v6761_v51  ;;  %7407 = vmatprep.subr.bf16.mxu0 %v6763_v22  ;;  %v6921_v51 = vld [vmem:[#allocation5 + $0x1728] sm:$0xff]  ;;  %v6923_v22 = vld [vmem:[#allocation5 + $0x1738] sm:$0xff] }
 0xafb   : > { %7285 = vmatpush1.bf16.msra.mxu1 %v6760_v7  ;;  %7408 = vmatpush1.bf16.msra.mxu0 %v6762_v31  ;;  %v6920_v7 = vld [vmem:[#allocation5 + $0x1720] sm:$0xff]  ;;  %v6922_v31 = vld [vmem:[#allocation5 + $0x1730] sm:$0xff] }
 0xafc   : > { %7286 = vmatprep.subr.bf16.mxu1 %v6777_v34  ;;  %7409 = vmatprep.subr.bf16.mxu0 %v6779_v13  ;;  %v6937_v34 = vld [vmem:[#allocation5 + $0x17a8] sm:$0xff]  ;;  %v6939_v13 = vld [vmem:[#allocation5 + $0x17b8] sm:$0xff] }
 0xaff   : > { %7287 = vmatpush1.bf16.msra.mxu1 %v6776_v52  ;;  %7410 = vmatpush1.bf16.msra.mxu0 %v6778_v40  ;;  %v6936_v52 = vld [vmem:[#allocation5 + $0x17a0] sm:$0xff]  ;;  %v6938_v40 = vld [vmem:[#allocation5 + $0x17b0] sm:$0xff] }
 0xb00   : > { %7288 = vmatprep.subr.bf16.mxu1 %v6793_v42  ;;  %7411 = vmatprep.subr.bf16.mxu0 %v6795_v49  ;;  %v6189_v42 = vld [vmem:[#allocation5 + $0x48] sm:$0xff]  ;;  %v6191_v49 = vld [vmem:[#allocation5 + $0x58] sm:$0xff] }
 0xb03   : > { %7289 = vmatpush1.bf16.msra.mxu1 %v6792_v1  ;;  %7412 = vmatpush1.bf16.msra.mxu0 %v6794_v26  ;;  %v6188_v1 = vld [vmem:[#allocation5 + $0x40] sm:$0xff]  ;;  %v6190_v26 = vld [vmem:[#allocation5 + $0x50] sm:$0xff] }
 0xb04   : > { %7290 = vmatprep.subr.bf16.mxu1 %v6809_v57  ;;  %7413 = vmatprep.subr.bf16.mxu0 %v6811_v4  ;;  %v6205_v57 = vld [vmem:[#allocation5 + $0xc8] sm:$0xff]  ;;  %v6207_v4 = vld [vmem:[#allocation5 + $0xd8] sm:$0xff] }
 0xb07   : > { %7291 = vmatpush1.bf16.msra.mxu1 %v6808_v10  ;;  %7414 = vmatpush1.bf16.msra.mxu0 %v6810_v17  ;;  %v6204_v10 = vld [vmem:[#allocation5 + $0xc0] sm:$0xff]  ;;  %v6206_v17 = vld [vmem:[#allocation5 + $0xd0] sm:$0xff] }
 0xb08   : > { %7292 = vmatprep.subr.bf16.mxu1 %v6825_v6  ;;  %7415 = vmatprep.subr.bf16.mxu0 %v6827_v46  ;;  %v6221_v6 = vld [vmem:[#allocation5 + $0x148] sm:$0xff]  ;;  %v6223_v46 = vld [vmem:[#allocation5 + $0x158] sm:$0xff] }
 0xb0b   : > { %7293 = vmatpush1.bf16.msra.mxu1 %v6824_v36  ;;  %7416 = vmatpush1.bf16.msra.mxu0 %v6826_v16  ;;  %v6220_v36 = vld [vmem:[#allocation5 + $0x140] sm:$0xff]  ;;  %v6222_v16 = vld [vmem:[#allocation5 + $0x150] sm:$0xff] }
 0xb0c   : > { %7294 = vmatprep.subr.bf16.mxu1 %v6841_v58  ;;  %7417 = vmatprep.subr.bf16.mxu0 %v6843_v32  ;;  %v6237_v58 = vld [vmem:[#allocation5 + $0x1c8] sm:$0xff]  ;;  %v6239_v32 = vld [vmem:[#allocation5 + $0x1d8] sm:$0xff] }
 0xb0f   : > { %7295 = vmatpush1.bf16.msra.mxu1 %v6840_v41  ;;  %7418 = vmatpush1.bf16.msra.mxu0 %v6842_v8  ;;  %v6236_v41 = vld [vmem:[#allocation5 + $0x1c0] sm:$0xff]  ;;  %v6238_v8 = vld [vmem:[#allocation5 + $0x1d0] sm:$0xff] }
 0xb10   : > { %7296 = vmatprep.subr.bf16.mxu1 %v6857_v63  ;;  %7419 = vmatprep.subr.bf16.mxu0 %v6859_v9  ;;  %v6253_v63 = vld [vmem:[#allocation5 + $0x248] sm:$0xff]  ;;  %v6255_v9 = vld [vmem:[#allocation5 + $0x258] sm:$0xff] }
 0xb13   : > { %7297 = vmatpush1.bf16.msra.mxu1 %v6856_v11  ;;  %7420 = vmatpush1.bf16.msra.mxu0 %v6858_v61  ;;  %v6252_v11 = vld [vmem:[#allocation5 + $0x240] sm:$0xff]  ;;  %v6254_v61 = vld [vmem:[#allocation5 + $0x250] sm:$0xff] }
 0xb14   : > { %7298 = vmatprep.subr.bf16.mxu1 %v6873_v12  ;;  %7421 = vmatprep.subr.bf16.mxu0 %v6875_v24  ;;  %v6269_v12 = vld [vmem:[#allocation5 + $0x2c8] sm:$0xff]  ;;  %v6271_v24 = vld [vmem:[#allocation5 + $0x2d8] sm:$0xff] }
 0xb17   : > { %7299 = vmatpush1.bf16.msra.mxu1 %v6872_v30  ;;  %7422 = vmatpush1.bf16.msra.mxu0 %v6874_v19  ;;  %v6268_v30 = vld [vmem:[#allocation5 + $0x2c0] sm:$0xff]  ;;  %v6270_v19 = vld [vmem:[#allocation5 + $0x2d0] sm:$0xff] }
 0xb18   : > { %7300 = vmatprep.subr.bf16.mxu1 %v6889_v28  ;;  %7423 = vmatprep.subr.bf16.mxu0 %v6891_v18 }
 0xb1b   : > { %7301 = vmatpush1.bf16.msra.mxu1 %v6888_v39  ;;  %7424 = vmatpush1.bf16.msra.mxu0 %v6890_v20  ;;  %v6285_v39 = vld [vmem:[#allocation5 + $0x348] sm:$0xff]  ;;  %v6287_v20 = vld [vmem:[#allocation5 + $0x358] sm:$0xff] }
 0xb1c   : > { %7302 = vmatprep.subr.bf16.mxu1 %v6905_v45  ;;  %7425 = vmatprep.subr.bf16.mxu0 %v6907_v37 }
 0xb1f   : > { %7303 = vmatpush1.bf16.msra.mxu1 %v6904_v14  ;;  %7426 = vmatpush1.bf16.msra.mxu0 %v6906_v50 }
 0xb20   : > { %7304 = vmatprep.subr.bf16.mxu1 %v6921_v51  ;;  %7427 = vmatprep.subr.bf16.mxu0 %v6923_v22 }
 0xb23   : > { %7305 = vmatpush1.bf16.msra.mxu1 %v6920_v7  ;;  %7428 = vmatpush1.bf16.msra.mxu0 %v6922_v31 }
 0xb24   : > { %7306 = vmatprep.subr.bf16.mxu1 %v6937_v34  ;;  %7429 = vmatprep.subr.bf16.mxu0 %v6939_v13  ;;  %v6284_v34 = vld [vmem:[#allocation5 + $0x340] sm:$0xff]  ;;  %v6286_v13 = vld [vmem:[#allocation5 + $0x350] sm:$0xff] }
 0xb27   : > { %7307 = vmatpush1.bf16.msra.mxu1 %v6936_v52  ;;  %7430 = vmatpush1.bf16.msra.mxu0 %v6938_v40  ;;  %v6301_v52 = vld [vmem:[#allocation5 + $0x3c8] sm:$0xff]  ;;  %v6303_v40 = vld [vmem:[#allocation5 + $0x3d8] sm:$0xff] }
 0xb28   : > { %7440 = vmatprep.subr.bf16.mxu1 %v6189_v42  ;;  %7563 = vmatprep.subr.bf16.mxu0 %v6191_v49  ;;  %v6300_v42 = vld [vmem:[#allocation5 + $0x3c0] sm:$0xff]  ;;  %v6302_v49 = vld [vmem:[#allocation5 + $0x3d0] sm:$0xff] }
 0xb2a   : > { %7309 = vmatmul.mubr.bf16.vlgmr.msra.gmra.mrb[52].mxu1 %v13065_v47  ;;  %7432 = vmatmul.mubr.bf16.vlgmr.msra.gmra.mrb[24].mxu0 %v13065_v47 }
 0xb2b   : > { %7441 = vmatpush1.bf16.msra.mxu1 %v6188_v1  ;;  %7564 = vmatpush1.bf16.msra.mxu0 %v6190_v26  ;;  %v6317_v1 = vld [vmem:[#allocation5 + $0x448] sm:$0xff]  ;;  %v6319_v26 = vld [vmem:[#allocation5 + $0x458] sm:$0xff] }
 0xb2c   : > { %7442 = vmatprep.subr.bf16.mxu1 %v6205_v57  ;;  %7565 = vmatprep.subr.bf16.mxu0 %v6207_v4  ;;  %v6316_v57 = vld [vmem:[#allocation5 + $0x440] sm:$0xff]  ;;  %v6318_v4 = vld [vmem:[#allocation5 + $0x450] sm:$0xff] }
 0xb2d   : > { %7472 = vmatprep.mubr.bf16.mxu1 %v13035_v60  ;;  %7595 = vmatprep.mubr.bf16.mxu0 %v13035_v60 }
 0xb2f   : > { %7443 = vmatpush1.bf16.msra.mxu1 %v6204_v10  ;;  %7566 = vmatpush1.bf16.msra.mxu0 %v6206_v17  ;;  %v6333_v10 = vld [vmem:[#allocation5 + $0x4c8] sm:$0xff]  ;;  %v6335_v17 = vld [vmem:[#allocation5 + $0x4d8] sm:$0xff] }
 0xb30   : > { %7444 = vmatprep.subr.bf16.mxu1 %v6221_v6  ;;  %7567 = vmatprep.subr.bf16.mxu0 %v6223_v46  ;;  %v6332_v6 = vld [vmem:[#allocation5 + $0x4c0] sm:$0xff]  ;;  %v6334_v46 = vld [vmem:[#allocation5 + $0x4d0] sm:$0xff] }
 0xb33   : > { %7445 = vmatpush1.bf16.msra.mxu1 %v6220_v36  ;;  %7568 = vmatpush1.bf16.msra.mxu0 %v6222_v16  ;;  %v6349_v36 = vld [vmem:[#allocation5 + $0x548] sm:$0xff]  ;;  %v6351_v16 = vld [vmem:[#allocation5 + $0x558] sm:$0xff] }
 0xb34   : > { %7446 = vmatprep.subr.bf16.mxu1 %v6237_v58  ;;  %7569 = vmatprep.subr.bf16.mxu0 %v6239_v32  ;;  %v6348_v58 = vld [vmem:[#allocation5 + $0x540] sm:$0xff]  ;;  %v6350_v32 = vld [vmem:[#allocation5 + $0x550] sm:$0xff] }
 0xb37   : > { %7447 = vmatpush1.bf16.msra.mxu1 %v6236_v41  ;;  %7570 = vmatpush1.bf16.msra.mxu0 %v6238_v8  ;;  %v6365_v41 = vld [vmem:[#allocation5 + $0x5c8] sm:$0xff]  ;;  %v6367_v8 = vld [vmem:[#allocation5 + $0x5d8] sm:$0xff] }
 0xb38   : > { %7448 = vmatprep.subr.bf16.mxu1 %v6253_v63  ;;  %7571 = vmatprep.subr.bf16.mxu0 %v6255_v9  ;;  %v6364_v63 = vld [vmem:[#allocation5 + $0x5c0] sm:$0xff]  ;;  %v6366_v9 = vld [vmem:[#allocation5 + $0x5d0] sm:$0xff] }
 0xb3b   : > { %7449 = vmatpush1.bf16.msra.mxu1 %v6252_v11  ;;  %7572 = vmatpush1.bf16.msra.mxu0 %v6254_v61  ;;  %v6381_v11 = vld [vmem:[#allocation5 + $0x648] sm:$0xff]  ;;  %v6383_v61 = vld [vmem:[#allocation5 + $0x658] sm:$0xff] }
 0xb3c   : > { %7450 = vmatprep.subr.bf16.mxu1 %v6269_v12  ;;  %7573 = vmatprep.subr.bf16.mxu0 %v6271_v24  ;;  %v6380_v12 = vld [vmem:[#allocation5 + $0x640] sm:$0xff]  ;;  %v6382_v24 = vld [vmem:[#allocation5 + $0x650] sm:$0xff] }
 0xb3d   : > { %v13083_v28 = vpop.f32.mrb[48].mxu1  ;;  %v13085_v18 = vpop.f32.mrb[20].mxu0 }
 0xb3e   : > { %v13087_v45 = vpop.f32.mrb[49].mxu1  ;;  %v13089_v37 = vpop.f32.mrb[21].mxu0 }
 0xb3f   : > { %v7948_v14 = vcombine.low %v13083_v28, %v13087_v45  ;;  %v7949_v50 = vcombine.low %v13085_v18, %v13089_v37  ;;  %v7068_v51 = vpop.f32.mrb[50].mxu1  ;;  %v7191_v22 = vpop.f32.mrb[22].mxu0  ;;  %7451 = vmatpush1.bf16.msra.mxu1 %v6268_v30  ;;  %7574 = vmatpush1.bf16.msra.mxu0 %v6270_v19  ;;  %v6397_v30 = vld [vmem:[#allocation5 + $0x6c8] sm:$0xff]  ;;  %v6399_v19 = vld [vmem:[#allocation5 + $0x6d8] sm:$0xff]  ;;  %v8348_v18 = vld [vmem:[#allocation5 + $0x23c0] sm:$0xff] }
 0xb40   : > { %v7069_v7 = vpop.f32.mrb[51].mxu1  ;;  %v7192_v31 = vpop.f32.mrb[23].mxu0  ;;  %7452 = vmatprep.subr.bf16.mxu1 %v6285_v39  ;;  %7575 = vmatprep.subr.bf16.mxu0 %v6287_v20  ;;  %v6396_v39 = vld [vmem:[#allocation5 + $0x6c0] sm:$0xff]  ;;  %v6398_v20 = vld [vmem:[#allocation5 + $0x6d0] sm:$0xff]  ;;  %v6413_v51 = vld [vmem:[#allocation5 + $0x748] sm:$0xff] }
 0xb41   : > { %v6415_v22 = vld [vmem:[#allocation5 + $0x758] sm:$0xff]  ;;  %v6412_v7 = vld [vmem:[#allocation5 + $0x740] sm:$0xff]  ;;  %v6414_v31 = vld [vmem:[#allocation5 + $0x750] sm:$0xff] }
 0xb42   : > { %v8350_v37 = vld [vmem:[#allocation5 + $0x23d0] sm:$0xff] }
 0xb43   : > { %7453 = vmatpush1.bf16.msra.mxu1 %v6284_v34  ;;  %7576 = vmatpush1.bf16.msra.mxu0 %v6286_v13  ;;  %v6429_v34 = vld [vmem:[#allocation5 + $0x7c8] sm:$0xff]  ;;  %v6431_v13 = vld [vmem:[#allocation5 + $0x7d8] sm:$0xff] }
 0xb44   : > { %7454 = vmatprep.subr.bf16.mxu1 %v6301_v52  ;;  %7577 = vmatprep.subr.bf16.mxu0 %v6303_v40  ;;  %v6428_v52 = vld [vmem:[#allocation5 + $0x7c0] sm:$0xff]  ;;  %v6430_v40 = vld [vmem:[#allocation5 + $0x7d0] sm:$0xff] }
 0xb47   : > { %7455 = vmatpush1.bf16.msra.mxu1 %v6300_v42  ;;  %7578 = vmatpush1.bf16.msra.mxu0 %v6302_v49  ;;  %v6445_v42 = vld [vmem:[#allocation5 + $0x848] sm:$0xff]  ;;  %v6447_v49 = vld [vmem:[#allocation5 + $0x858] sm:$0xff] }
 0xb48   : > { %7456 = vmatprep.subr.bf16.mxu1 %v6317_v1  ;;  %7579 = vmatprep.subr.bf16.mxu0 %v6319_v26  ;;  %v6444_v1 = vld [vmem:[#allocation5 + $0x840] sm:$0xff]  ;;  %v6446_v26 = vld [vmem:[#allocation5 + $0x850] sm:$0xff] }
 0xb4b   : > { %7457 = vmatpush1.bf16.msra.mxu1 %v6316_v57  ;;  %7580 = vmatpush1.bf16.msra.mxu0 %v6318_v4  ;;  %v6461_v57 = vld [vmem:[#allocation5 + $0x8c8] sm:$0xff]  ;;  %v6463_v4 = vld [vmem:[#allocation5 + $0x8d8] sm:$0xff] }
 0xb4c   : > { %7458 = vmatprep.subr.bf16.mxu1 %v6333_v10  ;;  %7581 = vmatprep.subr.bf16.mxu0 %v6335_v17  ;;  %v6460_v10 = vld [vmem:[#allocation5 + $0x8c0] sm:$0xff]  ;;  %v6462_v17 = vld [vmem:[#allocation5 + $0x8d0] sm:$0xff] }
 0xb4f   : > { %7459 = vmatpush1.bf16.msra.mxu1 %v6332_v6  ;;  %7582 = vmatpush1.bf16.msra.mxu0 %v6334_v46  ;;  %v6477_v6 = vld [vmem:[#allocation5 + $0x948] sm:$0xff]  ;;  %v6479_v46 = vld [vmem:[#allocation5 + $0x958] sm:$0xff] }
 0xb50   : > { %7460 = vmatprep.subr.bf16.mxu1 %v6349_v36  ;;  %7583 = vmatprep.subr.bf16.mxu0 %v6351_v16  ;;  %v6476_v36 = vld [vmem:[#allocation5 + $0x940] sm:$0xff]  ;;  %v6478_v16 = vld [vmem:[#allocation5 + $0x950] sm:$0xff] }
 0xb53   : > { %7461 = vmatpush1.bf16.msra.mxu1 %v6348_v58  ;;  %7584 = vmatpush1.bf16.msra.mxu0 %v6350_v32  ;;  %v6493_v58 = vld [vmem:[#allocation5 + $0x9c8] sm:$0xff]  ;;  %v6495_v32 = vld [vmem:[#allocation5 + $0x9d8] sm:$0xff] }
 0xb54   : > { %7462 = vmatprep.subr.bf16.mxu1 %v6365_v41  ;;  %7585 = vmatprep.subr.bf16.mxu0 %v6367_v8  ;;  %v6492_v41 = vld [vmem:[#allocation5 + $0x9c0] sm:$0xff]  ;;  %v6494_v8 = vld [vmem:[#allocation5 + $0x9d0] sm:$0xff] }
 0xb57   : > { %7463 = vmatpush1.bf16.msra.mxu1 %v6364_v63  ;;  %7586 = vmatpush1.bf16.msra.mxu0 %v6366_v9  ;;  %v6509_v63 = vld [vmem:[#allocation5 + $0xa48] sm:$0xff]  ;;  %v6511_v9 = vld [vmem:[#allocation5 + $0xa58] sm:$0xff] }
 0xb58   : > { %7464 = vmatprep.subr.bf16.mxu1 %v6381_v11  ;;  %7587 = vmatprep.subr.bf16.mxu0 %v6383_v61  ;;  %v6508_v11 = vld [vmem:[#allocation5 + $0xa40] sm:$0xff]  ;;  %v6510_v61 = vld [vmem:[#allocation5 + $0xa50] sm:$0xff] }
 0xb5b   : > { %7465 = vmatpush1.bf16.msra.mxu1 %v6380_v12  ;;  %7588 = vmatpush1.bf16.msra.mxu0 %v6382_v24  ;;  %v6525_v12 = vld [vmem:[#allocation5 + $0xac8] sm:$0xff]  ;;  %v6527_v24 = vld [vmem:[#allocation5 + $0xad8] sm:$0xff] }
 0xb5c   : > { %7466 = vmatprep.subr.bf16.mxu1 %v6397_v30  ;;  %7589 = vmatprep.subr.bf16.mxu0 %v6399_v19  ;;  %v6524_v30 = vld [vmem:[#allocation5 + $0xac0] sm:$0xff]  ;;  %v6526_v19 = vld [vmem:[#allocation5 + $0xad0] sm:$0xff] }
 0xb5f   : > { %7467 = vmatpush1.bf16.msra.mxu1 %v6396_v39  ;;  %7590 = vmatpush1.bf16.msra.mxu0 %v6398_v20  ;;  %v6541_v39 = vld [vmem:[#allocation5 + $0xb48] sm:$0xff]  ;;  %v6543_v20 = vld [vmem:[#allocation5 + $0xb58] sm:$0xff] }
 0xb60   : > { %7468 = vmatprep.subr.bf16.mxu1 %v6413_v51  ;;  %7591 = vmatprep.subr.bf16.mxu0 %v6415_v22  ;;  %v6540_v51 = vld [vmem:[#allocation5 + $0xb40] sm:$0xff]  ;;  %v6542_v22 = vld [vmem:[#allocation5 + $0xb50] sm:$0xff] }
 0xb63   : > { %7469 = vmatpush1.bf16.msra.mxu1 %v6412_v7  ;;  %7592 = vmatpush1.bf16.msra.mxu0 %v6414_v31  ;;  %v6557_v7 = vld [vmem:[#allocation5 + $0xbc8] sm:$0xff]  ;;  %v6559_v31 = vld [vmem:[#allocation5 + $0xbd8] sm:$0xff] }
 0xb64   : > { %7470 = vmatprep.subr.bf16.mxu1 %v6429_v34  ;;  %7593 = vmatprep.subr.bf16.mxu0 %v6431_v13  ;;  %v6556_v34 = vld [vmem:[#allocation5 + $0xbc0] sm:$0xff]  ;;  %v6558_v13 = vld [vmem:[#allocation5 + $0xbd0] sm:$0xff] }
 0xb67   : > { %7471 = vmatpush1.bf16.msra.mxu1 %v6428_v52  ;;  %7594 = vmatpush1.bf16.msra.mxu0 %v6430_v40  ;;  %v6573_v52 = vld [vmem:[#allocation5 + $0xc48] sm:$0xff]  ;;  %v6575_v40 = vld [vmem:[#allocation5 + $0xc58] sm:$0xff] }
 0xb68   : > { %7481 = vmatprep.subr.bf16.mxu1 %v6445_v42  ;;  %7604 = vmatprep.subr.bf16.mxu0 %v6447_v49  ;;  %v6572_v42 = vld [vmem:[#allocation5 + $0xc40] sm:$0xff]  ;;  %v6574_v49 = vld [vmem:[#allocation5 + $0xc50] sm:$0xff] }
 0xb6a   : > { %7473 = vmatmul.mubr.bf16.vlgmr.msra.gmra.mrb[56].mxu1 %v13041_v56  ;;  %7596 = vmatmul.mubr.bf16.vlgmr.msra.gmra.mrb[28].mxu0 %v13041_v56 }
 0xb6b   : > { %7482 = vmatpush1.bf16.msra.mxu1 %v6444_v1  ;;  %7605 = vmatpush1.bf16.msra.mxu0 %v6446_v26  ;;  %v6589_v1 = vld [vmem:[#allocation5 + $0xcc8] sm:$0xff]  ;;  %v6591_v26 = vld [vmem:[#allocation5 + $0xcd8] sm:$0xff] }
 0xb6c   : > { %7483 = vmatprep.subr.bf16.mxu1 %v6461_v57  ;;  %7606 = vmatprep.subr.bf16.mxu0 %v6463_v4  ;;  %v6588_v57 = vld [vmem:[#allocation5 + $0xcc0] sm:$0xff]  ;;  %v6590_v4 = vld [vmem:[#allocation5 + $0xcd0] sm:$0xff] }
 0xb6d   : > { %7513 = vmatprep.mubr.bf16.mxu1 %v13045_v5  ;;  %7636 = vmatprep.mubr.bf16.mxu0 %v13045_v5 }
 0xb6f   : > { %7484 = vmatpush1.bf16.msra.mxu1 %v6460_v10  ;;  %7607 = vmatpush1.bf16.msra.mxu0 %v6462_v17  ;;  %v6605_v10 = vld [vmem:[#allocation5 + $0xd48] sm:$0xff]  ;;  %v6607_v17 = vld [vmem:[#allocation5 + $0xd58] sm:$0xff] }
 0xb70   : > { %7485 = vmatprep.subr.bf16.mxu1 %v6477_v6  ;;  %7608 = vmatprep.subr.bf16.mxu0 %v6479_v46  ;;  %v6604_v6 = vld [vmem:[#allocation5 + $0xd40] sm:$0xff]  ;;  %v6606_v46 = vld [vmem:[#allocation5 + $0xd50] sm:$0xff] }
 0xb73   : > { %7486 = vmatpush1.bf16.msra.mxu1 %v6476_v36  ;;  %7609 = vmatpush1.bf16.msra.mxu0 %v6478_v16  ;;  %v6621_v36 = vld [vmem:[#allocation5 + $0xdc8] sm:$0xff]  ;;  %v6623_v16 = vld [vmem:[#allocation5 + $0xdd8] sm:$0xff] }
 0xb74   : > { %7487 = vmatprep.subr.bf16.mxu1 %v6493_v58  ;;  %7610 = vmatprep.subr.bf16.mxu0 %v6495_v32  ;;  %v6620_v58 = vld [vmem:[#allocation5 + $0xdc0] sm:$0xff]  ;;  %v6622_v32 = vld [vmem:[#allocation5 + $0xdd0] sm:$0xff] }
 0xb77   : > { %7488 = vmatpush1.bf16.msra.mxu1 %v6492_v41  ;;  %7611 = vmatpush1.bf16.msra.mxu0 %v6494_v8  ;;  %v6637_v41 = vld [vmem:[#allocation5 + $0xe48] sm:$0xff]  ;;  %v6639_v8 = vld [vmem:[#allocation5 + $0xe58] sm:$0xff] }
 0xb78   : > { %7489 = vmatprep.subr.bf16.mxu1 %v6509_v63  ;;  %7612 = vmatprep.subr.bf16.mxu0 %v6511_v9  ;;  %v6636_v63 = vld [vmem:[#allocation5 + $0xe40] sm:$0xff]  ;;  %v6638_v9 = vld [vmem:[#allocation5 + $0xe50] sm:$0xff] }
 0xb7b   : > { %7490 = vmatpush1.bf16.msra.mxu1 %v6508_v11  ;;  %7613 = vmatpush1.bf16.msra.mxu0 %v6510_v61  ;;  %v6653_v11 = vld [vmem:[#allocation5 + $0xec8] sm:$0xff]  ;;  %v6655_v61 = vld [vmem:[#allocation5 + $0xed8] sm:$0xff] }
 0xb7c   : > { %7491 = vmatprep.subr.bf16.mxu1 %v6525_v12  ;;  %7614 = vmatprep.subr.bf16.mxu0 %v6527_v24  ;;  %v6652_v12 = vld [vmem:[#allocation5 + $0xec0] sm:$0xff]  ;;  %v6654_v24 = vld [vmem:[#allocation5 + $0xed0] sm:$0xff] }
 0xb7f   : > { %7492 = vmatpush1.bf16.msra.mxu1 %v6524_v30  ;;  %7615 = vmatpush1.bf16.msra.mxu0 %v6526_v19  ;;  %v6669_v30 = vld [vmem:[#allocation5 + $0xf48] sm:$0xff]  ;;  %v6671_v19 = vld [vmem:[#allocation5 + $0xf58] sm:$0xff] }
 0xb80   : > { %7493 = vmatprep.subr.bf16.mxu1 %v6541_v39  ;;  %7616 = vmatprep.subr.bf16.mxu0 %v6543_v20  ;;  %v6668_v39 = vld [vmem:[#allocation5 + $0xf40] sm:$0xff]  ;;  %v6670_v20 = vld [vmem:[#allocation5 + $0xf50] sm:$0xff] }
 0xb83   : > { %7494 = vmatpush1.bf16.msra.mxu1 %v6540_v51  ;;  %7617 = vmatpush1.bf16.msra.mxu0 %v6542_v22  ;;  %v6685_v51 = vld [vmem:[#allocation5 + $0xfc8] sm:$0xff]  ;;  %v6687_v22 = vld [vmem:[#allocation5 + $0xfd8] sm:$0xff] }
 0xb84   : > { %7495 = vmatprep.subr.bf16.mxu1 %v6557_v7  ;;  %7618 = vmatprep.subr.bf16.mxu0 %v6559_v31  ;;  %v6684_v7 = vld [vmem:[#allocation5 + $0xfc0] sm:$0xff]  ;;  %v6686_v31 = vld [vmem:[#allocation5 + $0xfd0] sm:$0xff] }
 0xb87   : > { %7496 = vmatpush1.bf16.msra.mxu1 %v6556_v34  ;;  %7619 = vmatpush1.bf16.msra.mxu0 %v6558_v13  ;;  %v6701_v34 = vld [vmem:[#allocation5 + $0x1048] sm:$0xff]  ;;  %v6703_v13 = vld [vmem:[#allocation5 + $0x1058] sm:$0xff] }
 0xb88   : > { %7497 = vmatprep.subr.bf16.mxu1 %v6573_v52  ;;  %7620 = vmatprep.subr.bf16.mxu0 %v6575_v40  ;;  %v6700_v52 = vld [vmem:[#allocation5 + $0x1040] sm:$0xff]  ;;  %v6702_v40 = vld [vmem:[#allocation5 + $0x1050] sm:$0xff] }
 0xb8b   : > { %7498 = vmatpush1.bf16.msra.mxu1 %v6572_v42  ;;  %7621 = vmatpush1.bf16.msra.mxu0 %v6574_v49  ;;  %v6717_v42 = vld [vmem:[#allocation5 + $0x10c8] sm:$0xff]  ;;  %v6719_v49 = vld [vmem:[#allocation5 + $0x10d8] sm:$0xff] }
 0xb8c   : > { %7499 = vmatprep.subr.bf16.mxu1 %v6589_v1  ;;  %7622 = vmatprep.subr.bf16.mxu0 %v6591_v26  ;;  %v6716_v1 = vld [vmem:[#allocation5 + $0x10c0] sm:$0xff]  ;;  %v6718_v26 = vld [vmem:[#allocation5 + $0x10d0] sm:$0xff] }
 0xb8f   : > { %7500 = vmatpush1.bf16.msra.mxu1 %v6588_v57  ;;  %7623 = vmatpush1.bf16.msra.mxu0 %v6590_v4  ;;  %v6733_v57 = vld [vmem:[#allocation5 + $0x1148] sm:$0xff]  ;;  %v6735_v4 = vld [vmem:[#allocation5 + $0x1158] sm:$0xff] }
 0xb90   : > { %7501 = vmatprep.subr.bf16.mxu1 %v6605_v10  ;;  %7624 = vmatprep.subr.bf16.mxu0 %v6607_v17  ;;  %v6732_v10 = vld [vmem:[#allocation5 + $0x1140] sm:$0xff]  ;;  %v6734_v17 = vld [vmem:[#allocation5 + $0x1150] sm:$0xff] }
 0xb93   : > { %7502 = vmatpush1.bf16.msra.mxu1 %v6604_v6  ;;  %7625 = vmatpush1.bf16.msra.mxu0 %v6606_v46  ;;  %v6749_v6 = vld [vmem:[#allocation5 + $0x11c8] sm:$0xff]  ;;  %v6751_v46 = vld [vmem:[#allocation5 + $0x11d8] sm:$0xff] }
 0xb94   : > { %7503 = vmatprep.subr.bf16.mxu1 %v6621_v36  ;;  %7626 = vmatprep.subr.bf16.mxu0 %v6623_v16  ;;  %v6748_v36 = vld [vmem:[#allocation5 + $0x11c0] sm:$0xff]  ;;  %v6750_v16 = vld [vmem:[#allocation5 + $0x11d0] sm:$0xff] }
 0xb97   : > { %7504 = vmatpush1.bf16.msra.mxu1 %v6620_v58  ;;  %7627 = vmatpush1.bf16.msra.mxu0 %v6622_v32  ;;  %v6765_v58 = vld [vmem:[#allocation5 + $0x1248] sm:$0xff]  ;;  %v6767_v32 = vld [vmem:[#allocation5 + $0x1258] sm:$0xff] }
 0xb98   : > { %7505 = vmatprep.subr.bf16.mxu1 %v6637_v41  ;;  %7628 = vmatprep.subr.bf16.mxu0 %v6639_v8  ;;  %v6764_v41 = vld [vmem:[#allocation5 + $0x1240] sm:$0xff]  ;;  %v6766_v8 = vld [vmem:[#allocation5 + $0x1250] sm:$0xff] }
 0xb9b   : > { %7506 = vmatpush1.bf16.msra.mxu1 %v6636_v63  ;;  %7629 = vmatpush1.bf16.msra.mxu0 %v6638_v9  ;;  %v6781_v63 = vld [vmem:[#allocation5 + $0x12c8] sm:$0xff]  ;;  %v6783_v9 = vld [vmem:[#allocation5 + $0x12d8] sm:$0xff] }
 0xb9c   : > { %7507 = vmatprep.subr.bf16.mxu1 %v6653_v11  ;;  %7630 = vmatprep.subr.bf16.mxu0 %v6655_v61  ;;  %v6780_v11 = vld [vmem:[#allocation5 + $0x12c0] sm:$0xff]  ;;  %v6782_v61 = vld [vmem:[#allocation5 + $0x12d0] sm:$0xff] }
 0xb9f   : > { %7508 = vmatpush1.bf16.msra.mxu1 %v6652_v12  ;;  %7631 = vmatpush1.bf16.msra.mxu0 %v6654_v24  ;;  %v6797_v12 = vld [vmem:[#allocation5 + $0x1348] sm:$0xff]  ;;  %v6799_v24 = vld [vmem:[#allocation5 + $0x1358] sm:$0xff] }
 0xba0   : > { %7509 = vmatprep.subr.bf16.mxu1 %v6669_v30  ;;  %7632 = vmatprep.subr.bf16.mxu0 %v6671_v19  ;;  %v6796_v30 = vld [vmem:[#allocation5 + $0x1340] sm:$0xff]  ;;  %v6798_v19 = vld [vmem:[#allocation5 + $0x1350] sm:$0xff] }
 0xba3   : > { %7510 = vmatpush1.bf16.msra.mxu1 %v6668_v39  ;;  %7633 = vmatpush1.bf16.msra.mxu0 %v6670_v20  ;;  %v6813_v39 = vld [vmem:[#allocation5 + $0x13c8] sm:$0xff]  ;;  %v6815_v20 = vld [vmem:[#allocation5 + $0x13d8] sm:$0xff] }
 0xba4   : > { %7511 = vmatprep.subr.bf16.mxu1 %v6685_v51  ;;  %7634 = vmatprep.subr.bf16.mxu0 %v6687_v22  ;;  %v6812_v51 = vld [vmem:[#allocation5 + $0x13c0] sm:$0xff]  ;;  %v6814_v22 = vld [vmem:[#allocation5 + $0x13d0] sm:$0xff] }
 0xba7   : > { %7512 = vmatpush1.bf16.msra.mxu1 %v6684_v7  ;;  %7635 = vmatpush1.bf16.msra.mxu0 %v6686_v31  ;;  %v6829_v7 = vld [vmem:[#allocation5 + $0x1448] sm:$0xff]  ;;  %v6831_v31 = vld [vmem:[#allocation5 + $0x1458] sm:$0xff] }
 0xba8   : > { %7522 = vmatprep.subr.bf16.mxu1 %v6701_v34  ;;  %7645 = vmatprep.subr.bf16.mxu0 %v6703_v13  ;;  %v6828_v34 = vld [vmem:[#allocation5 + $0x1440] sm:$0xff]  ;;  %v6830_v13 = vld [vmem:[#allocation5 + $0x1450] sm:$0xff] }
 0xbaa   : > { %7514 = vmatmul.mubr.bf16.vlgmr.msra.gmra.mrb[56].mxu1 %v13053_v21  ;;  %7637 = vmatmul.mubr.bf16.vlgmr.msra.gmra.mrb[28].mxu0 %v13053_v21 }
 0xbab   : > { %7523 = vmatpush1.bf16.msra.mxu1 %v6700_v52  ;;  %7646 = vmatpush1.bf16.msra.mxu0 %v6702_v40  ;;  %v6845_v52 = vld [vmem:[#allocation5 + $0x14c8] sm:$0xff]  ;;  %v6847_v40 = vld [vmem:[#allocation5 + $0x14d8] sm:$0xff] }
 0xbac   : > { %7524 = vmatprep.subr.bf16.mxu1 %v6717_v42  ;;  %7647 = vmatprep.subr.bf16.mxu0 %v6719_v49  ;;  %v6844_v42 = vld [vmem:[#allocation5 + $0x14c0] sm:$0xff]  ;;  %v6846_v49 = vld [vmem:[#allocation5 + $0x14d0] sm:$0xff] }
 0xbad   : > { %7554 = vmatprep.mubr.bf16.mxu1 %v13057_v0  ;;  %7677 = vmatprep.mubr.bf16.mxu0 %v13057_v0 }
 0xbaf   : > { %7525 = vmatpush1.bf16.msra.mxu1 %v6716_v1  ;;  %7648 = vmatpush1.bf16.msra.mxu0 %v6718_v26  ;;  %v6861_v1 = vld [vmem:[#allocation5 + $0x1548] sm:$0xff]  ;;  %v6863_v26 = vld [vmem:[#allocation5 + $0x1558] sm:$0xff] }
 0xbb0   : > { %7526 = vmatprep.subr.bf16.mxu1 %v6733_v57  ;;  %7649 = vmatprep.subr.bf16.mxu0 %v6735_v4  ;;  %v6860_v57 = vld [vmem:[#allocation5 + $0x1540] sm:$0xff]  ;;  %v6862_v4 = vld [vmem:[#allocation5 + $0x1550] sm:$0xff] }
 0xbb3   : > { %7527 = vmatpush1.bf16.msra.mxu1 %v6732_v10  ;;  %7650 = vmatpush1.bf16.msra.mxu0 %v6734_v17  ;;  %v6877_v10 = vld [vmem:[#allocation5 + $0x15c8] sm:$0xff]  ;;  %v6879_v17 = vld [vmem:[#allocation5 + $0x15d8] sm:$0xff] }
 0xbb4   : > { %7528 = vmatprep.subr.bf16.mxu1 %v6749_v6  ;;  %7651 = vmatprep.subr.bf16.mxu0 %v6751_v46  ;;  %v6876_v6 = vld [vmem:[#allocation5 + $0x15c0] sm:$0xff]  ;;  %v6878_v46 = vld [vmem:[#allocation5 + $0x15d0] sm:$0xff] }
 0xbb7   : > { %7529 = vmatpush1.bf16.msra.mxu1 %v6748_v36  ;;  %7652 = vmatpush1.bf16.msra.mxu0 %v6750_v16  ;;  %v6893_v36 = vld [vmem:[#allocation5 + $0x1648] sm:$0xff]  ;;  %v6895_v16 = vld [vmem:[#allocation5 + $0x1658] sm:$0xff] }
 0xbb8   : > { %7530 = vmatprep.subr.bf16.mxu1 %v6765_v58  ;;  %7653 = vmatprep.subr.bf16.mxu0 %v6767_v32  ;;  %v6892_v58 = vld [vmem:[#allocation5 + $0x1640] sm:$0xff]  ;;  %v6894_v32 = vld [vmem:[#allocation5 + $0x1650] sm:$0xff] }
 0xbbb   : > { %7531 = vmatpush1.bf16.msra.mxu1 %v6764_v41  ;;  %7654 = vmatpush1.bf16.msra.mxu0 %v6766_v8  ;;  %v6909_v41 = vld [vmem:[#allocation5 + $0x16c8] sm:$0xff]  ;;  %v6911_v8 = vld [vmem:[#allocation5 + $0x16d8] sm:$0xff] }
 0xbbc   : > { %7532 = vmatprep.subr.bf16.mxu1 %v6781_v63  ;;  %7655 = vmatprep.subr.bf16.mxu0 %v6783_v9  ;;  %v6908_v63 = vld [vmem:[#allocation5 + $0x16c0] sm:$0xff]  ;;  %v6910_v9 = vld [vmem:[#allocation5 + $0x16d0] sm:$0xff] }
 0xbbf   : > { %7533 = vmatpush1.bf16.msra.mxu1 %v6780_v11  ;;  %7656 = vmatpush1.bf16.msra.mxu0 %v6782_v61  ;;  %v6925_v11 = vld [vmem:[#allocation5 + $0x1748] sm:$0xff]  ;;  %v6927_v61 = vld [vmem:[#allocation5 + $0x1758] sm:$0xff] }
 0xbc0   : > { %7534 = vmatprep.subr.bf16.mxu1 %v6797_v12  ;;  %7657 = vmatprep.subr.bf16.mxu0 %v6799_v24  ;;  %v6924_v12 = vld [vmem:[#allocation5 + $0x1740] sm:$0xff]  ;;  %v6926_v24 = vld [vmem:[#allocation5 + $0x1750] sm:$0xff] }
 0xbc3   : > { %7535 = vmatpush1.bf16.msra.mxu1 %v6796_v30  ;;  %7658 = vmatpush1.bf16.msra.mxu0 %v6798_v19  ;;  %v6941_v30 = vld [vmem:[#allocation5 + $0x17c8] sm:$0xff]  ;;  %v6943_v19 = vld [vmem:[#allocation5 + $0x17d8] sm:$0xff] }
 0xbc4   : > { %7536 = vmatprep.subr.bf16.mxu1 %v6813_v39  ;;  %7659 = vmatprep.subr.bf16.mxu0 %v6815_v20  ;;  %v6940_v39 = vld [vmem:[#allocation5 + $0x17c0] sm:$0xff]  ;;  %v6942_v20 = vld [vmem:[#allocation5 + $0x17d0] sm:$0xff] }
 0xbc7   : > { %7537 = vmatpush1.bf16.msra.mxu1 %v6812_v51  ;;  %7660 = vmatpush1.bf16.msra.mxu0 %v6814_v22  ;;  %v6193_v51 = vld [vmem:[#allocation5 + $0x68] sm:$0xff]  ;;  %v6195_v22 = vld [vmem:[#allocation5 + $0x78] sm:$0xff] }
 0xbc8   : > { %7538 = vmatprep.subr.bf16.mxu1 %v6829_v7  ;;  %7661 = vmatprep.subr.bf16.mxu0 %v6831_v31  ;;  %v6192_v7 = vld [vmem:[#allocation5 + $0x60] sm:$0xff]  ;;  %v6194_v31 = vld [vmem:[#allocation5 + $0x70] sm:$0xff] }
 0xbcb   : > { %7539 = vmatpush1.bf16.msra.mxu1 %v6828_v34  ;;  %7662 = vmatpush1.bf16.msra.mxu0 %v6830_v13  ;;  %v6209_v34 = vld [vmem:[#allocation5 + $0xe8] sm:$0xff]  ;;  %v6211_v13 = vld [vmem:[#allocation5 + $0xf8] sm:$0xff] }
 0xbcc   : > { %7540 = vmatprep.subr.bf16.mxu1 %v6845_v52  ;;  %7663 = vmatprep.subr.bf16.mxu0 %v6847_v40  ;;  %v6208_v52 = vld [vmem:[#allocation5 + $0xe0] sm:$0xff]  ;;  %v6210_v40 = vld [vmem:[#allocation5 + $0xf0] sm:$0xff] }
 0xbcf   : > { %7541 = vmatpush1.bf16.msra.mxu1 %v6844_v42  ;;  %7664 = vmatpush1.bf16.msra.mxu0 %v6846_v49  ;;  %v6225_v42 = vld [vmem:[#allocation5 + $0x168] sm:$0xff]  ;;  %v6227_v49 = vld [vmem:[#allocation5 + $0x178] sm:$0xff] }
 0xbd0   : > { %7542 = vmatprep.subr.bf16.mxu1 %v6861_v1  ;;  %7665 = vmatprep.subr.bf16.mxu0 %v6863_v26  ;;  %v6224_v1 = vld [vmem:[#allocation5 + $0x160] sm:$0xff]  ;;  %v6226_v26 = vld [vmem:[#allocation5 + $0x170] sm:$0xff] }
 0xbd3   : > { %7543 = vmatpush1.bf16.msra.mxu1 %v6860_v57  ;;  %7666 = vmatpush1.bf16.msra.mxu0 %v6862_v4  ;;  %v6241_v57 = vld [vmem:[#allocation5 + $0x1e8] sm:$0xff]  ;;  %v6243_v4 = vld [vmem:[#allocation5 + $0x1f8] sm:$0xff] }
 0xbd4   : > { %7544 = vmatprep.subr.bf16.mxu1 %v6877_v10  ;;  %7667 = vmatprep.subr.bf16.mxu0 %v6879_v17  ;;  %v6240_v10 = vld [vmem:[#allocation5 + $0x1e0] sm:$0xff]  ;;  %v6242_v17 = vld [vmem:[#allocation5 + $0x1f0] sm:$0xff] }
 0xbd7   : > { %7545 = vmatpush1.bf16.msra.mxu1 %v6876_v6  ;;  %7668 = vmatpush1.bf16.msra.mxu0 %v6878_v46  ;;  %v6257_v6 = vld [vmem:[#allocation5 + $0x268] sm:$0xff]  ;;  %v6259_v46 = vld [vmem:[#allocation5 + $0x278] sm:$0xff] }
 0xbd8   : > { %7546 = vmatprep.subr.bf16.mxu1 %v6893_v36  ;;  %7669 = vmatprep.subr.bf16.mxu0 %v6895_v16  ;;  %v6258_v36 = vld [vmem:[#allocation5 + $0x270] sm:$0xff]  ;;  %v6273_v16 = vld [vmem:[#allocation5 + $0x2e8] sm:$0xff] }
 0xbdb   : > { %7547 = vmatpush1.bf16.msra.mxu1 %v6892_v58  ;;  %7670 = vmatpush1.bf16.msra.mxu0 %v6894_v32  ;;  %v6275_v58 = vld [vmem:[#allocation5 + $0x2f8] sm:$0xff]  ;;  %v6272_v32 = vld [vmem:[#allocation5 + $0x2e0] sm:$0xff] }
 0xbdc   : > { %7548 = vmatprep.subr.bf16.mxu1 %v6909_v41  ;;  %7671 = vmatprep.subr.bf16.mxu0 %v6911_v8  ;;  %v6274_v41 = vld [vmem:[#allocation5 + $0x2f0] sm:$0xff] }
 0xbdf   : > { %7549 = vmatpush1.bf16.msra.mxu1 %v6908_v63  ;;  %7672 = vmatpush1.bf16.msra.mxu0 %v6910_v9  ;;  %v6289_v9 = vld [vmem:[#allocation5 + $0x368] sm:$0xff] }
 0xbe0   : > { %7550 = vmatprep.subr.bf16.mxu1 %v6925_v11  ;;  %7673 = vmatprep.subr.bf16.mxu0 %v6927_v61  ;;  %v6291_v11 = vld [vmem:[#allocation5 + $0x378] sm:$0xff] }
 0xbe3   : > { %7551 = vmatpush1.bf16.msra.mxu1 %v6924_v12  ;;  %7674 = vmatpush1.bf16.msra.mxu0 %v6926_v24 }
 0xbe4   : > { %7552 = vmatprep.subr.bf16.mxu1 %v6941_v30  ;;  %7675 = vmatprep.subr.bf16.mxu0 %v6943_v19 }
 0xbe7   : > { %7553 = vmatpush1.bf16.msra.mxu1 %v6940_v39  ;;  %7676 = vmatpush1.bf16.msra.mxu0 %v6942_v20 }
 0xbe8   : > { %7686 = vmatprep.subr.bf16.mxu1 %v6193_v51  ;;  %7809 = vmatprep.subr.bf16.mxu0 %v6195_v22  ;;  %v6288_v22 = vld [vmem:[#allocation5 + $0x360] sm:$0xff] }
 0xbea   : > { %7555 = vmatmul.mubr.bf16.vlgmr.msra.gmra.mrb[56].mxu1 %v13065_v47  ;;  %7678 = vmatmul.mubr.bf16.vlgmr.msra.gmra.mrb[28].mxu0 %v13065_v47 }
 0xbeb   : > { %7687 = vmatpush1.bf16.msra.mxu1 %v6192_v7  ;;  %7810 = vmatpush1.bf16.msra.mxu0 %v6194_v31  ;;  %v6290_v7 = vld [vmem:[#allocation5 + $0x370] sm:$0xff]  ;;  %v6305_v31 = vld [vmem:[#allocation5 + $0x3e8] sm:$0xff] }
 0xbec   : > { %7688 = vmatprep.subr.bf16.mxu1 %v6209_v34  ;;  %7811 = vmatprep.subr.bf16.mxu0 %v6211_v13  ;;  %v6307_v34 = vld [vmem:[#allocation5 + $0x3f8] sm:$0xff]  ;;  %v6304_v13 = vld [vmem:[#allocation5 + $0x3e0] sm:$0xff] }
 0xbed   : > { %7718 = vmatprep.mubr.bf16.mxu1 %v13035_v60  ;;  %7841 = vmatprep.mubr.bf16.mxu0 %v13035_v60  ;;  %v6256_v60 = vld [vmem:[#allocation5 + $0x260] sm:$0xff] }
 0xbef   : > { %7689 = vmatpush1.bf16.msra.mxu1 %v6208_v52  ;;  %7812 = vmatpush1.bf16.msra.mxu0 %v6210_v40  ;;  %v6306_v52 = vld [vmem:[#allocation5 + $0x3f0] sm:$0xff]  ;;  %v6321_v40 = vld [vmem:[#allocation5 + $0x468] sm:$0xff] }
 0xbf0   : > { %7690 = vmatprep.subr.bf16.mxu1 %v6225_v42  ;;  %7813 = vmatprep.subr.bf16.mxu0 %v6227_v49  ;;  %v6323_v42 = vld [vmem:[#allocation5 + $0x478] sm:$0xff]  ;;  %v6320_v49 = vld [vmem:[#allocation5 + $0x460] sm:$0xff] }
 0xbf3   : > { %7691 = vmatpush1.bf16.msra.mxu1 %v6224_v1  ;;  %7814 = vmatpush1.bf16.msra.mxu0 %v6226_v26  ;;  %v6322_v1 = vld [vmem:[#allocation5 + $0x470] sm:$0xff]  ;;  %v6337_v26 = vld [vmem:[#allocation5 + $0x4e8] sm:$0xff] }
 0xbf4   : > { %7692 = vmatprep.subr.bf16.mxu1 %v6241_v57  ;;  %7815 = vmatprep.subr.bf16.mxu0 %v6243_v4  ;;  %v6339_v57 = vld [vmem:[#allocation5 + $0x4f8] sm:$0xff]  ;;  %v6336_v4 = vld [vmem:[#allocation5 + $0x4e0] sm:$0xff] }
 0xbf7   : > { %7693 = vmatpush1.bf16.msra.mxu1 %v6240_v10  ;;  %7816 = vmatpush1.bf16.msra.mxu0 %v6242_v17  ;;  %v6338_v10 = vld [vmem:[#allocation5 + $0x4f0] sm:$0xff]  ;;  %v6353_v17 = vld [vmem:[#allocation5 + $0x568] sm:$0xff] }
 0xbf8   : > { %7694 = vmatprep.subr.bf16.mxu1 %v6257_v6  ;;  %7817 = vmatprep.subr.bf16.mxu0 %v6259_v46  ;;  %v6355_v6 = vld [vmem:[#allocation5 + $0x578] sm:$0xff]  ;;  %v6352_v46 = vld [vmem:[#allocation5 + $0x560] sm:$0xff] }
 0xbfb   : > { %7695 = vmatpush1.bf16.msra.mxu1 %v6256_v60  ;;  %7818 = vmatpush1.bf16.msra.mxu0 %v6258_v36  ;;  %v6354_v60 = vld [vmem:[#allocation5 + $0x570] sm:$0xff]  ;;  %v6369_v36 = vld [vmem:[#allocation5 + $0x5e8] sm:$0xff] }
 0xbfc   : > { %7696 = vmatprep.subr.bf16.mxu1 %v6273_v16  ;;  %7819 = vmatprep.subr.bf16.mxu0 %v6275_v58  ;;  %v6371_v16 = vld [vmem:[#allocation5 + $0x5f8] sm:$0xff]  ;;  %v6368_v58 = vld [vmem:[#allocation5 + $0x5e0] sm:$0xff] }
 0xbfd   : > { %v13107_v8 = vpop.f32.mrb[52].mxu1  ;;  %v13109_v63 = vpop.f32.mrb[24].mxu0 }
 0xbfe   : > { %v13111_v61 = vpop.f32.mrb[53].mxu1  ;;  %v13113_v12 = vpop.f32.mrb[25].mxu0 }
 0xbff   : > { %v7950_v24 = vcombine.low %v13107_v8, %v13111_v61  ;;  %v7951_v30 = vcombine.low %v13109_v63, %v13113_v12  ;;  %v7314_v19 = vpop.f32.mrb[54].mxu1  ;;  %v7437_v39 = vpop.f32.mrb[26].mxu0  ;;  %7697 = vmatpush1.bf16.msra.mxu1 %v6272_v32  ;;  %7820 = vmatpush1.bf16.msra.mxu0 %v6274_v41  ;;  %v6370_v32 = vld [vmem:[#allocation5 + $0x5f0] sm:$0xff]  ;;  %v6385_v41 = vld [vmem:[#allocation5 + $0x668] sm:$0xff]  ;;  %v8352_v63 = vld [vmem:[#allocation5 + $0x23e0] sm:$0xff] }
 0xc00   : > { %v7315_v20 = vpop.f32.mrb[55].mxu1  ;;  %v7438_v51 = vpop.f32.mrb[27].mxu0  ;;  %7698 = vmatprep.subr.bf16.mxu1 %v6289_v9  ;;  %7821 = vmatprep.subr.bf16.mxu0 %v6291_v11  ;;  %v6387_v9 = vld [vmem:[#allocation5 + $0x678] sm:$0xff]  ;;  %v6384_v11 = vld [vmem:[#allocation5 + $0x660] sm:$0xff]  ;;  %v6386_v19 = vld [vmem:[#allocation5 + $0x670] sm:$0xff] }
 0xc01   : > { %v6401_v39 = vld [vmem:[#allocation5 + $0x6e8] sm:$0xff]  ;;  %v6403_v20 = vld [vmem:[#allocation5 + $0x6f8] sm:$0xff]  ;;  %v6400_v51 = vld [vmem:[#allocation5 + $0x6e0] sm:$0xff] }
 0xc02   : > { %v8354_v12 = vld [vmem:[#allocation5 + $0x23f0] sm:$0xff] }
 0xc03   : > { %7699 = vmatpush1.bf16.msra.mxu1 %v6288_v22  ;;  %7822 = vmatpush1.bf16.msra.mxu0 %v6290_v7  ;;  %v6402_v22 = vld [vmem:[#allocation5 + $0x6f0] sm:$0xff]  ;;  %v6417_v7 = vld [vmem:[#allocation5 + $0x768] sm:$0xff] }
 0xc04   : > { %7700 = vmatprep.subr.bf16.mxu1 %v6305_v31  ;;  %7823 = vmatprep.subr.bf16.mxu0 %v6307_v34  ;;  %v6419_v31 = vld [vmem:[#allocation5 + $0x778] sm:$0xff]  ;;  %v6416_v34 = vld [vmem:[#allocation5 + $0x760] sm:$0xff] }
 0xc07   : > { %7701 = vmatpush1.bf16.msra.mxu1 %v6304_v13  ;;  %7824 = vmatpush1.bf16.msra.mxu0 %v6306_v52  ;;  %v6418_v13 = vld [vmem:[#allocation5 + $0x770] sm:$0xff]  ;;  %v6433_v52 = vld [vmem:[#allocation5 + $0x7e8] sm:$0xff] }
 0xc08   : > { %7702 = vmatprep.subr.bf16.mxu1 %v6321_v40  ;;  %7825 = vmatprep.subr.bf16.mxu0 %v6323_v42  ;;  %v6435_v40 = vld [vmem:[#allocation5 + $0x7f8] sm:$0xff]  ;;  %v6432_v42 = vld [vmem:[#allocation5 + $0x7e0] sm:$0xff] }
 0xc0b   : > { %7703 = vmatpush1.bf16.msra.mxu1 %v6320_v49  ;;  %7826 = vmatpush1.bf16.msra.mxu0 %v6322_v1  ;;  %v6434_v49 = vld [vmem:[#allocation5 + $0x7f0] sm:$0xff]  ;;  %v6449_v1 = vld [vmem:[#allocation5 + $0x868] sm:$0xff] }
 0xc0c   : > { %7704 = vmatprep.subr.bf16.mxu1 %v6337_v26  ;;  %7827 = vmatprep.subr.bf16.mxu0 %v6339_v57  ;;  %v6451_v26 = vld [vmem:[#allocation5 + $0x878] sm:$0xff]  ;;  %v6448_v57 = vld [vmem:[#allocation5 + $0x860] sm:$0xff] }
 0xc0f   : > { %7705 = vmatpush1.bf16.msra.mxu1 %v6336_v4  ;;  %7828 = vmatpush1.bf16.msra.mxu0 %v6338_v10  ;;  %v6450_v4 = vld [vmem:[#allocation5 + $0x870] sm:$0xff]  ;;  %v6465_v10 = vld [vmem:[#allocation5 + $0x8e8] sm:$0xff] }
 0xc10   : > { %7706 = vmatprep.subr.bf16.mxu1 %v6353_v17  ;;  %7829 = vmatprep.subr.bf16.mxu0 %v6355_v6  ;;  %v6467_v17 = vld [vmem:[#allocation5 + $0x8f8] sm:$0xff]  ;;  %v6464_v6 = vld [vmem:[#allocation5 + $0x8e0] sm:$0xff] }
 0xc13   : > { %7707 = vmatpush1.bf16.msra.mxu1 %v6352_v46  ;;  %7830 = vmatpush1.bf16.msra.mxu0 %v6354_v60  ;;  %v6466_v46 = vld [vmem:[#allocation5 + $0x8f0] sm:$0xff]  ;;  %v6481_v60 = vld [vmem:[#allocation5 + $0x968] sm:$0xff] }
 0xc14   : > { %7708 = vmatprep.subr.bf16.mxu1 %v6369_v36  ;;  %7831 = vmatprep.subr.bf16.mxu0 %v6371_v16  ;;  %v6483_v36 = vld [vmem:[#allocation5 + $0x978] sm:$0xff]  ;;  %v6480_v16 = vld [vmem:[#allocation5 + $0x960] sm:$0xff] }
 0xc17   : > { %7709 = vmatpush1.bf16.msra.mxu1 %v6368_v58  ;;  %7832 = vmatpush1.bf16.msra.mxu0 %v6370_v32  ;;  %v6482_v58 = vld [vmem:[#allocation5 + $0x970] sm:$0xff]  ;;  %v6497_v32 = vld [vmem:[#allocation5 + $0x9e8] sm:$0xff] }
 0xc18   : > { %7710 = vmatprep.subr.bf16.mxu1 %v6385_v41  ;;  %7833 = vmatprep.subr.bf16.mxu0 %v6387_v9  ;;  %v6496_v41 = vld [vmem:[#allocation5 + $0x9e0] sm:$0xff]  ;;  %v6498_v9 = vld [vmem:[#allocation5 + $0x9f0] sm:$0xff] }
 0xc1b   : > { %7711 = vmatpush1.bf16.msra.mxu1 %v6384_v11  ;;  %7834 = vmatpush1.bf16.msra.mxu0 %v6386_v19  ;;  %v6513_v11 = vld [vmem:[#allocation5 + $0xa68] sm:$0xff]  ;;  %v6515_v19 = vld [vmem:[#allocation5 + $0xa78] sm:$0xff] }
 0xc1c   : > { %7712 = vmatprep.subr.bf16.mxu1 %v6401_v39  ;;  %7835 = vmatprep.subr.bf16.mxu0 %v6403_v20  ;;  %v6514_v39 = vld [vmem:[#allocation5 + $0xa70] sm:$0xff]  ;;  %v6529_v20 = vld [vmem:[#allocation5 + $0xae8] sm:$0xff] }
 0xc1f   : > { %7713 = vmatpush1.bf16.msra.mxu1 %v6400_v51  ;;  %7836 = vmatpush1.bf16.msra.mxu0 %v6402_v22  ;;  %v6531_v51 = vld [vmem:[#allocation5 + $0xaf8] sm:$0xff]  ;;  %v6528_v22 = vld [vmem:[#allocation5 + $0xae0] sm:$0xff] }
 0xc20   : > { %7714 = vmatprep.subr.bf16.mxu1 %v6417_v7  ;;  %7837 = vmatprep.subr.bf16.mxu0 %v6419_v31  ;;  %v6530_v7 = vld [vmem:[#allocation5 + $0xaf0] sm:$0xff]  ;;  %v6545_v31 = vld [vmem:[#allocation5 + $0xb68] sm:$0xff] }
 0xc23   : > { %7715 = vmatpush1.bf16.msra.mxu1 %v6416_v34  ;;  %7838 = vmatpush1.bf16.msra.mxu0 %v6418_v13  ;;  %v6547_v34 = vld [vmem:[#allocation5 + $0xb78] sm:$0xff]  ;;  %v6544_v13 = vld [vmem:[#allocation5 + $0xb60] sm:$0xff] }
 0xc24   : > { %7716 = vmatprep.subr.bf16.mxu1 %v6433_v52  ;;  %7839 = vmatprep.subr.bf16.mxu0 %v6435_v40  ;;  %v6546_v52 = vld [vmem:[#allocation5 + $0xb70] sm:$0xff]  ;;  %v6561_v40 = vld [vmem:[#allocation5 + $0xbe8] sm:$0xff] }
 0xc27   : > { %7717 = vmatpush1.bf16.msra.mxu1 %v6432_v42  ;;  %7840 = vmatpush1.bf16.msra.mxu0 %v6434_v49  ;;  %v6563_v42 = vld [vmem:[#allocation5 + $0xbf8] sm:$0xff]  ;;  %v6560_v49 = vld [vmem:[#allocation5 + $0xbe0] sm:$0xff] }
 0xc28   : > { %7727 = vmatprep.subr.bf16.mxu1 %v6449_v1  ;;  %7850 = vmatprep.subr.bf16.mxu0 %v6451_v26  ;;  %v6562_v1 = vld [vmem:[#allocation5 + $0xbf0] sm:$0xff]  ;;  %v6577_v26 = vld [vmem:[#allocation5 + $0xc68] sm:$0xff] }
 0xc2a   : > { %7719 = vmatmul.mubr.bf16.vlgmr.msra.gmra.mrb[60].mxu1 %v13041_v56  ;;  %7842 = vmatmul.mubr.bf16.vlgmr.msra.gmra.mrb[32].mxu0 %v13041_v56  ;;  %v6499_v56 = vld [vmem:[#allocation5 + $0x9f8] sm:$0xff] }
 0xc2b   : > { %7728 = vmatpush1.bf16.msra.mxu1 %v6448_v57  ;;  %7851 = vmatpush1.bf16.msra.mxu0 %v6450_v4  ;;  %v6579_v57 = vld [vmem:[#allocation5 + $0xc78] sm:$0xff]  ;;  %v6576_v4 = vld [vmem:[#allocation5 + $0xc60] sm:$0xff] }
 0xc2c   : > { %7729 = vmatprep.subr.bf16.mxu1 %v6465_v10  ;;  %7852 = vmatprep.subr.bf16.mxu0 %v6467_v17  ;;  %v6578_v10 = vld [vmem:[#allocation5 + $0xc70] sm:$0xff]  ;;  %v6593_v17 = vld [vmem:[#allocation5 + $0xce8] sm:$0xff] }
 0xc2d   : > { %7759 = vmatprep.mubr.bf16.mxu1 %v13045_v5  ;;  %7882 = vmatprep.mubr.bf16.mxu0 %v13045_v5  ;;  %v6512_v5 = vld [vmem:[#allocation5 + $0xa60] sm:$0xff] }
 0xc2f   : > { %7730 = vmatpush1.bf16.msra.mxu1 %v6464_v6  ;;  %7853 = vmatpush1.bf16.msra.mxu0 %v6466_v46  ;;  %v6595_v6 = vld [vmem:[#allocation5 + $0xcf8] sm:$0xff]  ;;  %v6592_v46 = vld [vmem:[#allocation5 + $0xce0] sm:$0xff] }
 0xc30   : > { %7731 = vmatprep.subr.bf16.mxu1 %v6481_v60  ;;  %7854 = vmatprep.subr.bf16.mxu0 %v6483_v36  ;;  %v6594_v60 = vld [vmem:[#allocation5 + $0xcf0] sm:$0xff]  ;;  %v6609_v36 = vld [vmem:[#allocation5 + $0xd68] sm:$0xff] }
 0xc33   : > { %7732 = vmatpush1.bf16.msra.mxu1 %v6480_v16  ;;  %7855 = vmatpush1.bf16.msra.mxu0 %v6482_v58  ;;  %v6611_v16 = vld [vmem:[#allocation5 + $0xd78] sm:$0xff]  ;;  %v6608_v58 = vld [vmem:[#allocation5 + $0xd60] sm:$0xff] }
 0xc34   : > { %7733 = vmatprep.subr.bf16.mxu1 %v6497_v32  ;;  %7856 = vmatprep.subr.bf16.mxu0 %v6499_v56  ;;  %v6610_v32 = vld [vmem:[#allocation5 + $0xd70] sm:$0xff]  ;;  %v6625_v56 = vld [vmem:[#allocation5 + $0xde8] sm:$0xff] }
 0xc37   : > { %7734 = vmatpush1.bf16.msra.mxu1 %v6496_v41  ;;  %7857 = vmatpush1.bf16.msra.mxu0 %v6498_v9  ;;  %v6627_v41 = vld [vmem:[#allocation5 + $0xdf8] sm:$0xff]  ;;  %v6624_v9 = vld [vmem:[#allocation5 + $0xde0] sm:$0xff] }
 0xc38   : > { %7735 = vmatprep.subr.bf16.mxu1 %v6513_v11  ;;  %7858 = vmatprep.subr.bf16.mxu0 %v6515_v19  ;;  %v6626_v11 = vld [vmem:[#allocation5 + $0xdf0] sm:$0xff]  ;;  %v6641_v19 = vld [vmem:[#allocation5 + $0xe68] sm:$0xff] }
 0xc3b   : > { %7736 = vmatpush1.bf16.msra.mxu1 %v6512_v5  ;;  %7859 = vmatpush1.bf16.msra.mxu0 %v6514_v39  ;;  %v6643_v5 = vld [vmem:[#allocation5 + $0xe78] sm:$0xff]  ;;  %v6640_v39 = vld [vmem:[#allocation5 + $0xe60] sm:$0xff] }
 0xc3c   : > { %7737 = vmatprep.subr.bf16.mxu1 %v6529_v20  ;;  %7860 = vmatprep.subr.bf16.mxu0 %v6531_v51  ;;  %v6642_v20 = vld [vmem:[#allocation5 + $0xe70] sm:$0xff]  ;;  %v6657_v51 = vld [vmem:[#allocation5 + $0xee8] sm:$0xff] }
 0xc3f   : > { %7738 = vmatpush1.bf16.msra.mxu1 %v6528_v22  ;;  %7861 = vmatpush1.bf16.msra.mxu0 %v6530_v7  ;;  %v6659_v22 = vld [vmem:[#allocation5 + $0xef8] sm:$0xff]  ;;  %v6656_v7 = vld [vmem:[#allocation5 + $0xee0] sm:$0xff] }
 0xc40   : > { %7739 = vmatprep.subr.bf16.mxu1 %v6545_v31  ;;  %7862 = vmatprep.subr.bf16.mxu0 %v6547_v34  ;;  %v6658_v31 = vld [vmem:[#allocation5 + $0xef0] sm:$0xff]  ;;  %v6673_v34 = vld [vmem:[#allocation5 + $0xf68] sm:$0xff] }
 0xc43   : > { %7740 = vmatpush1.bf16.msra.mxu1 %v6544_v13  ;;  %7863 = vmatpush1.bf16.msra.mxu0 %v6546_v52  ;;  %v6675_v13 = vld [vmem:[#allocation5 + $0xf78] sm:$0xff]  ;;  %v6672_v52 = vld [vmem:[#allocation5 + $0xf60] sm:$0xff] }
 0xc44   : > { %7741 = vmatprep.subr.bf16.mxu1 %v6561_v40  ;;  %7864 = vmatprep.subr.bf16.mxu0 %v6563_v42  ;;  %v6674_v40 = vld [vmem:[#allocation5 + $0xf70] sm:$0xff]  ;;  %v6689_v42 = vld [vmem:[#allocation5 + $0xfe8] sm:$0xff] }
 0xc47   : > { %7742 = vmatpush1.bf16.msra.mxu1 %v6560_v49  ;;  %7865 = vmatpush1.bf16.msra.mxu0 %v6562_v1  ;;  %v6691_v49 = vld [vmem:[#allocation5 + $0xff8] sm:$0xff]  ;;  %v6688_v1 = vld [vmem:[#allocation5 + $0xfe0] sm:$0xff] }
 0xc48   : > { %7743 = vmatprep.subr.bf16.mxu1 %v6577_v26  ;;  %7866 = vmatprep.subr.bf16.mxu0 %v6579_v57  ;;  %v6690_v26 = vld [vmem:[#allocation5 + $0xff0] sm:$0xff]  ;;  %v6705_v57 = vld [vmem:[#allocation5 + $0x1068] sm:$0xff] }
 0xc4b   : > { %7744 = vmatpush1.bf16.msra.mxu1 %v6576_v4  ;;  %7867 = vmatpush1.bf16.msra.mxu0 %v6578_v10  ;;  %v6707_v4 = vld [vmem:[#allocation5 + $0x1078] sm:$0xff]  ;;  %v6704_v10 = vld [vmem:[#allocation5 + $0x1060] sm:$0xff] }
 0xc4c   : > { %7745 = vmatprep.subr.bf16.mxu1 %v6593_v17  ;;  %7868 = vmatprep.subr.bf16.mxu0 %v6595_v6  ;;  %v6706_v17 = vld [vmem:[#allocation5 + $0x1070] sm:$0xff]  ;;  %v6721_v6 = vld [vmem:[#allocation5 + $0x10e8] sm:$0xff] }
 0xc4f   : > { %7746 = vmatpush1.bf16.msra.mxu1 %v6592_v46  ;;  %7869 = vmatpush1.bf16.msra.mxu0 %v6594_v60  ;;  %v6723_v46 = vld [vmem:[#allocation5 + $0x10f8] sm:$0xff]  ;;  %v6720_v60 = vld [vmem:[#allocation5 + $0x10e0] sm:$0xff] }
 0xc50   : > { %7747 = vmatprep.subr.bf16.mxu1 %v6609_v36  ;;  %7870 = vmatprep.subr.bf16.mxu0 %v6611_v16  ;;  %v6722_v36 = vld [vmem:[#allocation5 + $0x10f0] sm:$0xff]  ;;  %v6737_v16 = vld [vmem:[#allocation5 + $0x1168] sm:$0xff] }
 0xc53   : > { %7748 = vmatpush1.bf16.msra.mxu1 %v6608_v58  ;;  %7871 = vmatpush1.bf16.msra.mxu0 %v6610_v32  ;;  %v6739_v58 = vld [vmem:[#allocation5 + $0x1178] sm:$0xff]  ;;  %v6736_v32 = vld [vmem:[#allocation5 + $0x1160] sm:$0xff] }
 0xc54   : > { %7749 = vmatprep.subr.bf16.mxu1 %v6625_v56  ;;  %7872 = vmatprep.subr.bf16.mxu0 %v6627_v41  ;;  %v6738_v56 = vld [vmem:[#allocation5 + $0x1170] sm:$0xff]  ;;  %v6753_v41 = vld [vmem:[#allocation5 + $0x11e8] sm:$0xff] }
 0xc57   : > { %7750 = vmatpush1.bf16.msra.mxu1 %v6624_v9  ;;  %7873 = vmatpush1.bf16.msra.mxu0 %v6626_v11  ;;  %v6752_v9 = vld [vmem:[#allocation5 + $0x11e0] sm:$0xff]  ;;  %v6754_v11 = vld [vmem:[#allocation5 + $0x11f0] sm:$0xff] }
 0xc58   : > { %7751 = vmatprep.subr.bf16.mxu1 %v6641_v19  ;;  %7874 = vmatprep.subr.bf16.mxu0 %v6643_v5  ;;  %v6769_v19 = vld [vmem:[#allocation5 + $0x1268] sm:$0xff]  ;;  %v6771_v5 = vld [vmem:[#allocation5 + $0x1278] sm:$0xff] }
 0xc5b   : > { %7752 = vmatpush1.bf16.msra.mxu1 %v6640_v39  ;;  %7875 = vmatpush1.bf16.msra.mxu0 %v6642_v20  ;;  %v6770_v39 = vld [vmem:[#allocation5 + $0x1270] sm:$0xff]  ;;  %v6785_v20 = vld [vmem:[#allocation5 + $0x12e8] sm:$0xff] }
 0xc5c   : > { %7753 = vmatprep.subr.bf16.mxu1 %v6657_v51  ;;  %7876 = vmatprep.subr.bf16.mxu0 %v6659_v22  ;;  %v6787_v51 = vld [vmem:[#allocation5 + $0x12f8] sm:$0xff]  ;;  %v6784_v22 = vld [vmem:[#allocation5 + $0x12e0] sm:$0xff] }
 0xc5f   : > { %7754 = vmatpush1.bf16.msra.mxu1 %v6656_v7  ;;  %7877 = vmatpush1.bf16.msra.mxu0 %v6658_v31  ;;  %v6786_v7 = vld [vmem:[#allocation5 + $0x12f0] sm:$0xff]  ;;  %v6801_v31 = vld [vmem:[#allocation5 + $0x1368] sm:$0xff] }
 0xc60   : > { %7755 = vmatprep.subr.bf16.mxu1 %v6673_v34  ;;  %7878 = vmatprep.subr.bf16.mxu0 %v6675_v13  ;;  %v6803_v34 = vld [vmem:[#allocation5 + $0x1378] sm:$0xff]  ;;  %v6800_v13 = vld [vmem:[#allocation5 + $0x1360] sm:$0xff] }
 0xc63   : > { %7756 = vmatpush1.bf16.msra.mxu1 %v6672_v52  ;;  %7879 = vmatpush1.bf16.msra.mxu0 %v6674_v40  ;;  %v6802_v52 = vld [vmem:[#allocation5 + $0x1370] sm:$0xff]  ;;  %v6817_v40 = vld [vmem:[#allocation5 + $0x13e8] sm:$0xff] }
 0xc64   : > { %7757 = vmatprep.subr.bf16.mxu1 %v6689_v42  ;;  %7880 = vmatprep.subr.bf16.mxu0 %v6691_v49  ;;  %v6819_v42 = vld [vmem:[#allocation5 + $0x13f8] sm:$0xff]  ;;  %v6816_v49 = vld [vmem:[#allocation5 + $0x13e0] sm:$0xff] }
 0xc67   : > { %7758 = vmatpush1.bf16.msra.mxu1 %v6688_v1  ;;  %7881 = vmatpush1.bf16.msra.mxu0 %v6690_v26  ;;  %v6818_v1 = vld [vmem:[#allocation5 + $0x13f0] sm:$0xff]  ;;  %v6833_v26 = vld [vmem:[#allocation5 + $0x1468] sm:$0xff] }
 0xc68   : > { %7768 = vmatprep.subr.bf16.mxu1 %v6705_v57  ;;  %7891 = vmatprep.subr.bf16.mxu0 %v6707_v4  ;;  %v6835_v57 = vld [vmem:[#allocation5 + $0x1478] sm:$0xff]  ;;  %v6832_v4 = vld [vmem:[#allocation5 + $0x1460] sm:$0xff] }
 0xc6a   : > { %7760 = vmatmul.mubr.bf16.vlgmr.msra.gmra.mrb[60].mxu1 %v13053_v21  ;;  %7883 = vmatmul.mubr.bf16.vlgmr.msra.gmra.mrb[32].mxu0 %v13053_v21  ;;  %v6755_v21 = vld [vmem:[#allocation5 + $0x11f8] sm:$0xff] }
 0xc6b   : > { %7769 = vmatpush1.bf16.msra.mxu1 %v6704_v10  ;;  %7892 = vmatpush1.bf16.msra.mxu0 %v6706_v17  ;;  %v6834_v10 = vld [vmem:[#allocation5 + $0x1470] sm:$0xff]  ;;  %v6849_v17 = vld [vmem:[#allocation5 + $0x14e8] sm:$0xff] }
 0xc6c   : > { %7770 = vmatprep.subr.bf16.mxu1 %v6721_v6  ;;  %7893 = vmatprep.subr.bf16.mxu0 %v6723_v46  ;;  %v6851_v6 = vld [vmem:[#allocation5 + $0x14f8] sm:$0xff]  ;;  %v6848_v46 = vld [vmem:[#allocation5 + $0x14e0] sm:$0xff] }
 0xc6d   : > { %7800 = vmatprep.mubr.bf16.mxu1 %v13057_v0  ;;  %7923 = vmatprep.mubr.bf16.mxu0 %v13057_v0  ;;  %v6768_v0 = vld [vmem:[#allocation5 + $0x1260] sm:$0xff] }
 0xc6f   : > { %7771 = vmatpush1.bf16.msra.mxu1 %v6720_v60  ;;  %7894 = vmatpush1.bf16.msra.mxu0 %v6722_v36  ;;  %v6850_v60 = vld [vmem:[#allocation5 + $0x14f0] sm:$0xff]  ;;  %v6865_v36 = vld [vmem:[#allocation5 + $0x1568] sm:$0xff] }
 0xc70   : > { %7772 = vmatprep.subr.bf16.mxu1 %v6737_v16  ;;  %7895 = vmatprep.subr.bf16.mxu0 %v6739_v58  ;;  %v6867_v16 = vld [vmem:[#allocation5 + $0x1578] sm:$0xff]  ;;  %v6864_v58 = vld [vmem:[#allocation5 + $0x1560] sm:$0xff] }
 0xc73   : > { %7773 = vmatpush1.bf16.msra.mxu1 %v6736_v32  ;;  %7896 = vmatpush1.bf16.msra.mxu0 %v6738_v56  ;;  %v6866_v32 = vld [vmem:[#allocation5 + $0x1570] sm:$0xff]  ;;  %v6881_v56 = vld [vmem:[#allocation5 + $0x15e8] sm:$0xff] }
 0xc74   : > { %7774 = vmatprep.subr.bf16.mxu1 %v6753_v41  ;;  %7897 = vmatprep.subr.bf16.mxu0 %v6755_v21  ;;  %v6883_v41 = vld [vmem:[#allocation5 + $0x15f8] sm:$0xff]  ;;  %v6880_v21 = vld [vmem:[#allocation5 + $0x15e0] sm:$0xff] }
 0xc77   : > { %7775 = vmatpush1.bf16.msra.mxu1 %v6752_v9  ;;  %7898 = vmatpush1.bf16.msra.mxu0 %v6754_v11  ;;  %v6882_v9 = vld [vmem:[#allocation5 + $0x15f0] sm:$0xff]  ;;  %v6897_v11 = vld [vmem:[#allocation5 + $0x1668] sm:$0xff] }
 0xc78   : > { %7776 = vmatprep.subr.bf16.mxu1 %v6769_v19  ;;  %7899 = vmatprep.subr.bf16.mxu0 %v6771_v5  ;;  %v6899_v19 = vld [vmem:[#allocation5 + $0x1678] sm:$0xff]  ;;  %v6896_v5 = vld [vmem:[#allocation5 + $0x1660] sm:$0xff] }
 0xc7b   : > { %7777 = vmatpush1.bf16.msra.mxu1 %v6768_v0  ;;  %7900 = vmatpush1.bf16.msra.mxu0 %v6770_v39  ;;  %v6898_v0 = vld [vmem:[#allocation5 + $0x1670] sm:$0xff]  ;;  %v6913_v39 = vld [vmem:[#allocation5 + $0x16e8] sm:$0xff] }
 0xc7c   : > { %7778 = vmatprep.subr.bf16.mxu1 %v6785_v20  ;;  %7901 = vmatprep.subr.bf16.mxu0 %v6787_v51  ;;  %v6915_v20 = vld [vmem:[#allocation5 + $0x16f8] sm:$0xff]  ;;  %v6912_v51 = vld [vmem:[#allocation5 + $0x16e0] sm:$0xff] }
 0xc7f   : > { %7779 = vmatpush1.bf16.msra.mxu1 %v6784_v22  ;;  %7902 = vmatpush1.bf16.msra.mxu0 %v6786_v7  ;;  %v6914_v22 = vld [vmem:[#allocation5 + $0x16f0] sm:$0xff]  ;;  %v6929_v7 = vld [vmem:[#allocation5 + $0x1768] sm:$0xff] }
 0xc80   : > { %7780 = vmatprep.subr.bf16.mxu1 %v6801_v31  ;;  %7903 = vmatprep.subr.bf16.mxu0 %v6803_v34  ;;  %v6931_v31 = vld [vmem:[#allocation5 + $0x1778] sm:$0xff]  ;;  %v6928_v34 = vld [vmem:[#allocation5 + $0x1760] sm:$0xff] }
 0xc83   : > { %7781 = vmatpush1.bf16.msra.mxu1 %v6800_v13  ;;  %7904 = vmatpush1.bf16.msra.mxu0 %v6802_v52  ;;  %v6930_v13 = vld [vmem:[#allocation5 + $0x1770] sm:$0xff]  ;;  %v6945_v52 = vld [vmem:[#allocation5 + $0x17e8] sm:$0xff] }
 0xc84   : > { %7782 = vmatprep.subr.bf16.mxu1 %v6817_v40  ;;  %7905 = vmatprep.subr.bf16.mxu0 %v6819_v42  ;;  %v6947_v40 = vld [vmem:[#allocation5 + $0x17f8] sm:$0xff]  ;;  %v6944_v42 = vld [vmem:[#allocation5 + $0x17e0] sm:$0xff] }
 0xc87   : > { %7783 = vmatpush1.bf16.msra.mxu1 %v6816_v49  ;;  %7906 = vmatpush1.bf16.msra.mxu0 %v6818_v1  ;;  %v6946_v49 = vld [vmem:[#allocation5 + $0x17f0] sm:$0xff]  ;;  %v7973_v1 = vld [vmem:[#allocation5 + $0x1808] sm:$0xff] }
 0xc88   : > { %7784 = vmatprep.subr.bf16.mxu1 %v6833_v26  ;;  %7907 = vmatprep.subr.bf16.mxu0 %v6835_v57  ;;  %v7975_v26 = vld [vmem:[#allocation5 + $0x1818] sm:$0xff]  ;;  %v7972_v57 = vld [vmem:[#allocation5 + $0x1800] sm:$0xff] }
 0xc8b   : > { %7785 = vmatpush1.bf16.msra.mxu1 %v6832_v4  ;;  %7908 = vmatpush1.bf16.msra.mxu0 %v6834_v10  ;;  %v7974_v4 = vld [vmem:[#allocation5 + $0x1810] sm:$0xff]  ;;  %v7989_v10 = vld [vmem:[#allocation5 + $0x1888] sm:$0xff] }
 0xc8c   : > { %7786 = vmatprep.subr.bf16.mxu1 %v6849_v17  ;;  %7909 = vmatprep.subr.bf16.mxu0 %v6851_v6  ;;  %v7991_v17 = vld [vmem:[#allocation5 + $0x1898] sm:$0xff]  ;;  %v7988_v6 = vld [vmem:[#allocation5 + $0x1880] sm:$0xff] }
 0xc8f   : > { %7787 = vmatpush1.bf16.msra.mxu1 %v6848_v46  ;;  %7910 = vmatpush1.bf16.msra.mxu0 %v6850_v60  ;;  %v7990_v46 = vld [vmem:[#allocation5 + $0x1890] sm:$0xff]  ;;  %v8005_v60 = vld [vmem:[#allocation5 + $0x1908] sm:$0xff] }
 0xc90   : > { %7788 = vmatprep.subr.bf16.mxu1 %v6865_v36  ;;  %7911 = vmatprep.subr.bf16.mxu0 %v6867_v16  ;;  %v8007_v36 = vld [vmem:[#allocation5 + $0x1918] sm:$0xff]  ;;  %v8004_v16 = vld [vmem:[#allocation5 + $0x1900] sm:$0xff] }
 0xc93   : > { %7789 = vmatpush1.bf16.msra.mxu1 %v6864_v58  ;;  %7912 = vmatpush1.bf16.msra.mxu0 %v6866_v32  ;;  %v8006_v58 = vld [vmem:[#allocation5 + $0x1910] sm:$0xff]  ;;  %v8021_v32 = vld [vmem:[#allocation5 + $0x1988] sm:$0xff] }
 0xc94   : > { %7790 = vmatprep.subr.bf16.mxu1 %v6881_v56  ;;  %7913 = vmatprep.subr.bf16.mxu0 %v6883_v41  ;;  %v8020_v56 = vld [vmem:[#allocation5 + $0x1980] sm:$0xff]  ;;  %v8022_v41 = vld [vmem:[#allocation5 + $0x1990] sm:$0xff] }
 0xc97   : > { %7791 = vmatpush1.bf16.msra.mxu1 %v6880_v21  ;;  %7914 = vmatpush1.bf16.msra.mxu0 %v6882_v9  ;;  %v8037_v21 = vld [vmem:[#allocation5 + $0x1a08] sm:$0xff]  ;;  %v8039_v9 = vld [vmem:[#allocation5 + $0x1a18] sm:$0xff] }
 0xc98   : > { %7792 = vmatprep.subr.bf16.mxu1 %v6897_v11  ;;  %7915 = vmatprep.subr.bf16.mxu0 %v6899_v19  ;;  %v8036_v11 = vld [vmem:[#allocation5 + $0x1a00] sm:$0xff]  ;;  %v8038_v19 = vld [vmem:[#allocation5 + $0x1a10] sm:$0xff] }
 0xc9b   : > { %7793 = vmatpush1.bf16.msra.mxu1 %v6896_v5  ;;  %7916 = vmatpush1.bf16.msra.mxu0 %v6898_v0  ;;  %v8053_v5 = vld [vmem:[#allocation5 + $0x1a88] sm:$0xff]  ;;  %v8055_v0 = vld [vmem:[#allocation5 + $0x1a98] sm:$0xff] }
 0xc9c   : > { %7794 = vmatprep.subr.bf16.mxu1 %v6913_v39  ;;  %7917 = vmatprep.subr.bf16.mxu0 %v6915_v20  ;;  %v8052_v39 = vld [vmem:[#allocation5 + $0x1a80] sm:$0xff]  ;;  %v8054_v20 = vld [vmem:[#allocation5 + $0x1a90] sm:$0xff] }
 0xc9f   : > { %7795 = vmatpush1.bf16.msra.mxu1 %v6912_v51  ;;  %7918 = vmatpush1.bf16.msra.mxu0 %v6914_v22 }
 0xca0   : > { %7796 = vmatprep.subr.bf16.mxu1 %v6929_v7  ;;  %7919 = vmatprep.subr.bf16.mxu0 %v6931_v31  ;;  %v8069_v7 = vld [vmem:[#allocation5 + $0x1b08] sm:$0xff]  ;;  %v8071_v31 = vld [vmem:[#allocation5 + $0x1b18] sm:$0xff] }
 0xca3   : > { %7797 = vmatpush1.bf16.msra.mxu1 %v6928_v34  ;;  %7920 = vmatpush1.bf16.msra.mxu0 %v6930_v13 }
 0xca4   : > { %7798 = vmatprep.subr.bf16.mxu1 %v6945_v52  ;;  %7921 = vmatprep.subr.bf16.mxu0 %v6947_v40 }
 0xca7   : > { %7799 = vmatpush1.bf16.msra.mxu1 %v6944_v42  ;;  %7922 = vmatpush1.bf16.msra.mxu0 %v6946_v49 }
 0xca8   : > { %8484 = vmatprep.subr.bf16.mxu1 %v7973_v1  ;;  %8566 = vmatprep.subr.bf16.mxu0 %v7975_v26 }
 0xcaa   : > { %7801 = vmatmul.mubr.bf16.vlgmr.msra.gmra.mrb[60].mxu1 %v13065_v47  ;;  %7924 = vmatmul.mubr.bf16.vlgmr.msra.gmra.mrb[32].mxu0 %v13065_v47  ;;  %v8023_v47 = vld [vmem:[#allocation5 + $0x1998] sm:$0xff] }
 0xcab   : > { %8485 = vmatpush1.bf16.msra.mxu1 %v7972_v57  ;;  %8567 = vmatpush1.bf16.msra.mxu0 %v7974_v4  ;;  %v8068_v57 = vld [vmem:[#allocation5 + $0x1b00] sm:$0xff]  ;;  %v8070_v4 = vld [vmem:[#allocation5 + $0x1b10] sm:$0xff] }
 0xcac   : > { %8486 = vmatprep.subr.bf16.mxu1 %v7989_v10  ;;  %8568 = vmatprep.subr.bf16.mxu0 %v7991_v17  ;;  %v8085_v10 = vld [vmem:[#allocation5 + $0x1b88] sm:$0xff]  ;;  %v8087_v17 = vld [vmem:[#allocation5 + $0x1b98] sm:$0xff] }
 0xcad   : > { %8516 = vmatprep.mubr.bf16.mxu1 %v12714_v29  ;;  %8598 = vmatprep.mubr.bf16.mxu0 %v12714_v29 }
 0xcaf   : > { %8487 = vmatpush1.bf16.msra.mxu1 %v7988_v6  ;;  %8569 = vmatpush1.bf16.msra.mxu0 %v7990_v46  ;;  %v8084_v6 = vld [vmem:[#allocation5 + $0x1b80] sm:$0xff]  ;;  %v8086_v46 = vld [vmem:[#allocation5 + $0x1b90] sm:$0xff] }
 0xcb0   : > { %8488 = vmatprep.subr.bf16.mxu1 %v8005_v60  ;;  %8570 = vmatprep.subr.bf16.mxu0 %v8007_v36  ;;  %v8101_v60 = vld [vmem:[#allocation5 + $0x1c08] sm:$0xff]  ;;  %v8103_v36 = vld [vmem:[#allocation5 + $0x1c18] sm:$0xff] }
 0xcb3   : > { %8489 = vmatpush1.bf16.msra.mxu1 %v8004_v16  ;;  %8571 = vmatpush1.bf16.msra.mxu0 %v8006_v58  ;;  %v8100_v16 = vld [vmem:[#allocation5 + $0x1c00] sm:$0xff]  ;;  %v8102_v58 = vld [vmem:[#allocation5 + $0x1c10] sm:$0xff] }
 0xcb4   : > { %8490 = vmatprep.subr.bf16.mxu1 %v8021_v32  ;;  %8572 = vmatprep.subr.bf16.mxu0 %v8023_v47  ;;  %v8117_v32 = vld [vmem:[#allocation5 + $0x1c88] sm:$0xff]  ;;  %v8119_v47 = vld [vmem:[#allocation5 + $0x1c98] sm:$0xff] }
 0xcb7   : > { %8491 = vmatpush1.bf16.msra.mxu1 %v8020_v56  ;;  %8573 = vmatpush1.bf16.msra.mxu0 %v8022_v41  ;;  %v8116_v56 = vld [vmem:[#allocation5 + $0x1c80] sm:$0xff]  ;;  %v8118_v41 = vld [vmem:[#allocation5 + $0x1c90] sm:$0xff] }
 0xcb8   : > { %8492 = vmatprep.subr.bf16.mxu1 %v8037_v21  ;;  %8574 = vmatprep.subr.bf16.mxu0 %v8039_v9  ;;  %v8133_v21 = vld [vmem:[#allocation5 + $0x1d08] sm:$0xff]  ;;  %v8135_v9 = vld [vmem:[#allocation5 + $0x1d18] sm:$0xff] }
 0xcbb   : > { %8493 = vmatpush1.bf16.msra.mxu1 %v8036_v11  ;;  %8575 = vmatpush1.bf16.msra.mxu0 %v8038_v19  ;;  %v8132_v11 = vld [vmem:[#allocation5 + $0x1d00] sm:$0xff]  ;;  %v8134_v19 = vld [vmem:[#allocation5 + $0x1d10] sm:$0xff] }
 0xcbc   : > { %8494 = vmatprep.subr.bf16.mxu1 %v8053_v5  ;;  %8576 = vmatprep.subr.bf16.mxu0 %v8055_v0  ;;  %v8149_v5 = vld [vmem:[#allocation5 + $0x1d88] sm:$0xff]  ;;  %v8151_v0 = vld [vmem:[#allocation5 + $0x1d98] sm:$0xff] }
 0xcbd   : > { %v13131_v51 = vpop.f32.mrb[56].mxu1  ;;  %v13133_v22 = vpop.f32.mrb[28].mxu0 }
 0xcbe   : > { %v13135_v34 = vpop.f32.mrb[57].mxu1  ;;  %v13137_v13 = vpop.f32.mrb[29].mxu0 }
 0xcbf   : > { %v7952_v52 = vcombine.low %v13131_v51, %v13135_v34  ;;  %v7953_v40 = vcombine.low %v13133_v22, %v13137_v13  ;;  %v7560_v42 = vpop.f32.mrb[58].mxu1  ;;  %v7683_v49 = vpop.f32.mrb[30].mxu0  ;;  %8495 = vmatpush1.bf16.msra.mxu1 %v8052_v39  ;;  %8577 = vmatpush1.bf16.msra.mxu0 %v8054_v20  ;;  %v8148_v39 = vld [vmem:[#allocation5 + $0x1d80] sm:$0xff]  ;;  %v8150_v20 = vld [vmem:[#allocation5 + $0x1d90] sm:$0xff] }
 0xcc0   : > { %v7561_v1 = vpop.f32.mrb[59].mxu1  ;;  %v7684_v26 = vpop.f32.mrb[31].mxu0  ;;  %8496 = vmatprep.subr.bf16.mxu1 %v8069_v7  ;;  %8578 = vmatprep.subr.bf16.mxu0 %v8071_v31  ;;  %v8165_v7 = vld [vmem:[#allocation5 + $0x1e08] sm:$0xff]  ;;  %v8167_v31 = vld [vmem:[#allocation5 + $0x1e18] sm:$0xff]  ;;  %v8164_v42 = vld [vmem:[#allocation5 + $0x1e00] sm:$0xff] }
 0xcc1   : > { %v8166_v49 = vld [vmem:[#allocation5 + $0x1e10] sm:$0xff]  ;;  %v8181_v1 = vld [vmem:[#allocation5 + $0x1e88] sm:$0xff]  ;;  %v8183_v26 = vld [vmem:[#allocation5 + $0x1e98] sm:$0xff] }
 0xcc3   : > { %8497 = vmatpush1.bf16.msra.mxu1 %v8068_v57  ;;  %8579 = vmatpush1.bf16.msra.mxu0 %v8070_v4  ;;  %v8180_v57 = vld [vmem:[#allocation5 + $0x1e80] sm:$0xff]  ;;  %v8182_v4 = vld [vmem:[#allocation5 + $0x1e90] sm:$0xff] }
 0xcc4   : > { %8498 = vmatprep.subr.bf16.mxu1 %v8085_v10  ;;  %8580 = vmatprep.subr.bf16.mxu0 %v8087_v17  ;;  %v8197_v10 = vld [vmem:[#allocation5 + $0x1f08] sm:$0xff]  ;;  %v8199_v17 = vld [vmem:[#allocation5 + $0x1f18] sm:$0xff] }
 0xcc7   : > { %8499 = vmatpush1.bf16.msra.mxu1 %v8084_v6  ;;  %8581 = vmatpush1.bf16.msra.mxu0 %v8086_v46  ;;  %v8196_v6 = vld [vmem:[#allocation5 + $0x1f00] sm:$0xff]  ;;  %v8198_v46 = vld [vmem:[#allocation5 + $0x1f10] sm:$0xff] }
 0xcc8   : > { %8500 = vmatprep.subr.bf16.mxu1 %v8101_v60  ;;  %8582 = vmatprep.subr.bf16.mxu0 %v8103_v36  ;;  %v8213_v60 = vld [vmem:[#allocation5 + $0x1f88] sm:$0xff]  ;;  %v8215_v36 = vld [vmem:[#allocation5 + $0x1f98] sm:$0xff] }
 0xccb   : > { %8501 = vmatpush1.bf16.msra.mxu1 %v8100_v16  ;;  %8583 = vmatpush1.bf16.msra.mxu0 %v8102_v58  ;;  %v8212_v16 = vld [vmem:[#allocation5 + $0x1f80] sm:$0xff]  ;;  %v8214_v58 = vld [vmem:[#allocation5 + $0x1f90] sm:$0xff] }
 0xccc   : > { %8502 = vmatprep.subr.bf16.mxu1 %v8117_v32  ;;  %8584 = vmatprep.subr.bf16.mxu0 %v8119_v47  ;;  %v8229_v32 = vld [vmem:[#allocation5 + $0x2008] sm:$0xff]  ;;  %v8231_v47 = vld [vmem:[#allocation5 + $0x2018] sm:$0xff] }
 0xccf   : > { %8503 = vmatpush1.bf16.msra.mxu1 %v8116_v56  ;;  %8585 = vmatpush1.bf16.msra.mxu0 %v8118_v41  ;;  %v8228_v56 = vld [vmem:[#allocation5 + $0x2000] sm:$0xff]  ;;  %v8230_v41 = vld [vmem:[#allocation5 + $0x2010] sm:$0xff] }
 0xcd0   : > { %8504 = vmatprep.subr.bf16.mxu1 %v8133_v21  ;;  %8586 = vmatprep.subr.bf16.mxu0 %v8135_v9  ;;  %v8245_v21 = vld [vmem:[#allocation5 + $0x2088] sm:$0xff]  ;;  %v8247_v9 = vld [vmem:[#allocation5 + $0x2098] sm:$0xff] }
 0xcd3   : > { %8505 = vmatpush1.bf16.msra.mxu1 %v8132_v11  ;;  %8587 = vmatpush1.bf16.msra.mxu0 %v8134_v19  ;;  %v8244_v11 = vld [vmem:[#allocation5 + $0x2080] sm:$0xff]  ;;  %v8246_v19 = vld [vmem:[#allocation5 + $0x2090] sm:$0xff] }
 0xcd4   : > { %8506 = vmatprep.subr.bf16.mxu1 %v8149_v5  ;;  %8588 = vmatprep.subr.bf16.mxu0 %v8151_v0  ;;  %v8261_v5 = vld [vmem:[#allocation5 + $0x2108] sm:$0xff]  ;;  %v8263_v0 = vld [vmem:[#allocation5 + $0x2118] sm:$0xff] }
 0xcd7   : > { %8507 = vmatpush1.bf16.msra.mxu1 %v8148_v39  ;;  %8589 = vmatpush1.bf16.msra.mxu0 %v8150_v20  ;;  %v8260_v39 = vld [vmem:[#allocation5 + $0x2100] sm:$0xff]  ;;  %v8262_v20 = vld [vmem:[#allocation5 + $0x2110] sm:$0xff] }
 0xcd8   : > { %8508 = vmatprep.subr.bf16.mxu1 %v8165_v7  ;;  %8590 = vmatprep.subr.bf16.mxu0 %v8167_v31  ;;  %v8277_v7 = vld [vmem:[#allocation5 + $0x2188] sm:$0xff]  ;;  %v8279_v31 = vld [vmem:[#allocation5 + $0x2198] sm:$0xff] }
 0xcdb   : > { %8509 = vmatpush1.bf16.msra.mxu1 %v8164_v42  ;;  %8591 = vmatpush1.bf16.msra.mxu0 %v8166_v49  ;;  %v8276_v42 = vld [vmem:[#allocation5 + $0x2180] sm:$0xff]  ;;  %v8278_v49 = vld [vmem:[#allocation5 + $0x2190] sm:$0xff] }
 0xcdc   : > { %8510 = vmatprep.subr.bf16.mxu1 %v8181_v1  ;;  %8592 = vmatprep.subr.bf16.mxu0 %v8183_v26  ;;  %v8293_v1 = vld [vmem:[#allocation5 + $0x2208] sm:$0xff]  ;;  %v8295_v26 = vld [vmem:[#allocation5 + $0x2218] sm:$0xff] }
 0xcdf   : > { %8511 = vmatpush1.bf16.msra.mxu1 %v8180_v57  ;;  %8593 = vmatpush1.bf16.msra.mxu0 %v8182_v4  ;;  %v8292_v57 = vld [vmem:[#allocation5 + $0x2200] sm:$0xff]  ;;  %v8294_v4 = vld [vmem:[#allocation5 + $0x2210] sm:$0xff] }
 0xce0   : > { %8512 = vmatprep.subr.bf16.mxu1 %v8197_v10  ;;  %8594 = vmatprep.subr.bf16.mxu0 %v8199_v17  ;;  %v8309_v10 = vld [vmem:[#allocation5 + $0x2288] sm:$0xff]  ;;  %v8311_v17 = vld [vmem:[#allocation5 + $0x2298] sm:$0xff] }
 0xce3   : > { %8513 = vmatpush1.bf16.msra.mxu1 %v8196_v6  ;;  %8595 = vmatpush1.bf16.msra.mxu0 %v8198_v46  ;;  %v8308_v6 = vld [vmem:[#allocation5 + $0x2280] sm:$0xff]  ;;  %v8310_v46 = vld [vmem:[#allocation5 + $0x2290] sm:$0xff] }
 0xce4   : > { %8514 = vmatprep.subr.bf16.mxu1 %v8213_v60  ;;  %8596 = vmatprep.subr.bf16.mxu0 %v8215_v36  ;;  %v8325_v60 = vld [vmem:[#allocation5 + $0x2308] sm:$0xff]  ;;  %v8327_v36 = vld [vmem:[#allocation5 + $0x2318] sm:$0xff] }
 0xce7   : > { %8515 = vmatpush1.bf16.msra.mxu1 %v8212_v16  ;;  %8597 = vmatpush1.bf16.msra.mxu0 %v8214_v58  ;;  %v8324_v16 = vld [vmem:[#allocation5 + $0x2300] sm:$0xff]  ;;  %v8326_v58 = vld [vmem:[#allocation5 + $0x2310] sm:$0xff] }
 0xce8   : > { %8525 = vmatprep.subr.bf16.mxu1 %v8229_v32  ;;  %8607 = vmatprep.subr.bf16.mxu0 %v8231_v47  ;;  %v8341_v32 = vld [vmem:[#allocation5 + $0x2388] sm:$0xff]  ;;  %v8343_v47 = vld [vmem:[#allocation5 + $0x2398] sm:$0xff] }
 0xcea   : > { %8517 = vmatmul.mubr.bf16.vlgmr.msra.gmra.mrb[64].mxu1 %v12718_v38  ;;  %8599 = vmatmul.mubr.bf16.vlgmr.msra.gmra.mrb[36].mxu0 %v12718_v38 }
 0xceb   : > { %8526 = vmatpush1.bf16.msra.mxu1 %v8228_v56  ;;  %8608 = vmatpush1.bf16.msra.mxu0 %v8230_v41  ;;  %v8340_v56 = vld [vmem:[#allocation5 + $0x2380] sm:$0xff]  ;;  %v8342_v41 = vld [vmem:[#allocation5 + $0x2390] sm:$0xff] }
 0xcec   : > { %8527 = vmatprep.subr.bf16.mxu1 %v8245_v21  ;;  %8609 = vmatprep.subr.bf16.mxu0 %v8247_v9  ;;  %v8357_v21 = vld [vmem:[#allocation5 + $0x2408] sm:$0xff]  ;;  %v8359_v9 = vld [vmem:[#allocation5 + $0x2418] sm:$0xff] }
 0xced   : > { %8557 = vmatprep.mubr.bf16.mxu1 %v12726_v15  ;;  %8639 = vmatprep.mubr.bf16.mxu0 %v12726_v15 }
 0xcef   : > { %8528 = vmatpush1.bf16.msra.mxu1 %v8244_v11  ;;  %8610 = vmatpush1.bf16.msra.mxu0 %v8246_v19  ;;  %v8356_v11 = vld [vmem:[#allocation5 + $0x2400] sm:$0xff]  ;;  %v8358_v19 = vld [vmem:[#allocation5 + $0x2410] sm:$0xff] }
 0xcf0   : > { %8529 = vmatprep.subr.bf16.mxu1 %v8261_v5  ;;  %8611 = vmatprep.subr.bf16.mxu0 %v8263_v0  ;;  %v8373_v5 = vld [vmem:[#allocation5 + $0x2488] sm:$0xff]  ;;  %v8375_v0 = vld [vmem:[#allocation5 + $0x2498] sm:$0xff] }
 0xcf3   : > { %8530 = vmatpush1.bf16.msra.mxu1 %v8260_v39  ;;  %8612 = vmatpush1.bf16.msra.mxu0 %v8262_v20  ;;  %v8372_v39 = vld [vmem:[#allocation5 + $0x2480] sm:$0xff]  ;;  %v8374_v20 = vld [vmem:[#allocation5 + $0x2490] sm:$0xff] }
 0xcf4   : > { %8531 = vmatprep.subr.bf16.mxu1 %v8277_v7  ;;  %8613 = vmatprep.subr.bf16.mxu0 %v8279_v31  ;;  %v8389_v7 = vld [vmem:[#allocation5 + $0x2508] sm:$0xff]  ;;  %v8391_v31 = vld [vmem:[#allocation5 + $0x2518] sm:$0xff] }
 0xcf7   : > { %8532 = vmatpush1.bf16.msra.mxu1 %v8276_v42  ;;  %8614 = vmatpush1.bf16.msra.mxu0 %v8278_v49  ;;  %v8388_v42 = vld [vmem:[#allocation5 + $0x2500] sm:$0xff]  ;;  %v8390_v49 = vld [vmem:[#allocation5 + $0x2510] sm:$0xff] }
 0xcf8   : > { %8533 = vmatprep.subr.bf16.mxu1 %v8293_v1  ;;  %8615 = vmatprep.subr.bf16.mxu0 %v8295_v26  ;;  %v8405_v1 = vld [vmem:[#allocation5 + $0x2588] sm:$0xff]  ;;  %v8407_v26 = vld [vmem:[#allocation5 + $0x2598] sm:$0xff] }
 0xcfb   : > { %8534 = vmatpush1.bf16.msra.mxu1 %v8292_v57  ;;  %8616 = vmatpush1.bf16.msra.mxu0 %v8294_v4  ;;  %v8404_v57 = vld [vmem:[#allocation5 + $0x2580] sm:$0xff]  ;;  %v8406_v4 = vld [vmem:[#allocation5 + $0x2590] sm:$0xff] }
 0xcfc   : > { %8535 = vmatprep.subr.bf16.mxu1 %v8309_v10  ;;  %8617 = vmatprep.subr.bf16.mxu0 %v8311_v17  ;;  %v8421_v10 = vld [vmem:[#allocation5 + $0x2608] sm:$0xff]  ;;  %v8423_v17 = vld [vmem:[#allocation5 + $0x2618] sm:$0xff] }
 0xcff   : > { %8536 = vmatpush1.bf16.msra.mxu1 %v8308_v6  ;;  %8618 = vmatpush1.bf16.msra.mxu0 %v8310_v46  ;;  %v8420_v6 = vld [vmem:[#allocation5 + $0x2600] sm:$0xff]  ;;  %v8422_v46 = vld [vmem:[#allocation5 + $0x2610] sm:$0xff] }
 0xd00   : > { %8537 = vmatprep.subr.bf16.mxu1 %v8325_v60  ;;  %8619 = vmatprep.subr.bf16.mxu0 %v8327_v36  ;;  %v8437_v60 = vld [vmem:[#allocation5 + $0x2688] sm:$0xff]  ;;  %v8439_v36 = vld [vmem:[#allocation5 + $0x2698] sm:$0xff] }
 0xd03   : > { %8538 = vmatpush1.bf16.msra.mxu1 %v8324_v16  ;;  %8620 = vmatpush1.bf16.msra.mxu0 %v8326_v58  ;;  %v8436_v16 = vld [vmem:[#allocation5 + $0x2680] sm:$0xff]  ;;  %v8438_v58 = vld [vmem:[#allocation5 + $0x2690] sm:$0xff] }
 0xd04   : > { %8539 = vmatprep.subr.bf16.mxu1 %v8341_v32  ;;  %8621 = vmatprep.subr.bf16.mxu0 %v8343_v47  ;;  %v8453_v32 = vld [vmem:[#allocation5 + $0x2708] sm:$0xff]  ;;  %v8455_v47 = vld [vmem:[#allocation5 + $0x2718] sm:$0xff] }
 0xd07   : > { %8540 = vmatpush1.bf16.msra.mxu1 %v8340_v56  ;;  %8622 = vmatpush1.bf16.msra.mxu0 %v8342_v41  ;;  %v8452_v56 = vld [vmem:[#allocation5 + $0x2700] sm:$0xff]  ;;  %v8454_v41 = vld [vmem:[#allocation5 + $0x2710] sm:$0xff] }
 0xd08   : > { %8541 = vmatprep.subr.bf16.mxu1 %v8357_v21  ;;  %8623 = vmatprep.subr.bf16.mxu0 %v8359_v9  ;;  %v8469_v21 = vld [vmem:[#allocation5 + $0x2788] sm:$0xff]  ;;  %v8471_v9 = vld [vmem:[#allocation5 + $0x2798] sm:$0xff] }
 0xd0b   : > { %8542 = vmatpush1.bf16.msra.mxu1 %v8356_v11  ;;  %8624 = vmatpush1.bf16.msra.mxu0 %v8358_v19  ;;  %v8468_v11 = vld [vmem:[#allocation5 + $0x2780] sm:$0xff]  ;;  %v8470_v19 = vld [vmem:[#allocation5 + $0x2790] sm:$0xff] }
 0xd0c   : > { %8543 = vmatprep.subr.bf16.mxu1 %v8373_v5  ;;  %8625 = vmatprep.subr.bf16.mxu0 %v8375_v0  ;;  %v7977_v5 = vld [vmem:[#allocation5 + $0x1828] sm:$0xff]  ;;  %v7979_v0 = vld [vmem:[#allocation5 + $0x1838] sm:$0xff] }
 0xd0f   : > { %8544 = vmatpush1.bf16.msra.mxu1 %v8372_v39  ;;  %8626 = vmatpush1.bf16.msra.mxu0 %v8374_v20  ;;  %v7976_v39 = vld [vmem:[#allocation5 + $0x1820] sm:$0xff]  ;;  %v7978_v20 = vld [vmem:[#allocation5 + $0x1830] sm:$0xff] }
 0xd10   : > { %8545 = vmatprep.subr.bf16.mxu1 %v8389_v7  ;;  %8627 = vmatprep.subr.bf16.mxu0 %v8391_v31  ;;  %v7993_v7 = vld [vmem:[#allocation5 + $0x18a8] sm:$0xff]  ;;  %v7995_v31 = vld [vmem:[#allocation5 + $0x18b8] sm:$0xff] }
 0xd13   : > { %8546 = vmatpush1.bf16.msra.mxu1 %v8388_v42  ;;  %8628 = vmatpush1.bf16.msra.mxu0 %v8390_v49  ;;  %v7992_v42 = vld [vmem:[#allocation5 + $0x18a0] sm:$0xff]  ;;  %v7994_v49 = vld [vmem:[#allocation5 + $0x18b0] sm:$0xff] }
 0xd14   : > { %8547 = vmatprep.subr.bf16.mxu1 %v8405_v1  ;;  %8629 = vmatprep.subr.bf16.mxu0 %v8407_v26  ;;  %v8009_v1 = vld [vmem:[#allocation5 + $0x1928] sm:$0xff]  ;;  %v8011_v26 = vld [vmem:[#allocation5 + $0x1938] sm:$0xff] }
 0xd17   : > { %8548 = vmatpush1.bf16.msra.mxu1 %v8404_v57  ;;  %8630 = vmatpush1.bf16.msra.mxu0 %v8406_v4  ;;  %v8008_v57 = vld [vmem:[#allocation5 + $0x1920] sm:$0xff]  ;;  %v8010_v4 = vld [vmem:[#allocation5 + $0x1930] sm:$0xff] }
 0xd18   : > { %8549 = vmatprep.subr.bf16.mxu1 %v8421_v10  ;;  %8631 = vmatprep.subr.bf16.mxu0 %v8423_v17  ;;  %v8025_v10 = vld [vmem:[#allocation5 + $0x19a8] sm:$0xff]  ;;  %v8027_v17 = vld [vmem:[#allocation5 + $0x19b8] sm:$0xff] }
 0xd1b   : > { %8550 = vmatpush1.bf16.msra.mxu1 %v8420_v6  ;;  %8632 = vmatpush1.bf16.msra.mxu0 %v8422_v46  ;;  %v8024_v6 = vld [vmem:[#allocation5 + $0x19a0] sm:$0xff]  ;;  %v8026_v46 = vld [vmem:[#allocation5 + $0x19b0] sm:$0xff] }
 0xd1c   : > { %8551 = vmatprep.subr.bf16.mxu1 %v8437_v60  ;;  %8633 = vmatprep.subr.bf16.mxu0 %v8439_v36  ;;  %v8041_v60 = vld [vmem:[#allocation5 + $0x1a28] sm:$0xff]  ;;  %v8043_v36 = vld [vmem:[#allocation5 + $0x1a38] sm:$0xff] }
 0xd1f   : > { %8552 = vmatpush1.bf16.msra.mxu1 %v8436_v16  ;;  %8634 = vmatpush1.bf16.msra.mxu0 %v8438_v58  ;;  %v8040_v16 = vld [vmem:[#allocation5 + $0x1a20] sm:$0xff]  ;;  %v8042_v58 = vld [vmem:[#allocation5 + $0x1a30] sm:$0xff] }
 0xd20   : > { %8553 = vmatprep.subr.bf16.mxu1 %v8453_v32  ;;  %8635 = vmatprep.subr.bf16.mxu0 %v8455_v47  ;;  %v8057_v32 = vld [vmem:[#allocation5 + $0x1aa8] sm:$0xff]  ;;  %v8059_v47 = vld [vmem:[#allocation5 + $0x1ab8] sm:$0xff] }
 0xd23   : > { %8554 = vmatpush1.bf16.msra.mxu1 %v8452_v56  ;;  %8636 = vmatpush1.bf16.msra.mxu0 %v8454_v41  ;;  %v8056_v56 = vld [vmem:[#allocation5 + $0x1aa0] sm:$0xff]  ;;  %v8058_v41 = vld [vmem:[#allocation5 + $0x1ab0] sm:$0xff] }
 0xd24   : > { %8555 = vmatprep.subr.bf16.mxu1 %v8469_v21  ;;  %8637 = vmatprep.subr.bf16.mxu0 %v8471_v9  ;;  %v8073_v21 = vld [vmem:[#allocation5 + $0x1b28] sm:$0xff]  ;;  %v8075_v9 = vld [vmem:[#allocation5 + $0x1b38] sm:$0xff] }
 0xd27   : > { %8556 = vmatpush1.bf16.msra.mxu1 %v8468_v11  ;;  %8638 = vmatpush1.bf16.msra.mxu0 %v8470_v19  ;;  %v8072_v11 = vld [vmem:[#allocation5 + $0x1b20] sm:$0xff]  ;;  %v8074_v19 = vld [vmem:[#allocation5 + $0x1b30] sm:$0xff] }
 0xd28   : > { %8648 = vmatprep.subr.bf16.mxu1 %v7977_v5  ;;  %8730 = vmatprep.subr.bf16.mxu0 %v7979_v0  ;;  %v8089_v5 = vld [vmem:[#allocation5 + $0x1ba8] sm:$0xff]  ;;  %v8091_v0 = vld [vmem:[#allocation5 + $0x1bb8] sm:$0xff] }
 0xd2a   : > { %8558 = vmatmul.mubr.bf16.vlgmr.msra.gmra.mrb[64].mxu1 %v12732_v54  ;;  %8640 = vmatmul.mubr.bf16.vlgmr.msra.gmra.mrb[36].mxu0 %v12732_v54 }
 0xd2b   : > { %8649 = vmatpush1.bf16.msra.mxu1 %v7976_v39  ;;  %8731 = vmatpush1.bf16.msra.mxu0 %v7978_v20  ;;  %v8088_v39 = vld [vmem:[#allocation5 + $0x1ba0] sm:$0xff]  ;;  %v8090_v20 = vld [vmem:[#allocation5 + $0x1bb0] sm:$0xff] }
 0xd2c   : > { %8650 = vmatprep.subr.bf16.mxu1 %v7993_v7  ;;  %8732 = vmatprep.subr.bf16.mxu0 %v7995_v31  ;;  %v8105_v7 = vld [vmem:[#allocation5 + $0x1c28] sm:$0xff]  ;;  %v8107_v31 = vld [vmem:[#allocation5 + $0x1c38] sm:$0xff] }
 0xd2d   : > { %8680 = vmatprep.mubr.bf16.mxu1 %v12714_v29  ;;  %8762 = vmatprep.mubr.bf16.mxu0 %v12714_v29 }
 0xd2f   : > { %8651 = vmatpush1.bf16.msra.mxu1 %v7992_v42  ;;  %8733 = vmatpush1.bf16.msra.mxu0 %v7994_v49  ;;  %v8104_v42 = vld [vmem:[#allocation5 + $0x1c20] sm:$0xff]  ;;  %v8106_v49 = vld [vmem:[#allocation5 + $0x1c30] sm:$0xff] }
 0xd30   : > { %8652 = vmatprep.subr.bf16.mxu1 %v8009_v1  ;;  %8734 = vmatprep.subr.bf16.mxu0 %v8011_v26  ;;  %v8121_v1 = vld [vmem:[#allocation5 + $0x1ca8] sm:$0xff]  ;;  %v8123_v26 = vld [vmem:[#allocation5 + $0x1cb8] sm:$0xff] }
 0xd33   : > { %8653 = vmatpush1.bf16.msra.mxu1 %v8008_v57  ;;  %8735 = vmatpush1.bf16.msra.mxu0 %v8010_v4  ;;  %v8120_v57 = vld [vmem:[#allocation5 + $0x1ca0] sm:$0xff]  ;;  %v8122_v4 = vld [vmem:[#allocation5 + $0x1cb0] sm:$0xff] }
 0xd34   : > { %8654 = vmatprep.subr.bf16.mxu1 %v8025_v10  ;;  %8736 = vmatprep.subr.bf16.mxu0 %v8027_v17  ;;  %v8137_v10 = vld [vmem:[#allocation5 + $0x1d28] sm:$0xff]  ;;  %v8139_v17 = vld [vmem:[#allocation5 + $0x1d38] sm:$0xff] }
 0xd37   : > { %8655 = vmatpush1.bf16.msra.mxu1 %v8024_v6  ;;  %8737 = vmatpush1.bf16.msra.mxu0 %v8026_v46  ;;  %v8136_v6 = vld [vmem:[#allocation5 + $0x1d20] sm:$0xff]  ;;  %v8138_v46 = vld [vmem:[#allocation5 + $0x1d30] sm:$0xff] }
 0xd38   : > { %8656 = vmatprep.subr.bf16.mxu1 %v8041_v60  ;;  %8738 = vmatprep.subr.bf16.mxu0 %v8043_v36  ;;  %v8153_v60 = vld [vmem:[#allocation5 + $0x1da8] sm:$0xff]  ;;  %v8155_v36 = vld [vmem:[#allocation5 + $0x1db8] sm:$0xff] }
 0xd3b   : > { %8657 = vmatpush1.bf16.msra.mxu1 %v8040_v16  ;;  %8739 = vmatpush1.bf16.msra.mxu0 %v8042_v58  ;;  %v8152_v16 = vld [vmem:[#allocation5 + $0x1da0] sm:$0xff]  ;;  %v8154_v58 = vld [vmem:[#allocation5 + $0x1db0] sm:$0xff] }
 0xd3c   : > { %8658 = vmatprep.subr.bf16.mxu1 %v8057_v32  ;;  %8740 = vmatprep.subr.bf16.mxu0 %v8059_v47  ;;  %v8169_v32 = vld [vmem:[#allocation5 + $0x1e28] sm:$0xff]  ;;  %v8171_v47 = vld [vmem:[#allocation5 + $0x1e38] sm:$0xff] }
 0xd3f   : > { %8659 = vmatpush1.bf16.msra.mxu1 %v8056_v56  ;;  %8741 = vmatpush1.bf16.msra.mxu0 %v8058_v41  ;;  %v8168_v56 = vld [vmem:[#allocation5 + $0x1e20] sm:$0xff]  ;;  %v8170_v41 = vld [vmem:[#allocation5 + $0x1e30] sm:$0xff] }
 0xd40   : > { %8660 = vmatprep.subr.bf16.mxu1 %v8073_v21  ;;  %8742 = vmatprep.subr.bf16.mxu0 %v8075_v9  ;;  %v8185_v21 = vld [vmem:[#allocation5 + $0x1ea8] sm:$0xff]  ;;  %v8187_v9 = vld [vmem:[#allocation5 + $0x1eb8] sm:$0xff] }
 0xd43   : > { %8661 = vmatpush1.bf16.msra.mxu1 %v8072_v11  ;;  %8743 = vmatpush1.bf16.msra.mxu0 %v8074_v19  ;;  %v8184_v11 = vld [vmem:[#allocation5 + $0x1ea0] sm:$0xff]  ;;  %v8186_v19 = vld [vmem:[#allocation5 + $0x1eb0] sm:$0xff] }
 0xd44   : > { %8662 = vmatprep.subr.bf16.mxu1 %v8089_v5  ;;  %8744 = vmatprep.subr.bf16.mxu0 %v8091_v0  ;;  %v8201_v5 = vld [vmem:[#allocation5 + $0x1f28] sm:$0xff]  ;;  %v8203_v0 = vld [vmem:[#allocation5 + $0x1f38] sm:$0xff] }
 0xd47   : > { %8663 = vmatpush1.bf16.msra.mxu1 %v8088_v39  ;;  %8745 = vmatpush1.bf16.msra.mxu0 %v8090_v20  ;;  %v8200_v39 = vld [vmem:[#allocation5 + $0x1f20] sm:$0xff]  ;;  %v8202_v20 = vld [vmem:[#allocation5 + $0x1f30] sm:$0xff] }
 0xd48   : > { %8664 = vmatprep.subr.bf16.mxu1 %v8105_v7  ;;  %8746 = vmatprep.subr.bf16.mxu0 %v8107_v31  ;;  %v8217_v7 = vld [vmem:[#allocation5 + $0x1fa8] sm:$0xff]  ;;  %v8219_v31 = vld [vmem:[#allocation5 + $0x1fb8] sm:$0xff] }
 0xd4b   : > { %8665 = vmatpush1.bf16.msra.mxu1 %v8104_v42  ;;  %8747 = vmatpush1.bf16.msra.mxu0 %v8106_v49  ;;  %v8216_v42 = vld [vmem:[#allocation5 + $0x1fa0] sm:$0xff]  ;;  %v8218_v49 = vld [vmem:[#allocation5 + $0x1fb0] sm:$0xff] }
 0xd4c   : > { %8666 = vmatprep.subr.bf16.mxu1 %v8121_v1  ;;  %8748 = vmatprep.subr.bf16.mxu0 %v8123_v26  ;;  %v8233_v1 = vld [vmem:[#allocation5 + $0x2028] sm:$0xff]  ;;  %v8235_v26 = vld [vmem:[#allocation5 + $0x2038] sm:$0xff] }
 0xd4f   : > { %8667 = vmatpush1.bf16.msra.mxu1 %v8120_v57  ;;  %8749 = vmatpush1.bf16.msra.mxu0 %v8122_v4  ;;  %v8232_v57 = vld [vmem:[#allocation5 + $0x2020] sm:$0xff]  ;;  %v8234_v4 = vld [vmem:[#allocation5 + $0x2030] sm:$0xff] }
 0xd50   : > { %8668 = vmatprep.subr.bf16.mxu1 %v8137_v10  ;;  %8750 = vmatprep.subr.bf16.mxu0 %v8139_v17  ;;  %v8249_v10 = vld [vmem:[#allocation5 + $0x20a8] sm:$0xff]  ;;  %v8251_v17 = vld [vmem:[#allocation5 + $0x20b8] sm:$0xff] }
 0xd53   : > { %8669 = vmatpush1.bf16.msra.mxu1 %v8136_v6  ;;  %8751 = vmatpush1.bf16.msra.mxu0 %v8138_v46  ;;  %v8248_v6 = vld [vmem:[#allocation5 + $0x20a0] sm:$0xff]  ;;  %v8250_v46 = vld [vmem:[#allocation5 + $0x20b0] sm:$0xff] }
 0xd54   : > { %8670 = vmatprep.subr.bf16.mxu1 %v8153_v60  ;;  %8752 = vmatprep.subr.bf16.mxu0 %v8155_v36  ;;  %v8265_v60 = vld [vmem:[#allocation5 + $0x2128] sm:$0xff]  ;;  %v8267_v36 = vld [vmem:[#allocation5 + $0x2138] sm:$0xff] }
 0xd57   : > { %8671 = vmatpush1.bf16.msra.mxu1 %v8152_v16  ;;  %8753 = vmatpush1.bf16.msra.mxu0 %v8154_v58  ;;  %v8264_v16 = vld [vmem:[#allocation5 + $0x2120] sm:$0xff]  ;;  %v8266_v58 = vld [vmem:[#allocation5 + $0x2130] sm:$0xff] }
 0xd58   : > { %8672 = vmatprep.subr.bf16.mxu1 %v8169_v32  ;;  %8754 = vmatprep.subr.bf16.mxu0 %v8171_v47  ;;  %v8281_v32 = vld [vmem:[#allocation5 + $0x21a8] sm:$0xff]  ;;  %v8283_v47 = vld [vmem:[#allocation5 + $0x21b8] sm:$0xff] }
 0xd5b   : > { %8673 = vmatpush1.bf16.msra.mxu1 %v8168_v56  ;;  %8755 = vmatpush1.bf16.msra.mxu0 %v8170_v41  ;;  %v8280_v56 = vld [vmem:[#allocation5 + $0x21a0] sm:$0xff]  ;;  %v8282_v41 = vld [vmem:[#allocation5 + $0x21b0] sm:$0xff] }
 0xd5c   : > { %8674 = vmatprep.subr.bf16.mxu1 %v8185_v21  ;;  %8756 = vmatprep.subr.bf16.mxu0 %v8187_v9  ;;  %v8297_v21 = vld [vmem:[#allocation5 + $0x2228] sm:$0xff]  ;;  %v8299_v9 = vld [vmem:[#allocation5 + $0x2238] sm:$0xff] }
 0xd5f   : > { %8675 = vmatpush1.bf16.msra.mxu1 %v8184_v11  ;;  %8757 = vmatpush1.bf16.msra.mxu0 %v8186_v19  ;;  %v8296_v11 = vld [vmem:[#allocation5 + $0x2220] sm:$0xff]  ;;  %v8298_v19 = vld [vmem:[#allocation5 + $0x2230] sm:$0xff] }
 0xd60   : > { %8676 = vmatprep.subr.bf16.mxu1 %v8201_v5  ;;  %8758 = vmatprep.subr.bf16.mxu0 %v8203_v0  ;;  %v8313_v5 = vld [vmem:[#allocation5 + $0x22a8] sm:$0xff]  ;;  %v8315_v0 = vld [vmem:[#allocation5 + $0x22b8] sm:$0xff] }
 0xd63   : > { %8677 = vmatpush1.bf16.msra.mxu1 %v8200_v39  ;;  %8759 = vmatpush1.bf16.msra.mxu0 %v8202_v20  ;;  %v8312_v39 = vld [vmem:[#allocation5 + $0x22a0] sm:$0xff]  ;;  %v8314_v20 = vld [vmem:[#allocation5 + $0x22b0] sm:$0xff] }
 0xd64   : > { %8678 = vmatprep.subr.bf16.mxu1 %v8217_v7  ;;  %8760 = vmatprep.subr.bf16.mxu0 %v8219_v31 }
 0xd67   : > { %8679 = vmatpush1.bf16.msra.mxu1 %v8216_v42  ;;  %8761 = vmatpush1.bf16.msra.mxu0 %v8218_v49  ;;  %v8329_v42 = vld [vmem:[#allocation5 + $0x2328] sm:$0xff]  ;;  %v8331_v49 = vld [vmem:[#allocation5 + $0x2338] sm:$0xff] }
 0xd68   : > { %8689 = vmatprep.subr.bf16.mxu1 %v8233_v1  ;;  %8771 = vmatprep.subr.bf16.mxu0 %v8235_v26 }
 0xd6a   : > { %8681 = vmatmul.mubr.bf16.vlgmr.msra.gmra.mrb[68].mxu1 %v12718_v38  ;;  %8763 = vmatmul.mubr.bf16.vlgmr.msra.gmra.mrb[40].mxu0 %v12718_v38 }
 0xd6b   : > { %8690 = vmatpush1.bf16.msra.mxu1 %v8232_v57  ;;  %8772 = vmatpush1.bf16.msra.mxu0 %v8234_v4 }
 0xd6c   : > { %8691 = vmatprep.subr.bf16.mxu1 %v8249_v10  ;;  %8773 = vmatprep.subr.bf16.mxu0 %v8251_v17 }
 0xd6d   : > { %8721 = vmatprep.mubr.bf16.mxu1 %v12726_v15  ;;  %8803 = vmatprep.mubr.bf16.mxu0 %v12726_v15 }
 0xd6f   : > { %8692 = vmatpush1.bf16.msra.mxu1 %v8248_v6  ;;  %8774 = vmatpush1.bf16.msra.mxu0 %v8250_v46 }
 0xd70   : > { %8693 = vmatprep.subr.bf16.mxu1 %v8265_v60  ;;  %8775 = vmatprep.subr.bf16.mxu0 %v8267_v36  ;;  %v8328_v60 = vld [vmem:[#allocation5 + $0x2320] sm:$0xff]  ;;  %v8330_v36 = vld [vmem:[#allocation5 + $0x2330] sm:$0xff] }
 0xd73   : > { %8694 = vmatpush1.bf16.msra.mxu1 %v8264_v16  ;;  %8776 = vmatpush1.bf16.msra.mxu0 %v8266_v58  ;;  %v8345_v16 = vld [vmem:[#allocation5 + $0x23a8] sm:$0xff]  ;;  %v8347_v58 = vld [vmem:[#allocation5 + $0x23b8] sm:$0xff] }
 0xd74   : > { %8695 = vmatprep.subr.bf16.mxu1 %v8281_v32  ;;  %8777 = vmatprep.subr.bf16.mxu0 %v8283_v47  ;;  %v8344_v32 = vld [vmem:[#allocation5 + $0x23a0] sm:$0xff]  ;;  %v8346_v47 = vld [vmem:[#allocation5 + $0x23b0] sm:$0xff] }
 0xd77   : > { %8696 = vmatpush1.bf16.msra.mxu1 %v8280_v56  ;;  %8778 = vmatpush1.bf16.msra.mxu0 %v8282_v41  ;;  %v8361_v56 = vld [vmem:[#allocation5 + $0x2428] sm:$0xff]  ;;  %v8363_v41 = vld [vmem:[#allocation5 + $0x2438] sm:$0xff] }
 0xd78   : > { %8697 = vmatprep.subr.bf16.mxu1 %v8297_v21  ;;  %8779 = vmatprep.subr.bf16.mxu0 %v8299_v9  ;;  %v8360_v21 = vld [vmem:[#allocation5 + $0x2420] sm:$0xff]  ;;  %v8362_v9 = vld [vmem:[#allocation5 + $0x2430] sm:$0xff] }
 0xd7b   : > { %8698 = vmatpush1.bf16.msra.mxu1 %v8296_v11  ;;  %8780 = vmatpush1.bf16.msra.mxu0 %v8298_v19  ;;  %v8377_v11 = vld [vmem:[#allocation5 + $0x24a8] sm:$0xff]  ;;  %v8379_v19 = vld [vmem:[#allocation5 + $0x24b8] sm:$0xff] }
 0xd7c   : > { %8699 = vmatprep.subr.bf16.mxu1 %v8313_v5  ;;  %8781 = vmatprep.subr.bf16.mxu0 %v8315_v0  ;;  %v8376_v5 = vld [vmem:[#allocation5 + $0x24a0] sm:$0xff]  ;;  %v8378_v0 = vld [vmem:[#allocation5 + $0x24b0] sm:$0xff] }
 0xd7d   : > { %v13155_v7 = vpop.f32.mrb[60].mxu1  ;;  %v13157_v31 = vpop.f32.mrb[32].mxu0 }
 0xd7e   : > { %v13159_v1 = vpop.f32.mrb[61].mxu1  ;;  %v13161_v26 = vpop.f32.mrb[33].mxu0 }
 0xd7f   : > { %v7954_v57 = vcombine.low %v13155_v7, %v13159_v1  ;;  %v7955_v4 = vcombine.low %v13157_v31, %v13161_v26  ;;  %v7806_v10 = vpop.f32.mrb[62].mxu1  ;;  %v7929_v17 = vpop.f32.mrb[34].mxu0  ;;  %8700 = vmatpush1.bf16.msra.mxu1 %v8312_v39  ;;  %8782 = vmatpush1.bf16.msra.mxu0 %v8314_v20  ;;  %v8393_v39 = vld [vmem:[#allocation5 + $0x2528] sm:$0xff]  ;;  %v8395_v20 = vld [vmem:[#allocation5 + $0x2538] sm:$0xff] }
 0xd80   : > { %v7807_v6 = vpop.f32.mrb[63].mxu1  ;;  %v7930_v46 = vpop.f32.mrb[35].mxu0  ;;  %8701 = vmatprep.subr.bf16.mxu1 %v8329_v42  ;;  %8783 = vmatprep.subr.bf16.mxu0 %v8331_v49  ;;  %v8392_v42 = vld [vmem:[#allocation5 + $0x2520] sm:$0xff]  ;;  %v8394_v49 = vld [vmem:[#allocation5 + $0x2530] sm:$0xff]  ;;  %v8409_v10 = vld [vmem:[#allocation5 + $0x25a8] sm:$0xff] }
 0xd81   : > { %v8411_v17 = vld [vmem:[#allocation5 + $0x25b8] sm:$0xff]  ;;  %v8408_v6 = vld [vmem:[#allocation5 + $0x25a0] sm:$0xff]  ;;  %v8410_v46 = vld [vmem:[#allocation5 + $0x25b0] sm:$0xff] }
 0xd83   : > { %8702 = vmatpush1.bf16.msra.mxu1 %v8328_v60  ;;  %8784 = vmatpush1.bf16.msra.mxu0 %v8330_v36  ;;  %v8425_v60 = vld [vmem:[#allocation5 + $0x2628] sm:$0xff]  ;;  %v8427_v36 = vld [vmem:[#allocation5 + $0x2638] sm:$0xff] }
 0xd84   : > { %8703 = vmatprep.subr.bf16.mxu1 %v8345_v16  ;;  %8785 = vmatprep.subr.bf16.mxu0 %v8347_v58  ;;  %v8424_v16 = vld [vmem:[#allocation5 + $0x2620] sm:$0xff]  ;;  %v8426_v58 = vld [vmem:[#allocation5 + $0x2630] sm:$0xff] }
 0xd87   : > { %8704 = vmatpush1.bf16.msra.mxu1 %v8344_v32  ;;  %8786 = vmatpush1.bf16.msra.mxu0 %v8346_v47  ;;  %v8441_v32 = vld [vmem:[#allocation5 + $0x26a8] sm:$0xff]  ;;  %v8443_v47 = vld [vmem:[#allocation5 + $0x26b8] sm:$0xff] }
 0xd88   : > { %8705 = vmatprep.subr.bf16.mxu1 %v8361_v56  ;;  %8787 = vmatprep.subr.bf16.mxu0 %v8363_v41  ;;  %v8440_v56 = vld [vmem:[#allocation5 + $0x26a0] sm:$0xff]  ;;  %v8442_v41 = vld [vmem:[#allocation5 + $0x26b0] sm:$0xff] }
 0xd8b   : > { %8706 = vmatpush1.bf16.msra.mxu1 %v8360_v21  ;;  %8788 = vmatpush1.bf16.msra.mxu0 %v8362_v9  ;;  %v8457_v21 = vld [vmem:[#allocation5 + $0x2728] sm:$0xff]  ;;  %v8459_v9 = vld [vmem:[#allocation5 + $0x2738] sm:$0xff] }
 0xd8c   : > { %8707 = vmatprep.subr.bf16.mxu1 %v8377_v11  ;;  %8789 = vmatprep.subr.bf16.mxu0 %v8379_v19  ;;  %v8456_v11 = vld [vmem:[#allocation5 + $0x2720] sm:$0xff]  ;;  %v8458_v19 = vld [vmem:[#allocation5 + $0x2730] sm:$0xff] }
 0xd8f   : > { %8708 = vmatpush1.bf16.msra.mxu1 %v8376_v5  ;;  %8790 = vmatpush1.bf16.msra.mxu0 %v8378_v0  ;;  %v8473_v5 = vld [vmem:[#allocation5 + $0x27a8] sm:$0xff]  ;;  %v8475_v0 = vld [vmem:[#allocation5 + $0x27b8] sm:$0xff] }
 0xd90   : > { %8709 = vmatprep.subr.bf16.mxu1 %v8393_v39  ;;  %8791 = vmatprep.subr.bf16.mxu0 %v8395_v20  ;;  %v8472_v39 = vld [vmem:[#allocation5 + $0x27a0] sm:$0xff]  ;;  %v8474_v20 = vld [vmem:[#allocation5 + $0x27b0] sm:$0xff] }
 0xd93   : > { %8710 = vmatpush1.bf16.msra.mxu1 %v8392_v42  ;;  %8792 = vmatpush1.bf16.msra.mxu0 %v8394_v49  ;;  %v7981_v42 = vld [vmem:[#allocation5 + $0x1848] sm:$0xff]  ;;  %v7983_v49 = vld [vmem:[#allocation5 + $0x1858] sm:$0xff] }
 0xd94   : > { %8711 = vmatprep.subr.bf16.mxu1 %v8409_v10  ;;  %8793 = vmatprep.subr.bf16.mxu0 %v8411_v17  ;;  %v7980_v10 = vld [vmem:[#allocation5 + $0x1840] sm:$0xff]  ;;  %v7982_v17 = vld [vmem:[#allocation5 + $0x1850] sm:$0xff] }
 0xd97   : > { %8712 = vmatpush1.bf16.msra.mxu1 %v8408_v6  ;;  %8794 = vmatpush1.bf16.msra.mxu0 %v8410_v46  ;;  %v7997_v6 = vld [vmem:[#allocation5 + $0x18c8] sm:$0xff]  ;;  %v7999_v46 = vld [vmem:[#allocation5 + $0x18d8] sm:$0xff] }
 0xd98   : > { %8713 = vmatprep.subr.bf16.mxu1 %v8425_v60  ;;  %8795 = vmatprep.subr.bf16.mxu0 %v8427_v36  ;;  %v7996_v60 = vld [vmem:[#allocation5 + $0x18c0] sm:$0xff]  ;;  %v7998_v36 = vld [vmem:[#allocation5 + $0x18d0] sm:$0xff] }
 0xd9b   : > { %8714 = vmatpush1.bf16.msra.mxu1 %v8424_v16  ;;  %8796 = vmatpush1.bf16.msra.mxu0 %v8426_v58  ;;  %v8013_v16 = vld [vmem:[#allocation5 + $0x1948] sm:$0xff]  ;;  %v8015_v58 = vld [vmem:[#allocation5 + $0x1958] sm:$0xff] }
 0xd9c   : > { %8715 = vmatprep.subr.bf16.mxu1 %v8441_v32  ;;  %8797 = vmatprep.subr.bf16.mxu0 %v8443_v47  ;;  %v8012_v32 = vld [vmem:[#allocation5 + $0x1940] sm:$0xff]  ;;  %v8014_v47 = vld [vmem:[#allocation5 + $0x1950] sm:$0xff] }
 0xd9f   : > { %8716 = vmatpush1.bf16.msra.mxu1 %v8440_v56  ;;  %8798 = vmatpush1.bf16.msra.mxu0 %v8442_v41  ;;  %v8029_v56 = vld [vmem:[#allocation5 + $0x19c8] sm:$0xff]  ;;  %v8031_v41 = vld [vmem:[#allocation5 + $0x19d8] sm:$0xff] }
 0xda0   : > { %8717 = vmatprep.subr.bf16.mxu1 %v8457_v21  ;;  %8799 = vmatprep.subr.bf16.mxu0 %v8459_v9  ;;  %v8028_v21 = vld [vmem:[#allocation5 + $0x19c0] sm:$0xff]  ;;  %v8030_v9 = vld [vmem:[#allocation5 + $0x19d0] sm:$0xff] }
 0xda3   : > { %8718 = vmatpush1.bf16.msra.mxu1 %v8456_v11  ;;  %8800 = vmatpush1.bf16.msra.mxu0 %v8458_v19  ;;  %v8045_v11 = vld [vmem:[#allocation5 + $0x1a48] sm:$0xff]  ;;  %v8047_v19 = vld [vmem:[#allocation5 + $0x1a58] sm:$0xff] }
 0xda4   : > { %8719 = vmatprep.subr.bf16.mxu1 %v8473_v5  ;;  %8801 = vmatprep.subr.bf16.mxu0 %v8475_v0  ;;  %v8044_v5 = vld [vmem:[#allocation5 + $0x1a40] sm:$0xff]  ;;  %v8046_v0 = vld [vmem:[#allocation5 + $0x1a50] sm:$0xff] }
 0xda7   : > { %8720 = vmatpush1.bf16.msra.mxu1 %v8472_v39  ;;  %8802 = vmatpush1.bf16.msra.mxu0 %v8474_v20  ;;  %v8061_v39 = vld [vmem:[#allocation5 + $0x1ac8] sm:$0xff]  ;;  %v8063_v20 = vld [vmem:[#allocation5 + $0x1ad8] sm:$0xff] }
 0xda8   : > { %8812 = vmatprep.subr.bf16.mxu1 %v7981_v42  ;;  %8894 = vmatprep.subr.bf16.mxu0 %v7983_v49  ;;  %v8060_v42 = vld [vmem:[#allocation5 + $0x1ac0] sm:$0xff]  ;;  %v8062_v49 = vld [vmem:[#allocation5 + $0x1ad0] sm:$0xff] }
 0xdaa   : > { %8722 = vmatmul.mubr.bf16.vlgmr.msra.gmra.mrb[68].mxu1 %v12732_v54  ;;  %8804 = vmatmul.mubr.bf16.vlgmr.msra.gmra.mrb[40].mxu0 %v12732_v54 }
 0xdab   : > { %8813 = vmatpush1.bf16.msra.mxu1 %v7980_v10  ;;  %8895 = vmatpush1.bf16.msra.mxu0 %v7982_v17  ;;  %v8077_v10 = vld [vmem:[#allocation5 + $0x1b48] sm:$0xff]  ;;  %v8079_v17 = vld [vmem:[#allocation5 + $0x1b58] sm:$0xff] }
 0xdac   : > { %8814 = vmatprep.subr.bf16.mxu1 %v7997_v6  ;;  %8896 = vmatprep.subr.bf16.mxu0 %v7999_v46  ;;  %v8076_v6 = vld [vmem:[#allocation5 + $0x1b40] sm:$0xff]  ;;  %v8078_v46 = vld [vmem:[#allocation5 + $0x1b50] sm:$0xff] }
 0xdad   : > { %8844 = vmatprep.mubr.bf16.mxu1 %v12714_v29  ;;  %8926 = vmatprep.mubr.bf16.mxu0 %v12714_v29 }
 0xdaf   : > { %8815 = vmatpush1.bf16.msra.mxu1 %v7996_v60  ;;  %8897 = vmatpush1.bf16.msra.mxu0 %v7998_v36  ;;  %v8093_v60 = vld [vmem:[#allocation5 + $0x1bc8] sm:$0xff]  ;;  %v8095_v36 = vld [vmem:[#allocation5 + $0x1bd8] sm:$0xff] }
 0xdb0   : > { %8816 = vmatprep.subr.bf16.mxu1 %v8013_v16  ;;  %8898 = vmatprep.subr.bf16.mxu0 %v8015_v58  ;;  %v8092_v16 = vld [vmem:[#allocation5 + $0x1bc0] sm:$0xff]  ;;  %v8094_v58 = vld [vmem:[#allocation5 + $0x1bd0] sm:$0xff] }
 0xdb3   : > { %8817 = vmatpush1.bf16.msra.mxu1 %v8012_v32  ;;  %8899 = vmatpush1.bf16.msra.mxu0 %v8014_v47  ;;  %v8109_v32 = vld [vmem:[#allocation5 + $0x1c48] sm:$0xff]  ;;  %v8111_v47 = vld [vmem:[#allocation5 + $0x1c58] sm:$0xff] }
 0xdb4   : > { %8818 = vmatprep.subr.bf16.mxu1 %v8029_v56  ;;  %8900 = vmatprep.subr.bf16.mxu0 %v8031_v41  ;;  %v8108_v56 = vld [vmem:[#allocation5 + $0x1c40] sm:$0xff]  ;;  %v8110_v41 = vld [vmem:[#allocation5 + $0x1c50] sm:$0xff] }
 0xdb7   : > { %8819 = vmatpush1.bf16.msra.mxu1 %v8028_v21  ;;  %8901 = vmatpush1.bf16.msra.mxu0 %v8030_v9  ;;  %v8125_v21 = vld [vmem:[#allocation5 + $0x1cc8] sm:$0xff]  ;;  %v8127_v9 = vld [vmem:[#allocation5 + $0x1cd8] sm:$0xff] }
 0xdb8   : > { %8820 = vmatprep.subr.bf16.mxu1 %v8045_v11  ;;  %8902 = vmatprep.subr.bf16.mxu0 %v8047_v19  ;;  %v8124_v11 = vld [vmem:[#allocation5 + $0x1cc0] sm:$0xff]  ;;  %v8126_v19 = vld [vmem:[#allocation5 + $0x1cd0] sm:$0xff] }
 0xdbb   : > { %8821 = vmatpush1.bf16.msra.mxu1 %v8044_v5  ;;  %8903 = vmatpush1.bf16.msra.mxu0 %v8046_v0  ;;  %v8141_v5 = vld [vmem:[#allocation5 + $0x1d48] sm:$0xff]  ;;  %v8143_v0 = vld [vmem:[#allocation5 + $0x1d58] sm:$0xff] }
 0xdbc   : > { %8822 = vmatprep.subr.bf16.mxu1 %v8061_v39  ;;  %8904 = vmatprep.subr.bf16.mxu0 %v8063_v20  ;;  %v8140_v39 = vld [vmem:[#allocation5 + $0x1d40] sm:$0xff]  ;;  %v8142_v20 = vld [vmem:[#allocation5 + $0x1d50] sm:$0xff] }
 0xdbf   : > { %8823 = vmatpush1.bf16.msra.mxu1 %v8060_v42  ;;  %8905 = vmatpush1.bf16.msra.mxu0 %v8062_v49  ;;  %v8157_v42 = vld [vmem:[#allocation5 + $0x1dc8] sm:$0xff]  ;;  %v8159_v49 = vld [vmem:[#allocation5 + $0x1dd8] sm:$0xff] }
 0xdc0   : > { %8824 = vmatprep.subr.bf16.mxu1 %v8077_v10  ;;  %8906 = vmatprep.subr.bf16.mxu0 %v8079_v17  ;;  %v8156_v10 = vld [vmem:[#allocation5 + $0x1dc0] sm:$0xff]  ;;  %v8158_v17 = vld [vmem:[#allocation5 + $0x1dd0] sm:$0xff] }
 0xdc3   : > { %8825 = vmatpush1.bf16.msra.mxu1 %v8076_v6  ;;  %8907 = vmatpush1.bf16.msra.mxu0 %v8078_v46  ;;  %v8173_v6 = vld [vmem:[#allocation5 + $0x1e48] sm:$0xff]  ;;  %v8175_v46 = vld [vmem:[#allocation5 + $0x1e58] sm:$0xff] }
 0xdc4   : > { %8826 = vmatprep.subr.bf16.mxu1 %v8093_v60  ;;  %8908 = vmatprep.subr.bf16.mxu0 %v8095_v36  ;;  %v8172_v60 = vld [vmem:[#allocation5 + $0x1e40] sm:$0xff]  ;;  %v8174_v36 = vld [vmem:[#allocation5 + $0x1e50] sm:$0xff] }
 0xdc7   : > { %8827 = vmatpush1.bf16.msra.mxu1 %v8092_v16  ;;  %8909 = vmatpush1.bf16.msra.mxu0 %v8094_v58  ;;  %v8189_v16 = vld [vmem:[#allocation5 + $0x1ec8] sm:$0xff]  ;;  %v8191_v58 = vld [vmem:[#allocation5 + $0x1ed8] sm:$0xff] }
 0xdc8   : > { %8828 = vmatprep.subr.bf16.mxu1 %v8109_v32  ;;  %8910 = vmatprep.subr.bf16.mxu0 %v8111_v47  ;;  %v8188_v32 = vld [vmem:[#allocation5 + $0x1ec0] sm:$0xff]  ;;  %v8190_v47 = vld [vmem:[#allocation5 + $0x1ed0] sm:$0xff] }
 0xdcb   : > { %8829 = vmatpush1.bf16.msra.mxu1 %v8108_v56  ;;  %8911 = vmatpush1.bf16.msra.mxu0 %v8110_v41  ;;  %v8205_v56 = vld [vmem:[#allocation5 + $0x1f48] sm:$0xff]  ;;  %v8207_v41 = vld [vmem:[#allocation5 + $0x1f58] sm:$0xff] }
 0xdcc   : > { %8830 = vmatprep.subr.bf16.mxu1 %v8125_v21  ;;  %8912 = vmatprep.subr.bf16.mxu0 %v8127_v9  ;;  %v8204_v21 = vld [vmem:[#allocation5 + $0x1f40] sm:$0xff]  ;;  %v8206_v9 = vld [vmem:[#allocation5 + $0x1f50] sm:$0xff] }
 0xdcf   : > { %8831 = vmatpush1.bf16.msra.mxu1 %v8124_v11  ;;  %8913 = vmatpush1.bf16.msra.mxu0 %v8126_v19  ;;  %v8221_v11 = vld [vmem:[#allocation5 + $0x1fc8] sm:$0xff]  ;;  %v8223_v19 = vld [vmem:[#allocation5 + $0x1fd8] sm:$0xff] }
 0xdd0   : > { %8832 = vmatprep.subr.bf16.mxu1 %v8141_v5  ;;  %8914 = vmatprep.subr.bf16.mxu0 %v8143_v0  ;;  %v8220_v5 = vld [vmem:[#allocation5 + $0x1fc0] sm:$0xff]  ;;  %v8222_v0 = vld [vmem:[#allocation5 + $0x1fd0] sm:$0xff] }
 0xdd3   : > { %8833 = vmatpush1.bf16.msra.mxu1 %v8140_v39  ;;  %8915 = vmatpush1.bf16.msra.mxu0 %v8142_v20  ;;  %v8237_v39 = vld [vmem:[#allocation5 + $0x2048] sm:$0xff]  ;;  %v8239_v20 = vld [vmem:[#allocation5 + $0x2058] sm:$0xff] }
 0xdd4   : > { %8834 = vmatprep.subr.bf16.mxu1 %v8157_v42  ;;  %8916 = vmatprep.subr.bf16.mxu0 %v8159_v49  ;;  %v8236_v42 = vld [vmem:[#allocation5 + $0x2040] sm:$0xff]  ;;  %v8238_v49 = vld [vmem:[#allocation5 + $0x2050] sm:$0xff] }
 0xdd7   : > { %8835 = vmatpush1.bf16.msra.mxu1 %v8156_v10  ;;  %8917 = vmatpush1.bf16.msra.mxu0 %v8158_v17  ;;  %v8253_v10 = vld [vmem:[#allocation5 + $0x20c8] sm:$0xff]  ;;  %v8255_v17 = vld [vmem:[#allocation5 + $0x20d8] sm:$0xff] }
 0xdd8   : > { %8836 = vmatprep.subr.bf16.mxu1 %v8173_v6  ;;  %8918 = vmatprep.subr.bf16.mxu0 %v8175_v46  ;;  %v8252_v6 = vld [vmem:[#allocation5 + $0x20c0] sm:$0xff]  ;;  %v8254_v46 = vld [vmem:[#allocation5 + $0x20d0] sm:$0xff] }
 0xddb   : > { %8837 = vmatpush1.bf16.msra.mxu1 %v8172_v60  ;;  %8919 = vmatpush1.bf16.msra.mxu0 %v8174_v36  ;;  %v8269_v60 = vld [vmem:[#allocation5 + $0x2148] sm:$0xff]  ;;  %v8271_v36 = vld [vmem:[#allocation5 + $0x2158] sm:$0xff] }
 0xddc   : > { %8838 = vmatprep.subr.bf16.mxu1 %v8189_v16  ;;  %8920 = vmatprep.subr.bf16.mxu0 %v8191_v58  ;;  %v8268_v16 = vld [vmem:[#allocation5 + $0x2140] sm:$0xff]  ;;  %v8270_v58 = vld [vmem:[#allocation5 + $0x2150] sm:$0xff] }
 0xddf   : > { %8839 = vmatpush1.bf16.msra.mxu1 %v8188_v32  ;;  %8921 = vmatpush1.bf16.msra.mxu0 %v8190_v47  ;;  %v8285_v32 = vld [vmem:[#allocation5 + $0x21c8] sm:$0xff]  ;;  %v8287_v47 = vld [vmem:[#allocation5 + $0x21d8] sm:$0xff] }
 0xde0   : > { %8840 = vmatprep.subr.bf16.mxu1 %v8205_v56  ;;  %8922 = vmatprep.subr.bf16.mxu0 %v8207_v41  ;;  %v8284_v56 = vld [vmem:[#allocation5 + $0x21c0] sm:$0xff]  ;;  %v8286_v41 = vld [vmem:[#allocation5 + $0x21d0] sm:$0xff] }
 0xde3   : > { %8841 = vmatpush1.bf16.msra.mxu1 %v8204_v21  ;;  %8923 = vmatpush1.bf16.msra.mxu0 %v8206_v9  ;;  %v8301_v21 = vld [vmem:[#allocation5 + $0x2248] sm:$0xff]  ;;  %v8303_v9 = vld [vmem:[#allocation5 + $0x2258] sm:$0xff] }
 0xde4   : > { %8842 = vmatprep.subr.bf16.mxu1 %v8221_v11  ;;  %8924 = vmatprep.subr.bf16.mxu0 %v8223_v19  ;;  %v8300_v11 = vld [vmem:[#allocation5 + $0x2240] sm:$0xff]  ;;  %v8302_v19 = vld [vmem:[#allocation5 + $0x2250] sm:$0xff] }
 0xde7   : > { %8843 = vmatpush1.bf16.msra.mxu1 %v8220_v5  ;;  %8925 = vmatpush1.bf16.msra.mxu0 %v8222_v0  ;;  %v8317_v5 = vld [vmem:[#allocation5 + $0x22c8] sm:$0xff]  ;;  %v8319_v0 = vld [vmem:[#allocation5 + $0x22d8] sm:$0xff] }
 0xde8   : > { %8853 = vmatprep.subr.bf16.mxu1 %v8237_v39  ;;  %8935 = vmatprep.subr.bf16.mxu0 %v8239_v20  ;;  %v6166_v39 = vld [vmem:[%s12627_s14] sm:$0xff]  ;;  %v6167_v20 = vld [vmem:[%s12627_s14 + $0x8] sm:$0xff] }
 0xdea   : > { %8845 = vmatmul.mubr.bf16.vlgmr.msra.gmra.mrb[72].mxu1 %v12718_v38  ;;  %8927 = vmatmul.mubr.bf16.vlgmr.msra.gmra.mrb[44].mxu0 %v12718_v38 }
 0xdeb   : > { %8854 = vmatpush1.bf16.msra.mxu1 %v8236_v42  ;;  %8936 = vmatpush1.bf16.msra.mxu0 %v8238_v49  ;;  %v8316_v42 = vld [vmem:[#allocation5 + $0x22c0] sm:$0xff]  ;;  %v8318_v49 = vld [vmem:[#allocation5 + $0x22d0] sm:$0xff] }
 0xdec   : > { %8855 = vmatprep.subr.bf16.mxu1 %v8253_v10  ;;  %8937 = vmatprep.subr.bf16.mxu0 %v8255_v17 }
 0xded   : > { %8885 = vmatprep.mubr.bf16.mxu1 %v12726_v15  ;;  %8967 = vmatprep.mubr.bf16.mxu0 %v12726_v15 }
 0xdef   : > { %8856 = vmatpush1.bf16.msra.mxu1 %v8252_v6  ;;  %8938 = vmatpush1.bf16.msra.mxu0 %v8254_v46  ;;  %v8333_v6 = vld [vmem:[#allocation5 + $0x2348] sm:$0xff]  ;;  %v8335_v46 = vld [vmem:[#allocation5 + $0x2358] sm:$0xff] }
 0xdf0   : > { %8857 = vmatprep.subr.bf16.mxu1 %v8269_v60  ;;  %8939 = vmatprep.subr.bf16.mxu0 %v8271_v36  ;;  %v7964_v60 = vadd.f32 %v7948_v14, %v6166_v39  ;;  %v8349_v14 = vld [vmem:[#allocation5 + $0x23c8] sm:$0xff]  ;;  %v8364_v39 = vld [vmem:[#allocation5 + $0x2440] sm:$0xff] }
 0xdf3   : > { %8858 = vmatpush1.bf16.msra.mxu1 %v8268_v16  ;;  %8940 = vmatpush1.bf16.msra.mxu0 %v8270_v58  ;;  %v7965_v58 = vadd.f32 %v7949_v50, %v6167_v20  ;;  %v8365_v50 = vld [vmem:[#allocation5 + $0x2448] sm:$0xff]  ;;  %v8366_v20 = vld [vmem:[#allocation5 + $0x2450] sm:$0xff] }
 0xdf4   : > { %8859 = vmatprep.subr.bf16.mxu1 %v8285_v32  ;;  %8941 = vmatprep.subr.bf16.mxu0 %v8287_v47 }
 0xdf7   : > { %8860 = vmatpush1.bf16.msra.mxu1 %v8284_v56  ;;  %8942 = vmatpush1.bf16.msra.mxu0 %v8286_v41 }
 0xdf8   : > { %8861 = vmatprep.subr.bf16.mxu1 %v8301_v21  ;;  %8943 = vmatprep.subr.bf16.mxu0 %v8303_v9 }
 0xdfb   : > { %8862 = vmatpush1.bf16.msra.mxu1 %v8300_v11  ;;  %8944 = vmatpush1.bf16.msra.mxu0 %v8302_v19  ;;  %v8332_v11 = vld [vmem:[#allocation5 + $0x2340] sm:$0xff]  ;;  %v8334_v19 = vld [vmem:[#allocation5 + $0x2350] sm:$0xff] }
 0xdfc   : > { %8863 = vmatprep.subr.bf16.mxu1 %v8317_v5  ;;  %8945 = vmatprep.subr.bf16.mxu0 %v8319_v0  ;;  %v8351_v5 = vld [vmem:[#allocation5 + $0x23d8] sm:$0xff] }
 0xdfd   : > { %v8559_v10 = vpop.f32.mrb[64].mxu1  ;;  %v8641_v17 = vpop.f32.mrb[36].mxu0  ;;  %v8367_v0 = vld [vmem:[#allocation5 + $0x2458] sm:$0xff] }
 0xdfe   : > { %v8561_v36 = vpop.f32.mrb[65].mxu1  ;;  %v8643_v16 = vpop.f32.mrb[37].mxu0 }
 0xdff   : > { %v9156_v32 = vcombine.low %v8559_v10, %v8561_v36  ;;  %v9157_v47 = vcombine.low %v8641_v17, %v8643_v16  ;;  %v8563_v56 = vpop.f32.mrb[66].mxu1  ;;  %v8645_v41 = vpop.f32.mrb[38].mxu0  ;;  %8864 = vmatpush1.bf16.msra.mxu1 %v8316_v42  ;;  %8946 = vmatpush1.bf16.msra.mxu0 %v8318_v49  ;;  %v8381_v42 = vld [vmem:[#allocation5 + $0x24c8] sm:$0xff]  ;;  %v8383_v49 = vld [vmem:[#allocation5 + $0x24d8] sm:$0xff]  ;;  %v8380_v10 = vld [vmem:[#allocation5 + $0x24c0] sm:$0xff] }
 0xe00   : > { %v8564_v21 = vpop.f32.mrb[67].mxu1  ;;  %v8646_v9 = vpop.f32.mrb[39].mxu0  ;;  %8865 = vmatprep.subr.bf16.mxu1 %v8333_v6  ;;  %8947 = vmatprep.subr.bf16.mxu0 %v8335_v46  ;;  %v8382_v17 = vld [vmem:[#allocation5 + $0x24d0] sm:$0xff]  ;;  %v8397_v6 = vld [vmem:[#allocation5 + $0x2548] sm:$0xff]  ;;  %v8399_v46 = vld [vmem:[#allocation5 + $0x2558] sm:$0xff] }
 0xe01   : > { %v13183_v28 = vadd.f32 %v9156_v32, %v7964_v60  ;;  %v13185_v45 = vadd.f32 %v9157_v47, %v7965_v58  ;;  %v8396_v60 = vld [vmem:[#allocation5 + $0x2540] sm:$0xff]  ;;  %v8398_v36 = vld [vmem:[#allocation5 + $0x2550] sm:$0xff]  ;;  %v8413_v16 = vld [vmem:[#allocation5 + $0x25c8] sm:$0xff] }
 0xe02   : > { %v8415_v58 = vld [vmem:[#allocation5 + $0x25d8] sm:$0xff]  ;;  %v8412_v32 = vld [vmem:[#allocation5 + $0x25c0] sm:$0xff]  ;;  %v8414_v47 = vld [vmem:[#allocation5 + $0x25d0] sm:$0xff] }
 0xe03   : > { %8866 = vmatpush1.bf16.msra.mxu1 %v8332_v11  ;;  %8948 = vmatpush1.bf16.msra.mxu0 %v8334_v19  ;;  %v8429_v56 = vld [vmem:[#allocation5 + $0x2648] sm:$0xff]  ;;  %v8431_v41 = vld [vmem:[#allocation5 + $0x2658] sm:$0xff]  ;;  %v8428_v21 = vld [vmem:[#allocation5 + $0x2640] sm:$0xff] }
 0xe04   : > { %8867 = vmatprep.subr.bf16.mxu1 %v8349_v14  ;;  %8949 = vmatprep.subr.bf16.mxu0 %v8351_v5  ;;  %v8430_v9 = vld [vmem:[#allocation5 + $0x2650] sm:$0xff]  ;;  %v8445_v11 = vld [vmem:[#allocation5 + $0x26c8] sm:$0xff]  ;;  %v8447_v19 = vld [vmem:[#allocation5 + $0x26d8] sm:$0xff] }
 0xe05   : > { %v8444_v14 = vld [vmem:[#allocation5 + $0x26c0] sm:$0xff]  ;;  %v8446_v5 = vld [vmem:[#allocation5 + $0x26d0] sm:$0xff] }
 0xe07   : > { %8868 = vmatpush1.bf16.msra.mxu1 %v8348_v18  ;;  %8950 = vmatpush1.bf16.msra.mxu0 %v8350_v37  ;;  %v8461_v18 = vld [vmem:[#allocation5 + $0x2748] sm:$0xff]  ;;  %v8463_v37 = vld [vmem:[#allocation5 + $0x2758] sm:$0xff] }
 0xe08   : > { %8869 = vmatprep.subr.bf16.mxu1 %v8365_v50  ;;  %8951 = vmatprep.subr.bf16.mxu0 %v8367_v0  ;;  %v8460_v50 = vld [vmem:[#allocation5 + $0x2740] sm:$0xff]  ;;  %v8462_v0 = vld [vmem:[#allocation5 + $0x2750] sm:$0xff] }
 0xe0b   : > { %8870 = vmatpush1.bf16.msra.mxu1 %v8364_v39  ;;  %8952 = vmatpush1.bf16.msra.mxu0 %v8366_v20  ;;  %v8477_v39 = vld [vmem:[#allocation5 + $0x27c8] sm:$0xff]  ;;  %v8479_v20 = vld [vmem:[#allocation5 + $0x27d8] sm:$0xff] }
 0xe0c   : > { %8871 = vmatprep.subr.bf16.mxu1 %v8381_v42  ;;  %8953 = vmatprep.subr.bf16.mxu0 %v8383_v49  ;;  %v8476_v42 = vld [vmem:[#allocation5 + $0x27c0] sm:$0xff]  ;;  %v8478_v49 = vld [vmem:[#allocation5 + $0x27d0] sm:$0xff] }
 0xe0f   : > { %8872 = vmatpush1.bf16.msra.mxu1 %v8380_v10  ;;  %8954 = vmatpush1.bf16.msra.mxu0 %v8382_v17  ;;  %v7985_v10 = vld [vmem:[#allocation5 + $0x1868] sm:$0xff]  ;;  %v7987_v17 = vld [vmem:[#allocation5 + $0x1878] sm:$0xff] }
 0xe10   : > { %8873 = vmatprep.subr.bf16.mxu1 %v8397_v6  ;;  %8955 = vmatprep.subr.bf16.mxu0 %v8399_v46  ;;  %v7984_v6 = vld [vmem:[#allocation5 + $0x1860] sm:$0xff]  ;;  %v7986_v46 = vld [vmem:[#allocation5 + $0x1870] sm:$0xff] }
 0xe13   : > { %8874 = vmatpush1.bf16.msra.mxu1 %v8396_v60  ;;  %8956 = vmatpush1.bf16.msra.mxu0 %v8398_v36  ;;  %v8001_v60 = vld [vmem:[#allocation5 + $0x18e8] sm:$0xff]  ;;  %v8003_v36 = vld [vmem:[#allocation5 + $0x18f8] sm:$0xff] }
 0xe14   : > { %8875 = vmatprep.subr.bf16.mxu1 %v8413_v16  ;;  %8957 = vmatprep.subr.bf16.mxu0 %v8415_v58  ;;  %v8000_v16 = vld [vmem:[#allocation5 + $0x18e0] sm:$0xff]  ;;  %v8002_v58 = vld [vmem:[#allocation5 + $0x18f0] sm:$0xff] }
 0xe17   : > { %8876 = vmatpush1.bf16.msra.mxu1 %v8412_v32  ;;  %8958 = vmatpush1.bf16.msra.mxu0 %v8414_v47  ;;  %v8017_v32 = vld [vmem:[#allocation5 + $0x1968] sm:$0xff]  ;;  %v8019_v47 = vld [vmem:[#allocation5 + $0x1978] sm:$0xff] }
 0xe18   : > { %8877 = vmatprep.subr.bf16.mxu1 %v8429_v56  ;;  %8959 = vmatprep.subr.bf16.mxu0 %v8431_v41  ;;  %v8016_v56 = vld [vmem:[#allocation5 + $0x1960] sm:$0xff]  ;;  %v8018_v41 = vld [vmem:[#allocation5 + $0x1970] sm:$0xff] }
 0xe1b   : > { %8878 = vmatpush1.bf16.msra.mxu1 %v8428_v21  ;;  %8960 = vmatpush1.bf16.msra.mxu0 %v8430_v9  ;;  %v8033_v21 = vld [vmem:[#allocation5 + $0x19e8] sm:$0xff]  ;;  %v8035_v9 = vld [vmem:[#allocation5 + $0x19f8] sm:$0xff] }
 0xe1c   : > { %8879 = vmatprep.subr.bf16.mxu1 %v8445_v11  ;;  %8961 = vmatprep.subr.bf16.mxu0 %v8447_v19  ;;  %v8032_v11 = vld [vmem:[#allocation5 + $0x19e0] sm:$0xff]  ;;  %v8034_v19 = vld [vmem:[#allocation5 + $0x19f0] sm:$0xff] }
 0xe1f   : > { %8880 = vmatpush1.bf16.msra.mxu1 %v8444_v14  ;;  %8962 = vmatpush1.bf16.msra.mxu0 %v8446_v5  ;;  %v8049_v14 = vld [vmem:[#allocation5 + $0x1a68] sm:$0xff]  ;;  %v8051_v5 = vld [vmem:[#allocation5 + $0x1a78] sm:$0xff] }
 0xe20   : > { %8881 = vmatprep.subr.bf16.mxu1 %v8461_v18  ;;  %8963 = vmatprep.subr.bf16.mxu0 %v8463_v37  ;;  %v8050_v18 = vld [vmem:[#allocation5 + $0x1a70] sm:$0xff]  ;;  %v8065_v37 = vld [vmem:[#allocation5 + $0x1ae8] sm:$0xff] }
 0xe23   : > { %8882 = vmatpush1.bf16.msra.mxu1 %v8460_v50  ;;  %8964 = vmatpush1.bf16.msra.mxu0 %v8462_v0  ;;  %v8067_v50 = vld [vmem:[#allocation5 + $0x1af8] sm:$0xff]  ;;  %v8064_v0 = vld [vmem:[#allocation5 + $0x1ae0] sm:$0xff] }
 0xe24   : > { %8883 = vmatprep.subr.bf16.mxu1 %v8477_v39  ;;  %8965 = vmatprep.subr.bf16.mxu0 %v8479_v20  ;;  %v8066_v39 = vld [vmem:[#allocation5 + $0x1af0] sm:$0xff]  ;;  %v8081_v20 = vld [vmem:[#allocation5 + $0x1b68] sm:$0xff] }
 0xe27   : > { %8884 = vmatpush1.bf16.msra.mxu1 %v8476_v42  ;;  %8966 = vmatpush1.bf16.msra.mxu0 %v8478_v49  ;;  %v8083_v42 = vld [vmem:[#allocation5 + $0x1b78] sm:$0xff]  ;;  %v8080_v49 = vld [vmem:[#allocation5 + $0x1b60] sm:$0xff] }
 0xe28   : > { %8976 = vmatprep.subr.bf16.mxu1 %v7985_v10  ;;  %9058 = vmatprep.subr.bf16.mxu0 %v7987_v17  ;;  %v8082_v10 = vld [vmem:[#allocation5 + $0x1b70] sm:$0xff]  ;;  %v8097_v17 = vld [vmem:[#allocation5 + $0x1be8] sm:$0xff] }
 0xe2a   : > { %8886 = vmatmul.mubr.bf16.vlgmr.msra.gmra.mrb[72].mxu1 %v12732_v54  ;;  %8968 = vmatmul.mubr.bf16.vlgmr.msra.gmra.mrb[44].mxu0 %v12732_v54 }
 0xe2b   : > { %8977 = vmatpush1.bf16.msra.mxu1 %v7984_v6  ;;  %9059 = vmatpush1.bf16.msra.mxu0 %v7986_v46  ;;  %v8099_v6 = vld [vmem:[#allocation5 + $0x1bf8] sm:$0xff]  ;;  %v8096_v46 = vld [vmem:[#allocation5 + $0x1be0] sm:$0xff] }
 0xe2c   : > { %8978 = vmatprep.subr.bf16.mxu1 %v8001_v60  ;;  %9060 = vmatprep.subr.bf16.mxu0 %v8003_v36  ;;  %v8098_v60 = vld [vmem:[#allocation5 + $0x1bf0] sm:$0xff]  ;;  %v8113_v36 = vld [vmem:[#allocation5 + $0x1c68] sm:$0xff] }
 0xe2d   : > { %9008 = vmatprep.mubr.bf16.mxu1 %v12714_v29  ;;  %9090 = vmatprep.mubr.bf16.mxu0 %v12714_v29  ;;  %v8048_v29 = vld [vmem:[#allocation5 + $0x1a60] sm:$0xff] }
 0xe2f   : > { %8979 = vmatpush1.bf16.msra.mxu1 %v8000_v16  ;;  %9061 = vmatpush1.bf16.msra.mxu0 %v8002_v58  ;;  %v8115_v16 = vld [vmem:[#allocation5 + $0x1c78] sm:$0xff]  ;;  %v8112_v58 = vld [vmem:[#allocation5 + $0x1c60] sm:$0xff] }
 0xe30   : > { %8980 = vmatprep.subr.bf16.mxu1 %v8017_v32  ;;  %9062 = vmatprep.subr.bf16.mxu0 %v8019_v47  ;;  %v8114_v32 = vld [vmem:[#allocation5 + $0x1c70] sm:$0xff]  ;;  %v8129_v47 = vld [vmem:[#allocation5 + $0x1ce8] sm:$0xff] }
 0xe33   : > { %8981 = vmatpush1.bf16.msra.mxu1 %v8016_v56  ;;  %9063 = vmatpush1.bf16.msra.mxu0 %v8018_v41  ;;  %v8131_v56 = vld [vmem:[#allocation5 + $0x1cf8] sm:$0xff]  ;;  %v8128_v41 = vld [vmem:[#allocation5 + $0x1ce0] sm:$0xff] }
 0xe34   : > { %8982 = vmatprep.subr.bf16.mxu1 %v8033_v21  ;;  %9064 = vmatprep.subr.bf16.mxu0 %v8035_v9  ;;  %v8130_v21 = vld [vmem:[#allocation5 + $0x1cf0] sm:$0xff]  ;;  %v8145_v9 = vld [vmem:[#allocation5 + $0x1d68] sm:$0xff] }
 0xe37   : > { %8983 = vmatpush1.bf16.msra.mxu1 %v8032_v11  ;;  %9065 = vmatpush1.bf16.msra.mxu0 %v8034_v19  ;;  %v8147_v11 = vld [vmem:[#allocation5 + $0x1d78] sm:$0xff]  ;;  %v8144_v19 = vld [vmem:[#allocation5 + $0x1d60] sm:$0xff] }
 0xe38   : > { %8984 = vmatprep.subr.bf16.mxu1 %v8049_v14  ;;  %9066 = vmatprep.subr.bf16.mxu0 %v8051_v5  ;;  %v8146_v14 = vld [vmem:[#allocation5 + $0x1d70] sm:$0xff]  ;;  %v8161_v5 = vld [vmem:[#allocation5 + $0x1de8] sm:$0xff] }
 0xe3b   : > { %8985 = vmatpush1.bf16.msra.mxu1 %v8048_v29  ;;  %9067 = vmatpush1.bf16.msra.mxu0 %v8050_v18  ;;  %v8163_v29 = vld [vmem:[#allocation5 + $0x1df8] sm:$0xff]  ;;  %v8160_v18 = vld [vmem:[#allocation5 + $0x1de0] sm:$0xff] }
 0xe3c   : > { %8986 = vmatprep.subr.bf16.mxu1 %v8065_v37  ;;  %9068 = vmatprep.subr.bf16.mxu0 %v8067_v50  ;;  %v8162_v37 = vld [vmem:[#allocation5 + $0x1df0] sm:$0xff]  ;;  %v8177_v50 = vld [vmem:[#allocation5 + $0x1e68] sm:$0xff] }
 0xe3f   : > { %8987 = vmatpush1.bf16.msra.mxu1 %v8064_v0  ;;  %9069 = vmatpush1.bf16.msra.mxu0 %v8066_v39  ;;  %v8179_v0 = vld [vmem:[#allocation5 + $0x1e78] sm:$0xff]  ;;  %v8176_v39 = vld [vmem:[#allocation5 + $0x1e60] sm:$0xff] }
 0xe40   : > { %8988 = vmatprep.subr.bf16.mxu1 %v8081_v20  ;;  %9070 = vmatprep.subr.bf16.mxu0 %v8083_v42  ;;  %v8178_v20 = vld [vmem:[#allocation5 + $0x1e70] sm:$0xff]  ;;  %v8193_v42 = vld [vmem:[#allocation5 + $0x1ee8] sm:$0xff] }
 0xe43   : > { %8989 = vmatpush1.bf16.msra.mxu1 %v8080_v49  ;;  %9071 = vmatpush1.bf16.msra.mxu0 %v8082_v10  ;;  %v8195_v49 = vld [vmem:[#allocation5 + $0x1ef8] sm:$0xff]  ;;  %v8192_v10 = vld [vmem:[#allocation5 + $0x1ee0] sm:$0xff] }
 0xe44   : > { %8990 = vmatprep.subr.bf16.mxu1 %v8097_v17  ;;  %9072 = vmatprep.subr.bf16.mxu0 %v8099_v6  ;;  %v8194_v17 = vld [vmem:[#allocation5 + $0x1ef0] sm:$0xff]  ;;  %v8209_v6 = vld [vmem:[#allocation5 + $0x1f68] sm:$0xff] }
 0xe47   : > { %8991 = vmatpush1.bf16.msra.mxu1 %v8096_v46  ;;  %9073 = vmatpush1.bf16.msra.mxu0 %v8098_v60  ;;  %v8211_v46 = vld [vmem:[#allocation5 + $0x1f78] sm:$0xff]  ;;  %v8208_v60 = vld [vmem:[#allocation5 + $0x1f60] sm:$0xff] }
 0xe48   : > { %8992 = vmatprep.subr.bf16.mxu1 %v8113_v36  ;;  %9074 = vmatprep.subr.bf16.mxu0 %v8115_v16  ;;  %v8210_v36 = vld [vmem:[#allocation5 + $0x1f70] sm:$0xff]  ;;  %v8225_v16 = vld [vmem:[#allocation5 + $0x1fe8] sm:$0xff] }
 0xe4b   : > { %8993 = vmatpush1.bf16.msra.mxu1 %v8112_v58  ;;  %9075 = vmatpush1.bf16.msra.mxu0 %v8114_v32  ;;  %v8227_v58 = vld [vmem:[#allocation5 + $0x1ff8] sm:$0xff]  ;;  %v8224_v32 = vld [vmem:[#allocation5 + $0x1fe0] sm:$0xff] }
 0xe4c   : > { %8994 = vmatprep.subr.bf16.mxu1 %v8129_v47  ;;  %9076 = vmatprep.subr.bf16.mxu0 %v8131_v56  ;;  %v8226_v47 = vld [vmem:[#allocation5 + $0x1ff0] sm:$0xff]  ;;  %v8241_v56 = vld [vmem:[#allocation5 + $0x2068] sm:$0xff] }
 0xe4f   : > { %8995 = vmatpush1.bf16.msra.mxu1 %v8128_v41  ;;  %9077 = vmatpush1.bf16.msra.mxu0 %v8130_v21  ;;  %v8243_v41 = vld [vmem:[#allocation5 + $0x2078] sm:$0xff]  ;;  %v8240_v21 = vld [vmem:[#allocation5 + $0x2060] sm:$0xff] }
 0xe50   : > { %8996 = vmatprep.subr.bf16.mxu1 %v8145_v9  ;;  %9078 = vmatprep.subr.bf16.mxu0 %v8147_v11  ;;  %v8242_v9 = vld [vmem:[#allocation5 + $0x2070] sm:$0xff]  ;;  %v8257_v11 = vld [vmem:[#allocation5 + $0x20e8] sm:$0xff] }
 0xe53   : > { %8997 = vmatpush1.bf16.msra.mxu1 %v8144_v19  ;;  %9079 = vmatpush1.bf16.msra.mxu0 %v8146_v14  ;;  %v8259_v19 = vld [vmem:[#allocation5 + $0x20f8] sm:$0xff]  ;;  %v8256_v14 = vld [vmem:[#allocation5 + $0x20e0] sm:$0xff] }
 0xe54   : > { %8998 = vmatprep.subr.bf16.mxu1 %v8161_v5  ;;  %9080 = vmatprep.subr.bf16.mxu0 %v8163_v29  ;;  %v8258_v5 = vld [vmem:[#allocation5 + $0x20f0] sm:$0xff]  ;;  %v8273_v29 = vld [vmem:[#allocation5 + $0x2168] sm:$0xff] }
 0xe57   : > { %8999 = vmatpush1.bf16.msra.mxu1 %v8160_v18  ;;  %9081 = vmatpush1.bf16.msra.mxu0 %v8162_v37  ;;  %v8275_v18 = vld [vmem:[#allocation5 + $0x2178] sm:$0xff]  ;;  %v8272_v37 = vld [vmem:[#allocation5 + $0x2160] sm:$0xff] }
 0xe58   : > { %9000 = vmatprep.subr.bf16.mxu1 %v8177_v50  ;;  %9082 = vmatprep.subr.bf16.mxu0 %v8179_v0  ;;  %v8274_v50 = vld [vmem:[#allocation5 + $0x2170] sm:$0xff]  ;;  %v8289_v0 = vld [vmem:[#allocation5 + $0x21e8] sm:$0xff] }
 0xe5b   : > { %9001 = vmatpush1.bf16.msra.mxu1 %v8176_v39  ;;  %9083 = vmatpush1.bf16.msra.mxu0 %v8178_v20  ;;  %v8288_v39 = vld [vmem:[#allocation5 + $0x21e0] sm:$0xff]  ;;  %v8290_v20 = vld [vmem:[#allocation5 + $0x21f0] sm:$0xff] }
 0xe5c   : > { %9002 = vmatprep.subr.bf16.mxu1 %v8193_v42  ;;  %9084 = vmatprep.subr.bf16.mxu0 %v8195_v49  ;;  %v8305_v42 = vld [vmem:[#allocation5 + $0x2268] sm:$0xff]  ;;  %v8307_v49 = vld [vmem:[#allocation5 + $0x2278] sm:$0xff] }
 0xe5f   : > { %9003 = vmatpush1.bf16.msra.mxu1 %v8192_v10  ;;  %9085 = vmatpush1.bf16.msra.mxu0 %v8194_v17  ;;  %v8306_v10 = vld [vmem:[#allocation5 + $0x2270] sm:$0xff]  ;;  %v8321_v17 = vld [vmem:[#allocation5 + $0x22e8] sm:$0xff] }
 0xe60   : > { %9004 = vmatprep.subr.bf16.mxu1 %v8209_v6  ;;  %9086 = vmatprep.subr.bf16.mxu0 %v8211_v46  ;;  %v8323_v6 = vld [vmem:[#allocation5 + $0x22f8] sm:$0xff]  ;;  %v6168_v46 = vld [vmem:[%s12627_s14 + $0x10] sm:$0xff] }
 0xe63   : > { %9005 = vmatpush1.bf16.msra.mxu1 %v8208_v60  ;;  %9087 = vmatpush1.bf16.msra.mxu0 %v8210_v36  ;;  %v6169_v60 = vld [vmem:[%s12627_s14 + $0x18] sm:$0xff]  ;;  %v8320_v36 = vld [vmem:[#allocation5 + $0x22e0] sm:$0xff] }
 0xe64   : > { %9006 = vmatprep.subr.bf16.mxu1 %v8225_v16  ;;  %9088 = vmatprep.subr.bf16.mxu0 %v8227_v58  ;;  %v8322_v16 = vld [vmem:[#allocation5 + $0x22f0] sm:$0xff] }
 0xe67   : > { %9007 = vmatpush1.bf16.msra.mxu1 %v8224_v32  ;;  %9089 = vmatpush1.bf16.msra.mxu0 %v8226_v47  ;;  %v8337_v47 = vld [vmem:[#allocation5 + $0x2368] sm:$0xff] }
 0xe68   : > { %9017 = vmatprep.subr.bf16.mxu1 %v8241_v56  ;;  %9099 = vmatprep.subr.bf16.mxu0 %v8243_v41  ;;  %v8339_v56 = vld [vmem:[#allocation5 + $0x2378] sm:$0xff]  ;;  %v7966_v41 = vadd.f32 %v7950_v24, %v6168_v46  ;;  %v8353_v24 = vld [vmem:[#allocation5 + $0x23e8] sm:$0xff] }
 0xe69   : > { %v8403_v46 = vld [vmem:[#allocation5 + $0x2578] sm:$0xff] }
 0xe6a   : > { %9009 = vmatmul.mubr.bf16.vlgmr.msra.gmra.mrb[76].mxu1 %v12718_v38  ;;  %9091 = vmatmul.mubr.bf16.vlgmr.msra.gmra.mrb[48].mxu0 %v12718_v38  ;;  %v8291_v38 = vld [vmem:[#allocation5 + $0x21f8] sm:$0xff] }
 0xe6b   : > { %9018 = vmatpush1.bf16.msra.mxu1 %v8240_v21  ;;  %9100 = vmatpush1.bf16.msra.mxu0 %v8242_v9 }
 0xe6c   : > { %9019 = vmatprep.subr.bf16.mxu1 %v8257_v11  ;;  %9101 = vmatprep.subr.bf16.mxu0 %v8259_v19  ;;  %v7967_v11 = vadd.f32 %v7951_v30, %v6169_v60  ;;  %v8369_v30 = vld [vmem:[#allocation5 + $0x2468] sm:$0xff]  ;;  %v8400_v60 = vld [vmem:[#allocation5 + $0x2560] sm:$0xff] }
 0xe6d   : > { %9049 = vmatprep.mubr.bf16.mxu1 %v12726_v15  ;;  %9131 = vmatprep.mubr.bf16.mxu0 %v12726_v15  ;;  %v8304_v15 = vld [vmem:[#allocation5 + $0x2260] sm:$0xff] }
 0xe6f   : > { %9020 = vmatpush1.bf16.msra.mxu1 %v8256_v14  ;;  %9102 = vmatpush1.bf16.msra.mxu0 %v8258_v5 }
 0xe70   : > { %9021 = vmatprep.subr.bf16.mxu1 %v8273_v29  ;;  %9103 = vmatprep.subr.bf16.mxu0 %v8275_v18 }
 0xe73   : > { %9022 = vmatpush1.bf16.msra.mxu1 %v8272_v37  ;;  %9104 = vmatpush1.bf16.msra.mxu0 %v8274_v50  ;;  %v8336_v50 = vld [vmem:[#allocation5 + $0x2360] sm:$0xff] }
 0xe74   : > { %9023 = vmatprep.subr.bf16.mxu1 %v8289_v0  ;;  %9105 = vmatprep.subr.bf16.mxu0 %v8291_v38  ;;  %v8338_v0 = vld [vmem:[#allocation5 + $0x2370] sm:$0xff]  ;;  %v8355_v38 = vld [vmem:[#allocation5 + $0x23f8] sm:$0xff] }
 0xe77   : > { %9024 = vmatpush1.bf16.msra.mxu1 %v8288_v39  ;;  %9106 = vmatpush1.bf16.msra.mxu0 %v8290_v20  ;;  %v8371_v39 = vld [vmem:[#allocation5 + $0x2478] sm:$0xff]  ;;  %v8368_v20 = vld [vmem:[#allocation5 + $0x2460] sm:$0xff] }
 0xe78   : > { %9025 = vmatprep.subr.bf16.mxu1 %v8305_v42  ;;  %9107 = vmatprep.subr.bf16.mxu0 %v8307_v49  ;;  %v8370_v42 = vld [vmem:[#allocation5 + $0x2470] sm:$0xff]  ;;  %v8385_v49 = vld [vmem:[#allocation5 + $0x24e8] sm:$0xff] }
 0xe7b   : > { %9026 = vmatpush1.bf16.msra.mxu1 %v8304_v15  ;;  %9108 = vmatpush1.bf16.msra.mxu0 %v8306_v10  ;;  %v8387_v15 = vld [vmem:[#allocation5 + $0x24f8] sm:$0xff]  ;;  %v8384_v10 = vld [vmem:[#allocation5 + $0x24e0] sm:$0xff] }
 0xe7c   : > { %9027 = vmatprep.subr.bf16.mxu1 %v8321_v17  ;;  %9109 = vmatprep.subr.bf16.mxu0 %v8323_v6  ;;  %v8386_v17 = vld [vmem:[#allocation5 + $0x24f0] sm:$0xff]  ;;  %v8401_v6 = vld [vmem:[#allocation5 + $0x2568] sm:$0xff] }
 0xe7d   : > { %v8723_v58 = vpop.f32.mrb[68].mxu1  ;;  %v8805_v32 = vpop.f32.mrb[40].mxu0 }
 0xe7e   : > { %v8725_v21 = vpop.f32.mrb[69].mxu1  ;;  %v8807_v9 = vpop.f32.mrb[41].mxu0 }
 0xe7f   : > { %v9158_v19 = vcombine.low %v8723_v58, %v8725_v21  ;;  %v9159_v14 = vcombine.low %v8805_v32, %v8807_v9  ;;  %v8727_v5 = vpop.f32.mrb[70].mxu1  ;;  %v8809_v29 = vpop.f32.mrb[42].mxu0  ;;  %9028 = vmatpush1.bf16.msra.mxu1 %v8320_v36  ;;  %9110 = vmatpush1.bf16.msra.mxu0 %v8322_v16  ;;  %v8402_v36 = vld [vmem:[#allocation5 + $0x2570] sm:$0xff]  ;;  %v8417_v16 = vld [vmem:[#allocation5 + $0x25e8] sm:$0xff]  ;;  %v8419_v58 = vld [vmem:[#allocation5 + $0x25f8] sm:$0xff] }
 0xe80   : > { %v8728_v18 = vpop.f32.mrb[71].mxu1  ;;  %v8810_v37 = vpop.f32.mrb[43].mxu0  ;;  %9029 = vmatprep.subr.bf16.mxu1 %v8337_v47  ;;  %9111 = vmatprep.subr.bf16.mxu0 %v8339_v56  ;;  %v8416_v32 = vld [vmem:[#allocation5 + $0x25e0] sm:$0xff]  ;;  %v8418_v47 = vld [vmem:[#allocation5 + $0x25f0] sm:$0xff]  ;;  %v8433_v56 = vld [vmem:[#allocation5 + $0x2668] sm:$0xff] }
 0xe81   : > { %v13203_v8 = vadd.f32 %v9158_v19, %v7966_v41  ;;  %v13205_v61 = vadd.f32 %v9159_v14, %v7967_v11  ;;  %v8435_v41 = vld [vmem:[#allocation5 + $0x2678] sm:$0xff]  ;;  %v8432_v21 = vld [vmem:[#allocation5 + $0x2660] sm:$0xff]  ;;  %v8434_v9 = vld [vmem:[#allocation5 + $0x2670] sm:$0xff] }
 0xe82   : > { %v8449_v11 = vld [vmem:[#allocation5 + $0x26e8] sm:$0xff]  ;;  %v8451_v19 = vld [vmem:[#allocation5 + $0x26f8] sm:$0xff]  ;;  %v8448_v14 = vld [vmem:[#allocation5 + $0x26e0] sm:$0xff] }
 0xe83   : > { %9030 = vmatpush1.bf16.msra.mxu1 %v8336_v50  ;;  %9112 = vmatpush1.bf16.msra.mxu0 %v8338_v0  ;;  %v8450_v5 = vld [vmem:[#allocation5 + $0x26f0] sm:$0xff]  ;;  %v8465_v29 = vld [vmem:[#allocation5 + $0x2768] sm:$0xff]  ;;  %v8467_v18 = vld [vmem:[#allocation5 + $0x2778] sm:$0xff] }
 0xe84   : > { %9031 = vmatprep.subr.bf16.mxu1 %v8353_v24  ;;  %9113 = vmatprep.subr.bf16.mxu0 %v8355_v38  ;;  %v8464_v37 = vld [vmem:[#allocation5 + $0x2760] sm:$0xff]  ;;  %v8466_v50 = vld [vmem:[#allocation5 + $0x2770] sm:$0xff]  ;;  %v8481_v0 = vld [vmem:[#allocation5 + $0x27e8] sm:$0xff] }
 0xe85   : > { %v8483_v24 = vld [vmem:[#allocation5 + $0x27f8] sm:$0xff]  ;;  %v8480_v38 = vld [vmem:[#allocation5 + $0x27e0] sm:$0xff] }
 0xe87   : > { %9032 = vmatpush1.bf16.msra.mxu1 %v8352_v63  ;;  %9114 = vmatpush1.bf16.msra.mxu0 %v8354_v12  ;;  %v8482_v63 = vld [vmem:[#allocation5 + $0x27f0] sm:$0xff]  ;;  %v10322_v12 = vmul.f32 -1.442695, %v13183_v28 }
 0xe88   : > { %9033 = vmatprep.subr.bf16.mxu1 %v8369_v30  ;;  %9115 = vmatprep.subr.bf16.mxu0 %v8371_v39  ;;  %v10323_v30 = vmul.f32 -1.442695, %v13185_v45  ;;  %v10324_v39 = vmul.f32 -1.442695, %v13203_v8 }
 0xe89   : > { %11675 = vpow2.f32 %v10322_v12 }
 0xe8a   : > { %11677 = vpow2.f32 %v10323_v30 }
 0xe8b   : > { %9034 = vmatpush1.bf16.msra.mxu1 %v8368_v20  ;;  %9116 = vmatpush1.bf16.msra.mxu0 %v8370_v42  ;;  %v10325_v20 = vmul.f32 -1.442695, %v13205_v61  ;;  %11679 = vpow2.f32 %v10324_v39 }
 0xe8c   : > { %9035 = vmatprep.subr.bf16.mxu1 %v8385_v49  ;;  %9117 = vmatprep.subr.bf16.mxu0 %v8387_v15 }
 0xe8d   : > { %11681 = vpow2.f32 %v10325_v20 }
 0xe8f   : > { %9036 = vmatpush1.bf16.msra.mxu1 %v8384_v10  ;;  %9118 = vmatpush1.bf16.msra.mxu0 %v8386_v17  ;;  %v6170_v17 = vld [vmem:[%s12627_s14 + $0x20] sm:$0xff] }
 0xe90   : > { %9037 = vmatprep.subr.bf16.mxu1 %v8401_v6  ;;  %9119 = vmatprep.subr.bf16.mxu0 %v8403_v46  ;;  %v6171_v46 = vld [vmem:[%s12627_s14 + $0x28] sm:$0xff]  ;;  %v7968_v45 = vadd.f32 %v7952_v52, %v6170_v17 }
 0xe93   : > { %9038 = vmatpush1.bf16.msra.mxu1 %v8400_v60  ;;  %9120 = vmatpush1.bf16.msra.mxu0 %v8402_v36  ;;  %v11676_v42 = vpop.eup %11675 }
 0xe94   : > { %9039 = vmatprep.subr.bf16.mxu1 %v8417_v16  ;;  %9121 = vmatprep.subr.bf16.mxu0 %v8419_v58  ;;  %v11678_v49 = vpop.eup %11677  ;;  %v9186_v6 = vadd.f32 1.0, %v11676_v42  ;;  %v7969_v58 = vadd.f32 %v7953_v40, %v6171_v46 }
 0xe95   : > { %v11680_v15 = vpop.eup %11679 }
 0xe96   : > { %v9198_v60 = vadd.f32 1.0, %v11680_v15  ;;  %11683 = vrcp.f32 %v9186_v6 }
 0xe97   : > { %9040 = vmatpush1.bf16.msra.mxu1 %v8416_v32  ;;  %9122 = vmatpush1.bf16.msra.mxu0 %v8418_v47  ;;  %v11682_v10 = vpop.eup %11681 }
 0xe98   : > { %9041 = vmatprep.subr.bf16.mxu1 %v8433_v56  ;;  %9123 = vmatprep.subr.bf16.mxu0 %v8435_v41  ;;  %v9199_v8 = vadd.f32 1.0, %v11682_v10 }
 0xe9b   : > { %9042 = vmatpush1.bf16.msra.mxu1 %v8432_v21  ;;  %9124 = vmatpush1.bf16.msra.mxu0 %v8434_v9 }
 0xe9c   : > { %9043 = vmatprep.subr.bf16.mxu1 %v8449_v11  ;;  %9125 = vmatprep.subr.bf16.mxu0 %v8451_v19 }
 0xe9f   : > { %9044 = vmatpush1.bf16.msra.mxu1 %v8448_v14  ;;  %9126 = vmatpush1.bf16.msra.mxu0 %v8450_v5 }
 0xea0   : > { %9045 = vmatprep.subr.bf16.mxu1 %v8465_v29  ;;  %9127 = vmatprep.subr.bf16.mxu0 %v8467_v18  ;;  %v11684_v51 = vpop.eup %11683 }
 0xea3   : > { %9046 = vmatpush1.bf16.msra.mxu1 %v8464_v37  ;;  %9128 = vmatpush1.bf16.msra.mxu0 %v8466_v50 }
 0xea4   : > { %9047 = vmatprep.subr.bf16.mxu1 %v8481_v0  ;;  %9129 = vmatprep.subr.bf16.mxu0 %v8483_v24  ;;  %v6172_v0 = vld [vmem:[%s12627_s14 + $0x30] sm:$0xff]  ;;  %v6173_v24 = vld [vmem:[%s12627_s14 + $0x38] sm:$0xff] }
 0xea5   : > { %v7970_v39 = vadd.f32 %v7954_v57, %v6172_v0 }
 0xea7   : > { %9048 = vmatpush1.bf16.msra.mxu1 %v8480_v38  ;;  %9130 = vmatpush1.bf16.msra.mxu0 %v8482_v63 }
 0xeaa   : > { %9050 = vmatmul.mubr.bf16.vlgmr.msra.gmra.mrb[76].mxu1 %v12732_v54  ;;  %9132 = vmatmul.mubr.bf16.vlgmr.msra.gmra.mrb[48].mxu0 %v12732_v54  ;;  %v9187_v54 = vadd.f32 1.0, %v11678_v49 }
 0xeac   : > { %11685 = vrcp.f32 %v9187_v54 }
 0xead   : > { %11687 = vrcp.f32 %v9198_v60 }
 0xeae   : > { %11689 = vrcp.f32 %v9199_v8 }
 0xeb6   : > { %v11686_v34 = vpop.eup %11685 }
 0xeb7   : > { %v11688_v22 = vpop.eup %11687 }
 0xeb8   : > { %v11690_v13 = vpop.eup %11689  ;;  %v9218_v14 = vmul.f32 %v11688_v22, %v12710_v43  ;;  %v7971_v43 = vadd.f32 %v7955_v4, %v6173_v24 }
 0xeb9   : > { %v9219_v29 = vmul.f32 %v11690_v13, %v12712_v35 }
 0xefd   : > { %v8887_v28 = vpop.f32.mrb[72].mxu1  ;;  %v8969_v36 = vpop.f32.mrb[44].mxu0 }
 0xefe   : > { %v8889_v61 = vpop.f32.mrb[73].mxu1  ;;  %v8971_v16 = vpop.f32.mrb[45].mxu0 }
 0xeff   : > { %v9160_v32 = vcombine.low %v8887_v28, %v8889_v61  ;;  %v9161_v47 = vcombine.low %v8969_v36, %v8971_v16  ;;  %v8891_v56 = vpop.f32.mrb[74].mxu1  ;;  %v8973_v41 = vpop.f32.mrb[46].mxu0 }
 0xf00   : > { %v8892_v21 = vpop.f32.mrb[75].mxu1  ;;  %v8974_v9 = vpop.f32.mrb[47].mxu0 }
 0xf01   : > { %v9176_v11 = vadd.f32 %v9160_v32, %v7968_v45  ;;  %v9177_v19 = vadd.f32 %v9161_v47, %v7969_v58 }
 0xf03   : > { %11691 = vtanh.f32 %v9176_v11 }
 0xf04   : > { %11693 = vtanh.f32 %v9177_v19 }
 0xf0d   : > { %v11692_v52 = vpop.eup %11691 }
 0xf0e   : > { %v11694_v40 = vpop.eup %11693  ;;  %v9220_v5 = vmul.f32 %v11692_v52, %v11684_v51 }
 0xf0f   : > { %v9221_v18 = vmul.f32 %v11694_v40, %v11686_v34 }
 0xf10   : > { %v9222_v37 = vadd.f32 %v9220_v5, %v9218_v14 }
 0xf11   : > { %v9223_v50 = vadd.f32 %v9221_v18, %v9219_v29 }
 0xf7d   : > { %v9051_v38 = vpop.f32.mrb[76].mxu1  ;;  %v9133_v63 = vpop.f32.mrb[48].mxu0 }
 0xf7e   : > { %v9053_v12 = vpop.f32.mrb[77].mxu1  ;;  %v9135_v30 = vpop.f32.mrb[49].mxu0 }
 0xf7f   : > { %v9162_v20 = vcombine.low %v9051_v38, %v9053_v12  ;;  %v9163_v42 = vcombine.low %v9133_v63, %v9135_v30  ;;  %v9055_v35 = vpop.f32.mrb[78].mxu1  ;;  %v9137_v49 = vpop.f32.mrb[50].mxu0 }
 0xf80   : > { %v9056_v15 = vpop.f32.mrb[79].mxu1  ;;  %v9138_v10 = vpop.f32.mrb[51].mxu0 }
 0xf81   : > { %v9178_v17 = vadd.f32 %v9162_v20, %v7970_v39  ;;  %v9179_v6 = vadd.f32 %v9163_v42, %v7971_v43 }
 0xf83   : > { %v10326_v46 = vmul.f32 -1.442695, %v9178_v17  ;;  %v10327_v54 = vmul.f32 -1.442695, %v9179_v6 }
 0xf85   : > { %11695 = vpow2.f32 %v10326_v46 }
 0xf86   : > { %11697 = vpow2.f32 %v10327_v54 }
 0xf87   : > { %11699 = vtanh.f32 %v9222_v37 }
 0xf88   : > { %11701 = vtanh.f32 %v9223_v50 }
 0xf8f   : > { %v11696_v60 = vpop.eup %11695 }
 0xf90   : > { %v11698_v7 = vpop.eup %11697  ;;  %v9212_v1 = vadd.f32 1.0, %v11696_v60 }
 0xf91   : > { %v9213_v31 = vadd.f32 1.0, %v11698_v7  ;;  %v11700_v26 = vpop.eup %11699 }
 0xf92   : > { %11703 = vrcp.f32 %v9212_v1  ;;  %v11702_v57 = vpop.eup %11701 }
 0xf93   : > { %11705 = vrcp.f32 %v9213_v31 }
 0xf9c   : > { %v11704_v4 = vpop.eup %11703 }
 0xf9d   : > { %v11706_v28 = vpop.eup %11705  ;;  %v9226_v36 = vmul.f32 %v11704_v4, %v11700_v26 }
 0xf9e   : > { %v13231_v45 = vmul.f32 %v11706_v28, %v11702_v57 }
 0xf9f   : > { %12138 = dma.done.wait (%p10705_p10), [#allocation7 + $0x1], 4096 }
 0xfa0   : > { %12140 = vsyncadd (%p10705_p10), [#allocation7 + $0x1], 4294963200  ;;  %v9238_v8 = vcombine.high %v9226_v36, %v9226_v36  ;;  %11708 = vset.pattern.permute.xlu1 %v12200_v33  ;;  %9452 = vst [vmem:[#allocation2] sm:$0xff] %v9226_v36  ;;  %11707 = vset.pattern.permute.xlu0 %v12200_v33  ;;  %v9254_v16 = vld [vmem:[#allocation6 + $0x40] sm:$0xff]  ;;  %v9255_v32 = vld [vmem:[#allocation6 + $0x48] sm:$0xff]  ;;  %v9242_v19 = vpack.c.bf16 %v9226_v36, %v9226_v36  ;;  %s9365_s14 = sld [smem:[#allocation9 + %s13436_s18]] }
 0xfa1   : > { %9453 = vst [vmem:[#allocation2 + $0x8] sm:$0xff] %v13231_v45  ;;  %9454 = vst [vmem:[#allocation3] sm:$0xff] %v9222_v37  ;;  %9392 = vperm.xlu1 %11708, %v12912_v2   ;;  %9386 = vperm.xlu0 %11707, %v12904_v23   ;;  %v9246_v58 = vld [vmem:[#allocation6] sm:$0xff]  ;;  %v9247_v47 = vld [vmem:[#allocation6 + $0x8] sm:$0xff]  ;;  %v9244_v12 = vpack.c.bf16 %v13231_v45, %v13231_v45  ;;  %s10332_s2 = sshll.u32 %s13436_s18, 6  ;;  %s13439_s6 = sld [smem:[#allocation59_spill]] }
 0xfa2   : > { %9455 = vst [vmem:[#allocation3 + $0x8] sm:$0xff] %v9223_v50  ;;  %v9243_v61 = vpack.c.bf16 %v9238_v8, %v9238_v8  ;;  %10339 = vmatprep.subr.bf16.mxu1 %v9254_v16  ;;  %v9256_v33 = vld [vmem:[#allocation6 + $0x50] sm:$0xff]  ;;  %v9249_v2 = vld [vmem:[#allocation6 + $0x18] sm:$0xff]  ;;  %v9259_v56 = vld [vmem:[#allocation6 + $0x68] sm:$0xff]  ;;  %s9492_s11 = sshll.u32 %s12652_s29, 4  ;;  %s9462_s17 = scalar_lea.sflag [#allocation28], %s12624_s19  ;;  %s9493_s11 = int_to_ptr.vmem [resolvable:$true] %s9492_s11 }
 0xfa3   : > { %10340 = vmatpush3.bf16.msra.mxu1 %v9246_v58  ;;  %v9248_v23 = vld [vmem:[#allocation6 + $0x10] sm:$0xff]  ;;  %v9261_v21 = vld [vmem:[#allocation6 + $0x78] sm:$0xff]  ;;  %v9270_v11 = vld [vmem:[#allocation6 + $0xc0] sm:$0xff]  ;;  %s12023_s1 = scalar_lea.vmem %s9493_s11, 64  ;;  %p13440_p1 = scmp.ne.s32.totalorder %s13415_s13, 0 }
 0xfa4   : > { %9317 = vmatprep.mubr.bf16.mxu1 %v9243_v61  ;;  %10341 = vmatprep.subr.bf16.mxu1 %v9255_v32  ;;  %v9260_v41 = vld [vmem:[#allocation6 + $0x70] sm:$0xff]  ;;  %v9253_v9 = vld [vmem:[#allocation6 + $0x38] sm:$0xff]  ;;  %v9262_v34 = vld [vmem:[#allocation6 + $0x80] sm:$0xff]  ;;  %p12024_p6 = scmp.ne.s32.totalorder %s9493_s11, %s12023_s1  ;;  %s12201_s28 = smov [#allocation27]  }
 0xfa5   : > { %9395 = vperm.xlu1 %11708, %v12915_v3   ;;  %9389 = vperm.xlu0 %11707, %v12907_v44   ;;  %v9257_v44 = vld [vmem:[#allocation6 + $0x58] sm:$0xff]  ;;  %v9258_v3 = vld [vmem:[#allocation6 + $0x60] sm:$0xff]  ;;  %v9271_v22 = vld [vmem:[#allocation6 + $0xc8] sm:$0xff]  ;;  %s12027_s16 = sshll.u32 %s12201_s28, 4  ;;  %s12028_s16 = int_to_ptr.vmem [resolvable:$false] %s12027_s16 }
 0xfa6   : > { %v9263_v13 = vld [vmem:[#allocation6 + $0x88] sm:$0xff]  ;;  %v9272_v52 = vld [vmem:[#allocation6 + $0xd0] sm:$0xff]  ;;  %v9273_v14 = vld [vmem:[#allocation6 + $0xd8] sm:$0xff]  ;;  %v9371_v26 = vstv %s9365_s14  ;;  %p12025_p2 = pnand %p12024_p6, %p13440_p1  ;;  %s12029_s10 = scalar_lea.vmem %s12028_s16, 128 }
 0xfa7   : > { %10342 = vmatpush3.bf16.msra.mxu1 %v9247_v47  ;;  %v9264_v40 = vld [vmem:[#allocation6 + $0x90] sm:$0xff]  ;;  %v9265_v5 = vld [vmem:[#allocation6 + $0x98] sm:$0xff]  ;;  %v9274_v29 = vld [vmem:[#allocation6 + $0xe0] sm:$0xff]  ;;  %vm13267_vm6 = vcmp.lt.s32.totalorder %v12737_v59, %v9371_v26  ;;  %s13283_s7 = scalar_lea.hbm %s13439_s6, %s10332_s2  ;;  %p12030_p3 = scmp.lt.s32.totalorder %s9493_s11, %s12028_s16 }
 0xfa8   : > { %10343 = vmatprep.subr.bf16.mxu1 %v9256_v33  ;;  %v9266_v18 = vld [vmem:[#allocation6 + $0xa0] sm:$0xff]  ;;  %v9275_v37 = vld [vmem:[#allocation6 + $0xe8] sm:$0xff]  ;;  %v9276_v0 = vld [vmem:[#allocation6 + $0xf0] sm:$0xff]  ;;  %p12026_p8 = pneg %p12025_p2  ;;  %p12031_p0 = scmp.lt.s32.totalorder %s12029_s10, %s12023_s1 }
 0xfa9   : > { %9401 = vperm.xlu1 %11708, %v12892_v27   ;;  %9398 = vperm.xlu0 %11707, %v12890_v48   ;;  %v9250_v27 = vld [vmem:[#allocation6 + $0x20] sm:$0xff]  ;;  %v9251_v48 = vld [vmem:[#allocation6 + $0x28] sm:$0xff]  ;;  %v9268_v24 = vld [vmem:[#allocation6 + $0xb0] sm:$0xff] }
 0xfaa   : > { %v9267_v50 = vld [vmem:[#allocation6 + $0xa8] sm:$0xff]  ;;  %v9277_v38 = vld [vmem:[#allocation6 + $0xf8] sm:$0xff]  ;;  %p12032_p4 = por %p12031_p0, %p12030_p3 }
 0xfab   : > { %10344 = vmatpush3.bf16.msra.mxu1 %v9248_v23  ;;  %v9269_v63 = vld [vmem:[#allocation6 + $0xb8] sm:$0xff] }
 0xfac   : > { %10345 = vmatprep.subr.bf16.mxu1 %v9257_v44  ;;  %p12033_p5 = pnand %p12032_p4, %p12026_p8 }
 0xfad   : > { %9407 = vperm.xlu1 %11708, %v12899_v55   ;;  %9404 = vperm.xlu0 %11707, %v12897_v53   ;;  %v9252_v55 = vld [vmem:[#allocation6 + $0x30] sm:$0xff]  ;;  %v9239_v53 = vcombine.high %v13231_v45, %v13231_v45 }
 0xfaf   : > { %10346 = vmatpush3.bf16.msra.mxu1 %v9249_v2  ;;  %v9245_v51 = vpack.c.bf16 %v9239_v53, %v9239_v53 }
 0xfb0   : > { %10347 = vmatprep.subr.bf16.mxu1 %v9258_v3 }
 0xfb3   : > { %10348 = vmatpush3.bf16.msra.mxu1 %v9250_v27 }
 0xfb4   : > { %10349 = vmatprep.subr.bf16.mxu1 %v9259_v56 }
 0xfb7   : > { %10350 = vmatpush3.bf16.msra.mxu1 %v9251_v48 }
 0xfb8   : > { %10351 = vmatprep.subr.bf16.mxu1 %v9260_v41 }
 0xfbb   : > { %10352 = vmatpush3.bf16.msra.mxu1 %v9252_v55 }
 0xfbc   : > { %10353 = vmatprep.subr.bf16.mxu1 %v9261_v21 }
 0xfbf   : > { %10354 = vmatpush3.bf16.msra.mxu1 %v9253_v9 }
 0xfc0   : > { %10361 = vmatprep.subr.bf16.mxu1 %v9270_v11 }
 0xfc2   : > { %9318 = vmatmul.mubr.bf16.vlgmr.msra.gmra.mrb[80].mxu1 %v9242_v19 }
 0xfc3   : > { %10362 = vmatpush3.bf16.msra.mxu1 %v9262_v34  ;;  %9357 = vmatprep.mubr.bf16.mxu1 %v9245_v51 }
 0xfc4   : > { %10363 = vmatprep.subr.bf16.mxu1 %v9271_v22 }
 0xfc7   : > { %10364 = vmatpush3.bf16.msra.mxu1 %v9263_v13 }
 0xfc8   : > { %10365 = vmatprep.subr.bf16.mxu1 %v9272_v52 }
 0xfcb   : > { %10366 = vmatpush3.bf16.msra.mxu1 %v9264_v40 }
 0xfcc   : > { %10367 = vmatprep.subr.bf16.mxu1 %v9273_v14 }
 0xfcf   : > { %10368 = vmatpush3.bf16.msra.mxu1 %v9265_v5 }
 0xfd0   : > { %10369 = vmatprep.subr.bf16.mxu1 %v9274_v29 }
 0xfd3   : > { %10370 = vmatpush3.bf16.msra.mxu1 %v9266_v18 }
 0xfd4   : > { %10371 = vmatprep.subr.bf16.mxu1 %v9275_v37 }
 0xfd7   : > { %10372 = vmatpush3.bf16.msra.mxu1 %v9267_v50 }
 0xfd8   : > { %10373 = vmatprep.subr.bf16.mxu1 %v9276_v0 }
 0xfdb   : > { %10374 = vmatpush3.bf16.msra.mxu1 %v9268_v24 }
 0xfdc   : > { %10375 = vmatprep.subr.bf16.mxu1 %v9277_v38 }
 0xfdf   : > { %10376 = vmatpush3.bf16.msra.mxu1 %v9269_v63 }
 0xfe2   : > { %9358 = vmatmul.mubr.bf16.vlgmr.msra.gmra.mrb[84].mxu1 %v9244_v12 }
0x1020   : > { %v9393_v30 = vpop.permute.xlu1 %9392  ;;  %v9387_v39 = vpop.permute.xlu0 %9386 }
0x1021   : > { %v9421_v43 = vrot.slane %v9393_v30, %v12833_v25  ;;  %v9412_v20 = vrot.slane %v9387_v39, %v12833_v25 }
0x1024   : > { %v9396_v42 = vpop.permute.xlu1 %9395  ;;  %v9390_v49 = vpop.permute.xlu0 %9389 }
0x1025   : > { %v9425_v35 = vrot.slane %v9396_v42, %v12830_v62  ;;  %v9416_v15 = vrot.slane %v9390_v49, %v12830_v62 }
0x1027   : > { %v9426_v10 = vsel %vm3699_vm0, %v9425_v35, %v9421_v43  ;;  %v9417_v17 = vsel %vm3699_vm0, %v9416_v15, %v9412_v20 }
0x1028   : > { %v9402_v6 = vpop.permute.xlu1 %9401  ;;  %v9399_v54 = vpop.permute.xlu0 %9398  ;;  %v9445_v7 = vsel %vm3728_vm1, %v9426_v10, %v9417_v17 }
0x1029   : > { %v9434_v46 = vrot.slane %v9402_v6, %v12830_v62  ;;  %v9430_v60 = vrot.slane %v9399_v54, %v12833_v25 }
0x102b   : > { %v9435_v1 = vsel %vm3699_vm0, %v9434_v46, %v9430_v60 }
0x102c   : > { %v9408_v31 = vpop.permute.xlu1 %9407  ;;  %v9405_v4 = vpop.permute.xlu0 %9404  ;;  %v9446_v28 = vsel %vm3730_vm2, %v9435_v1, %v9445_v7 }
0x102d   : > { %v9443_v57 = vrot.slane %v9408_v31, %v12830_v62  ;;  %v9439_v36 = vrot.slane %v9405_v4, %v12833_v25 }
0x102f   : > { %v9444_v8 = vsel %vm3699_vm0, %v9443_v57, %v9439_v36 }
0x1030   : > { %v9447_v61 = vsel %vm3732_vm3, %v9444_v8, %v9446_v28 }
0x1031   : > { %v9449_v16 = vsel %vm13267_vm6, %v9447_v61, 0.0 }
0x1032   : > { %v9450_v62 = vsel %vm3969_vm5, %v9449_v16, 0.0 }
0x1033   : > { %9451 = vst [vmem:[%s12652_s29] sm:$0xf] %v9450_v62 }
0x1034   : > { %12036 = shalt.err (!%p12033_p5)
}
0x1035   : > { %s12037_s29 = scalar_lea.hbm %s13283_s7, 64  ;;  %s12041_s14 = scalar_lea.hbm %s13439_s6, 320 }
0x1036   : > { %p12038_p7 = scmp.ne.s32.totalorder %s13283_s7, %s12037_s29  ;;  %p12042_p13 = scmp.lt.u32.totalorder %s13283_s7, %s13439_s6 }
0x1037   : > { %p12043_p11 = scmp.lt.u32.totalorder %s12041_s14, %s12037_s29  ;;  %p12045_p6 = scmp.lt.u32.totalorder %s12037_s29, %s13283_s7 }
0x1038   : > { %p12039_p9 = pnand %p12038_p7, %p13440_p1 }
0x1039   : > { %p12044_p10 = por %p12043_p11, %p12042_p13 }
0x103a   : > { %p12040_p12 = pneg %p12039_p9 }
0x103b   : > { %p12046_p2 = por %p12045_p6, %p12044_p10 }
0x103d   : > { %p12047_p8 = pnand %p12046_p2, %p12040_p12 }
0x103f   : > { %12050 = shalt.err (!%p12047_p8)
}
0x1040   : > { %10644 = dma.vmem_to_hbm [thread:$0]  (%p13440_p1), %s9493_s11, 64, %s13283_s7, %s9462_s17   ;;  %v10329_v33 = vld [vmem:[#allocation25] ss:$0 sm:$0xff] }
0x1041   : > { %s9477_s1 = sshll.u32 %s12650_s26, 4  ;;  %s13441_s11 = sld [smem:[#allocation58_spill]]  ;;  %s13312_s1 = int_to_ptr.vmem [resolvable:$true] %s9477_s1 }
0x1042   : > { %s9457_s16 = scalar_lea.sflag [#allocation12], %s12624_s19  ;;  %s12051_s10 = scalar_lea.vmem %s13312_s1, 64 }
0x1043   : > { %p12052_p3 = scmp.ne.s32.totalorder %s13312_s1, %s12051_s10  ;;  %s12202_s18 = smov [#allocation26]  }
0x1044   : > { %s12055_s29 = sshll.u32 %s12202_s18, 4  ;;  %s12056_s29 = int_to_ptr.vmem [resolvable:$false] %s12055_s29 }
0x1045   : > { %p12053_p0 = pnand %p12052_p3, %p13440_p1  ;;  %p12058_p5 = scmp.lt.s32.totalorder %s13312_s1, %s12056_s29 }
0x1047   : > { %s13310_s17 = scalar_lea.hbm %s13441_s11, %s10332_s2  ;;  %p12054_p4 = pneg %p12053_p0 }
0x1048   : > { %s12057_s2 = scalar_lea.vmem %s12056_s29, 128 }
0x1049   : > { %p12059_p7 = scmp.lt.s32.totalorder %s12057_s2, %s12051_s10 }
0x104b   : > { %p12060_p9 = por %p12059_p7, %p12058_p5 }
0x104d   : > { %p12061_p12 = pnand %p12060_p9, %p12054_p4 }
0x1095   : > { %v10355_v59 = vpop.f32.mrb[80].mxu1 }
0x1096   : > { %v10356_v25 = vpop.f32.mrb[81].mxu1 }
0x1097   : > { %v10357_v58 = vadd.f32 %v10356_v25, %v10355_v59  ;;  %v10358_v32 = vpop.f32.mrb[82].mxu1 }
0x1098   : > { %v10359_v47 = vpop.f32.mrb[83].mxu1 }
0x1099   : > { %v9320_v2 = vadd.f32 %v10357_v58, %v10329_v33 }
0x10b5   : > { %v10377_v23 = vpop.f32.mrb[84].mxu1 }
0x10b6   : > { %v10378_v44 = vpop.f32.mrb[85].mxu1 }
0x10b7   : > { %v10379_v3 = vadd.f32 %v10378_v44, %v10377_v23  ;;  %v10380_v27 = vpop.f32.mrb[86].mxu1 }
0x10b8   : > { %v10381_v56 = vpop.f32.mrb[87].mxu1 }
0x10b9   : > { %v9360_v48 = vadd.f32 %v10379_v3, %v9320_v2 }
0x10bb   : > { %v9375_v41 = vsel %vm13267_vm6, %v9360_v48, 0.0 }
0x10bc   : > { %9376 = vst [vmem:[%s12650_s26] sm:$0xf] %v9375_v41 }
0x10bd   : > { %12064 = shalt.err (!%p12061_p12)
}
0x10be   : > { %s12065_s19 = scalar_lea.hbm %s13310_s17, 64  ;;  %s12069_s20 = scalar_lea.hbm %s13441_s11, 320 }
0x10bf   : > { %p12066_p13 = scmp.ne.s32.totalorder %s13310_s17, %s12065_s19  ;;  %p12070_p6 = scmp.lt.u32.totalorder %s13310_s17, %s13441_s11 }
0x10c0   : > { %p12071_p2 = scmp.lt.u32.totalorder %s12069_s20, %s12065_s19  ;;  %p12073_p3 = scmp.lt.u32.totalorder %s12065_s19, %s13310_s17 }
0x10c1   : > { %p12067_p11 = pnand %p12066_p13, %p13440_p1 }
0x10c2   : > { %p12072_p8 = por %p12071_p2, %p12070_p6 }
0x10c3   : > { %p12068_p10 = pneg %p12067_p11 }
0x10c4   : > { %p12074_p0 = por %p12073_p3, %p12072_p8 }
0x10c6   : > { %p12075_p4 = pnand %p12074_p0, %p12068_p10 }
0x10c8   : > { %12078 = shalt.err (!%p12075_p4)
}
0x10c9   : > { %10643 = dma.vmem_to_hbm [thread:$0]  (%p13440_p1), %s13312_s1, 64, %s13310_s17, %s9457_s16  }
0x10ca PF: > { %p10707_p5 = scmp.ge.s32.totalorder %s12171_s27, 2  ;;  %s9504_s5 = sand.u32 1, %s12151_s23  }
0x10cb   : > { %p13442_p7 = scmp.ne.s32.totalorder %s13416_s22, 0  ;;  %s9505_s28 = scalar_lea.sflag [#allocation12], %s9504_s5 }
0x10cd   : > { %p10680_p9 = pnand %p10707_p5, %p13442_p7 }
0x10cf   : > { %12142 = dma.done.wait (!%p10680_p9), %s9505_s28, 64  }
0x10d0   : > { %12144 = vsyncadd (!%p10680_p9), %s9505_s28, 4294967232  ;;  %s9514_s7 = scalar_lea.sflag [#allocation28], %s9504_s5 }
0x10d1   : > { %12146 = dma.done.wait (!%p10680_p9), %s9514_s7, 64  }
0x10d2   : > { %12148 = vsyncadd (!%p10680_p9), %s9514_s7, 4294967232  ;;  %s40_s27 = sadd.s32 1, %s12171_s27   ;;  %s13443_s23 = smov %s12155_s24 }
0x10d3   : > { %p37_p12 = scmp.ge.s32.totalorder %s40_s27, 7   ;;  %s13444_s24 = smov %s12159_s25 }
0x10d4   : > { %s13445_s25 = smov %s12565_s15  ;;  %s13446_s26 = smov %s12167_s0 }
0x10d5   : > { %s13447_s0 = smov %s13449_s21  ;;  %39 = sbr.rel (!%p37_p12) target bundleno = 29 (0x1d), region = 186 }
0x10dc   :  { %9519 = vsyncpa [#allocation11], 1 }
0x10dd   :  { %9521 = vsyncpa [#allocation11 + $0x1], 1 }
0x10de   :  { %9522 = vsyncpa [#allocation14], 1 }
0x10df   :  { %9523 = vsyncpa [#allocation18], 1 }
0x10e0   :  { %9524 = vsyncpa [#allocation21], 1 }
0x10e1   :  { %9525 = vsyncpa [#allocation24], 1 }
0x10e2   :  { %9526 = vsyncpa [#allocation12], 1 }
0x10e3   :  { %9528 = vsyncpa [#allocation12 + $0x1], 1 }
0x10e4   :  { %9529 = vsyncpa [#allocation28], 1 }
0x10e5   :  { %9531 = vsyncpa [#allocation28 + $0x1], 1 }
0x10e6   :  { %9532 = vsyncmov [#allocation7] }
0x10e9   :  { %s9533_s13 = vpop.sfrf %9532 }
0x10ea   :  { %p10336_p1 = scmp.ne.s32.totalorder %s9533_s13, 0 }
0x10ec   :  { %9537 = shalt.err (%p10336_p1)  }
0x10ed   :  { %9539 = vsyncmov [#allocation7 + $0x1] }
0x10f0   :  { %s9540_s15 = vpop.sfrf %9539 }
0x10f1   :  { %p10337_p13 = scmp.ne.s32.totalorder %s9540_s15, 0 }
0x10f3   :  { %9544 = shalt.err (%p10337_p13)  }

</bundles_post_ra>
